<compile_context>
chip_gen: v5e
topology: v5e:2x2
jax: 0.10.0
libtpu: 0.0.40
codegen_flags: <defaults>
</compile_context>

<pallas_src>
import jax
import jax.numpy as jnp
from jax import lax
from jax.experimental import pallas as pl
from jax.experimental.pallas import tpu as pltpu


def _round_up(n, m):
    return ((n + m - 1) // m) * m


# ----------------------------------------------------------------------------
# Kernel
# ----------------------------------------------------------------------------
def _lstm_fc_kernel(x_ref,                     # (TC, Bp, D)   chunk of input
                    wih1_ref,                  # (D, 4Hp)
                    whh1_ref,                  # (Hp, 4Hp)
                    b1_ref,                    # (1, 4Hp)
                    w2_ref,                    # (2Hp, 4Hp)  = [[wih2],[whh2]]
                    b2_ref,                    # (1, 4Hp)
                    wfc_ref,                   # (Hp, 1)
                    bfc_ref,                   # (1, 1)
                    out_ref,                   # (Bp, 1)
                    z1_ref,                    # scratch (TC, Bp, 4Hp)
                    h1_ref, c1_ref, h2_ref, c2_ref):   # scratch (Bp, Hp) each
    TC, Bp, D = x_ref.shape
    Hp = whh1_ref.shape[0]
    chunk = pl.program_id(0)

    @pl.when(chunk == 0)
    def _init():
        h1_ref[...] = jnp.zeros_like(h1_ref)
        c1_ref[...] = jnp.zeros_like(c1_ref)
        h2_ref[...] = jnp.zeros_like(h2_ref)
        c2_ref[...] = jnp.zeros_like(c2_ref)

    # ---- Hoisted layer-1 input projection: ONE GEMM for the whole chunk ----
    x_flat = x_ref[...].reshape(TC * Bp, D)
    z1_all = jnp.dot(x_flat, wih1_ref[...], preferred_element_type=jnp.float32)
    z1_ref[...] = (z1_all + b1_ref[...]).reshape(TC, Bp, 4 * Hp)

    whh1 = whh1_ref[...]
    w2 = w2_ref[...]
    b2 = b2_ref[...]

    def gates(z, c):
        # gate order (i, f, g, o) — matches torch.nn.LSTM. Hp is a multiple of
        # 128, so every slice is lane-aligned (full-vreg VPU/EUP ops).
        i = jax.nn.sigmoid(z[:, 0 * Hp:1 * Hp])
        f = jax.nn.sigmoid(z[:, 1 * Hp:2 * Hp])
        g = jnp.tanh(z[:, 2 * Hp:3 * Hp])
        o = jax.nn.sigmoid(z[:, 3 * Hp:4 * Hp])
        c_new = f * c + i * g
        return o * jnp.tanh(c_new), c_new

    def step(t, carry):
        h1, c1, h2, c2 = carry
        # Layer 1: only the recurrent dot is on the serial path.
        za = z1_ref[t] + jnp.dot(h1, whh1, preferred_element_type=jnp.float32)
        h1, c1 = gates(za, c1)
        # Layer 2: single fused dot on [h1 | h2] with pre-stacked weights.
        zb = jnp.dot(jnp.concatenate([h1, h2], axis=1), w2,
                     preferred_element_type=jnp.float32) + b2
        h2, c2 = gates(zb, c2)
        return h1, c1, h2, c2

    carry = (h1_ref[...], c1_ref[...], h2_ref[...], c2_ref[...])
    h1, c1, h2, c2 = lax.fori_loop(0, TC, step, carry, unroll=True)
    h1_ref[...], c1_ref[...], h2_ref[...], c2_ref[...] = h1, c1, h2, c2

    @pl.when(chunk == pl.num_programs(0) - 1)
    def _final():
        # fc(hidden -> 1) on the last timestep's top-layer hidden state.
        out_ref[...] = (jnp.dot(h2, wfc_ref[...],
                                preferred_element_type=jnp.float32)
                        + bfc_ref[...]).astype(out_ref.dtype)


# ----------------------------------------------------------------------------
# Parameter packing (pad H -> multiple of 128, stack layer-2 weights)
# ----------------------------------------------------------------------------
def _pad_gates(w, H, Hp):
    """(in_dim, 4H) -> (in_dim, 4Hp): each (i,f,g,o) block zero-padded to Hp."""
    blocks = [w[:, k * H:(k + 1) * H] for k in range(4)]
    return jnp.concatenate([jnp.pad(b, ((0, 0), (0, Hp - H))) for b in blocks],
                           axis=1)


def _pack_params(params, Hp):
    H = params["whh1"].shape[0]
    wih1 = _pad_gates(params["wih1"], H, Hp)                               # (D, 4Hp)
    whh1 = jnp.pad(_pad_gates(params["whh1"], H, Hp), ((0, Hp - H), (0, 0)))
    b1 = _pad_gates(params["b1"], H, Hp)                                   # (1, 4Hp)
    wih2 = jnp.pad(_pad_gates(params["wih2"], H, Hp), ((0, Hp - H), (0, 0)))
    whh2 = jnp.pad(_pad_gates(params["whh2"], H, Hp), ((0, Hp - H), (0, 0)))
    w2 = jnp.concatenate([wih2, whh2], axis=0)                             # (2Hp, 4Hp)
    b2 = _pad_gates(params["b2"], H, Hp)
    wfc = jnp.pad(params["wfc"], ((0, Hp - H), (0, 0)))                    # (Hp, 1)
    bfc = params["bfc"]
    return wih1, whh1, b1, w2, b2, wfc, bfc


# ----------------------------------------------------------------------------
# Wrapper
# ----------------------------------------------------------------------------
def lstm_model_forward(x, params, *, t_chunk=8):
    """x: (B, T, D) float32 -> (B, 1) float32."""
    B, T, D = x.shape
    H = params["whh1"].shape[0]
    Hp = _round_up(H, 128)        # lane-aligned gate width
    Bp = _round_up(B, 8)          # sublane-aligned batch

    # Pick the largest chunk <= t_chunk that divides T.
    tc = max(1, min(t_chunk, T))
    while T % tc:
        tc -= 1
    n_chunks = T // tc

    wih1, whh1, b1, w2, b2, wfc, bfc = _pack_params(params, Hp)

    # (B, T, D) -> (T, Bp, D): timestep-major so each grid step streams one
    # contiguous (tc, Bp, D) slab; padded batch rows are sliced off at the end.
    x_tbd = jnp.transpose(jnp.pad(x, ((0, Bp - B), (0, 0), (0, 0))), (1, 0, 2))

    out = pl.pallas_call(
        _lstm_fc_kernel,
        out_shape=jax.ShapeDtypeStruct((Bp, 1), jnp.float32),
        grid_spec=pltpu.PrefetchScalarGridSpec(
            num_scalar_prefetch=0,
            grid=(n_chunks,),
            in_specs=[
                pl.BlockSpec((tc, Bp, D), lambda c: (c, 0, 0)),     # x chunk
                pl.BlockSpec((D, 4 * Hp), lambda c: (0, 0)),        # wih1
                pl.BlockSpec((Hp, 4 * Hp), lambda c: (0, 0)),       # whh1
                pl.BlockSpec((1, 4 * Hp), lambda c: (0, 0)),        # b1
                pl.BlockSpec((2 * Hp, 4 * Hp), lambda c: (0, 0)),   # w2 stacked
                pl.BlockSpec((1, 4 * Hp), lambda c: (0, 0)),        # b2
                pl.BlockSpec((Hp, 1), lambda c: (0, 0)),            # wfc
                pl.BlockSpec((1, 1), lambda c: (0, 0)),             # bfc
            ],
            out_specs=pl.BlockSpec((Bp, 1), lambda c: (0, 0)),
            scratch_shapes=[
                pltpu.VMEM((tc, Bp, 4 * Hp), jnp.float32),          # z1 chunk
                pltpu.VMEM((Bp, Hp), jnp.float32),                  # h1
                pltpu.VMEM((Bp, Hp), jnp.float32),                  # c1
                pltpu.VMEM((Bp, Hp), jnp.float32),                  # h2
                pltpu.VMEM((Bp, Hp), jnp.float32),                  # c2
            ],
        ),
        compiler_params=pltpu.CompilerParams(
            dimension_semantics=("arbitrary",)),   # serial recurrence over T
    )(x_tbd, wih1, whh1, b1, w2, b2, wfc, bfc)
    return out[:B]


# ----------------------------------------------------------------------------
# Init + pure-JAX reference
# ----------------------------------------------------------------------------
def init_params(key, input_size, hidden_size):
    """Deterministic init mimicking PyTorch's U(-1/sqrt(H), 1/sqrt(H))."""
    H = hidden_size
    k = 1.0 / jnp.sqrt(jnp.float32(H))
    keys = jax.random.split(key, 10)

    def u(kk, shape):
        return jax.random.uniform(kk, shape, jnp.float32, -k, k)

    # PyTorch stores weight_ih_l{l}: (4H, in), weight_hh_l{l}: (4H, H).
    # Pre-transpose so every matmul is (B, in) @ (in, 4H).
    wih1 = u(keys[0], (4 * H, input_size)).T
    whh1 = u(keys[1], (4 * H, H)).T
    b1 = (u(keys[2], (4 * H,)) + u(keys[3], (4 * H,))).reshape(1, 4 * H)

    wih2 = u(keys[4], (4 * H, H)).T
    whh2 = u(keys[5], (4 * H, H)).T
    b2 = (u(keys[6], (4 * H,)) + u(keys[7], (4 * H,))).reshape(1, 4 * H)

    wfc = jax.random.uniform(keys[8], (1, H), jnp.float32, -k, k).T
    bfc = jax.random.uniform(keys[9], (1,), jnp.float32, -k, k).reshape(1, 1)

    return dict(wih1=wih1, whh1=whh1, b1=b1,
                wih2=wih2, whh2=whh2, b2=b2,
                wfc=wfc, bfc=bfc)


def lstm_model_ref(x, params):
    """Pure-JAX reference (unpadded) for correctness checking."""
    B, T, D = x.shape
    H = params["whh1"].shape[0]

    def cell(x_t, h, c, wih, whh, b):
        z = x_t @ wih + h @ whh + b
        i = jax.nn.sigmoid(z[:, 0 * H:1 * H])
        f = jax.nn.sigmoid(z[:, 1 * H:2 * H])
        g = jnp.tanh(z[:, 2 * H:3 * H])
        o = jax.nn.sigmoid(z[:, 3 * H:4 * H])
        c = f * c + i * g
        return jnp.tanh(c) * o, c

    h1 = c1 = h2 = c2 = jnp.zeros((B, H), jnp.float32)
    for t in range(T):
        h1, c1 = cell(x[:, t, :], h1, c1, params["wih1"], params["whh1"], params["b1"])
        h2, c2 = cell(h1, h2, c2, params["wih2"], params["whh2"], params["b2"])
    return h2 @ params["wfc"] + params["bfc"]


if __name__ == "__main__":
    # Small shapes consistent with the module (input_size/seq scaled down).
    B, T, D, H = 4, 16, 32, 64   # T=16 with t_chunk=8 exercises the 2-chunk grid

    key = jax.random.PRNGKey(0)
    k_x, k_p = jax.random.split(key)
    x = jax.random.normal(k_x, (B, T, D), jnp.float32)
    params = init_params(k_p, input_size=D, hidden_size=H)

    out = lstm_model_forward(x, params, t_chunk=8)
    out = jax.block_until_ready(out)

    ref = lstm_model_ref(x, params)
    assert out.shape == (B, 1)
    assert jnp.allclose(out, ref, atol=1e-4, rtol=1e-4), (out, ref)
    print("KERNEL_OK")
</pallas_src>

<mosaic_0001>
module attributes {stable_mosaic.version = 11 : i64} {
  func.func @_lstm_fc_kernel(%arg0: i32, %arg1: memref<8x8x32xf32, #tpu.memory_space<vmem>>, %arg2: memref<32x512xf32, #tpu.memory_space<vmem>>, %arg3: memref<128x512xf32, #tpu.memory_space<vmem>>, %arg4: memref<1x512xf32, #tpu.memory_space<vmem>>, %arg5: memref<256x512xf32, #tpu.memory_space<vmem>>, %arg6: memref<1x512xf32, #tpu.memory_space<vmem>>, %arg7: memref<128x1xf32, #tpu.memory_space<vmem>>, %arg8: memref<1x1xf32, #tpu.memory_space<vmem>>, %arg9: memref<8x1xf32, #tpu.memory_space<vmem>>, %arg10: memref<8x8x512xf32, #tpu.memory_space<vmem>>, %arg11: memref<8x128xf32, #tpu.memory_space<vmem>>, %arg12: memref<8x128xf32, #tpu.memory_space<vmem>>, %arg13: memref<8x128xf32, #tpu.memory_space<vmem>>, %arg14: memref<8x128xf32, #tpu.memory_space<vmem>>) attributes {dimension_semantics = [#tpu.dimension_semantics<arbitrary>], iteration_bounds = array<i64: 2>, scalar_prefetch = 0 : i64, scratch_operands = 5 : i64, tpu.core_type = #tpu.core_type<tc>, window_params = [{transform_indices = @transform_0, window_bounds = array<i64: 8, 8, 32>}, {pipeline_mode = #tpu.pipeline_mode<synchronous>, transform_indices = @transform_1, window_bounds = array<i64: 32, 512>}, {pipeline_mode = #tpu.pipeline_mode<synchronous>, transform_indices = @transform_2, window_bounds = array<i64: 128, 512>}, {pipeline_mode = #tpu.pipeline_mode<synchronous>, transform_indices = @transform_3, window_bounds = array<i64: 1, 512>}, {pipeline_mode = #tpu.pipeline_mode<synchronous>, transform_indices = @transform_4, window_bounds = array<i64: 256, 512>}, {pipeline_mode = #tpu.pipeline_mode<synchronous>, transform_indices = @transform_5, window_bounds = array<i64: 1, 512>}, {pipeline_mode = #tpu.pipeline_mode<synchronous>, transform_indices = @transform_6, window_bounds = array<i64: 128, 1>}, {pipeline_mode = #tpu.pipeline_mode<synchronous>, transform_indices = @transform_7, window_bounds = array<i64: 1, 1>}, {pipeline_mode = #tpu.pipeline_mode<synchronous>, transform_indices = @transform_8, window_bounds = array<i64: 8, 1>}]} {
    %c0_i32 = arith.constant 0 : i32
    %0 = arith.cmpi eq, %arg0, %c0_i32 : i32
    %1 = arith.extui %0 : i1 to i32
    %c0_i32_0 = arith.constant 0 : i32
    %2 = arith.cmpi ne, %1, %c0_i32_0 : i32
    scf.if %2 {
      %cst_115 = arith.constant 0.000000e+00 : f32
      %498 = vector.broadcast %cst_115 : f32 to vector<8x128xf32>
      %c0_116 = arith.constant 0 : index
      %c0_117 = arith.constant 0 : index
      %499 = vector.load %arg11[%c0_116, %c0_117] : memref<8x128xf32, #tpu.memory_space<vmem>>, vector<8x128xf32>
      tpu.vector_store %arg11[%c0_116, %c0_117], %498 {strides = array<i32>} : memref<8x128xf32, #tpu.memory_space<vmem>>, vector<8x128xf32>,
      %cst_118 = arith.constant 0.000000e+00 : f32
      %500 = vector.broadcast %cst_118 : f32 to vector<8x128xf32>
      %c0_119 = arith.constant 0 : index
      %c0_120 = arith.constant 0 : index
      %501 = vector.load %arg12[%c0_119, %c0_120] : memref<8x128xf32, #tpu.memory_space<vmem>>, vector<8x128xf32>
      tpu.vector_store %arg12[%c0_119, %c0_120], %500 {strides = array<i32>} : memref<8x128xf32, #tpu.memory_space<vmem>>, vector<8x128xf32>,
      %cst_121 = arith.constant 0.000000e+00 : f32
      %502 = vector.broadcast %cst_121 : f32 to vector<8x128xf32>
      %c0_122 = arith.constant 0 : index
      %c0_123 = arith.constant 0 : index
      %503 = vector.load %arg13[%c0_122, %c0_123] : memref<8x128xf32, #tpu.memory_space<vmem>>, vector<8x128xf32>
      tpu.vector_store %arg13[%c0_122, %c0_123], %502 {strides = array<i32>} : memref<8x128xf32, #tpu.memory_space<vmem>>, vector<8x128xf32>,
      %cst_124 = arith.constant 0.000000e+00 : f32
      %504 = vector.broadcast %cst_124 : f32 to vector<8x128xf32>
      %c0_125 = arith.constant 0 : index
      %c0_126 = arith.constant 0 : index
      %505 = vector.load %arg14[%c0_125, %c0_126] : memref<8x128xf32, #tpu.memory_space<vmem>>, vector<8x128xf32>
      tpu.vector_store %arg14[%c0_125, %c0_126], %504 {strides = array<i32>} : memref<8x128xf32, #tpu.memory_space<vmem>>, vector<8x128xf32>,
    } else {
    }
    %c0 = arith.constant 0 : index
    %c0_1 = arith.constant 0 : index
    %c0_2 = arith.constant 0 : index
    %3 = vector.load %arg1[%c0, %c0_1, %c0_2] : memref<8x8x32xf32, #tpu.memory_space<vmem>>, vector<8x8x32xf32>
    %4 = vector.shape_cast %3 : vector<8x8x32xf32> to vector<64x32xf32>
    %c0_3 = arith.constant 0 : index
    %c0_4 = arith.constant 0 : index
    %5 = vector.load %arg2[%c0_3, %c0_4] : memref<32x512xf32, #tpu.memory_space<vmem>>, vector<32x512xf32>
    %cst = arith.constant dense<0.000000e+00> : vector<64x512xf32>
    %6 = tpu.matmul %4, %5, %cst {dimension_numbers = #tpu.dot_dimension_numbers<[1], [0], [0], [1], [0, 0, 1, 1], [], []>} : vector<64x32xf32>, vector<32x512xf32>, vector<64x512xf32> -> vector<64x512xf32>
    %c0_5 = arith.constant 0 : index
    %c0_6 = arith.constant 0 : index
    %7 = vector.load %arg4[%c0_5, %c0_6] : memref<1x512xf32, #tpu.memory_space<vmem>>, vector<1x512xf32>
    %8 = vector.broadcast %7 : vector<1x512xf32> to vector<64x512xf32>
    %9 = arith.addf %6, %8 : vector<64x512xf32>
    %10 = vector.shape_cast %9 : vector<64x512xf32> to vector<8x8x512xf32>
    %c0_7 = arith.constant 0 : index
    %c0_8 = arith.constant 0 : index
    %c0_9 = arith.constant 0 : index
    %11 = vector.load %arg10[%c0_7, %c0_8, %c0_9] : memref<8x8x512xf32, #tpu.memory_space<vmem>>, vector<8x8x512xf32>
    tpu.vector_store %arg10[%c0_7, %c0_8, %c0_9], %10 {strides = array<i32>} : memref<8x8x512xf32, #tpu.memory_space<vmem>>, vector<8x8x512xf32>,
    %c0_10 = arith.constant 0 : index
    %c0_11 = arith.constant 0 : index
    %12 = vector.load %arg3[%c0_10, %c0_11] : memref<128x512xf32, #tpu.memory_space<vmem>>, vector<128x512xf32>
    %c0_12 = arith.constant 0 : index
    %c0_13 = arith.constant 0 : index
    %13 = vector.load %arg5[%c0_12, %c0_13] : memref<256x512xf32, #tpu.memory_space<vmem>>, vector<256x512xf32>
    %c0_14 = arith.constant 0 : index
    %c0_15 = arith.constant 0 : index
    %14 = vector.load %arg6[%c0_14, %c0_15] : memref<1x512xf32, #tpu.memory_space<vmem>>, vector<1x512xf32>
    %c0_16 = arith.constant 0 : index
    %c0_17 = arith.constant 0 : index
    %15 = vector.load %arg11[%c0_16, %c0_17] : memref<8x128xf32, #tpu.memory_space<vmem>>, vector<8x128xf32>
    %c0_18 = arith.constant 0 : index
    %c0_19 = arith.constant 0 : index
    %16 = vector.load %arg12[%c0_18, %c0_19] : memref<8x128xf32, #tpu.memory_space<vmem>>, vector<8x128xf32>
    %c0_20 = arith.constant 0 : index
    %c0_21 = arith.constant 0 : index
    %17 = vector.load %arg13[%c0_20, %c0_21] : memref<8x128xf32, #tpu.memory_space<vmem>>, vector<8x128xf32>
    %c0_22 = arith.constant 0 : index
    %c0_23 = arith.constant 0 : index
    %18 = vector.load %arg14[%c0_22, %c0_23] : memref<8x128xf32, #tpu.memory_space<vmem>>, vector<8x128xf32>
    %c0_i32_24 = arith.constant 0 : i32
    %19 = arith.index_cast %c0_i32_24 : i32 to index
    %c0_25 = arith.constant 0 : index
    %c0_26 = arith.constant 0 : index
    %20 = vector.load %arg10[%19, %c0_25, %c0_26] : memref<8x8x512xf32, #tpu.memory_space<vmem>>, vector<1x8x512xf32>
    %21 = vector.shape_cast %20 : vector<1x8x512xf32> to vector<8x512xf32>
    %cst_27 = arith.constant dense<0.000000e+00> : vector<8x512xf32>
    %22 = tpu.matmul %15, %12, %cst_27 {dimension_numbers = #tpu.dot_dimension_numbers<[1], [0], [0], [1], [0, 0, 1, 1], [], []>} : vector<8x128xf32>, vector<128x512xf32>, vector<8x512xf32> -> vector<8x512xf32>
    %23 = arith.addf %21, %22 : vector<8x512xf32>
    %24 = vector.extract_strided_slice %23 {offsets = [0, 0], sizes = [8, 128], strides = [1, 1]} : vector<8x512xf32> to vector<8x128xf32>
    %25 = arith.negf %24 : vector<8x128xf32>
    %26 = math.exp %25 : vector<8x128xf32>
    %cst_28 = arith.constant 1.000000e+00 : f32
    %27 = vector.broadcast %cst_28 : f32 to vector<8x128xf32>
    %28 = arith.addf %27, %26 : vector<8x128xf32>
    %29 = arith.divf %27, %28 : vector<8x128xf32>
    %30 = vector.extract_strided_slice %23 {offsets = [0, 128], sizes = [8, 128], strides = [1, 1]} : vector<8x512xf32> to vector<8x128xf32>
    %31 = arith.negf %30 : vector<8x128xf32>
    %32 = math.exp %31 : vector<8x128xf32>
    %cst_29 = arith.constant 1.000000e+00 : f32
    %33 = vector.broadcast %cst_29 : f32 to vector<8x128xf32>
    %34 = arith.addf %33, %32 : vector<8x128xf32>
    %35 = arith.divf %33, %34 : vector<8x128xf32>
    %36 = vector.extract_strided_slice %23 {offsets = [0, 256], sizes = [8, 128], strides = [1, 1]} : vector<8x512xf32> to vector<8x128xf32>
    %37 = math.tanh %36 : vector<8x128xf32>
    %38 = vector.extract_strided_slice %23 {offsets = [0, 384], sizes = [8, 128], strides = [1, 1]} : vector<8x512xf32> to vector<8x128xf32>
    %39 = arith.negf %38 : vector<8x128xf32>
    %40 = math.exp %39 : vector<8x128xf32>
    %cst_30 = arith.constant 1.000000e+00 : f32
    %41 = vector.broadcast %cst_30 : f32 to vector<8x128xf32>
    %42 = arith.addf %41, %40 : vector<8x128xf32>
    %43 = arith.divf %41, %42 : vector<8x128xf32>
    %44 = arith.mulf %35, %16 : vector<8x128xf32>
    %45 = arith.mulf %29, %37 : vector<8x128xf32>
    %46 = arith.addf %44, %45 : vector<8x128xf32>
    %47 = math.tanh %46 : vector<8x128xf32>
    %48 = arith.mulf %43, %47 : vector<8x128xf32>
    %49 = tpu.concatenate %48, %17 in 1 : vector<8x128xf32>, vector<8x128xf32> -> vector<8x256xf32>
    %cst_31 = arith.constant dense<0.000000e+00> : vector<8x512xf32>
    %50 = tpu.matmul %49, %13, %cst_31 {dimension_numbers = #tpu.dot_dimension_numbers<[1], [0], [0], [1], [0, 0, 1, 1], [], []>} : vector<8x256xf32>, vector<256x512xf32>, vector<8x512xf32> -> vector<8x512xf32>
    %51 = vector.broadcast %14 : vector<1x512xf32> to vector<8x512xf32>
    %52 = arith.addf %50, %51 : vector<8x512xf32>
    %53 = vector.extract_strided_slice %52 {offsets = [0, 0], sizes = [8, 128], strides = [1, 1]} : vector<8x512xf32> to vector<8x128xf32>
    %54 = arith.negf %53 : vector<8x128xf32>
    %55 = math.exp %54 : vector<8x128xf32>
    %cst_32 = arith.constant 1.000000e+00 : f32
    %56 = vector.broadcast %cst_32 : f32 to vector<8x128xf32>
    %57 = arith.addf %56, %55 : vector<8x128xf32>
    %58 = arith.divf %56, %57 : vector<8x128xf32>
    %59 = vector.extract_strided_slice %52 {offsets = [0, 128], sizes = [8, 128], strides = [1, 1]} : vector<8x512xf32> to vector<8x128xf32>
    %60 = arith.negf %59 : vector<8x128xf32>
    %61 = math.exp %60 : vector<8x128xf32>
    %cst_33 = arith.constant 1.000000e+00 : f32
    %62 = vector.broadcast %cst_33 : f32 to vector<8x128xf32>
    %63 = arith.addf %62, %61 : vector<8x128xf32>
    %64 = arith.divf %62, %63 : vector<8x128xf32>
    %65 = vector.extract_strided_slice %52 {offsets = [0, 256], sizes = [8, 128], strides = [1, 1]} : vector<8x512xf32> to vector<8x128xf32>
    %66 = math.tanh %65 : vector<8x128xf32>
    %67 = vector.extract_strided_slice %52 {offsets = [0, 384], sizes = [8, 128], strides = [1, 1]} : vector<8x512xf32> to vector<8x128xf32>
    %68 = arith.negf %67 : vector<8x128xf32>
    %69 = math.exp %68 : vector<8x128xf32>
    %cst_34 = arith.constant 1.000000e+00 : f32
    %70 = vector.broadcast %cst_34 : f32 to vector<8x128xf32>
    %71 = arith.addf %70, %69 : vector<8x128xf32>
    %72 = arith.divf %70, %71 : vector<8x128xf32>
    %73 = arith.mulf %64, %18 : vector<8x128xf32>
    %74 = arith.mulf %58, %66 : vector<8x128xf32>
    %75 = arith.addf %73, %74 : vector<8x128xf32>
    %76 = math.tanh %75 : vector<8x128xf32>
    %77 = arith.mulf %72, %76 : vector<8x128xf32>
    %c1_i32 = arith.constant 1 : i32
    %78 = arith.index_cast %c1_i32 : i32 to index
    %c0_35 = arith.constant 0 : index
    %c0_36 = arith.constant 0 : index
    %79 = vector.load %arg10[%78, %c0_35, %c0_36] : memref<8x8x512xf32, #tpu.memory_space<vmem>>, vector<1x8x512xf32>
    %80 = vector.shape_cast %79 : vector<1x8x512xf32> to vector<8x512xf32>
    %cst_37 = arith.constant dense<0.000000e+00> : vector<8x512xf32>
    %81 = tpu.matmul %48, %12, %cst_37 {dimension_numbers = #tpu.dot_dimension_numbers<[1], [0], [0], [1], [0, 0, 1, 1], [], []>} : vector<8x128xf32>, vector<128x512xf32>, vector<8x512xf32> -> vector<8x512xf32>
    %82 = arith.addf %80, %81 : vector<8x512xf32>
    %83 = vector.extract_strided_slice %82 {offsets = [0, 0], sizes = [8, 128], strides = [1, 1]} : vector<8x512xf32> to vector<8x128xf32>
    %84 = arith.negf %83 : vector<8x128xf32>
    %85 = math.exp %84 : vector<8x128xf32>
    %cst_38 = arith.constant 1.000000e+00 : f32
    %86 = vector.broadcast %cst_38 : f32 to vector<8x128xf32>
    %87 = arith.addf %86, %85 : vector<8x128xf32>
    %88 = arith.divf %86, %87 : vector<8x128xf32>
    %89 = vector.extract_strided_slice %82 {offsets = [0, 128], sizes = [8, 128], strides = [1, 1]} : vector<8x512xf32> to vector<8x128xf32>
    %90 = arith.negf %89 : vector<8x128xf32>
    %91 = math.exp %90 : vector<8x128xf32>
    %cst_39 = arith.constant 1.000000e+00 : f32
    %92 = vector.broadcast %cst_39 : f32 to vector<8x128xf32>
    %93 = arith.addf %92, %91 : vector<8x128xf32>
    %94 = arith.divf %92, %93 : vector<8x128xf32>
    %95 = vector.extract_strided_slice %82 {offsets = [0, 256], sizes = [8, 128], strides = [1, 1]} : vector<8x512xf32> to vector<8x128xf32>
    %96 = math.tanh %95 : vector<8x128xf32>
    %97 = vector.extract_strided_slice %82 {offsets = [0, 384], sizes = [8, 128], strides = [1, 1]} : vector<8x512xf32> to vector<8x128xf32>
    %98 = arith.negf %97 : vector<8x128xf32>
    %99 = math.exp %98 : vector<8x128xf32>
    %cst_40 = arith.constant 1.000000e+00 : f32
    %100 = vector.broadcast %cst_40 : f32 to vector<8x128xf32>
    %101 = arith.addf %100, %99 : vector<8x128xf32>
    %102 = arith.divf %100, %101 : vector<8x128xf32>
    %103 = arith.mulf %94, %46 : vector<8x128xf32>
    %104 = arith.mulf %88, %96 : vector<8x128xf32>
    %105 = arith.addf %103, %104 : vector<8x128xf32>
    %106 = math.tanh %105 : vector<8x128xf32>
    %107 = arith.mulf %102, %106 : vector<8x128xf32>
    %108 = tpu.concatenate %107, %77 in 1 : vector<8x128xf32>, vector<8x128xf32> -> vector<8x256xf32>
    %cst_41 = arith.constant dense<0.000000e+00> : vector<8x512xf32>
    %109 = tpu.matmul %108, %13, %cst_41 {dimension_numbers = #tpu.dot_dimension_numbers<[1], [0], [0], [1], [0, 0, 1, 1], [], []>} : vector<8x256xf32>, vector<256x512xf32>, vector<8x512xf32> -> vector<8x512xf32>
    %110 = vector.broadcast %14 : vector<1x512xf32> to vector<8x512xf32>
    %111 = arith.addf %109, %110 : vector<8x512xf32>
    %112 = vector.extract_strided_slice %111 {offsets = [0, 0], sizes = [8, 128], strides = [1, 1]} : vector<8x512xf32> to vector<8x128xf32>
    %113 = arith.negf %112 : vector<8x128xf32>
    %114 = math.exp %113 : vector<8x128xf32>
    %cst_42 = arith.constant 1.000000e+00 : f32
    %115 = vector.broadcast %cst_42 : f32 to vector<8x128xf32>
    %116 = arith.addf %115, %114 : vector<8x128xf32>
    %117 = arith.divf %115, %116 : vector<8x128xf32>
    %118 = vector.extract_strided_slice %111 {offsets = [0, 128], sizes = [8, 128], strides = [1, 1]} : vector<8x512xf32> to vector<8x128xf32>
    %119 = arith.negf %118 : vector<8x128xf32>
    %120 = math.exp %119 : vector<8x128xf32>
    %cst_43 = arith.constant 1.000000e+00 : f32
    %121 = vector.broadcast %cst_43 : f32 to vector<8x128xf32>
    %122 = arith.addf %121, %120 : vector<8x128xf32>
    %123 = arith.divf %121, %122 : vector<8x128xf32>
    %124 = vector.extract_strided_slice %111 {offsets = [0, 256], sizes = [8, 128], strides = [1, 1]} : vector<8x512xf32> to vector<8x128xf32>
    %125 = math.tanh %124 : vector<8x128xf32>
    %126 = vector.extract_strided_slice %111 {offsets = [0, 384], sizes = [8, 128], strides = [1, 1]} : vector<8x512xf32> to vector<8x128xf32>
    %127 = arith.negf %126 : vector<8x128xf32>
    %128 = math.exp %127 : vector<8x128xf32>
    %cst_44 = arith.constant 1.000000e+00 : f32
    %129 = vector.broadcast %cst_44 : f32 to vector<8x128xf32>
    %130 = arith.addf %129, %128 : vector<8x128xf32>
    %131 = arith.divf %129, %130 : vector<8x128xf32>
    %132 = arith.mulf %123, %75 : vector<8x128xf32>
    %133 = arith.mulf %117, %125 : vector<8x128xf32>
    %134 = arith.addf %132, %133 : vector<8x128xf32>
    %135 = math.tanh %134 : vector<8x128xf32>
    %136 = arith.mulf %131, %135 : vector<8x128xf32>
    %c2_i32 = arith.constant 2 : i32
    %137 = arith.index_cast %c2_i32 : i32 to index
    %c0_45 = arith.constant 0 : index
    %c0_46 = arith.constant 0 : index
    %138 = vector.load %arg10[%137, %c0_45, %c0_46] : memref<8x8x512xf32, #tpu.memory_space<vmem>>, vector<1x8x512xf32>
    %139 = vector.shape_cast %138 : vector<1x8x512xf32> to vector<8x512xf32>
    %cst_47 = arith.constant dense<0.000000e+00> : vector<8x512xf32>
    %140 = tpu.matmul %107, %12, %cst_47 {dimension_numbers = #tpu.dot_dimension_numbers<[1], [0], [0], [1], [0, 0, 1, 1], [], []>} : vector<8x128xf32>, vector<128x512xf32>, vector<8x512xf32> -> vector<8x512xf32>
    %141 = arith.addf %139, %140 : vector<8x512xf32>
    %142 = vector.extract_strided_slice %141 {offsets = [0, 0], sizes = [8, 128], strides = [1, 1]} : vector<8x512xf32> to vector<8x128xf32>
    %143 = arith.negf %142 : vector<8x128xf32>
    %144 = math.exp %143 : vector<8x128xf32>
    %cst_48 = arith.constant 1.000000e+00 : f32
    %145 = vector.broadcast %cst_48 : f32 to vector<8x128xf32>
    %146 = arith.addf %145, %144 : vector<8x128xf32>
    %147 = arith.divf %145, %146 : vector<8x128xf32>
    %148 = vector.extract_strided_slice %141 {offsets = [0, 128], sizes = [8, 128], strides = [1, 1]} : vector<8x512xf32> to vector<8x128xf32>
    %149 = arith.negf %148 : vector<8x128xf32>
    %150 = math.exp %149 : vector<8x128xf32>
    %cst_49 = arith.constant 1.000000e+00 : f32
    %151 = vector.broadcast %cst_49 : f32 to vector<8x128xf32>
    %152 = arith.addf %151, %150 : vector<8x128xf32>
    %153 = arith.divf %151, %152 : vector<8x128xf32>
    %154 = vector.extract_strided_slice %141 {offsets = [0, 256], sizes = [8, 128], strides = [1, 1]} : vector<8x512xf32> to vector<8x128xf32>
    %155 = math.tanh %154 : vector<8x128xf32>
    %156 = vector.extract_strided_slice %141 {offsets = [0, 384], sizes = [8, 128], strides = [1, 1]} : vector<8x512xf32> to vector<8x128xf32>
    %157 = arith.negf %156 : vector<8x128xf32>
    %158 = math.exp %157 : vector<8x128xf32>
    %cst_50 = arith.constant 1.000000e+00 : f32
    %159 = vector.broadcast %cst_50 : f32 to vector<8x128xf32>
    %160 = arith.addf %159, %158 : vector<8x128xf32>
    %161 = arith.divf %159, %160 : vector<8x128xf32>
    %162 = arith.mulf %153, %105 : vector<8x128xf32>
    %163 = arith.mulf %147, %155 : vector<8x128xf32>
    %164 = arith.addf %162, %163 : vector<8x128xf32>
    %165 = math.tanh %164 : vector<8x128xf32>
    %166 = arith.mulf %161, %165 : vector<8x128xf32>
    %167 = tpu.concatenate %166, %136 in 1 : vector<8x128xf32>, vector<8x128xf32> -> vector<8x256xf32>
    %cst_51 = arith.constant dense<0.000000e+00> : vector<8x512xf32>
    %168 = tpu.matmul %167, %13, %cst_51 {dimension_numbers = #tpu.dot_dimension_numbers<[1], [0], [0], [1], [0, 0, 1, 1], [], []>} : vector<8x256xf32>, vector<256x512xf32>, vector<8x512xf32> -> vector<8x512xf32>
    %169 = vector.broadcast %14 : vector<1x512xf32> to vector<8x512xf32>
    %170 = arith.addf %168, %169 : vector<8x512xf32>
    %171 = vector.extract_strided_slice %170 {offsets = [0, 0], sizes = [8, 128], strides = [1, 1]} : vector<8x512xf32> to vector<8x128xf32>
    %172 = arith.negf %171 : vector<8x128xf32>
    %173 = math.exp %172 : vector<8x128xf32>
    %cst_52 = arith.constant 1.000000e+00 : f32
    %174 = vector.broadcast %cst_52 : f32 to vector<8x128xf32>
    %175 = arith.addf %174, %173 : vector<8x128xf32>
    %176 = arith.divf %174, %175 : vector<8x128xf32>
    %177 = vector.extract_strided_slice %170 {offsets = [0, 128], sizes = [8, 128], strides = [1, 1]} : vector<8x512xf32> to vector<8x128xf32>
    %178 = arith.negf %177 : vector<8x128xf32>
    %179 = math.exp %178 : vector<8x128xf32>
    %cst_53 = arith.constant 1.000000e+00 : f32
    %180 = vector.broadcast %cst_53 : f32 to vector<8x128xf32>
    %181 = arith.addf %180, %179 : vector<8x128xf32>
    %182 = arith.divf %180, %181 : vector<8x128xf32>
    %183 = vector.extract_strided_slice %170 {offsets = [0, 256], sizes = [8, 128], strides = [1, 1]} : vector<8x512xf32> to vector<8x128xf32>
    %184 = math.tanh %183 : vector<8x128xf32>
    %185 = vector.extract_strided_slice %170 {offsets = [0, 384], sizes = [8, 128], strides = [1, 1]} : vector<8x512xf32> to vector<8x128xf32>
    %186 = arith.negf %185 : vector<8x128xf32>
    %187 = math.exp %186 : vector<8x128xf32>
    %cst_54 = arith.constant 1.000000e+00 : f32
    %188 = vector.broadcast %cst_54 : f32 to vector<8x128xf32>
    %189 = arith.addf %188, %187 : vector<8x128xf32>
    %190 = arith.divf %188, %189 : vector<8x128xf32>
    %191 = arith.mulf %182, %134 : vector<8x128xf32>
    %192 = arith.mulf %176, %184 : vector<8x128xf32>
    %193 = arith.addf %191, %192 : vector<8x128xf32>
    %194 = math.tanh %193 : vector<8x128xf32>
    %195 = arith.mulf %190, %194 : vector<8x128xf32>
    %c3_i32 = arith.constant 3 : i32
    %196 = arith.index_cast %c3_i32 : i32 to index
    %c0_55 = arith.constant 0 : index
    %c0_56 = arith.constant 0 : index
    %197 = vector.load %arg10[%196, %c0_55, %c0_56] : memref<8x8x512xf32, #tpu.memory_space<vmem>>, vector<1x8x512xf32>
    %198 = vector.shape_cast %197 : vector<1x8x512xf32> to vector<8x512xf32>
    %cst_57 = arith.constant dense<0.000000e+00> : vector<8x512xf32>
    %199 = tpu.matmul %166, %12, %cst_57 {dimension_numbers = #tpu.dot_dimension_numbers<[1], [0], [0], [1], [0, 0, 1, 1], [], []>} : vector<8x128xf32>, vector<128x512xf32>, vector<8x512xf32> -> vector<8x512xf32>
    %200 = arith.addf %198, %199 : vector<8x512xf32>
    %201 = vector.extract_strided_slice %200 {offsets = [0, 0], sizes = [8, 128], strides = [1, 1]} : vector<8x512xf32> to vector<8x128xf32>
    %202 = arith.negf %201 : vector<8x128xf32>
    %203 = math.exp %202 : vector<8x128xf32>
    %cst_58 = arith.constant 1.000000e+00 : f32
    %204 = vector.broadcast %cst_58 : f32 to vector<8x128xf32>
    %205 = arith.addf %204, %203 : vector<8x128xf32>
    %206 = arith.divf %204, %205 : vector<8x128xf32>
    %207 = vector.extract_strided_slice %200 {offsets = [0, 128], sizes = [8, 128], strides = [1, 1]} : vector<8x512xf32> to vector<8x128xf32>
    %208 = arith.negf %207 : vector<8x128xf32>
    %209 = math.exp %208 : vector<8x128xf32>
    %cst_59 = arith.constant 1.000000e+00 : f32
    %210 = vector.broadcast %cst_59 : f32 to vector<8x128xf32>
    %211 = arith.addf %210, %209 : vector<8x128xf32>
    %212 = arith.divf %210, %211 : vector<8x128xf32>
    %213 = vector.extract_strided_slice %200 {offsets = [0, 256], sizes = [8, 128], strides = [1, 1]} : vector<8x512xf32> to vector<8x128xf32>
    %214 = math.tanh %213 : vector<8x128xf32>
    %215 = vector.extract_strided_slice %200 {offsets = [0, 384], sizes = [8, 128], strides = [1, 1]} : vector<8x512xf32> to vector<8x128xf32>
    %216 = arith.negf %215 : vector<8x128xf32>
    %217 = math.exp %216 : vector<8x128xf32>
    %cst_60 = arith.constant 1.000000e+00 : f32
    %218 = vector.broadcast %cst_60 : f32 to vector<8x128xf32>
    %219 = arith.addf %218, %217 : vector<8x128xf32>
    %220 = arith.divf %218, %219 : vector<8x128xf32>
    %221 = arith.mulf %212, %164 : vector<8x128xf32>
    %222 = arith.mulf %206, %214 : vector<8x128xf32>
    %223 = arith.addf %221, %222 : vector<8x128xf32>
    %224 = math.tanh %223 : vector<8x128xf32>
    %225 = arith.mulf %220, %224 : vector<8x128xf32>
    %226 = tpu.concatenate %225, %195 in 1 : vector<8x128xf32>, vector<8x128xf32> -> vector<8x256xf32>
    %cst_61 = arith.constant dense<0.000000e+00> : vector<8x512xf32>
    %227 = tpu.matmul %226, %13, %cst_61 {dimension_numbers = #tpu.dot_dimension_numbers<[1], [0], [0], [1], [0, 0, 1, 1], [], []>} : vector<8x256xf32>, vector<256x512xf32>, vector<8x512xf32> -> vector<8x512xf32>
    %228 = vector.broadcast %14 : vector<1x512xf32> to vector<8x512xf32>
    %229 = arith.addf %227, %228 : vector<8x512xf32>
    %230 = vector.extract_strided_slice %229 {offsets = [0, 0], sizes = [8, 128], strides = [1, 1]} : vector<8x512xf32> to vector<8x128xf32>
    %231 = arith.negf %230 : vector<8x128xf32>
    %232 = math.exp %231 : vector<8x128xf32>
    %cst_62 = arith.constant 1.000000e+00 : f32
    %233 = vector.broadcast %cst_62 : f32 to vector<8x128xf32>
    %234 = arith.addf %233, %232 : vector<8x128xf32>
    %235 = arith.divf %233, %234 : vector<8x128xf32>
    %236 = vector.extract_strided_slice %229 {offsets = [0, 128], sizes = [8, 128], strides = [1, 1]} : vector<8x512xf32> to vector<8x128xf32>
    %237 = arith.negf %236 : vector<8x128xf32>
    %238 = math.exp %237 : vector<8x128xf32>
    %cst_63 = arith.constant 1.000000e+00 : f32
    %239 = vector.broadcast %cst_63 : f32 to vector<8x128xf32>
    %240 = arith.addf %239, %238 : vector<8x128xf32>
    %241 = arith.divf %239, %240 : vector<8x128xf32>
    %242 = vector.extract_strided_slice %229 {offsets = [0, 256], sizes = [8, 128], strides = [1, 1]} : vector<8x512xf32> to vector<8x128xf32>
    %243 = math.tanh %242 : vector<8x128xf32>
    %244 = vector.extract_strided_slice %229 {offsets = [0, 384], sizes = [8, 128], strides = [1, 1]} : vector<8x512xf32> to vector<8x128xf32>
    %245 = arith.negf %244 : vector<8x128xf32>
    %246 = math.exp %245 : vector<8x128xf32>
    %cst_64 = arith.constant 1.000000e+00 : f32
    %247 = vector.broadcast %cst_64 : f32 to vector<8x128xf32>
    %248 = arith.addf %247, %246 : vector<8x128xf32>
    %249 = arith.divf %247, %248 : vector<8x128xf32>
    %250 = arith.mulf %241, %193 : vector<8x128xf32>
    %251 = arith.mulf %235, %243 : vector<8x128xf32>
    %252 = arith.addf %250, %251 : vector<8x128xf32>
    %253 = math.tanh %252 : vector<8x128xf32>
    %254 = arith.mulf %249, %253 : vector<8x128xf32>
    %c4_i32 = arith.constant 4 : i32
    %255 = arith.index_cast %c4_i32 : i32 to index
    %c0_65 = arith.constant 0 : index
    %c0_66 = arith.constant 0 : index
    %256 = vector.load %arg10[%255, %c0_65, %c0_66] : memref<8x8x512xf32, #tpu.memory_space<vmem>>, vector<1x8x512xf32>
    %257 = vector.shape_cast %256 : vector<1x8x512xf32> to vector<8x512xf32>
    %cst_67 = arith.constant dense<0.000000e+00> : vector<8x512xf32>
    %258 = tpu.matmul %225, %12, %cst_67 {dimension_numbers = #tpu.dot_dimension_numbers<[1], [0], [0], [1], [0, 0, 1, 1], [], []>} : vector<8x128xf32>, vector<128x512xf32>, vector<8x512xf32> -> vector<8x512xf32>
    %259 = arith.addf %257, %258 : vector<8x512xf32>
    %260 = vector.extract_strided_slice %259 {offsets = [0, 0], sizes = [8, 128], strides = [1, 1]} : vector<8x512xf32> to vector<8x128xf32>
    %261 = arith.negf %260 : vector<8x128xf32>
    %262 = math.exp %261 : vector<8x128xf32>
    %cst_68 = arith.constant 1.000000e+00 : f32
    %263 = vector.broadcast %cst_68 : f32 to vector<8x128xf32>
    %264 = arith.addf %263, %262 : vector<8x128xf32>
    %265 = arith.divf %263, %264 : vector<8x128xf32>
    %266 = vector.extract_strided_slice %259 {offsets = [0, 128], sizes = [8, 128], strides = [1, 1]} : vector<8x512xf32> to vector<8x128xf32>
    %267 = arith.negf %266 : vector<8x128xf32>
    %268 = math.exp %267 : vector<8x128xf32>
    %cst_69 = arith.constant 1.000000e+00 : f32
    %269 = vector.broadcast %cst_69 : f32 to vector<8x128xf32>
    %270 = arith.addf %269, %268 : vector<8x128xf32>
    %271 = arith.divf %269, %270 : vector<8x128xf32>
    %272 = vector.extract_strided_slice %259 {offsets = [0, 256], sizes = [8, 128], strides = [1, 1]} : vector<8x512xf32> to vector<8x128xf32>
    %273 = math.tanh %272 : vector<8x128xf32>
    %274 = vector.extract_strided_slice %259 {offsets = [0, 384], sizes = [8, 128], strides = [1, 1]} : vector<8x512xf32> to vector<8x128xf32>
    %275 = arith.negf %274 : vector<8x128xf32>
    %276 = math.exp %275 : vector<8x128xf32>
    %cst_70 = arith.constant 1.000000e+00 : f32
    %277 = vector.broadcast %cst_70 : f32 to vector<8x128xf32>
    %278 = arith.addf %277, %276 : vector<8x128xf32>
    %279 = arith.divf %277, %278 : vector<8x128xf32>
    %280 = arith.mulf %271, %223 : vector<8x128xf32>
    %281 = arith.mulf %265, %273 : vector<8x128xf32>
    %282 = arith.addf %280, %281 : vector<8x128xf32>
    %283 = math.tanh %282 : vector<8x128xf32>
    %284 = arith.mulf %279, %283 : vector<8x128xf32>
    %285 = tpu.concatenate %284, %254 in 1 : vector<8x128xf32>, vector<8x128xf32> -> vector<8x256xf32>
    %cst_71 = arith.constant dense<0.000000e+00> : vector<8x512xf32>
    %286 = tpu.matmul %285, %13, %cst_71 {dimension_numbers = #tpu.dot_dimension_numbers<[1], [0], [0], [1], [0, 0, 1, 1], [], []>} : vector<8x256xf32>, vector<256x512xf32>, vector<8x512xf32> -> vector<8x512xf32>
    %287 = vector.broadcast %14 : vector<1x512xf32> to vector<8x512xf32>
    %288 = arith.addf %286, %287 : vector<8x512xf32>
    %289 = vector.extract_strided_slice %288 {offsets = [0, 0], sizes = [8, 128], strides = [1, 1]} : vector<8x512xf32> to vector<8x128xf32>
    %290 = arith.negf %289 : vector<8x128xf32>
    %291 = math.exp %290 : vector<8x128xf32>
    %cst_72 = arith.constant 1.000000e+00 : f32
    %292 = vector.broadcast %cst_72 : f32 to vector<8x128xf32>
    %293 = arith.addf %292, %291 : vector<8x128xf32>
    %294 = arith.divf %292, %293 : vector<8x128xf32>
    %295 = vector.extract_strided_slice %288 {offsets = [0, 128], sizes = [8, 128], strides = [1, 1]} : vector<8x512xf32> to vector<8x128xf32>
    %296 = arith.negf %295 : vector<8x128xf32>
    %297 = math.exp %296 : vector<8x128xf32>
    %cst_73 = arith.constant 1.000000e+00 : f32
    %298 = vector.broadcast %cst_73 : f32 to vector<8x128xf32>
    %299 = arith.addf %298, %297 : vector<8x128xf32>
    %300 = arith.divf %298, %299 : vector<8x128xf32>
    %301 = vector.extract_strided_slice %288 {offsets = [0, 256], sizes = [8, 128], strides = [1, 1]} : vector<8x512xf32> to vector<8x128xf32>
    %302 = math.tanh %301 : vector<8x128xf32>
    %303 = vector.extract_strided_slice %288 {offsets = [0, 384], sizes = [8, 128], strides = [1, 1]} : vector<8x512xf32> to vector<8x128xf32>
    %304 = arith.negf %303 : vector<8x128xf32>
    %305 = math.exp %304 : vector<8x128xf32>
    %cst_74 = arith.constant 1.000000e+00 : f32
    %306 = vector.broadcast %cst_74 : f32 to vector<8x128xf32>
    %307 = arith.addf %306, %305 : vector<8x128xf32>
    %308 = arith.divf %306, %307 : vector<8x128xf32>
    %309 = arith.mulf %300, %252 : vector<8x128xf32>
    %310 = arith.mulf %294, %302 : vector<8x128xf32>
    %311 = arith.addf %309, %310 : vector<8x128xf32>
    %312 = math.tanh %311 : vector<8x128xf32>
    %313 = arith.mulf %308, %312 : vector<8x128xf32>
    %c5_i32 = arith.constant 5 : i32
    %314 = arith.index_cast %c5_i32 : i32 to index
    %c0_75 = arith.constant 0 : index
    %c0_76 = arith.constant 0 : index
    %315 = vector.load %arg10[%314, %c0_75, %c0_76] : memref<8x8x512xf32, #tpu.memory_space<vmem>>, vector<1x8x512xf32>
    %316 = vector.shape_cast %315 : vector<1x8x512xf32> to vector<8x512xf32>
    %cst_77 = arith.constant dense<0.000000e+00> : vector<8x512xf32>
    %317 = tpu.matmul %284, %12, %cst_77 {dimension_numbers = #tpu.dot_dimension_numbers<[1], [0], [0], [1], [0, 0, 1, 1], [], []>} : vector<8x128xf32>, vector<128x512xf32>, vector<8x512xf32> -> vector<8x512xf32>
    %318 = arith.addf %316, %317 : vector<8x512xf32>
    %319 = vector.extract_strided_slice %318 {offsets = [0, 0], sizes = [8, 128], strides = [1, 1]} : vector<8x512xf32> to vector<8x128xf32>
    %320 = arith.negf %319 : vector<8x128xf32>
    %321 = math.exp %320 : vector<8x128xf32>
    %cst_78 = arith.constant 1.000000e+00 : f32
    %322 = vector.broadcast %cst_78 : f32 to vector<8x128xf32>
    %323 = arith.addf %322, %321 : vector<8x128xf32>
    %324 = arith.divf %322, %323 : vector<8x128xf32>
    %325 = vector.extract_strided_slice %318 {offsets = [0, 128], sizes = [8, 128], strides = [1, 1]} : vector<8x512xf32> to vector<8x128xf32>
    %326 = arith.negf %325 : vector<8x128xf32>
    %327 = math.exp %326 : vector<8x128xf32>
    %cst_79 = arith.constant 1.000000e+00 : f32
    %328 = vector.broadcast %cst_79 : f32 to vector<8x128xf32>
    %329 = arith.addf %328, %327 : vector<8x128xf32>
    %330 = arith.divf %328, %329 : vector<8x128xf32>
    %331 = vector.extract_strided_slice %318 {offsets = [0, 256], sizes = [8, 128], strides = [1, 1]} : vector<8x512xf32> to vector<8x128xf32>
    %332 = math.tanh %331 : vector<8x128xf32>
    %333 = vector.extract_strided_slice %318 {offsets = [0, 384], sizes = [8, 128], strides = [1, 1]} : vector<8x512xf32> to vector<8x128xf32>
    %334 = arith.negf %333 : vector<8x128xf32>
    %335 = math.exp %334 : vector<8x128xf32>
    %cst_80 = arith.constant 1.000000e+00 : f32
    %336 = vector.broadcast %cst_80 : f32 to vector<8x128xf32>
    %337 = arith.addf %336, %335 : vector<8x128xf32>
    %338 = arith.divf %336, %337 : vector<8x128xf32>
    %339 = arith.mulf %330, %282 : vector<8x128xf32>
    %340 = arith.mulf %324, %332 : vector<8x128xf32>
    %341 = arith.addf %339, %340 : vector<8x128xf32>
    %342 = math.tanh %341 : vector<8x128xf32>
    %343 = arith.mulf %338, %342 : vector<8x128xf32>
    %344 = tpu.concatenate %343, %313 in 1 : vector<8x128xf32>, vector<8x128xf32> -> vector<8x256xf32>
    %cst_81 = arith.constant dense<0.000000e+00> : vector<8x512xf32>
    %345 = tpu.matmul %344, %13, %cst_81 {dimension_numbers = #tpu.dot_dimension_numbers<[1], [0], [0], [1], [0, 0, 1, 1], [], []>} : vector<8x256xf32>, vector<256x512xf32>, vector<8x512xf32> -> vector<8x512xf32>
    %346 = vector.broadcast %14 : vector<1x512xf32> to vector<8x512xf32>
    %347 = arith.addf %345, %346 : vector<8x512xf32>
    %348 = vector.extract_strided_slice %347 {offsets = [0, 0], sizes = [8, 128], strides = [1, 1]} : vector<8x512xf32> to vector<8x128xf32>
    %349 = arith.negf %348 : vector<8x128xf32>
    %350 = math.exp %349 : vector<8x128xf32>
    %cst_82 = arith.constant 1.000000e+00 : f32
    %351 = vector.broadcast %cst_82 : f32 to vector<8x128xf32>
    %352 = arith.addf %351, %350 : vector<8x128xf32>
    %353 = arith.divf %351, %352 : vector<8x128xf32>
    %354 = vector.extract_strided_slice %347 {offsets = [0, 128], sizes = [8, 128], strides = [1, 1]} : vector<8x512xf32> to vector<8x128xf32>
    %355 = arith.negf %354 : vector<8x128xf32>
    %356 = math.exp %355 : vector<8x128xf32>
    %cst_83 = arith.constant 1.000000e+00 : f32
    %357 = vector.broadcast %cst_83 : f32 to vector<8x128xf32>
    %358 = arith.addf %357, %356 : vector<8x128xf32>
    %359 = arith.divf %357, %358 : vector<8x128xf32>
    %360 = vector.extract_strided_slice %347 {offsets = [0, 256], sizes = [8, 128], strides = [1, 1]} : vector<8x512xf32> to vector<8x128xf32>
    %361 = math.tanh %360 : vector<8x128xf32>
    %362 = vector.extract_strided_slice %347 {offsets = [0, 384], sizes = [8, 128], strides = [1, 1]} : vector<8x512xf32> to vector<8x128xf32>
    %363 = arith.negf %362 : vector<8x128xf32>
    %364 = math.exp %363 : vector<8x128xf32>
    %cst_84 = arith.constant 1.000000e+00 : f32
    %365 = vector.broadcast %cst_84 : f32 to vector<8x128xf32>
    %366 = arith.addf %365, %364 : vector<8x128xf32>
    %367 = arith.divf %365, %366 : vector<8x128xf32>
    %368 = arith.mulf %359, %311 : vector<8x128xf32>
    %369 = arith.mulf %353, %361 : vector<8x128xf32>
    %370 = arith.addf %368, %369 : vector<8x128xf32>
    %371 = math.tanh %370 : vector<8x128xf32>
    %372 = arith.mulf %367, %371 : vector<8x128xf32>
    %c6_i32 = arith.constant 6 : i32
    %373 = arith.index_cast %c6_i32 : i32 to index
    %c0_85 = arith.constant 0 : index
    %c0_86 = arith.constant 0 : index
    %374 = vector.load %arg10[%373, %c0_85, %c0_86] : memref<8x8x512xf32, #tpu.memory_space<vmem>>, vector<1x8x512xf32>
    %375 = vector.shape_cast %374 : vector<1x8x512xf32> to vector<8x512xf32>
    %cst_87 = arith.constant dense<0.000000e+00> : vector<8x512xf32>
    %376 = tpu.matmul %343, %12, %cst_87 {dimension_numbers = #tpu.dot_dimension_numbers<[1], [0], [0], [1], [0, 0, 1, 1], [], []>} : vector<8x128xf32>, vector<128x512xf32>, vector<8x512xf32> -> vector<8x512xf32>
    %377 = arith.addf %375, %376 : vector<8x512xf32>
    %378 = vector.extract_strided_slice %377 {offsets = [0, 0], sizes = [8, 128], strides = [1, 1]} : vector<8x512xf32> to vector<8x128xf32>
    %379 = arith.negf %378 : vector<8x128xf32>
    %380 = math.exp %379 : vector<8x128xf32>
    %cst_88 = arith.constant 1.000000e+00 : f32
    %381 = vector.broadcast %cst_88 : f32 to vector<8x128xf32>
    %382 = arith.addf %381, %380 : vector<8x128xf32>
    %383 = arith.divf %381, %382 : vector<8x128xf32>
    %384 = vector.extract_strided_slice %377 {offsets = [0, 128], sizes = [8, 128], strides = [1, 1]} : vector<8x512xf32> to vector<8x128xf32>
    %385 = arith.negf %384 : vector<8x128xf32>
    %386 = math.exp %385 : vector<8x128xf32>
    %cst_89 = arith.constant 1.000000e+00 : f32
    %387 = vector.broadcast %cst_89 : f32 to vector<8x128xf32>
    %388 = arith.addf %387, %386 : vector<8x128xf32>
    %389 = arith.divf %387, %388 : vector<8x128xf32>
    %390 = vector.extract_strided_slice %377 {offsets = [0, 256], sizes = [8, 128], strides = [1, 1]} : vector<8x512xf32> to vector<8x128xf32>
    %391 = math.tanh %390 : vector<8x128xf32>
    %392 = vector.extract_strided_slice %377 {offsets = [0, 384], sizes = [8, 128], strides = [1, 1]} : vector<8x512xf32> to vector<8x128xf32>
    %393 = arith.negf %392 : vector<8x128xf32>
    %394 = math.exp %393 : vector<8x128xf32>
    %cst_90 = arith.constant 1.000000e+00 : f32
    %395 = vector.broadcast %cst_90 : f32 to vector<8x128xf32>
    %396 = arith.addf %395, %394 : vector<8x128xf32>
    %397 = arith.divf %395, %396 : vector<8x128xf32>
    %398 = arith.mulf %389, %341 : vector<8x128xf32>
    %399 = arith.mulf %383, %391 : vector<8x128xf32>
    %400 = arith.addf %398, %399 : vector<8x128xf32>
    %401 = math.tanh %400 : vector<8x128xf32>
    %402 = arith.mulf %397, %401 : vector<8x128xf32>
    %403 = tpu.concatenate %402, %372 in 1 : vector<8x128xf32>, vector<8x128xf32> -> vector<8x256xf32>
    %cst_91 = arith.constant dense<0.000000e+00> : vector<8x512xf32>
    %404 = tpu.matmul %403, %13, %cst_91 {dimension_numbers = #tpu.dot_dimension_numbers<[1], [0], [0], [1], [0, 0, 1, 1], [], []>} : vector<8x256xf32>, vector<256x512xf32>, vector<8x512xf32> -> vector<8x512xf32>
    %405 = vector.broadcast %14 : vector<1x512xf32> to vector<8x512xf32>
    %406 = arith.addf %404, %405 : vector<8x512xf32>
    %407 = vector.extract_strided_slice %406 {offsets = [0, 0], sizes = [8, 128], strides = [1, 1]} : vector<8x512xf32> to vector<8x128xf32>
    %408 = arith.negf %407 : vector<8x128xf32>
    %409 = math.exp %408 : vector<8x128xf32>
    %cst_92 = arith.constant 1.000000e+00 : f32
    %410 = vector.broadcast %cst_92 : f32 to vector<8x128xf32>
    %411 = arith.addf %410, %409 : vector<8x128xf32>
    %412 = arith.divf %410, %411 : vector<8x128xf32>
    %413 = vector.extract_strided_slice %406 {offsets = [0, 128], sizes = [8, 128], strides = [1, 1]} : vector<8x512xf32> to vector<8x128xf32>
    %414 = arith.negf %413 : vector<8x128xf32>
    %415 = math.exp %414 : vector<8x128xf32>
    %cst_93 = arith.constant 1.000000e+00 : f32
    %416 = vector.broadcast %cst_93 : f32 to vector<8x128xf32>
    %417 = arith.addf %416, %415 : vector<8x128xf32>
    %418 = arith.divf %416, %417 : vector<8x128xf32>
    %419 = vector.extract_strided_slice %406 {offsets = [0, 256], sizes = [8, 128], strides = [1, 1]} : vector<8x512xf32> to vector<8x128xf32>
    %420 = math.tanh %419 : vector<8x128xf32>
    %421 = vector.extract_strided_slice %406 {offsets = [0, 384], sizes = [8, 128], strides = [1, 1]} : vector<8x512xf32> to vector<8x128xf32>
    %422 = arith.negf %421 : vector<8x128xf32>
    %423 = math.exp %422 : vector<8x128xf32>
    %cst_94 = arith.constant 1.000000e+00 : f32
    %424 = vector.broadcast %cst_94 : f32 to vector<8x128xf32>
    %425 = arith.addf %424, %423 : vector<8x128xf32>
    %426 = arith.divf %424, %425 : vector<8x128xf32>
    %427 = arith.mulf %418, %370 : vector<8x128xf32>
    %428 = arith.mulf %412, %420 : vector<8x128xf32>
    %429 = arith.addf %427, %428 : vector<8x128xf32>
    %430 = math.tanh %429 : vector<8x128xf32>
    %431 = arith.mulf %426, %430 : vector<8x128xf32>
    %c7_i32 = arith.constant 7 : i32
    %432 = arith.index_cast %c7_i32 : i32 to index
    %c0_95 = arith.constant 0 : index
    %c0_96 = arith.constant 0 : index
    %433 = vector.load %arg10[%432, %c0_95, %c0_96] : memref<8x8x512xf32, #tpu.memory_space<vmem>>, vector<1x8x512xf32>
    %434 = vector.shape_cast %433 : vector<1x8x512xf32> to vector<8x512xf32>
    %cst_97 = arith.constant dense<0.000000e+00> : vector<8x512xf32>
    %435 = tpu.matmul %402, %12, %cst_97 {dimension_numbers = #tpu.dot_dimension_numbers<[1], [0], [0], [1], [0, 0, 1, 1], [], []>} : vector<8x128xf32>, vector<128x512xf32>, vector<8x512xf32> -> vector<8x512xf32>
    %436 = arith.addf %434, %435 : vector<8x512xf32>
    %437 = vector.extract_strided_slice %436 {offsets = [0, 0], sizes = [8, 128], strides = [1, 1]} : vector<8x512xf32> to vector<8x128xf32>
    %438 = arith.negf %437 : vector<8x128xf32>
    %439 = math.exp %438 : vector<8x128xf32>
    %cst_98 = arith.constant 1.000000e+00 : f32
    %440 = vector.broadcast %cst_98 : f32 to vector<8x128xf32>
    %441 = arith.addf %440, %439 : vector<8x128xf32>
    %442 = arith.divf %440, %441 : vector<8x128xf32>
    %443 = vector.extract_strided_slice %436 {offsets = [0, 128], sizes = [8, 128], strides = [1, 1]} : vector<8x512xf32> to vector<8x128xf32>
    %444 = arith.negf %443 : vector<8x128xf32>
    %445 = math.exp %444 : vector<8x128xf32>
    %cst_99 = arith.constant 1.000000e+00 : f32
    %446 = vector.broadcast %cst_99 : f32 to vector<8x128xf32>
    %447 = arith.addf %446, %445 : vector<8x128xf32>
    %448 = arith.divf %446, %447 : vector<8x128xf32>
    %449 = vector.extract_strided_slice %436 {offsets = [0, 256], sizes = [8, 128], strides = [1, 1]} : vector<8x512xf32> to vector<8x128xf32>
    %450 = math.tanh %449 : vector<8x128xf32>
    %451 = vector.extract_strided_slice %436 {offsets = [0, 384], sizes = [8, 128], strides = [1, 1]} : vector<8x512xf32> to vector<8x128xf32>
    %452 = arith.negf %451 : vector<8x128xf32>
    %453 = math.exp %452 : vector<8x128xf32>
    %cst_100 = arith.constant 1.000000e+00 : f32
    %454 = vector.broadcast %cst_100 : f32 to vector<8x128xf32>
    %455 = arith.addf %454, %453 : vector<8x128xf32>
    %456 = arith.divf %454, %455 : vector<8x128xf32>
    %457 = arith.mulf %448, %400 : vector<8x128xf32>
    %458 = arith.mulf %442, %450 : vector<8x128xf32>
    %459 = arith.addf %457, %458 : vector<8x128xf32>
    %460 = math.tanh %459 : vector<8x128xf32>
    %461 = arith.mulf %456, %460 : vector<8x128xf32>
    %462 = tpu.concatenate %461, %431 in 1 : vector<8x128xf32>, vector<8x128xf32> -> vector<8x256xf32>
    %cst_101 = arith.constant dense<0.000000e+00> : vector<8x512xf32>
    %463 = tpu.matmul %462, %13, %cst_101 {dimension_numbers = #tpu.dot_dimension_numbers<[1], [0], [0], [1], [0, 0, 1, 1], [], []>} : vector<8x256xf32>, vector<256x512xf32>, vector<8x512xf32> -> vector<8x512xf32>
    %464 = vector.broadcast %14 : vector<1x512xf32> to vector<8x512xf32>
    %465 = arith.addf %463, %464 : vector<8x512xf32>
    %466 = vector.extract_strided_slice %465 {offsets = [0, 0], sizes = [8, 128], strides = [1, 1]} : vector<8x512xf32> to vector<8x128xf32>
    %467 = arith.negf %466 : vector<8x128xf32>
    %468 = math.exp %467 : vector<8x128xf32>
    %cst_102 = arith.constant 1.000000e+00 : f32
    %469 = vector.broadcast %cst_102 : f32 to vector<8x128xf32>
    %470 = arith.addf %469, %468 : vector<8x128xf32>
    %471 = arith.divf %469, %470 : vector<8x128xf32>
    %472 = vector.extract_strided_slice %465 {offsets = [0, 128], sizes = [8, 128], strides = [1, 1]} : vector<8x512xf32> to vector<8x128xf32>
    %473 = arith.negf %472 : vector<8x128xf32>
    %474 = math.exp %473 : vector<8x128xf32>
    %cst_103 = arith.constant 1.000000e+00 : f32
    %475 = vector.broadcast %cst_103 : f32 to vector<8x128xf32>
    %476 = arith.addf %475, %474 : vector<8x128xf32>
    %477 = arith.divf %475, %476 : vector<8x128xf32>
    %478 = vector.extract_strided_slice %465 {offsets = [0, 256], sizes = [8, 128], strides = [1, 1]} : vector<8x512xf32> to vector<8x128xf32>
    %479 = math.tanh %478 : vector<8x128xf32>
    %480 = vector.extract_strided_slice %465 {offsets = [0, 384], sizes = [8, 128], strides = [1, 1]} : vector<8x512xf32> to vector<8x128xf32>
    %481 = arith.negf %480 : vector<8x128xf32>
    %482 = math.exp %481 : vector<8x128xf32>
    %cst_104 = arith.constant 1.000000e+00 : f32
    %483 = vector.broadcast %cst_104 : f32 to vector<8x128xf32>
    %484 = arith.addf %483, %482 : vector<8x128xf32>
    %485 = arith.divf %483, %484 : vector<8x128xf32>
    %486 = arith.mulf %477, %429 : vector<8x128xf32>
    %487 = arith.mulf %471, %479 : vector<8x128xf32>
    %488 = arith.addf %486, %487 : vector<8x128xf32>
    %489 = math.tanh %488 : vector<8x128xf32>
    %490 = arith.mulf %485, %489 : vector<8x128xf32>
    %c8_i32 = arith.constant 8 : i32
    %c0_105 = arith.constant 0 : index
    %c0_106 = arith.constant 0 : index
    %491 = vector.load %arg11[%c0_105, %c0_106] : memref<8x128xf32, #tpu.memory_space<vmem>>, vector<8x128xf32>
    tpu.vector_store %arg11[%c0_105, %c0_106], %461 {strides = array<i32>} : memref<8x128xf32, #tpu.memory_space<vmem>>, vector<8x128xf32>,
    %c0_107 = arith.constant 0 : index
    %c0_108 = arith.constant 0 : index
    %492 = vector.load %arg12[%c0_107, %c0_108] : memref<8x128xf32, #tpu.memory_space<vmem>>, vector<8x128xf32>
    tpu.vector_store %arg12[%c0_107, %c0_108], %459 {strides = array<i32>} : memref<8x128xf32, #tpu.memory_space<vmem>>, vector<8x128xf32>,
    %c0_109 = arith.constant 0 : index
    %c0_110 = arith.constant 0 : index
    %493 = vector.load %arg13[%c0_109, %c0_110] : memref<8x128xf32, #tpu.memory_space<vmem>>, vector<8x128xf32>
    tpu.vector_store %arg13[%c0_109, %c0_110], %490 {strides = array<i32>} : memref<8x128xf32, #tpu.memory_space<vmem>>, vector<8x128xf32>,
    %c0_111 = arith.constant 0 : index
    %c0_112 = arith.constant 0 : index
    %494 = vector.load %arg14[%c0_111, %c0_112] : memref<8x128xf32, #tpu.memory_space<vmem>>, vector<8x128xf32>
    tpu.vector_store %arg14[%c0_111, %c0_112], %488 {strides = array<i32>} : memref<8x128xf32, #tpu.memory_space<vmem>>, vector<8x128xf32>,
    %c1_i32_113 = arith.constant 1 : i32
    %495 = arith.cmpi eq, %arg0, %c1_i32_113 : i32
    %496 = arith.extui %495 : i1 to i32
    %c0_i32_114 = arith.constant 0 : i32
    %497 = arith.cmpi ne, %496, %c0_i32_114 : i32
    scf.if %497 {
      %c0_115 = arith.constant 0 : index
      %c0_116 = arith.constant 0 : index
      %498 = vector.load %arg7[%c0_115, %c0_116] : memref<128x1xf32, #tpu.memory_space<vmem>>, vector<128x1xf32>
      %cst_117 = arith.constant dense<0.000000e+00> : vector<8x1xf32>
      %499 = tpu.matmul %490, %498, %cst_117 {dimension_numbers = #tpu.dot_dimension_numbers<[1], [0], [0], [1], [0, 0, 1, 1], [], []>} : vector<8x128xf32>, vector<128x1xf32>, vector<8x1xf32> -> vector<8x1xf32>
      %c0_118 = arith.constant 0 : index
      %c0_119 = arith.constant 0 : index
      %500 = vector.load %arg8[%c0_118, %c0_119] : memref<1x1xf32, #tpu.memory_space<vmem>>, vector<1x1xf32>
      %501 = vector.broadcast %500 : vector<1x1xf32> to vector<8x1xf32>
      %502 = arith.addf %499, %501 : vector<8x1xf32>
      %c0_120 = arith.constant 0 : index
      %c0_121 = arith.constant 0 : index
      %503 = vector.load %arg9[%c0_120, %c0_121] : memref<8x1xf32, #tpu.memory_space<vmem>>, vector<8x1xf32>
      tpu.vector_store %arg9[%c0_120, %c0_121], %502 {strides = array<i32>} : memref<8x1xf32, #tpu.memory_space<vmem>>, vector<8x1xf32>,
    } else {
    }
    return
  }
  func.func @transform_0(%arg0: i32) -> (i32, i32, i32) {
    %c0_i32 = arith.constant 0 : i32
    %c0_i32_0 = arith.constant 0 : i32
    %c0_i32_1 = arith.constant 0 : i32
    return %arg0, %c0_i32, %c0_i32_0 : i32, i32, i32
  }
  func.func @transform_1(%arg0: i32) -> (i32, i32) {
    %c0_i32 = arith.constant 0 : i32
    %c0_i32_0 = arith.constant 0 : i32
    %c0_i32_1 = arith.constant 0 : i32
    return %c0_i32, %c0_i32_0 : i32, i32
  }
  func.func @transform_2(%arg0: i32) -> (i32, i32) {
    %c0_i32 = arith.constant 0 : i32
    %c0_i32_0 = arith.constant 0 : i32
    %c0_i32_1 = arith.constant 0 : i32
    return %c0_i32, %c0_i32_0 : i32, i32
  }
  func.func @transform_3(%arg0: i32) -> (i32, i32) {
    %c0_i32 = arith.constant 0 : i32
    %c0_i32_0 = arith.constant 0 : i32
    %c0_i32_1 = arith.constant 0 : i32
    return %c0_i32, %c0_i32_0 : i32, i32
  }
  func.func @transform_4(%arg0: i32) -> (i32, i32) {
    %c0_i32 = arith.constant 0 : i32
    %c0_i32_0 = arith.constant 0 : i32
    %c0_i32_1 = arith.constant 0 : i32
    return %c0_i32, %c0_i32_0 : i32, i32
  }
  func.func @transform_5(%arg0: i32) -> (i32, i32) {
    %c0_i32 = arith.constant 0 : i32
    %c0_i32_0 = arith.constant 0 : i32
    %c0_i32_1 = arith.constant 0 : i32
    return %c0_i32, %c0_i32_0 : i32, i32
  }
  func.func @transform_6(%arg0: i32) -> (i32, i32) {
    %c0_i32 = arith.constant 0 : i32
    %c0_i32_0 = arith.constant 0 : i32
    %c0_i32_1 = arith.constant 0 : i32
    return %c0_i32, %c0_i32_0 : i32, i32
  }
  func.func @transform_7(%arg0: i32) -> (i32, i32) {
    %c0_i32 = arith.constant 0 : i32
    %c0_i32_0 = arith.constant 0 : i32
    %c0_i32_1 = arith.constant 0 : i32
    return %c0_i32, %c0_i32_0 : i32, i32
  }
  func.func @transform_8(%arg0: i32) -> (i32, i32) {
    %c0_i32 = arith.constant 0 : i32
    %c0_i32_0 = arith.constant 0 : i32
    %c0_i32_1 = arith.constant 0 : i32
    return %c0_i32, %c0_i32_0 : i32, i32
  }
}

</mosaic_0001>

<bundles_post_ra>
// kernel: tpu_custom_call.1
= control target key start
LH: loop header
LB: loop body
LE: loop exit
PB: predicated region body
PF: predicated region fallthrough
CT: control target
= control target key end

     0   :  { %s8890_s0 = inlined_call_operand.vmem [shape: f32[16,8,32], index: 0, kind: input, shape index: {}]   ;;  %s8891_s1 = inlined_call_operand.hbm [shape: f32[32,512], index: 1, kind: input, shape index: {}]   ;;  %s8892_s2 = inlined_call_operand.hbm [shape: f32[128,512], index: 2, kind: input, shape index: {}]   ;;  %s8893_s3 = inlined_call_operand.hbm [shape: f32[1,512], index: 3, kind: input, shape index: {}]   ;;  %s8894_s4 = inlined_call_operand.hbm [shape: f32[256,512], index: 4, kind: input, shape index: {}]   ;;  %s8895_s5 = inlined_call_operand.vmem [shape: f32[1,512], index: 5, kind: input, shape index: {}]   ;;  %s8896_s6 = inlined_call_operand.vmem [shape: f32[128,1], index: 6, kind: input, shape index: {}]   ;;  %s8897_s7 = inlined_call_operand.<no memory space> [shape: f32[1,1], index: 7, kind: input, shape index: {}]   ;;  %s8898_s8 = inlined_call_operand.vmem [shape: f32[8,1], index: 8, kind: output, shape index: {}]  }
   0x1   :  { %v13_v0 = vstv %s8897_s7 }
   0x2   :  { %14 = vst [vmem:[#allocation7] sm:$0x1] %v13_v0 }
   0x3   :  { %15 = vsyncpa [#allocation9], 0 }
   0x4   :  { %16 = vsyncpa [#allocation11], 0 }
   0x5   :  { %17 = vsyncpa [#allocation14], 0  ;;  %s5157_s29 = smov 0  }
   0x6 LB: > { %s5163_s30 = sadd.s32 4294967295, %s5100_s29   ;;  %p3948_p0 = scmp.ge.s32.totalorder %s5100_s29, 1  ;;  %s5100_s29 = sphi %s5157_s29, %s23_s29  }
   0x7   : > { %p222_p1 = scmp.lt.s32.totalorder %s5100_s29, 3  ;;  %p3949_p2 = scmp.ne.s32.totalorder %s5163_s30, 0 }
   0x8   : > { %p4074_p3 = scmp.eq.s32.totalorder %s5163_s30, 0  ;;  %s247_s10 = sshll.u32 %s8892_s2, 4  ;;  %s248_s10 = int_to_ptr.hbm [resolvable:$true] %s247_s10 }
   0x9   : > { %p5172_p4 = pnand %p3948_p0, %p222_p1  ;;  %s233_s14 = sshll.u32 %s8891_s1, 4  ;;  %s234_s14 = int_to_ptr.hbm [resolvable:$true] %s233_s14 }
   0xa   : > { %s5102_s15 = smov [#allocation10]   ;;  %s5103_s18 = smov [#allocation8]  }
   0xb   : > { %p4061_p5 = pneg %p5172_p4  ;;  %s249_s16 = sshll.u32 %s5102_s15, 4  ;;  %s250_s16 = int_to_ptr.vmem [resolvable:$true] %s249_s16 }
   0xc   : > { %s235_s19 = sshll.u32 %s5103_s18, 4  ;;  %s262_s22 = sshll.u32 %s8893_s3, 4  ;;  %s236_s19 = int_to_ptr.vmem [resolvable:$true] %s235_s19  ;;  %s263_s22 = int_to_ptr.hbm [resolvable:$true] %s262_s22 }
   0xd   : > { %p5183_p6 = pnand %p4074_p3, %p4061_p5  ;;  %s5104_s23 = smov 512  }
   0xe   : > { %s5105_s24 = smov 32   ;;  %s5106_s25 = smov [#allocation12]  }
   0xf   : > { %4067 = dma.hbm_to_vmem [thread:$0]  (!%p5183_p6), %s248_s10, 8192, %s250_s16, [#allocation11], %s5104_s23, %s5104_s23, %s5105_s24  }
  0x10   : > { %4064 = dma.hbm_to_vmem [thread:$0]  (!%p5183_p6), %s234_s14, 2048, %s236_s19, [#allocation9], %s5104_s23, %s5104_s23, %s5105_s24  }
  0x11   : > { %s264_s26 = sshll.u32 %s5106_s25, 4  ;;  %s273_s7 = sshll.u32 %s8894_s4, 4  ;;  %s265_s26 = int_to_ptr.vmem [resolvable:$true] %s264_s26  ;;  %s274_s7 = int_to_ptr.hbm [resolvable:$true] %s273_s7 }
  0x12   : > { %4070 = dma.hbm_to_vmem [thread:$0]  (!%p5183_p6), %s263_s22, 64, %s265_s26, [#allocation11]  }
  0x13   : > { %s5107_s9 = smov [#allocation13]   ;;  %309 = sbr.rel (%p5172_p4) target bundleno = 2080 (0x820), region = 52 }
  0x14   : > { %s275_s12 = sshll.u32 %s5107_s9, 4  ;;  %s276_s12 = int_to_ptr.vmem [resolvable:$true] %s275_s12 }
  0x15   : > { %4073 = dma.hbm_to_vmem [thread:$0]  (!%p5183_p6), %s274_s7, 16384, %s276_s12, [#allocation14], %s5104_s23, %s5104_s23, %s5105_s24  }
  0x18   : > { %5087 = dma.done.wait (%p4074_p3), [#allocation9], 2048  }
  0x19   : > { %5089 = vsyncadd (%p4074_p3), [#allocation9], 4294965248 }
  0x1a   : > { %5091 = dma.done.wait (%p4074_p3), [#allocation11], 8256  }
  0x1b   : > { %5093 = vsyncadd (%p4074_p3), [#allocation11], 4294959040 }
  0x1c   : > { %5095 = dma.done.wait (%p4074_p3), [#allocation14], 16384  }
  0x1d   : > { %5097 = vsyncadd (%p4074_p3), [#allocation14], 4294950912  ;;  %s3959_s10 = sshll.u32 %s5163_s30, 3 }
  0x1e   : > { %p355_p7 = scmp.lt.s32.totalorder %s3959_s10, 15  ;;  %363 = sbr.rel (%p3949_p2) target bundleno = 40 (0x28), region = 72 }
  0x20   : > { %s10450_s10 = smov (!%p355_p7, %s3959_s10), 15 }
  0x21   : > { %s3960_s11 = sshll.u32 %s10450_s10, 3 }
  0x22   : > { %s5219_s15 = scalar_lea.vmem %s8890_s0, %s3960_s11 }
  0x23   : > { %v5108_v1 = vmov 0.0  }
  0x24   : > { %364 = vst [vmem:[#allocation3] sm:$0xff] %v5108_v1 }
  0x25   : > { %365 = vst [vmem:[#allocation4] sm:$0xff] %v5108_v1 }
  0x26   : > { %366 = vst [vmem:[#allocation5] sm:$0xff] %v5108_v1 }
  0x27   : > { %367 = vst [vmem:[#allocation6] sm:$0xff] %v5108_v1 }
  0x28 PF: > { %v388_v2 = vld [vmem:[#allocation8 + $0x60] sm:$0xff]  ;;  %v389_v3 = vld [vmem:[#allocation8 + $0x68] sm:$0xff]  ;;  %v390_v4 = vld [vmem:[#allocation8 + $0x70] sm:$0xff]  ;;  %vm402_vm0 = vcmask 261120   ;;  %p4042_p8 = scmp.ne.s32.totalorder %s5163_s30, 1 }
  0x29   : > { %439 = vmatpush.msra.mxu0 %v388_v2  ;;  %480 = vmatpush.msra.mxu1 %v389_v3  ;;  %v391_v5 = vld [vmem:[#allocation8 + $0x78] sm:$0xff]  ;;  %v384_v6 = vld [vmem:[#allocation8 + $0x40] sm:$0xff]  ;;  %v385_v7 = vld [vmem:[#allocation8 + $0x48] sm:$0xff] }
  0x2a   : > { %521 = vmatpush.msra.mxu2 %v390_v4  ;;  %562 = vmatpush.msra.mxu3 %v391_v5  ;;  %v386_v8 = vld [vmem:[#allocation8 + $0x50] sm:$0xff]  ;;  %v387_v9 = vld [vmem:[#allocation8 + $0x58] sm:$0xff]  ;;  %v380_v10 = vld [vmem:[#allocation8 + $0x20] sm:$0xff] }
  0x2b   : > { %440 = vmatpush.msra.mxu0 %v384_v6  ;;  %481 = vmatpush.msra.mxu1 %v385_v7  ;;  %v381_v11 = vld [vmem:[#allocation8 + $0x28] sm:$0xff]  ;;  %v382_v12 = vld [vmem:[#allocation8 + $0x30] sm:$0xff]  ;;  %v383_v13 = vld [vmem:[#allocation8 + $0x38] sm:$0xff] }
  0x2c   : > { %522 = vmatpush.msra.mxu2 %v386_v8  ;;  %563 = vmatpush.msra.mxu3 %v387_v9  ;;  %v376_v14 = vld [vmem:[#allocation8] sm:$0xff]  ;;  %v377_v15 = vld [vmem:[#allocation8 + $0x8] sm:$0xff]  ;;  %v378_v16 = vld [vmem:[#allocation8 + $0x10] sm:$0xff] }
  0x2d   : > { %441 = vmatpush.msra.mxu0 %v380_v10  ;;  %482 = vmatpush.msra.mxu1 %v381_v11  ;;  %v379_v17 = vld [vmem:[#allocation8 + $0x18] sm:$0xff]  ;;  %v683_v19 = vld [vmem:[#allocation10 + $0x1e0] sm:$0xff]  ;;  %v5224_v20 = vld [vmem:[#allocation10 + $0x1e8] sm:$0xff] }
  0x2e   : > { %523 = vmatpush.msra.mxu2 %v382_v12  ;;  %564 = vmatpush.msra.mxu3 %v383_v13  ;;  %v368_v18 = vld [vmem:[%s5219_s15] sm:$0xff]  ;;  %v685_v22 = vld [vmem:[#allocation10 + $0x1f0] sm:$0xff]  ;;  %v5232_v24 = vld [vmem:[#allocation10 + $0x1c8] sm:$0xff] }
  0x2f   : > { %442 = vmatpush.msra.mxu0 %v376_v14  ;;  %483 = vmatpush.msra.mxu1 %v377_v15  ;;  %v5228_v21 = vld [vmem:[#allocation10 + $0x1f8] sm:$0xff]  ;;  %v679_v23 = vld [vmem:[#allocation10 + $0x1c0] sm:$0xff]  ;;  %v681_v26 = vld [vmem:[#allocation10 + $0x1d0] sm:$0xff] }
  0x30   : > { %524 = vmatpush.msra.mxu2 %v378_v16  ;;  %565 = vmatpush.msra.mxu3 %v379_v17  ;;  %v5235_v25 = vld [vmem:[#allocation10 + $0x1d8] sm:$0xff]  ;;  %v675_v27 = vld [vmem:[#allocation10 + $0x1a0] sm:$0xff]  ;;  %v5238_v28 = vld [vmem:[#allocation10 + $0x1a8] sm:$0xff] }
  0x31   : > { %3962 = vmatmul.msk.f32.vlgmr.msra.gmra.mxu0 %vm402_vm0, %v368_v18  ;;  %3970 = vmatmul.msk.f32.vlgmr.msra.gmra.mxu1 %vm402_vm0, %v368_v18  ;;  %v5241_v29 = vld [vmem:[#allocation10 + $0x1b8] sm:$0xff]  ;;  %v677_v30 = vld [vmem:[#allocation10 + $0x1b0] sm:$0xff]  ;;  %v369_v31 = vld [vmem:[%s5219_s15 + $0x8] sm:$0xff] }
  0x32   : > { %3978 = vmatmul.msk.f32.vlgmr.msra.gmra.mxu2 %vm402_vm0, %v368_v18  ;;  %3986 = vmatmul.msk.f32.vlgmr.msra.gmra.mxu3 %vm402_vm0, %v368_v18  ;;  %v671_v32 = vld [vmem:[#allocation10 + $0x180] sm:$0xff]  ;;  %v5246_v33 = vld [vmem:[#allocation10 + $0x188] sm:$0xff]  ;;  %v5251_v34 = vld [vmem:[#allocation10 + $0x198] sm:$0xff] }
  0x33   : > { %824 = vmatpush.msrb.mxu0 %v683_v19  ;;  %844 = vmatpush.msrb.mxu1 %v5224_v20  ;;  %v673_v35 = vld [vmem:[#allocation10 + $0x190] sm:$0xff]  ;;  %v667_v36 = vld [vmem:[#allocation10 + $0x160] sm:$0xff]  ;;  %v5255_v37 = vld [vmem:[#allocation10 + $0x168] sm:$0xff] }
  0x34   : > { %884 = vmatpush.msrb.mxu3 %v5228_v21  ;;  %864 = vmatpush.msrb.mxu2 %v685_v22  ;;  %v5258_v38 = vld [vmem:[#allocation10 + $0x178] sm:$0xff]  ;;  %v669_v39 = vld [vmem:[#allocation10 + $0x170] sm:$0xff]  ;;  %v663_v40 = vld [vmem:[#allocation10 + $0x140] sm:$0xff] }
  0x35   : > { %825 = vmatpush.msrb.mxu0 %v679_v23  ;;  %845 = vmatpush.msrb.mxu1 %v5232_v24  ;;  %v5261_v41 = vld [vmem:[#allocation10 + $0x148] sm:$0xff]  ;;  %v5264_v42 = vld [vmem:[#allocation10 + $0x158] sm:$0xff]  ;;  %v665_v43 = vld [vmem:[#allocation10 + $0x150] sm:$0xff] }
  0x36   : > { %885 = vmatpush.msrb.mxu3 %v5235_v25  ;;  %865 = vmatpush.msrb.mxu2 %v681_v26  ;;  %v370_v44 = vld [vmem:[%s5219_s15 + $0x10] sm:$0xff]  ;;  %v659_v45 = vld [vmem:[#allocation10 + $0x120] sm:$0xff]  ;;  %v5274_v47 = vld [vmem:[#allocation10 + $0x138] sm:$0xff] }
  0x37   : > { %826 = vmatpush.msrb.mxu0 %v675_v27  ;;  %846 = vmatpush.msrb.mxu1 %v5238_v28  ;;  %v5269_v46 = vld [vmem:[#allocation10 + $0x128] sm:$0xff]  ;;  %v661_v48 = vld [vmem:[#allocation10 + $0x130] sm:$0xff]  ;;  %v655_v49 = vld [vmem:[#allocation10 + $0x100] sm:$0xff] }
  0x38   : > { %886 = vmatpush.msrb.mxu3 %v5241_v29  ;;  %866 = vmatpush.msrb.mxu2 %v677_v30  ;;  %v5278_v50 = vld [vmem:[#allocation10 + $0x108] sm:$0xff]  ;;  %v5281_v51 = vld [vmem:[#allocation10 + $0x118] sm:$0xff]  ;;  %v657_v52 = vld [vmem:[#allocation10 + $0x110] sm:$0xff] }
  0x39   : > { %3963 = vmatmul.msk.f32.gmra.mxu0 %vm402_vm0, %v369_v31  ;;  %3971 = vmatmul.msk.f32.gmra.mxu1 %vm402_vm0, %v369_v31  ;;  %v651_v53 = vld [vmem:[#allocation10 + $0xe0] sm:$0xff]  ;;  %v5284_v54 = vld [vmem:[#allocation10 + $0xe8] sm:$0xff]  ;;  %v5287_v55 = vld [vmem:[#allocation10 + $0xf8] sm:$0xff] }
  0x3a   : > { %3979 = vmatmul.msk.f32.gmra.mxu2 %vm402_vm0, %v369_v31  ;;  %3987 = vmatmul.msk.f32.gmra.mxu3 %vm402_vm0, %v369_v31  ;;  %v653_v56 = vld [vmem:[#allocation10 + $0xf0] sm:$0xff]  ;;  %v647_v58 = vld [vmem:[#allocation10 + $0xc0] sm:$0xff]  ;;  %v5292_v59 = vld [vmem:[#allocation10 + $0xc8] sm:$0xff] }
  0x3b   : > { %827 = vmatpush.msrb.mxu0 %v671_v32  ;;  %847 = vmatpush.msrb.mxu1 %v5246_v33  ;;  %v371_v57 = vld [vmem:[%s5219_s15 + $0x18] sm:$0xff]  ;;  %v643_v62 = vld [vmem:[#allocation10 + $0xa0] sm:$0xff]  ;;  %v5301_v63 = vld [vmem:[#allocation10 + $0xa8] sm:$0xff] }
  0x3c   : > { %887 = vmatpush.msrb.mxu3 %v5251_v34  ;;  %867 = vmatpush.msrb.mxu2 %v673_v35  ;;  %v5297_v60 = vld [vmem:[#allocation10 + $0xd8] sm:$0xff]  ;;  %v649_v61 = vld [vmem:[#allocation10 + $0xd0] sm:$0xff]  ;;  %v639_v2 = vld [vmem:[#allocation10 + $0x80] sm:$0xff] }
  0x3d   : > { %828 = vmatpush.msrb.mxu0 %v667_v36  ;;  %848 = vmatpush.msrb.mxu1 %v5255_v37  ;;  %v5304_v0 = vld [vmem:[#allocation10 + $0xb8] sm:$0xff]  ;;  %v645_v1 = vld [vmem:[#allocation10 + $0xb0] sm:$0xff]  ;;  %v5307_v3 = vld [vmem:[#allocation10 + $0x88] sm:$0xff] }
  0x3e   : > { %888 = vmatpush.msrb.mxu3 %v5258_v38  ;;  %868 = vmatpush.msrb.mxu2 %v669_v39  ;;  %v5310_v4 = vld [vmem:[#allocation10 + $0x98] sm:$0xff]  ;;  %v641_v5 = vld [vmem:[#allocation10 + $0x90] sm:$0xff]  ;;  %v635_v7 = vld [vmem:[#allocation10 + $0x60] sm:$0xff] }
  0x3f   : > { %829 = vmatpush.msrb.mxu0 %v663_v40  ;;  %849 = vmatpush.msrb.mxu1 %v5261_v41  ;;  %v372_v6 = vld [vmem:[%s5219_s15 + $0x20] sm:$0xff]  ;;  %v5315_v8 = vld [vmem:[#allocation10 + $0x68] sm:$0xff]  ;;  %v637_v10 = vld [vmem:[#allocation10 + $0x70] sm:$0xff] }
  0x40   : > { %889 = vmatpush.msrb.mxu3 %v5264_v42  ;;  %869 = vmatpush.msrb.mxu2 %v665_v43  ;;  %v5320_v9 = vld [vmem:[#allocation10 + $0x78] sm:$0xff]  ;;  %v631_v11 = vld [vmem:[#allocation10 + $0x40] sm:$0xff]  ;;  %v5324_v12 = vld [vmem:[#allocation10 + $0x48] sm:$0xff] }
  0x41   : > { %3964 = vmatmul.msk.f32.gmra.mxu0 %vm402_vm0, %v370_v44  ;;  %3972 = vmatmul.msk.f32.gmra.mxu1 %vm402_vm0, %v370_v44  ;;  %v5327_v13 = vld [vmem:[#allocation10 + $0x58] sm:$0xff]  ;;  %v633_v14 = vld [vmem:[#allocation10 + $0x50] sm:$0xff]  ;;  %v627_v15 = vld [vmem:[#allocation10 + $0x20] sm:$0xff] }
  0x42   : > { %3980 = vmatmul.msk.f32.gmra.mxu2 %vm402_vm0, %v370_v44  ;;  %3988 = vmatmul.msk.f32.gmra.mxu3 %vm402_vm0, %v370_v44  ;;  %v5330_v16 = vld [vmem:[#allocation10 + $0x28] sm:$0xff]  ;;  %v629_v17 = vld [vmem:[#allocation10 + $0x30] sm:$0xff]  ;;  %v5333_v18 = vld [vmem:[#allocation10 + $0x38] sm:$0xff] }
  0x43   : > { %830 = vmatpush.msrb.mxu0 %v659_v45  ;;  %850 = vmatpush.msrb.mxu1 %v5269_v46  ;;  %v373_v19 = vld [vmem:[%s5219_s15 + $0x28] sm:$0xff]  ;;  %v625_v26 = vld [vmem:[#allocation10 + $0x10] sm:$0xff]  ;;  %v5343_v27 = vld [vmem:[#allocation10 + $0x18] sm:$0xff] }
  0x44   : > { %890 = vmatpush.msrb.mxu3 %v5274_v47  ;;  %870 = vmatpush.msrb.mxu2 %v661_v48  ;;  %v623_v22 = vld [vmem:[#allocation10] sm:$0xff]  ;;  %v5338_v23 = vld [vmem:[#allocation10 + $0x8] sm:$0xff]  ;;  %v375_v31 = vld [vmem:[%s5219_s15 + $0x38] sm:$0xff] }
  0x45   : > { %831 = vmatpush.msrb.mxu0 %v655_v49  ;;  %851 = vmatpush.msrb.mxu1 %v5278_v50  ;;  %v374_v30 = vld [vmem:[%s5219_s15 + $0x30] sm:$0xff]  ;;  %v816_v32 = vld [vmem:[#allocation3] sm:$0xff] }
  0x46   : > { %891 = vmatpush.msrb.mxu3 %v5281_v51  ;;  %871 = vmatpush.msrb.mxu2 %v657_v52  ;;  %v5359_v35 = vld [vmem:[#allocation13 + $0x3e0] sm:$0xff]  ;;  %v5361_v36 = vld [vmem:[#allocation13 + $0x3e8] sm:$0xff] }
  0x47   : > { %832 = vmatpush.msrb.mxu0 %v651_v53  ;;  %852 = vmatpush.msrb.mxu1 %v5284_v54  ;;  %v5365_v39 = vld [vmem:[#allocation13 + $0x3c0] sm:$0xff]  ;;  %v5367_v40 = vld [vmem:[#allocation13 + $0x3c8] sm:$0xff] }
  0x48   : > { %892 = vmatpush.msrb.mxu3 %v5287_v55  ;;  %872 = vmatpush.msrb.mxu2 %v653_v56  ;;  %v5369_v43 = vld [vmem:[#allocation13 + $0x3a0] sm:$0xff]  ;;  %v5373_v44 = vld [vmem:[#allocation13 + $0x3a8] sm:$0xff] }
  0x49   : > { %3965 = vmatmul.msk.f32.gmra.mxu0 %vm402_vm0, %v371_v57  ;;  %3973 = vmatmul.msk.f32.gmra.mxu1 %vm402_vm0, %v371_v57  ;;  %v5375_v45 = vld [vmem:[#allocation13 + $0x380] sm:$0xff]  ;;  %v5377_v48 = vld [vmem:[#allocation13 + $0x388] sm:$0xff] }
  0x4a   : > { %3981 = vmatmul.msk.f32.gmra.mxu2 %vm402_vm0, %v371_v57  ;;  %3989 = vmatmul.msk.f32.gmra.mxu3 %vm402_vm0, %v371_v57  ;;  %v5383_v49 = vld [vmem:[#allocation13 + $0x360] sm:$0xff]  ;;  %v5385_v52 = vld [vmem:[#allocation13 + $0x368] sm:$0xff] }
  0x4b   : > { %833 = vmatpush.msrb.mxu0 %v647_v58  ;;  %853 = vmatpush.msrb.mxu1 %v5292_v59  ;;  %v5389_v53 = vld [vmem:[#allocation13 + $0x340] sm:$0xff]  ;;  %v5391_v56 = vld [vmem:[#allocation13 + $0x348] sm:$0xff] }
  0x4c   : > { %893 = vmatpush.msrb.mxu3 %v5297_v60  ;;  %873 = vmatpush.msrb.mxu2 %v649_v61  ;;  %v5393_v57 = vld [vmem:[#allocation13 + $0x320] sm:$0xff]  ;;  %v5397_v58 = vld [vmem:[#allocation13 + $0x328] sm:$0xff] }
  0x4d   : > { %834 = vmatpush.msrb.mxu0 %v643_v62  ;;  %854 = vmatpush.msrb.mxu1 %v5301_v63  ;;  %v5399_v61 = vld [vmem:[#allocation13 + $0x300] sm:$0xff]  ;;  %v5401_v62 = vld [vmem:[#allocation13 + $0x308] sm:$0xff] }
  0x4e   : > { %894 = vmatpush.msrb.mxu3 %v5304_v0  ;;  %874 = vmatpush.msrb.mxu2 %v645_v1  ;;  %v5407_v1 = vld [vmem:[#allocation13 + $0x2e0] sm:$0xff] }
  0x4f   : > { %835 = vmatpush.msrb.mxu0 %v639_v2  ;;  %855 = vmatpush.msrb.mxu1 %v5307_v3  ;;  %v5409_v2 = vld [vmem:[#allocation13 + $0x2e8] sm:$0xff] }
  0x50   : > { %895 = vmatpush.msrb.mxu3 %v5310_v4  ;;  %875 = vmatpush.msrb.mxu2 %v641_v5  ;;  %9391 = vst [vmem:[#allocation18_spill] sm:$0xff] %v5409_v2 }
  0x51   : > { %3966 = vmatmul.msk.f32.gmra.mxu0 %vm402_vm0, %v372_v6  ;;  %3974 = vmatmul.msk.f32.gmra.mxu1 %vm402_vm0, %v372_v6 }
  0x52   : > { %3982 = vmatmul.msk.f32.gmra.mxu2 %vm402_vm0, %v372_v6  ;;  %3990 = vmatmul.msk.f32.gmra.mxu3 %vm402_vm0, %v372_v6 }
  0x53   : > { %836 = vmatpush.msrb.mxu0 %v635_v7  ;;  %856 = vmatpush.msrb.mxu1 %v5315_v8  ;;  %v5417_v7 = vld [vmem:[#allocation13 + $0x2c0] sm:$0xff] }
  0x54   : > { %896 = vmatpush.msrb.mxu3 %v5320_v9  ;;  %876 = vmatpush.msrb.mxu2 %v637_v10  ;;  %9392 = vst [vmem:[#allocation19_spill] sm:$0xff] %v5417_v7  ;;  %v5419_v10 = vld [vmem:[#allocation13 + $0x2c8] sm:$0xff] }
  0x55   : > { %837 = vmatpush.msrb.mxu0 %v631_v11  ;;  %857 = vmatpush.msrb.mxu1 %v5324_v12  ;;  %9393 = vst [vmem:[#allocation20_spill] sm:$0xff] %v5419_v10  ;;  %v5421_v11 = vld [vmem:[#allocation13 + $0x2a0] sm:$0xff] }
  0x56   : > { %897 = vmatpush.msrb.mxu3 %v5327_v13  ;;  %877 = vmatpush.msrb.mxu2 %v633_v14  ;;  %9394 = vst [vmem:[#allocation21_spill] sm:$0xff] %v5421_v11  ;;  %v5425_v14 = vld [vmem:[#allocation13 + $0x2a8] sm:$0xff] }
  0x57   : > { %838 = vmatpush.msrb.mxu0 %v627_v15  ;;  %858 = vmatpush.msrb.mxu1 %v5330_v16  ;;  %9395 = vst [vmem:[#allocation22_spill] sm:$0xff] %v5425_v14  ;;  %v5427_v15 = vld [vmem:[#allocation13 + $0x280] sm:$0xff] }
  0x58   : > { %878 = vmatpush.msrb.mxu2 %v629_v17  ;;  %898 = vmatpush.msrb.mxu3 %v5333_v18  ;;  %9396 = vst [vmem:[#allocation23_spill] sm:$0xff] %v5427_v15  ;;  %v5429_v17 = vld [vmem:[#allocation13 + $0x288] sm:$0xff] }
  0x59   : > { %3967 = vmatmul.msk.f32.gmra.mxu0 %vm402_vm0, %v373_v19  ;;  %3975 = vmatmul.msk.f32.gmra.mxu1 %vm402_vm0, %v373_v19  ;;  %9397 = vst [vmem:[#allocation24_spill] sm:$0xff] %v5429_v17 }
  0x5a   : > { %3983 = vmatmul.msk.f32.gmra.mxu2 %vm402_vm0, %v373_v19  ;;  %3991 = vmatmul.msk.f32.gmra.mxu3 %vm402_vm0, %v373_v19 }
  0x5b   : > { %839 = vmatpush.msrb.mxu0 %v623_v22  ;;  %859 = vmatpush.msrb.mxu1 %v5338_v23 }
  0x5c   : > { %879 = vmatpush.msrb.mxu2 %v625_v26  ;;  %899 = vmatpush.msrb.mxu3 %v5343_v27  ;;  %v5439_v26 = vld [vmem:[#allocation13 + $0x260] sm:$0xff] }
  0x5d   : > { %1000 = vmatpush.msra.mxu1 %v5359_v35  ;;  %9398 = vst [vmem:[#allocation25_spill] sm:$0xff] %v5439_v26 }
  0x5e   : > { %1040 = vmatpush.msra.mxu3 %v5361_v36 }
  0x5f   : > { %1001 = vmatpush.msra.mxu1 %v5365_v39 }
  0x60   : > { %1041 = vmatpush.msra.mxu3 %v5367_v40 }
  0x61   : > { %3968 = vmatmul.msk.f32.gmra.mxu0 %vm402_vm0, %v374_v30  ;;  %3976 = vmatmul.msk.f32.gmra.mxu1 %vm402_vm0, %v374_v30 }
  0x62   : > { %3984 = vmatmul.msk.f32.gmra.mxu2 %vm402_vm0, %v374_v30  ;;  %3992 = vmatmul.msk.f32.gmra.mxu3 %vm402_vm0, %v374_v30  ;;  %v5441_v30 = vld [vmem:[#allocation13 + $0x268] sm:$0xff] }
  0x63   : > { %1002 = vmatpush.msra.mxu1 %v5369_v43  ;;  %1042 = vmatpush.msra.mxu3 %v5373_v44  ;;  %9399 = vst [vmem:[#allocation26_spill] sm:$0xff] %v5441_v30 }
  0x65   : > { %1003 = vmatpush.msra.mxu1 %v5375_v45  ;;  %1043 = vmatpush.msra.mxu3 %v5377_v48 }
  0x67   : > { %1004 = vmatpush.msra.mxu1 %v5383_v49  ;;  %1044 = vmatpush.msra.mxu3 %v5385_v52 }
  0x69   : > { %3969 = vmatmul.msk.f32.gmra.mxu0 %vm402_vm0, %v375_v31  ;;  %3977 = vmatmul.msk.f32.gmra.mxu1 %vm402_vm0, %v375_v31 }
  0x6a   : > { %3985 = vmatmul.msk.f32.gmra.mxu2 %vm402_vm0, %v375_v31  ;;  %3993 = vmatmul.msk.f32.gmra.mxu3 %vm402_vm0, %v375_v31 }
  0x6b   : > { %1005 = vmatpush.msra.mxu1 %v5389_v53  ;;  %1045 = vmatpush.msra.mxu3 %v5391_v56 }
  0x6d   : > { %1006 = vmatpush.msra.mxu1 %v5393_v57  ;;  %1046 = vmatpush.msra.mxu3 %v5397_v58 }
  0x6f   : > { %1007 = vmatpush.msra.mxu1 %v5399_v61  ;;  %1047 = vmatpush.msra.mxu3 %v5401_v62 }
  0x71   : > { %840 = vmatmul.f32.vlgmr.msrb.gmra.mxu0 %v816_v32  ;;  %860 = vmatmul.f32.vlgmr.msrb.gmra.mxu1 %v816_v32 }
  0x72   : > { %880 = vmatmul.f32.vlgmr.msrb.gmra.mxu2 %v816_v32  ;;  %900 = vmatmul.f32.vlgmr.msrb.gmra.mxu3 %v816_v32 }
  0x73   : > { %1008 = vmatpush.msra.mxu1 %v5407_v1  ;;  %1048 = vmatpush.msra.mxu3 %v5409_v2 }
  0x75   : > { %1009 = vmatpush.msra.mxu1 %v5417_v7  ;;  %1049 = vmatpush.msra.mxu3 %v5419_v10  ;;  %v5459_v10 = vld [vmem:[#allocation13 + $0x200] sm:$0xff]  ;;  %v5489_v7 = vld [vmem:[#allocation13 + $0x1c8] sm:$0xff] }
  0x76   : > { %9406 = vst [vmem:[#allocation33_spill] sm:$0xff] %v5459_v10 }
  0x77   : > { %1010 = vmatpush.msra.mxu1 %v5421_v11  ;;  %1050 = vmatpush.msra.mxu3 %v5425_v14  ;;  %v5449_v14 = vld [vmem:[#allocation13 + $0x240] sm:$0xff]  ;;  %v5457_v11 = vld [vmem:[#allocation13 + $0x228] sm:$0xff]  ;;  %9417 = vst [vmem:[#allocation44_spill] sm:$0xff] %v5489_v7 }
  0x78   : > { %9402 = vst [vmem:[#allocation29_spill] sm:$0xff] %v5449_v14 }
  0x79   : > { %1011 = vmatpush.msra.mxu1 %v5427_v15  ;;  %1051 = vmatpush.msra.mxu3 %v5429_v17  ;;  %v5451_v15 = vld [vmem:[#allocation13 + $0x248] sm:$0xff]  ;;  %v5453_v17 = vld [vmem:[#allocation13 + $0x220] sm:$0xff]  ;;  %9405 = vst [vmem:[#allocation32_spill] sm:$0xff] %v5457_v11 }
  0x7a   : > { %9403 = vst [vmem:[#allocation30_spill] sm:$0xff] %v5451_v15 }
  0x7b   : > { %1012 = vmatpush.msra.mxu1 %v5439_v26  ;;  %1052 = vmatpush.msra.mxu3 %v5441_v30  ;;  %9404 = vst [vmem:[#allocation31_spill] sm:$0xff] %v5453_v17  ;;  %v5469_v30 = vld [vmem:[#allocation13 + $0x1e8] sm:$0xff] }
  0x7c   : > { %9409 = vst [vmem:[#allocation36_spill] sm:$0xff] %v5469_v30  ;;  %1020 = vmatpush.msra.mxu2 %v5469_v30  ;;  %v5497_v30 = vld [vmem:[#allocation13 + $0x1a0] sm:$0xff] }
  0x7d   : > { %1013 = vmatpush.msra.mxu1 %v5449_v14  ;;  %1053 = vmatpush.msra.mxu3 %v5451_v15  ;;  %v5471_v14 = vld [vmem:[#allocation13 + $0x3f0] sm:$0xff]  ;;  %9420 = vst [vmem:[#allocation47_spill] sm:$0xff] %v5497_v30 }
  0x7e   : > { %9410 = vst [vmem:[#allocation37_spill] sm:$0xff] %v5471_v14  ;;  %1021 = vmatpush.msra.mxu2 %v5489_v7  ;;  %v5511_v7 = vld [vmem:[#allocation13 + $0x188] sm:$0xff] }
  0x7f   : > { %1014 = vmatpush.msra.mxu1 %v5453_v17  ;;  %1054 = vmatpush.msra.mxu3 %v5457_v11  ;;  %v5479_v17 = vld [vmem:[#allocation13 + $0x3f8] sm:$0xff]  ;;  %9425 = vst [vmem:[#allocation52_spill] sm:$0xff] %v5511_v7 }
  0x80   : > { %9413 = vst [vmem:[#allocation40_spill] sm:$0xff] %v5479_v17 }
  0x81   : > { %1015 = vmatpush.msra.mxu1 %v5459_v10 }
  0x83   : > { %1080 = vmatpush.msrb.mxu1 %v5471_v14  ;;  %v5515_v14 = vld [vmem:[#allocation13 + $0x398] sm:$0xff] }
  0x84   : > { %9427 = vst [vmem:[#allocation54_spill] sm:$0xff] %v5515_v14 }
  0xae   : > { %v5411_v5 = vpop.f32.mrf.mxu0  ;;  %v5413_v6 = vpop.f32.mrf.mxu1 }
  0xb5   : > { %v5435_v19 = vpop.f32.mrf.mxu2  ;;  %v5437_v22 = vpop.f32.mrf.mxu3 }
  0xb6   : > { %v5443_v31 = vpop.f32.mrf.mxu0  ;;  %v5445_v32 = vpop.f32.mrf.mxu1 }
  0xb7   : > { %9400 = vst [vmem:[#allocation27_spill] sm:$0xff] %v5443_v31  ;;  %v5461_v31 = vld [vmem:[#allocation13 + $0x208] sm:$0xff] }
  0xb8   : > { %9401 = vst [vmem:[#allocation28_spill] sm:$0xff] %v5445_v32  ;;  %1055 = vmatpush.msra.mxu3 %v5461_v31  ;;  %v5467_v32 = vld [vmem:[#allocation13 + $0x1e0] sm:$0xff] }
  0xb9   : > { %9407 = vst [vmem:[#allocation34_spill] sm:$0xff] %v5461_v31  ;;  %980 = vmatpush.msra.mxu0 %v5467_v32  ;;  %v5487_v31 = vld [vmem:[#allocation13 + $0x1c0] sm:$0xff] }
  0xba   : > { %9408 = vst [vmem:[#allocation35_spill] sm:$0xff] %v5467_v32  ;;  %1120 = vmatpush.msrb.mxu3 %v5479_v17  ;;  %v5505_v32 = vld [vmem:[#allocation13 + $0x3b8] sm:$0xff]  ;;  %v5507_v17 = vld [vmem:[#allocation13 + $0x180] sm:$0xff] }
  0xbb   : > { %9416 = vst [vmem:[#allocation43_spill] sm:$0xff] %v5487_v31  ;;  %981 = vmatpush.msra.mxu0 %v5487_v31  ;;  %v5513_v31 = vld [vmem:[#allocation13 + $0x390] sm:$0xff] }
  0xbc   : > { %9423 = vst [vmem:[#allocation50_spill] sm:$0xff] %v5505_v32 }
  0xbd   : > { %v5473_v15 = vpop.f32.mrf.mxu2  ;;  %v5475_v26 = vpop.f32.mrf.mxu3  ;;  %9424 = vst [vmem:[#allocation51_spill] sm:$0xff] %v5507_v17  ;;  %982 = vmatpush.msra.mxu0 %v5497_v30  ;;  %v5523_v30 = vld [vmem:[#allocation13 + $0x160] sm:$0xff] }
  0xbe   : > { %9411 = vst [vmem:[#allocation38_spill] sm:$0xff] %v5473_v15  ;;  %v5481_v11 = vpop.f32.mrf.mxu0  ;;  %v5483_v10 = vpop.f32.mrf.mxu1  ;;  %v5491_v15 = vld [vmem:[#allocation13 + $0x3d0] sm:$0xff] }
  0xbf   : > { %9412 = vst [vmem:[#allocation39_spill] sm:$0xff] %v5475_v26  ;;  %v5495_v26 = vld [vmem:[#allocation13 + $0x3d8] sm:$0xff]  ;;  %1081 = vmatpush.msrb.mxu1 %v5491_v15  ;;  %983 = vmatpush.msra.mxu0 %v5507_v17 }
  0xc0   : > { %9414 = vst [vmem:[#allocation41_spill] sm:$0xff] %v5481_v11  ;;  %v5499_v11 = vld [vmem:[#allocation13 + $0x1a8] sm:$0xff]  ;;  %1121 = vmatpush.msrb.mxu3 %v5495_v26  ;;  %v5535_v17 = vld [vmem:[#allocation13 + $0x378] sm:$0xff] }
  0xc1   : > { %9415 = vst [vmem:[#allocation42_spill] sm:$0xff] %v5483_v10  ;;  %v5503_v10 = vld [vmem:[#allocation13 + $0x3b0] sm:$0xff]  ;;  %1022 = vmatpush.msra.mxu2 %v5499_v11  ;;  %984 = vmatpush.msra.mxu0 %v5523_v30 }
  0xc2   : > { %9418 = vst [vmem:[#allocation45_spill] sm:$0xff] %v5491_v15  ;;  %1082 = vmatpush.msrb.mxu1 %v5503_v10  ;;  %1122 = vmatpush.msrb.mxu3 %v5505_v32  ;;  %v5545_v32 = vld [vmem:[#allocation13 + $0x148] sm:$0xff] }
  0xc3   : > { %9419 = vst [vmem:[#allocation46_spill] sm:$0xff] %v5495_v26  ;;  %1023 = vmatpush.msra.mxu2 %v5511_v7  ;;  %v5527_v26 = vld [vmem:[#allocation13 + $0x370] sm:$0xff] }
  0xc4   : > { %9421 = vst [vmem:[#allocation48_spill] sm:$0xff] %v5499_v11  ;;  %1083 = vmatpush.msrb.mxu1 %v5513_v31  ;;  %1123 = vmatpush.msrb.mxu3 %v5515_v14  ;;  %v5525_v11 = vld [vmem:[#allocation13 + $0x168] sm:$0xff]  ;;  %v5543_v14 = vld [vmem:[#allocation13 + $0x140] sm:$0xff] }
  0xc5   : > { %9422 = vst [vmem:[#allocation49_spill] sm:$0xff] %v5503_v10  ;;  %v5529_v15 = vpop.f32.mrf.mxu2  ;;  %v5531_v2 = vpop.f32.mrf.mxu3  ;;  %1024 = vmatpush.msra.mxu2 %v5525_v11  ;;  %985 = vmatpush.msra.mxu0 %v5543_v14 }
  0xc6   : > { %9426 = vst [vmem:[#allocation53_spill] sm:$0xff] %v5513_v31  ;;  %v5537_v7 = vpop.f32.mrf.mxu0  ;;  %v5539_v31 = vpop.f32.mrf.mxu1  ;;  %1084 = vmatpush.msrb.mxu1 %v5527_v26  ;;  %1124 = vmatpush.msrb.mxu3 %v5535_v17 }
  0xc7   : > { %9428 = vst [vmem:[#allocation55_spill] sm:$0xff] %v5523_v30  ;;  %1025 = vmatpush.msra.mxu2 %v5545_v32  ;;  %v5561_v30 = vld [vmem:[#allocation13 + $0x338] sm:$0xff] }
  0xc8   : > { %9429 = vst [vmem:[#allocation56_spill] sm:$0xff] %v5525_v11  ;;  %v5553_v11 = vld [vmem:[#allocation13 + $0x120] sm:$0xff] }
  0xc9   : > { %9430 = vst [vmem:[#allocation57_spill] sm:$0xff] %v5527_v26  ;;  %986 = vmatpush.msra.mxu0 %v5553_v11  ;;  %v5571_v26 = vld [vmem:[#allocation13 + $0x318] sm:$0xff] }
  0xca   : > { %9431 = vst [vmem:[#allocation58_spill] sm:$0xff] %v5529_v15  ;;  %v5547_v15 = vld [vmem:[#allocation13 + $0x350] sm:$0xff] }
  0xcb   : > { %9432 = vst [vmem:[#allocation59_spill] sm:$0xff] %v5531_v2  ;;  %v5551_v2 = vld [vmem:[#allocation13 + $0x358] sm:$0xff]  ;;  %1085 = vmatpush.msrb.mxu1 %v5547_v15 }
  0xcc   : > { %9433 = vst [vmem:[#allocation60_spill] sm:$0xff] %v5535_v17  ;;  %1125 = vmatpush.msrb.mxu3 %v5551_v2  ;;  %v5563_v17 = vld [vmem:[#allocation13 + $0x100] sm:$0xff] }
  0xcd   : > { %9434 = vst [vmem:[#allocation61_spill] sm:$0xff] %v5537_v7  ;;  %v5555_v7 = vld [vmem:[#allocation13 + $0x128] sm:$0xff]  ;;  %987 = vmatpush.msra.mxu0 %v5563_v17  ;;  %v5587_v10 = vpop.f32.mrf.mxu3 }
  0xce   : > { %9435 = vst [vmem:[#allocation62_spill] sm:$0xff] %v5539_v31  ;;  %v5559_v31 = vld [vmem:[#allocation13 + $0x330] sm:$0xff]  ;;  %1026 = vmatpush.msra.mxu2 %v5555_v7  ;;  %1126 = vmatpush.msrb.mxu3 %v5561_v30 }
  0xcf   : > { %9436 = vst [vmem:[#allocation63_spill] sm:$0xff] %v5543_v14  ;;  %v5569_v14 = vld [vmem:[#allocation13 + $0x310] sm:$0xff]  ;;  %1086 = vmatpush.msrb.mxu1 %v5559_v31 }
  0xd0   : > { %9437 = vst [vmem:[#allocation64_spill] sm:$0xff] %v5545_v32  ;;  %v5567_v32 = vld [vmem:[#allocation13 + $0x108] sm:$0xff]  ;;  %1127 = vmatpush.msrb.mxu3 %v5571_v26 }
  0xd1   : > { %9438 = vst [vmem:[#allocation65_spill] sm:$0xff] %v5547_v15  ;;  %1027 = vmatpush.msra.mxu2 %v5567_v32  ;;  %1087 = vmatpush.msrb.mxu1 %v5569_v14  ;;  %v5585_v15 = vpop.f32.mrf.mxu2 }
  0xd2   : > { %9439 = vst [vmem:[#allocation66_spill] sm:$0xff] %v5551_v2  ;;  %v5583_v2 = vld [vmem:[#allocation13 + $0x2f0] sm:$0xff] }
  0xd3   : > { %9440 = vst [vmem:[#allocation67_spill] sm:$0xff] %v5553_v11  ;;  %v5579_v11 = vld [vmem:[#allocation13 + $0xe0] sm:$0xff]  ;;  %1088 = vmatpush.msrb.mxu1 %v5583_v2 }
  0xd4   : > { %9441 = vst [vmem:[#allocation68_spill] sm:$0xff] %v5555_v7  ;;  %v5581_v7 = vld [vmem:[#allocation13 + $0xe8] sm:$0xff]  ;;  %988 = vmatpush.msra.mxu0 %v5579_v11 }
  0xd5   : > { %9442 = vst [vmem:[#allocation69_spill] sm:$0xff] %v5561_v30  ;;  %1028 = vmatpush.msra.mxu2 %v5581_v7  ;;  %v5601_v30 = vld [vmem:[#allocation13 + $0xc8] sm:$0xff] }
  0xd6   : > { %9443 = vst [vmem:[#allocation70_spill] sm:$0xff] %v5563_v17  ;;  %v5591_v17 = vld [vmem:[#allocation13 + $0x2f8] sm:$0xff] }
  0xd7   : > { %9444 = vst [vmem:[#allocation71_spill] sm:$0xff] %v5567_v32  ;;  %v5593_v32 = vpop.f32.mrf.mxu0  ;;  %1128 = vmatpush.msrb.mxu3 %v5591_v17  ;;  %1029 = vmatpush.msra.mxu2 %v5601_v30 }
  0xd8   : > { %9445 = vst [vmem:[#allocation72_spill] sm:$0xff] %v5569_v14  ;;  %v5595_v14 = vpop.f32.mrf.mxu1 }
  0xd9   : > { %9446 = vst [vmem:[#allocation73_spill] sm:$0xff] %v5571_v26  ;;  %v5599_v26 = vld [vmem:[#allocation13 + $0xc0] sm:$0xff] }
  0xda   : > { %9447 = vst [vmem:[#allocation74_spill] sm:$0xff] %v5579_v11  ;;  %989 = vmatpush.msra.mxu0 %v5599_v26  ;;  %v5619_v11 = vld [vmem:[#allocation13 + $0x2b8] sm:$0xff] }
  0xdb   : > { %9448 = vst [vmem:[#allocation75_spill] sm:$0xff] %v5581_v7  ;;  %v5615_v7 = vld [vmem:[#allocation13 + $0x2b0] sm:$0xff] }
  0xdc   : > { %9449 = vst [vmem:[#allocation76_spill] sm:$0xff] %v5583_v2 }
  0xdd   : > { %9450 = vst [vmem:[#allocation77_spill] sm:$0xff] %v5585_v15  ;;  %v5603_v15 = vld [vmem:[#allocation13 + $0x2d0] sm:$0xff] }
  0xde   : > { %9451 = vst [vmem:[#allocation78_spill] sm:$0xff] %v5587_v10  ;;  %v5607_v10 = vld [vmem:[#allocation13 + $0x2d8] sm:$0xff]  ;;  %1089 = vmatpush.msrb.mxu1 %v5603_v15 }
  0xdf   : > { %9452 = vst [vmem:[#allocation79_spill] sm:$0xff] %v5591_v17  ;;  %1129 = vmatpush.msrb.mxu3 %v5607_v10  ;;  %v5643_v17 = vpop.f32.mrf.mxu0 }
  0xe0   : > { %9453 = vst [vmem:[#allocation80_spill] sm:$0xff] %v5593_v32  ;;  %v5611_v32 = vld [vmem:[#allocation13 + $0xa0] sm:$0xff]  ;;  %1090 = vmatpush.msrb.mxu1 %v5615_v7  ;;  %v5645_v2 = vpop.f32.mrf.mxu1 }
  0xe1   : > { %9454 = vst [vmem:[#allocation81_spill] sm:$0xff] %v5595_v14  ;;  %v5613_v14 = vld [vmem:[#allocation13 + $0xa8] sm:$0xff]  ;;  %990 = vmatpush.msra.mxu0 %v5611_v32  ;;  %1130 = vmatpush.msrb.mxu3 %v5619_v11 }
  0xe2   : > { %9455 = vst [vmem:[#allocation82_spill] sm:$0xff] %v5599_v26  ;;  %1030 = vmatpush.msra.mxu2 %v5613_v14  ;;  %v5625_v26 = vld [vmem:[#allocation13 + $0x88] sm:$0xff] }
  0xe3   : > { %9456 = vst [vmem:[#allocation83_spill] sm:$0xff] %v5601_v30  ;;  %v5623_v30 = vld [vmem:[#allocation13 + $0x80] sm:$0xff] }
  0xe4   : > { %9457 = vst [vmem:[#allocation84_spill] sm:$0xff] %v5603_v15  ;;  %991 = vmatpush.msra.mxu0 %v5623_v30  ;;  %1031 = vmatpush.msra.mxu2 %v5625_v26  ;;  %v5631_v15 = vld [vmem:[#allocation13 + $0x298] sm:$0xff] }
  0xe5   : > { %9458 = vst [vmem:[#allocation85_spill] sm:$0xff] %v5607_v10  ;;  %v5627_v10 = vld [vmem:[#allocation13 + $0x290] sm:$0xff]  ;;  %1131 = vmatpush.msrb.mxu3 %v5631_v15 }
  0xe6   : > { %9459 = vst [vmem:[#allocation86_spill] sm:$0xff] %v5611_v32  ;;  %1091 = vmatpush.msrb.mxu1 %v5627_v10  ;;  %v5637_v32 = vld [vmem:[#allocation13 + $0x60] sm:$0xff] }
  0xe7   : > { %9460 = vst [vmem:[#allocation87_spill] sm:$0xff] %v5613_v14  ;;  %v5635_v14 = vpop.f32.mrf.mxu3  ;;  %992 = vmatpush.msra.mxu0 %v5637_v32 }
  0xe8   : > { %9461 = vst [vmem:[#allocation88_spill] sm:$0xff] %v5615_v7  ;;  %v5641_v7 = vld [vmem:[#allocation13 + $0x270] sm:$0xff] }
  0xe9   : > { %9462 = vst [vmem:[#allocation89_spill] sm:$0xff] %v5619_v11  ;;  %v5639_v11 = vld [vmem:[#allocation13 + $0x68] sm:$0xff]  ;;  %1092 = vmatpush.msrb.mxu1 %v5641_v7 }
  0xea   : > { %9463 = vst [vmem:[#allocation90_spill] sm:$0xff] %v5623_v30  ;;  %1032 = vmatpush.msra.mxu2 %v5639_v11  ;;  %v5651_v30 = vpop.f32.mrf.mxu2 }
  0xeb   : > { %9464 = vst [vmem:[#allocation91_spill] sm:$0xff] %v5625_v26  ;;  %v5649_v26 = vld [vmem:[#allocation13 + $0x278] sm:$0xff] }
  0xec   : > { %9465 = vst [vmem:[#allocation92_spill] sm:$0xff] %v5627_v10  ;;  %1132 = vmatpush.msrb.mxu3 %v5649_v26  ;;  %v5659_v10 = vld [vmem:[#allocation13 + $0x250] sm:$0xff] }
  0xed   : > { %9466 = vst [vmem:[#allocation93_spill] sm:$0xff] %v5631_v15  ;;  %v5657_v15 = vld [vmem:[#allocation13 + $0x48] sm:$0xff]  ;;  %1093 = vmatpush.msrb.mxu1 %v5659_v10 }
  0xee   : > { %9467 = vst [vmem:[#allocation94_spill] sm:$0xff] %v5635_v14  ;;  %v5655_v14 = vld [vmem:[#allocation13 + $0x40] sm:$0xff]  ;;  %1033 = vmatpush.msra.mxu2 %v5657_v15 }
  0xef   : > { %9468 = vst [vmem:[#allocation95_spill] sm:$0xff] %v5637_v32  ;;  %993 = vmatpush.msra.mxu0 %v5655_v14  ;;  %v5675_v32 = vld [vmem:[#allocation13 + $0x238] sm:$0xff] }
  0xf0   : > { %9469 = vst [vmem:[#allocation96_spill] sm:$0xff] %v5639_v11  ;;  %v5671_v11 = vld [vmem:[#allocation13 + $0x230] sm:$0xff] }
  0xf1   : > { %9470 = vst [vmem:[#allocation97_spill] sm:$0xff] %v5641_v7  ;;  %1094 = vmatpush.msrb.mxu1 %v5671_v11  ;;  %v5701_v7 = vpop.f32.mrf.mxu1 }
  0xf2   : > { %9471 = vst [vmem:[#allocation98_spill] sm:$0xff] %v5643_v17  ;;  %v5663_v17 = vld [vmem:[#allocation13 + $0x258] sm:$0xff] }
  0xf3   : > { %9472 = vst [vmem:[#allocation99_spill] sm:$0xff] %v5645_v2  ;;  %1133 = vmatpush.msrb.mxu3 %v5663_v17  ;;  %v5667_v2 = vld [vmem:[#allocation13 + $0x20] sm:$0xff] }
  0xf4   : > { %9473 = vst [vmem:[#allocation100_spill] sm:$0xff] %v5649_v26  ;;  %994 = vmatpush.msra.mxu0 %v5667_v2  ;;  %v5693_v26 = vpop.f32.mrf.mxu3 }
  0xf5   : > { %9474 = vst [vmem:[#allocation101_spill] sm:$0xff] %v5651_v30  ;;  %v5669_v30 = vld [vmem:[#allocation13 + $0x28] sm:$0xff]  ;;  %1134 = vmatpush.msrb.mxu3 %v5675_v32 }
  0xf6   : > { %9475 = vst [vmem:[#allocation102_spill] sm:$0xff] %v5655_v14  ;;  %1034 = vmatpush.msra.mxu2 %v5669_v30  ;;  %v5681_v14 = vld [vmem:[#allocation13 + $0x8] sm:$0xff] }
  0xf7   : > { %9476 = vst [vmem:[#allocation103_spill] sm:$0xff] %v5657_v15  ;;  %v5679_v15 = vld [vmem:[#allocation13] sm:$0xff] }
  0xf8   : > { %9477 = vst [vmem:[#allocation104_spill] sm:$0xff] %v5659_v10  ;;  %995 = vmatpush.msra.mxu0 %v5679_v15  ;;  %1035 = vmatpush.msra.mxu2 %v5681_v14  ;;  %v5687_v10 = vld [vmem:[#allocation13 + $0x218] sm:$0xff] }
  0xf9   : > { %9478 = vst [vmem:[#allocation105_spill] sm:$0xff] %v5663_v17  ;;  %v5683_v17 = vld [vmem:[#allocation13 + $0x210] sm:$0xff]  ;;  %1135 = vmatpush.msrb.mxu3 %v5687_v10 }
  0xfa   : > { %9479 = vst [vmem:[#allocation106_spill] sm:$0xff] %v5667_v2  ;;  %v5689_v2 = vld [vmem:[#allocation5] sm:$0xff]  ;;  %1095 = vmatpush.msrb.mxu1 %v5683_v17 }
  0xfb   : > { %9480 = vst [vmem:[#allocation107_spill] sm:$0xff] %v5669_v30  ;;  %v5691_v30 = vld [vmem:[#allocation13 + $0x1f0] sm:$0xff]  ;;  %1016 = vmatmul.f32.vlgmr.msra.gmra.mxu1 %v5689_v2  ;;  %1056 = vmatmul.f32.vlgmr.msra.gmra.mxu3 %v5689_v2 }
  0xfc   : > { %9481 = vst [vmem:[#allocation108_spill] sm:$0xff] %v5671_v11  ;;  %v5699_v11 = vpop.f32.mrf.mxu0  ;;  %1060 = vmatpush.msrb.mxu0 %v5691_v30  ;;  %1228 = vmatpush.msra.mxu1 %v5224_v20  ;;  %v5731_v20 = vld [vmem:[#allocation13 + $0x170] sm:$0xff] }
  0xfd   : > { %9482 = vst [vmem:[#allocation109_spill] sm:$0xff] %v5675_v32  ;;  %v5697_v32 = vld [vmem:[#allocation13 + $0x1f8] sm:$0xff]  ;;  %1268 = vmatpush.msra.mxu3 %v5228_v21 }
  0xfe   : > { %9483 = vst [vmem:[#allocation110_spill] sm:$0xff] %v5679_v15  ;;  %v5707_v15 = vld [vmem:[#allocation13 + $0x1d8] sm:$0xff]  ;;  %1100 = vmatpush.msrb.mxu2 %v5697_v32  ;;  %1229 = vmatpush.msra.mxu1 %v5232_v24 }
  0xff   : > { %9484 = vst [vmem:[#allocation111_spill] sm:$0xff] %v5681_v14  ;;  %v5705_v14 = vld [vmem:[#allocation13 + $0x1d0] sm:$0xff]  ;;  %1269 = vmatpush.msra.mxu3 %v5235_v25  ;;  %v5733_v21 = vld [vmem:[#allocation13 + $0x178] sm:$0xff] }
 0x100   : > { %9485 = vst [vmem:[#allocation112_spill] sm:$0xff] %v5691_v30  ;;  %1061 = vmatpush.msrb.mxu0 %v5705_v14  ;;  %1101 = vmatpush.msrb.mxu2 %v5707_v15  ;;  %v5723_v30 = vld [vmem:[#allocation13 + $0x190] sm:$0xff]  ;;  %v5739_v24 = vld [vmem:[#allocation12] sm:$0xf] }
 0x101   : > { %9486 = vst [vmem:[#allocation113_spill] sm:$0xff] %v5693_v26  ;;  %v5713_v26 = vld [vmem:[#allocation13 + $0x1b0] sm:$0xff]  ;;  %1230 = vmatpush.msra.mxu1 %v5238_v28  ;;  %1270 = vmatpush.msra.mxu3 %v5241_v29  ;;  %v5749_v29 = vld [vmem:[#allocation13 + $0x158] sm:$0xff] }
 0x102   : > { %9487 = vst [vmem:[#allocation114_spill] sm:$0xff] %v5697_v32  ;;  %v5725_v32 = vld [vmem:[#allocation13 + $0x198] sm:$0xff]  ;;  %1062 = vmatpush.msrb.mxu0 %v5713_v26  ;;  %v5747_v28 = vld [vmem:[#allocation13 + $0x150] sm:$0xff] }
 0x103   : > { %9488 = vst [vmem:[#allocation115_spill] sm:$0xff] %v5699_v11  ;;  %v5715_v11 = vld [vmem:[#allocation13 + $0x1b8] sm:$0xff]  ;;  %1231 = vmatpush.msra.mxu1 %v5246_v33  ;;  %1271 = vmatpush.msra.mxu3 %v5251_v34  ;;  %v5760_v33 = vperm.slane %v5739_v24, 0  ;;  %v5763_v34 = vperm.slane %v5739_v24, 1 }
 0x104   : > { %9489 = vst [vmem:[#allocation116_spill] sm:$0xff] %v5701_v7  ;;  %v5717_v7 = vpop.f32.mrf.mxu2  ;;  %1102 = vmatpush.msrb.mxu2 %v5715_v11  ;;  %1063 = vmatpush.msrb.mxu0 %v5723_v30  ;;  %v5741_v25 = vpop.f32.mrf.mxu0 }
 0x105   : > { %9490 = vst [vmem:[#allocation117_spill] sm:$0xff] %v5713_v26  ;;  %v5743_v26 = vpop.f32.mrf.mxu1  ;;  %1232 = vmatpush.msra.mxu1 %v5255_v37  ;;  %1272 = vmatpush.msra.mxu3 %v5258_v38  ;;  %v5769_v37 = vld [vmem:[#allocation13 + $0x110] sm:$0xff]  ;;  %v5771_v38 = vld [vmem:[#allocation13 + $0x118] sm:$0xff] }
 0x106   : > { %9491 = vst [vmem:[#allocation118_spill] sm:$0xff] %v5717_v7  ;;  %v5735_v7 = vpop.f32.mrf.mxu3  ;;  %1103 = vmatpush.msrb.mxu2 %v5725_v32  ;;  %1064 = vmatpush.msrb.mxu0 %v5731_v20 }
 0x107   : > { %9492 = vst [vmem:[#allocation119_spill] sm:$0xff] %v5733_v21  ;;  %1233 = vmatpush.msra.mxu1 %v5261_v41  ;;  %1273 = vmatpush.msra.mxu3 %v5264_v42  ;;  %v445_v41 = vadd.f32 %v5411_v5, %v5760_v33  ;;  %v486_v42 = vadd.f32 %v5413_v6, %v5763_v34  ;;  %v5800_v6 = vperm.slane %v5739_v24, 3 }
 0x108   : > { %9493 = vst [vmem:[#allocation120_spill] sm:$0xff] %v5735_v7  ;;  %1104 = vmatpush.msrb.mxu2 %v5733_v21  ;;  %v5755_v7 = vld [vmem:[#allocation13 + $0x130] sm:$0xff]  ;;  %1065 = vmatpush.msrb.mxu0 %v5747_v28 }
 0x109   : > { %9494 = vst [vmem:[#allocation121_spill] sm:$0xff] %v5741_v25  ;;  %v5757_v25 = vld [vmem:[#allocation13 + $0x138] sm:$0xff]  ;;  %1234 = vmatpush.msra.mxu1 %v5269_v46  ;;  %1274 = vmatpush.msra.mxu3 %v5274_v47  ;;  %v5793_v47 = vld [vmem:[#allocation13 + $0xd0] sm:$0xff] }
 0x10a   : > { %9495 = vst [vmem:[#allocation122_spill] sm:$0xff] %v5743_v26  ;;  %1105 = vmatpush.msrb.mxu2 %v5749_v29  ;;  %1066 = vmatpush.msrb.mxu0 %v5755_v7 }
 0x10b   : > { %9496 = vst [vmem:[#allocation123_spill] sm:$0xff] %v5747_v28  ;;  %v5779_v28 = vld [vmem:[#allocation13 + $0xf0] sm:$0xff]  ;;  %1235 = vmatpush.msra.mxu1 %v5278_v50  ;;  %1275 = vmatpush.msra.mxu3 %v5281_v51  ;;  %v5806_v51 = vld [vmem:[#allocation13 + $0xb8] sm:$0xff] }
 0x10c   : > { %9497 = vst [vmem:[#allocation124_spill] sm:$0xff] %v5749_v29  ;;  %v5773_v26 = vpop.f32.mrf.mxu2  ;;  %1106 = vmatpush.msrb.mxu2 %v5757_v25  ;;  %v5781_v29 = vld [vmem:[#allocation13 + $0xf8] sm:$0xff]  ;;  %1067 = vmatpush.msrb.mxu0 %v5769_v37  ;;  %v5804_v50 = vld [vmem:[#allocation13 + $0xb0] sm:$0xff] }
 0x10d   : > { %9498 = vst [vmem:[#allocation125_spill] sm:$0xff] %v5757_v25  ;;  %v861_v46 = vpop.f32.mrf.mxu1  ;;  %v5795_v25 = vld [vmem:[#allocation13 + $0xd8] sm:$0xff]  ;;  %1236 = vmatpush.msra.mxu1 %v5284_v54  ;;  %1276 = vmatpush.msra.mxu3 %v5287_v55  ;;  %v568_v54 = vadd.f32 %v5437_v22, %v5800_v6 }
 0x10e   : > { %9499 = vst [vmem:[#allocation126_spill] sm:$0xff] %v5760_v33  ;;  %v5787_v21 = vpop.f32.mrf.mxu3  ;;  %1107 = vmatpush.msrb.mxu2 %v5771_v38  ;;  %v905_v33 = vadd.f32 %v861_v46, %v486_v42  ;;  %1068 = vmatpush.msrb.mxu0 %v5779_v28 }
 0x10f   : > { %9500 = vst [vmem:[#allocation127_spill] sm:$0xff] %v5763_v34  ;;  %1237 = vmatpush.msra.mxu1 %v5292_v59  ;;  %1277 = vmatpush.msra.mxu3 %v5297_v60  ;;  %v5826_v60 = vld [vmem:[#allocation13 + $0x70] sm:$0xff] }
 0x110   : > { %9501 = vst [vmem:[#allocation128_spill] sm:$0xff] %v5773_v26  ;;  %v841_v26 = vpop.f32.mrf.mxu0  ;;  %1108 = vmatpush.msrb.mxu2 %v5781_v29  ;;  %v3995_v34 = vmul.f32 -1.442695, %v905_v33  ;;  %1069 = vmatpush.msrb.mxu0 %v5793_v47 }
 0x111   : > { %9502 = vst [vmem:[#allocation129_spill] sm:$0xff] %v5787_v21  ;;  %v904_v5 = vadd.f32 %v841_v26, %v445_v41  ;;  %v5812_v26 = vld [vmem:[#allocation13 + $0x90] sm:$0xff]  ;;  %v5814_v41 = vld [vmem:[#allocation13 + $0x98] sm:$0xff]  ;;  %1238 = vmatpush.msra.mxu1 %v5301_v63  ;;  %1278 = vmatpush.msra.mxu3 %v5304_v0 }
 0x112   : > { %9503 = vst [vmem:[#allocation130_spill] sm:$0xff] %v5800_v6  ;;  %1109 = vmatpush.msrb.mxu2 %v5795_v25  ;;  %1070 = vmatpush.msrb.mxu0 %v5804_v50  ;;  %v5834_v63 = vld [vmem:[#allocation13 + $0x50] sm:$0xff]  ;;  %v5836_v0 = vld [vmem:[#allocation13 + $0x58] sm:$0xff] }
 0x113   : > { %v3994_v21 = vmul.f32 -1.442695, %v904_v5  ;;  %1239 = vmatpush.msra.mxu1 %v5307_v3  ;;  %1279 = vmatpush.msra.mxu3 %v5310_v4  ;;  %v5842_v3 = vld [vmem:[#allocation13 + $0x30] sm:$0xff]  ;;  %v5844_v4 = vld [vmem:[#allocation13 + $0x38] sm:$0xff]  ;;  %v5859_v5 = vperm.slane %v5739_v24, 2 }
 0x114   : > { %1110 = vmatpush.msrb.mxu2 %v5806_v51  ;;  %v5822_v55 = vpop.f32.mrf.mxu2  ;;  %1071 = vmatpush.msrb.mxu0 %v5812_v26 }
 0x115   : > { %4097 = vpow2.f32 %v3994_v21  ;;  %9504 = vst [vmem:[#allocation131_spill] sm:$0xff] %v5822_v55  ;;  %v5828_v21 = vld [vmem:[#allocation13 + $0x78] sm:$0xff]  ;;  %1096 = vmatmul.f32.vlgmr.msrb.gmra.mxu1 %v5689_v2  ;;  %1136 = vmatmul.f32.vlgmr.msrb.gmra.mxu3 %v5689_v2  ;;  %v527_v24 = vadd.f32 %v5435_v19, %v5859_v5 }
 0x116   : > { %4099 = vpow2.f32 %v3995_v34  ;;  %v901_v59 = vpop.f32.mrf.mxu3  ;;  %1111 = vmatpush.msrb.mxu2 %v5814_v41  ;;  %1072 = vmatpush.msrb.mxu0 %v5826_v60  ;;  %v6035_v55 = vld [vmem:[#allocation10 + $0x20] sm:$0xff] }
 0x117   : > { %v907_v33 = vadd.f32 %v901_v59, %v568_v54  ;;  %1240 = vmatpush.msra.mxu1 %v5315_v8  ;;  %1280 = vmatpush.msra.mxu3 %v5320_v9  ;;  %v5854_v8 = vld [vmem:[#allocation13 + $0x10] sm:$0xff]  ;;  %v5856_v9 = vld [vmem:[#allocation13 + $0x18] sm:$0xff] }
 0x118   : > { %1112 = vmatpush.msrb.mxu2 %v5828_v21  ;;  %1073 = vmatpush.msrb.mxu0 %v5834_v63 }
 0x119   : > { %v3996_v22 = vmul.f32 -1.442695, %v907_v33  ;;  %1241 = vmatpush.msra.mxu1 %v5324_v12  ;;  %1281 = vmatpush.msra.mxu3 %v5327_v13 }
 0x11a   : > { %1113 = vmatpush.msrb.mxu2 %v5836_v0  ;;  %1074 = vmatpush.msrb.mxu0 %v5842_v3 }
 0x11b   : > { %v4098_v34 = vpop.eup %4097  ;;  %4101 = vpow2.f32 %v3996_v22  ;;  %1242 = vmatpush.msra.mxu1 %v5330_v16  ;;  %1282 = vmatpush.msra.mxu3 %v5333_v18 }
 0x11c   : > { %v4100_v42 = vpop.eup %4099  ;;  %v5846_v2 = vadd.f32 1.0, %v4098_v34  ;;  %1114 = vmatpush.msrb.mxu2 %v5844_v4  ;;  %1075 = vmatpush.msrb.mxu0 %v5854_v8  ;;  %v881_v12 = vpop.f32.mrf.mxu2 }
 0x11d   : > { %v5850_v46 = vadd.f32 1.0, %v4100_v42  ;;  %1243 = vmatpush.msra.mxu1 %v5338_v23  ;;  %1283 = vmatpush.msra.mxu3 %v5343_v27  ;;  %v906_v54 = vadd.f32 %v881_v12, %v527_v24 }
 0x11e   : > { %4103 = vrcp.f32 %v5846_v2  ;;  %1115 = vmatpush.msrb.mxu2 %v5856_v9  ;;  %v923_v19 = vand.u32 2147483648, %v5846_v2  ;;  %v921_v33 = vand.u32 2147483647, %v5846_v2  ;;  %vm917_vm3 = vweird.f32 %v5846_v2 }
 0x11f   : > { %4105 = vrcp.f32 %v5850_v46  ;;  %1375 = vmatpush.msrb.mxu1 %v5359_v35  ;;  %1415 = vmatpush.msrb.mxu3 %v5361_v36  ;;  %vm936_vm4 = vweird.f32 %v5850_v46 }
 0x120   : > { %vm922_vm7 = vcmp.eq.f32.partialorder %v921_v33, 8.507059e+37 }
 0x121   : > { %v4102_v13 = vpop.eup %4101  ;;  %1376 = vmatpush.msrb.mxu1 %v5365_v39  ;;  %1416 = vmatpush.msrb.mxu3 %v5367_v40  ;;  %v942_v39 = vand.u32 2147483648, %v5850_v46 }
 0x122   : > { %v5875_v16 = vadd.f32 1.0, %v4102_v13 }
 0x123   : > { %1377 = vmatpush.msrb.mxu1 %v5369_v43  ;;  %1417 = vmatpush.msrb.mxu3 %v5373_v44  ;;  %v940_v43 = vand.u32 2147483647, %v5850_v46  ;;  %v943_v12 = vor.u32 1.1754944e-38, %v942_v39  ;;  %v9510_v39 = vld [vmem:[#allocation23_spill] sm:$0xff] }
 0x124   : > { %v4104_v18 = vpop.eup %4103  ;;  %4107 = vrcp.f32 %v5875_v16  ;;  %vm956_vm10 = vweird.f32 %v5875_v16  ;;  %9544 = vst [vmem:[#allocation23_spill] sm:$0xff] %v6035_v55 }
 0x125   : > { %v4106_v59 = vpop.eup %4105  ;;  %v913_v23 = vmul.f32 %v4104_v18, %v5846_v2  ;;  %4109 = vtanh.f32 %v906_v54  ;;  %1378 = vmatpush.msrb.mxu1 %v5375_v45  ;;  %1418 = vmatpush.msrb.mxu3 %v5377_v48  ;;  %vm918_vm1 = vweird.f32 %v4104_v18  ;;  %v924_v45 = vor.u32 1.1754944e-38, %v923_v19 }
 0x126   : > { %v932_v27 = vmul.f32 %v4106_v59, %v5850_v46  ;;  %vm937_vm2 = vweird.f32 %v4106_v59  ;;  %vm919_vm5 = vmor %vm917_vm3, %vm918_vm1  ;;  %vm941_vm8 = vcmp.eq.f32.partialorder %v940_v43, 8.507059e+37  ;;  %v9512_v43 = vld [vmem:[#allocation25_spill] sm:$0xff] }
 0x127   : > { %v914_v35 = vsub.f32 1.0, %v913_v23  ;;  %1379 = vmatpush.msrb.mxu1 %v5383_v49  ;;  %1419 = vmatpush.msrb.mxu3 %v5385_v52  ;;  %vm938_vm6 = vmor %vm936_vm4, %vm937_vm2  ;;  %v817_v49 = vld [vmem:[#allocation4] sm:$0xff] }
 0x128   : > { %v933_v36 = vsub.f32 1.0, %v932_v27 }
 0x129   : > { %v915_v40 = vmul.f32 %v4104_v18, %v914_v35  ;;  %1380 = vmatpush.msrb.mxu1 %v5389_v53  ;;  %1420 = vmatpush.msrb.mxu3 %v5391_v56  ;;  %v9507_v35 = vld [vmem:[#allocation20_spill] sm:$0xff] }
 0x12a   : > { %v934_v22 = vmul.f32 %v4106_v59, %v933_v36  ;;  %v4108_v44 = vpop.eup %4107 }
 0x12b   : > { %v916_v34 = vadd.f32 %v4104_v18, %v915_v40  ;;  %v952_v42 = vmul.f32 %v4108_v44, %v5875_v16  ;;  %v4110_v52 = vpop.eup %4109  ;;  %1381 = vmatpush.msrb.mxu1 %v5393_v57  ;;  %1421 = vmatpush.msrb.mxu3 %v5397_v58  ;;  %vm957_vm9 = vweird.f32 %v4108_v44  ;;  %v962_v57 = vand.u32 2147483648, %v5875_v16  ;;  %v9506_v58 = vld [vmem:[#allocation19_spill] sm:$0xff]  ;;  %v9511_v40 = vld [vmem:[#allocation24_spill] sm:$0xff] }
 0x12c   : > { %v935_v48 = vadd.f32 %v4106_v59, %v934_v22  ;;  %vm958_vm11 = vmor %vm956_vm10, %vm957_vm9 }
 0x12d   : > { %v920_v13 = vsel %vm919_vm5, %v4104_v18, %v916_v34  ;;  %v953_v2 = vsub.f32 1.0, %v952_v42  ;;  %1382 = vmatpush.msrb.mxu1 %v5399_v61  ;;  %1422 = vmatpush.msrb.mxu3 %v5401_v62  ;;  %v9505_v18 = vld [vmem:[#allocation18_spill] sm:$0xff]  ;;  %v960_v61 = vand.u32 2147483647, %v5875_v16  ;;  %v9508_v62 = vld [vmem:[#allocation21_spill] sm:$0xff]  ;;  %v963_v19 = vor.u32 1.1754944e-38, %v962_v57 }
 0x12e   : > { %v925_v24 = vsel %vm922_vm7, %v924_v45, %v920_v13  ;;  %v939_v54 = vsel %vm938_vm6, %v4106_v59, %v935_v48  ;;  %v9513_v34 = vld [vmem:[#allocation26_spill] sm:$0xff]  ;;  %v9514_v16 = vld [vmem:[#allocation29_spill] sm:$0xff]  ;;  %v5927_v42 = vld [vmem:[#allocation10 + $0x1f0] sm:$0xff] }
 0x12f   : > { %v944_v46 = vsel %vm941_vm8, %v943_v12, %v939_v54  ;;  %v967_v23 = vmul.f32 %v4110_v52, %v925_v24  ;;  %v954_v53 = vmul.f32 %v4108_v44, %v953_v2  ;;  %1383 = vmatpush.msrb.mxu1 %v5407_v1  ;;  %1423 = vmatpush.msrb.mxu3 %v9505_v18  ;;  %v9509_v1 = vld [vmem:[#allocation22_spill] sm:$0xff]  ;;  %vm961_vm12 = vcmp.eq.f32.partialorder %v960_v61, 8.507059e+37  ;;  %v5935_v13 = vld [vmem:[#allocation10 + $0x1d0] sm:$0xff]  ;;  %v9518_v54 = vld [vmem:[#allocation33_spill] sm:$0xff] }
 0x130   : > { %v966_v27 = vmul.f32 %v944_v46, %v817_v49  ;;  %v9515_v48 = vld [vmem:[#allocation30_spill] sm:$0xff]  ;;  %v9516_v49 = vld [vmem:[#allocation31_spill] sm:$0xff]  ;;  %v9517_v52 = vld [vmem:[#allocation32_spill] sm:$0xff] }
 0x131   : > { %v955_v59 = vadd.f32 %v4108_v44, %v954_v53  ;;  %1384 = vmatpush.msrb.mxu1 %v9506_v58  ;;  %1424 = vmatpush.msrb.mxu3 %v9507_v35  ;;  %v5931_v12 = vld [vmem:[#allocation10 + $0x1c0] sm:$0xff]  ;;  %v5943_v2 = vld [vmem:[#allocation10 + $0x1b0] sm:$0xff] }
 0x132   : > { %v5901_v56 = vadd.f32 %v967_v23, %v966_v27  ;;  %v5939_v24 = vld [vmem:[#allocation10 + $0x1a0] sm:$0xff]  ;;  %v5951_v53 = vld [vmem:[#allocation10 + $0x190] sm:$0xff] }
 0x133   : > { %1385 = vmatpush.msrb.mxu1 %v9508_v62  ;;  %1425 = vmatpush.msrb.mxu3 %v9509_v1  ;;  %v959_v36 = vsel %vm958_vm11, %v4108_v44, %v955_v59  ;;  %v5923_v44 = vld [vmem:[#allocation10 + $0x1e0] sm:$0xff]  ;;  %v5959_v59 = vld [vmem:[#allocation10 + $0x170] sm:$0xff] }
 0x134   : > { %4111 = vtanh.f32 %v5901_v56  ;;  %v964_v22 = vsel %vm961_vm12, %v963_v19, %v959_v36  ;;  %v9519_v46 = vld [vmem:[#allocation34_spill] sm:$0xff]  ;;  %v9520_v27 = vld [vmem:[#allocation37_spill] sm:$0xff]  ;;  %v9521_v57 = vld [vmem:[#allocation40_spill] sm:$0xff] }
 0x135   : > { %1386 = vmatpush.msrb.mxu1 %v9510_v39  ;;  %1426 = vmatpush.msrb.mxu3 %v9511_v40  ;;  %v5947_v23 = vld [vmem:[#allocation10 + $0x180] sm:$0xff]  ;;  %v5967_v61 = vld [vmem:[#allocation10 + $0x150] sm:$0xff] }
 0x136   : > { %v5956_v18 = vld [vmem:[#allocation10 + $0x160] sm:$0xff]  ;;  %v5975_v19 = vld [vmem:[#allocation10 + $0x130] sm:$0xff] }
 0x137   : > { %1387 = vmatpush.msrb.mxu1 %v9512_v43  ;;  %1427 = vmatpush.msrb.mxu3 %v9513_v34  ;;  %v5963_v58 = vld [vmem:[#allocation10 + $0x140] sm:$0xff] }
 0x138   : > { %v9522_v35 = vld [vmem:[#allocation45_spill] sm:$0xff]  ;;  %v9523_v62 = vld [vmem:[#allocation46_spill] sm:$0xff] }
 0x139   : > { %1388 = vmatpush.msrb.mxu1 %v9514_v16  ;;  %1428 = vmatpush.msrb.mxu3 %v9515_v48  ;;  %v5971_v1 = vld [vmem:[#allocation10 + $0x120] sm:$0xff]  ;;  %v5991_v48 = vld [vmem:[#allocation10 + $0xf0] sm:$0xff] }
 0x13a   : > { %v4112_v33 = vpop.eup %4111  ;;  %v9524_v36 = vld [vmem:[#allocation49_spill] sm:$0xff]  ;;  %v9525_v39 = vld [vmem:[#allocation50_spill] sm:$0xff] }
 0x13b   : > { %v5917_v45 = vmul.f32 %v4112_v33, %v964_v22  ;;  %1389 = vmatpush.msrb.mxu1 %v9516_v49  ;;  %1429 = vmatpush.msrb.mxu3 %v9517_v52  ;;  %v5979_v40 = vld [vmem:[#allocation10 + $0x100] sm:$0xff]  ;;  %v5983_v22 = vld [vmem:[#allocation10 + $0x110] sm:$0xff] }
 0x13c   : > { %v9526_v33 = vld [vmem:[#allocation53_spill] sm:$0xff]  ;;  %v9527_v43 = vld [vmem:[#allocation54_spill] sm:$0xff]  ;;  %v9529_v49 = vld [vmem:[#allocation60_spill] sm:$0xff] }
 0x13d   : > { %996 = vmatmul.f32.vlgmr.msra.gmra.mxu0 %v5917_v45  ;;  %1036 = vmatmul.f32.vlgmr.msra.gmra.mxu2 %v5917_v45  ;;  %v5987_v34 = vld [vmem:[#allocation10 + $0xe0] sm:$0xff] }
 0x13e   : > { %1208 = vmatpush.msra.mxu0 %v5923_v44  ;;  %1244 = vmatmul.f32.vlgmr.msra.gmra.mxu1 %v5917_v45  ;;  %v9528_v16 = vld [vmem:[#allocation57_spill] sm:$0xff] }
 0x13f   : > { %1248 = vmatpush.msra.mxu2 %v5927_v42  ;;  %1284 = vmatmul.f32.vlgmr.msra.gmra.mxu3 %v5917_v45  ;;  %v5995_v52 = vld [vmem:[#allocation10 + $0xc0] sm:$0xff] }
 0x140   : > { %1209 = vmatpush.msra.mxu0 %v5931_v12  ;;  %1390 = vmatpush.msrb.mxu1 %v9518_v54  ;;  %v9530_v54 = vld [vmem:[#allocation65_spill] sm:$0xff] }
 0x141   : > { %1249 = vmatpush.msra.mxu2 %v5935_v13  ;;  %1430 = vmatpush.msrb.mxu3 %v9519_v46  ;;  %v5999_v46 = vld [vmem:[#allocation10 + $0xd0] sm:$0xff] }
 0x142   : > { %1210 = vmatpush.msra.mxu0 %v5939_v24  ;;  %1455 = vmatpush.msra.mxu1 %v9520_v27  ;;  %v9531_v27 = vld [vmem:[#allocation66_spill] sm:$0xff] }
 0x143   : > { %1250 = vmatpush.msra.mxu2 %v5943_v2  ;;  %1495 = vmatpush.msra.mxu3 %v9521_v57  ;;  %v6003_v57 = vld [vmem:[#allocation10 + $0xa0] sm:$0xff] }
 0x144   : > { %1211 = vmatpush.msra.mxu0 %v5947_v23  ;;  %1456 = vmatpush.msra.mxu1 %v9522_v35  ;;  %v6007_v35 = vld [vmem:[#allocation10 + $0xb0] sm:$0xff] }
 0x145   : > { %1251 = vmatpush.msra.mxu2 %v5951_v53  ;;  %1076 = vmatmul.f32.vlgmr.msrb.gmra.mxu0 %v5917_v45 }
 0x146   : > { %1116 = vmatmul.f32.vlgmr.msrb.gmra.mxu2 %v5917_v45  ;;  %1212 = vmatpush.msra.mxu0 %v5956_v18 }
 0x147   : > { %1252 = vmatpush.msra.mxu2 %v5959_v59  ;;  %1496 = vmatpush.msra.mxu3 %v9523_v62  ;;  %v9532_v62 = vld [vmem:[#allocation69_spill] sm:$0xff] }
 0x148   : > { %1213 = vmatpush.msra.mxu0 %v5963_v58  ;;  %1457 = vmatpush.msra.mxu1 %v9524_v36  ;;  %v6011_v36 = vld [vmem:[#allocation10 + $0x80] sm:$0xff] }
 0x149   : > { %1253 = vmatpush.msra.mxu2 %v5967_v61  ;;  %1497 = vmatpush.msra.mxu3 %v9525_v39  ;;  %v9533_v39 = vld [vmem:[#allocation72_spill] sm:$0xff] }
 0x14a   : > { %1214 = vmatpush.msra.mxu0 %v5971_v1  ;;  %1458 = vmatpush.msra.mxu1 %v9526_v33  ;;  %v6015_v33 = vld [vmem:[#allocation10 + $0x90] sm:$0xff] }
 0x14b   : > { %1254 = vmatpush.msra.mxu2 %v5975_v19  ;;  %1498 = vmatpush.msra.mxu3 %v9527_v43  ;;  %9534 = vst [vmem:[#allocation18_spill] sm:$0xff] %v6015_v33  ;;  %v9535_v43 = vld [vmem:[#allocation73_spill] sm:$0xff] }
 0x14c   : > { %1215 = vmatpush.msra.mxu0 %v5979_v40  ;;  %1459 = vmatpush.msra.mxu1 %v9528_v16  ;;  %v6019_v16 = vld [vmem:[#allocation10 + $0x60] sm:$0xff] }
 0x14d   : > { %1255 = vmatpush.msra.mxu2 %v5983_v22  ;;  %1499 = vmatpush.msra.mxu3 %v9529_v49  ;;  %9536 = vst [vmem:[#allocation19_spill] sm:$0xff] %v6019_v16  ;;  %v6023_v49 = vld [vmem:[#allocation10 + $0x70] sm:$0xff] }
 0x14e   : > { %1216 = vmatpush.msra.mxu0 %v5987_v34  ;;  %1460 = vmatpush.msra.mxu1 %v9530_v54  ;;  %9538 = vst [vmem:[#allocation20_spill] sm:$0xff] %v6023_v49  ;;  %v9539_v54 = vld [vmem:[#allocation79_spill] sm:$0xff] }
 0x14f   : > { %1256 = vmatpush.msra.mxu2 %v5991_v48  ;;  %1500 = vmatpush.msra.mxu3 %v9531_v27  ;;  %v6027_v27 = vld [vmem:[#allocation10 + $0x40] sm:$0xff] }
 0x150   : > { %1217 = vmatpush.msra.mxu0 %v5995_v52  ;;  %1461 = vmatpush.msra.mxu1 %v5559_v31  ;;  %v9537_v31 = vld [vmem:[#allocation76_spill] sm:$0xff]  ;;  %9540 = vst [vmem:[#allocation21_spill] sm:$0xff] %v6027_v27 }
 0x151   : > { %1257 = vmatpush.msra.mxu2 %v5999_v46  ;;  %1501 = vmatpush.msra.mxu3 %v9532_v62  ;;  %v9541_v62 = vld [vmem:[#allocation84_spill] sm:$0xff] }
 0x152   : > { %1218 = vmatpush.msra.mxu0 %v6003_v57  ;;  %1462 = vmatpush.msra.mxu1 %v9533_v39  ;;  %v6031_v39 = vld [vmem:[#allocation10 + $0x50] sm:$0xff] }
 0x153   : > { %1258 = vmatpush.msra.mxu2 %v6007_v35  ;;  %1502 = vmatpush.msra.mxu3 %v9535_v43  ;;  %9542 = vst [vmem:[#allocation22_spill] sm:$0xff] %v6031_v39  ;;  %v9543_v43 = vld [vmem:[#allocation85_spill] sm:$0xff] }
 0x154   : > { %1219 = vmatpush.msra.mxu0 %v6011_v36  ;;  %1463 = vmatpush.msra.mxu1 %v9537_v31  ;;  %v9545_v31 = vld [vmem:[#allocation88_spill] sm:$0xff] }
 0x155   : > { %1259 = vmatpush.msra.mxu2 %v6015_v33  ;;  %1503 = vmatpush.msra.mxu3 %v9539_v54  ;;  %v9547_v54 = vld [vmem:[#allocation89_spill] sm:$0xff]  ;;  %v9560_v33 = vld [vmem:[#allocation48_spill] sm:$0xff] }
 0x156   : > { %1220 = vmatpush.msra.mxu0 %v6019_v16  ;;  %1464 = vmatpush.msra.mxu1 %v9541_v62  ;;  %v9549_v62 = vld [vmem:[#allocation92_spill] sm:$0xff]  ;;  %v9558_v16 = vld [vmem:[#allocation47_spill] sm:$0xff] }
 0x157   : > { %1260 = vmatpush.msra.mxu2 %v6023_v49  ;;  %1504 = vmatpush.msra.mxu3 %v9543_v43  ;;  %v6039_v49 = vld [vmem:[#allocation10 + $0x30] sm:$0xff] }
 0x158   : > { %1221 = vmatpush.msra.mxu0 %v6027_v27  ;;  %1465 = vmatpush.msra.mxu1 %v9545_v31  ;;  %9546 = vst [vmem:[#allocation24_spill] sm:$0xff] %v6039_v49  ;;  %v6043_v27 = vld [vmem:[#allocation10] sm:$0xff]  ;;  %v9551_v43 = vld [vmem:[#allocation35_spill] sm:$0xff]  ;;  %v9552_v31 = vld [vmem:[#allocation36_spill] sm:$0xff] }
 0x159   : > { %1261 = vmatpush.msra.mxu2 %v6031_v39  ;;  %1505 = vmatpush.msra.mxu3 %v9547_v54  ;;  %9548 = vst [vmem:[#allocation25_spill] sm:$0xff] %v6043_v27  ;;  %v6047_v39 = vld [vmem:[#allocation10 + $0x10] sm:$0xff] }
 0x15a   : > { %1222 = vmatpush.msra.mxu0 %v6035_v55  ;;  %1466 = vmatpush.msra.mxu1 %v9549_v62  ;;  %9550 = vst [vmem:[#allocation26_spill] sm:$0xff] %v6047_v39  ;;  %v9554_v54 = vld [vmem:[#allocation43_spill] sm:$0xff]  ;;  %v9555_v55 = vld [vmem:[#allocation97_spill] sm:$0xff]  ;;  %v9557_v62 = vld [vmem:[#allocation100_spill] sm:$0xff] }
 0x15b   : > { %1262 = vmatpush.msra.mxu2 %v6039_v49  ;;  %v9553_v49 = vld [vmem:[#allocation93_spill] sm:$0xff] }
 0x15c   : > { %1223 = vmatpush.msra.mxu0 %v6043_v27  ;;  %1506 = vmatpush.msra.mxu3 %v9553_v49  ;;  %v9556_v27 = vld [vmem:[#allocation44_spill] sm:$0xff] }
 0x15d   : > { %1263 = vmatpush.msra.mxu2 %v6047_v39  ;;  %1224 = vmatmul.f32.vlgmr.msra.gmra.mxu0 %v5917_v45  ;;  %v9559_v39 = vld [vmem:[#allocation104_spill] sm:$0xff] }
 0x15e   : > { %1264 = vmatmul.f32.vlgmr.msra.gmra.mxu2 %v5917_v45  ;;  %1355 = vmatpush.msrb.mxu0 %v9551_v43  ;;  %v9561_v45 = vld [vmem:[#allocation105_spill] sm:$0xff]  ;;  %v9562_v43 = vld [vmem:[#allocation51_spill] sm:$0xff]  ;;  %v9564_v49 = vld [vmem:[#allocation52_spill] sm:$0xff] }
 0x15f   : > { %1395 = vmatpush.msrb.mxu2 %v9552_v31  ;;  %1467 = vmatpush.msra.mxu1 %v9555_v55  ;;  %v9563_v31 = vld [vmem:[#allocation108_spill] sm:$0xff]  ;;  %v9566_v55 = vld [vmem:[#allocation55_spill] sm:$0xff] }
 0x160   : > { %1356 = vmatpush.msrb.mxu0 %v9554_v54  ;;  %1507 = vmatpush.msra.mxu3 %v9557_v62  ;;  %v9565_v54 = vld [vmem:[#allocation109_spill] sm:$0xff]  ;;  %v9571_v62 = vld [vmem:[#allocation68_spill] sm:$0xff] }
 0x161   : > { %1396 = vmatpush.msrb.mxu2 %v9556_v27  ;;  %1468 = vmatpush.msra.mxu1 %v9559_v39  ;;  %v9567_v27 = vld [vmem:[#allocation56_spill] sm:$0xff]  ;;  %v9570_v39 = vld [vmem:[#allocation67_spill] sm:$0xff] }
 0x162   : > { %1357 = vmatpush.msrb.mxu0 %v9558_v16  ;;  %1508 = vmatpush.msra.mxu3 %v9561_v45  ;;  %v9568_v16 = vld [vmem:[#allocation63_spill] sm:$0xff]  ;;  %v9572_v45 = vld [vmem:[#allocation70_spill] sm:$0xff] }
 0x163   : > { %1397 = vmatpush.msrb.mxu2 %v9560_v33  ;;  %1469 = vmatpush.msra.mxu1 %v9563_v31  ;;  %v9569_v33 = vld [vmem:[#allocation64_spill] sm:$0xff]  ;;  %v9574_v31 = vld [vmem:[#allocation74_spill] sm:$0xff] }
 0x164   : > { %1358 = vmatpush.msrb.mxu0 %v9562_v43  ;;  %1509 = vmatpush.msra.mxu3 %v9565_v54  ;;  %v9573_v43 = vld [vmem:[#allocation71_spill] sm:$0xff] }
 0x165   : > { %1398 = vmatpush.msrb.mxu2 %v9564_v49  ;;  %1470 = vmatpush.msra.mxu1 %v5683_v17  ;;  %v9575_v49 = vld [vmem:[#allocation75_spill] sm:$0xff]  ;;  %v9576_v17 = vld [vmem:[#allocation82_spill] sm:$0xff] }
 0x166   : > { %1359 = vmatpush.msrb.mxu0 %v9566_v55  ;;  %1510 = vmatpush.msra.mxu3 %v5687_v10  ;;  %v9577_v54 = vld [vmem:[#allocation83_spill] sm:$0xff]  ;;  %v9578_v10 = vld [vmem:[#allocation86_spill] sm:$0xff] }
 0x167   : > { %1399 = vmatpush.msrb.mxu2 %v9567_v27  ;;  %v9579_v55 = vld [vmem:[#allocation87_spill] sm:$0xff]  ;;  %v9580_v27 = vld [vmem:[#allocation90_spill] sm:$0xff] }
 0x168   : > { %1360 = vmatpush.msrb.mxu0 %v9568_v16  ;;  %v9581_v16 = vld [vmem:[#allocation91_spill] sm:$0xff] }
 0x169   : > { %1400 = vmatpush.msrb.mxu2 %v9569_v33  ;;  %v9582_v33 = vld [vmem:[#allocation95_spill] sm:$0xff] }
 0x16a   : > { %1361 = vmatpush.msrb.mxu0 %v9570_v39  ;;  %v9583_v39 = vld [vmem:[#allocation96_spill] sm:$0xff] }
 0x16b   : > { %1401 = vmatpush.msrb.mxu2 %v9571_v62  ;;  %v9584_v62 = vld [vmem:[#allocation102_spill] sm:$0xff] }
 0x16c   : > { %1362 = vmatpush.msrb.mxu0 %v9572_v45  ;;  %v9585_v45 = vld [vmem:[#allocation103_spill] sm:$0xff] }
 0x16d   : > { %1402 = vmatpush.msrb.mxu2 %v9573_v43  ;;  %v9586_v43 = vld [vmem:[#allocation106_spill] sm:$0xff] }
 0x16e   : > { %1363 = vmatpush.msrb.mxu0 %v9574_v31  ;;  %v9587_v31 = vld [vmem:[#allocation107_spill] sm:$0xff] }
 0x16f   : > { %1403 = vmatpush.msrb.mxu2 %v9575_v49  ;;  %v9588_v49 = vld [vmem:[#allocation110_spill] sm:$0xff] }
 0x170   : > { %1364 = vmatpush.msrb.mxu0 %v9576_v17  ;;  %v9589_v17 = vld [vmem:[#allocation111_spill] sm:$0xff] }
 0x171   : > { %1404 = vmatpush.msrb.mxu2 %v9577_v54  ;;  %v9590_v54 = vld [vmem:[#allocation112_spill] sm:$0xff] }
 0x172   : > { %1365 = vmatpush.msrb.mxu0 %v9578_v10  ;;  %v9591_v10 = vld [vmem:[#allocation114_spill] sm:$0xff] }
 0x173   : > { %1405 = vmatpush.msrb.mxu2 %v9579_v55  ;;  %v9592_v55 = vld [vmem:[#allocation117_spill] sm:$0xff] }
 0x174   : > { %1366 = vmatpush.msrb.mxu0 %v9580_v27  ;;  %v9593_v27 = vld [vmem:[#allocation119_spill] sm:$0xff] }
 0x175   : > { %1406 = vmatpush.msrb.mxu2 %v9581_v16  ;;  %v9594_v16 = vld [vmem:[#allocation123_spill] sm:$0xff] }
 0x176   : > { %1367 = vmatpush.msrb.mxu0 %v9582_v33  ;;  %v9595_v33 = vld [vmem:[#allocation124_spill] sm:$0xff] }
 0x177   : > { %1407 = vmatpush.msrb.mxu2 %v9583_v39 }
 0x178   : > { %1368 = vmatpush.msrb.mxu0 %v9584_v62 }
 0x179   : > { %1408 = vmatpush.msrb.mxu2 %v9585_v45 }
 0x17a   : > { %1369 = vmatpush.msrb.mxu0 %v9586_v43 }
 0x17b   : > { %1409 = vmatpush.msrb.mxu2 %v9587_v31 }
 0x17c   : > { %1370 = vmatpush.msrb.mxu0 %v9588_v49  ;;  %v9602_v49 = vld [vmem:[#allocation39_spill] sm:$0xff] }
 0x17d   : > { %1410 = vmatpush.msrb.mxu2 %v9589_v17  ;;  %v571_v17 = vadd.f32 %v9602_v49, %v5800_v6 }
 0x17e   : > { %1435 = vmatpush.msra.mxu0 %v9590_v54 }
 0x17f   : > { %1475 = vmatpush.msra.mxu2 %v9591_v10 }
 0x180   : > { %1436 = vmatpush.msra.mxu0 %v5705_v14  ;;  %v9596_v14 = vld [vmem:[#allocation125_spill] sm:$0xff] }
 0x181   : > { %1476 = vmatpush.msra.mxu2 %v5707_v15 }
 0x182   : > { %1437 = vmatpush.msra.mxu0 %v9592_v55 }
 0x183   : > { %1477 = vmatpush.msra.mxu2 %v5715_v11  ;;  %v815_v11 = vld [vmem:[%s8895_s5] sm:$0xf] }
 0x184   : > { %1438 = vmatpush.msra.mxu0 %v5723_v30  ;;  %v6128_v30 = vperm.slane %v815_v11, 0  ;;  %v6141_v10 = vperm.slane %v815_v11, 2 }
 0x185   : > { %1478 = vmatpush.msra.mxu2 %v5725_v32  ;;  %v1057_v32 = vpop.f32.mrf.mxu3 }
 0x186   : > { %1439 = vmatpush.msra.mxu0 %v5731_v20  ;;  %9597 = vst [vmem:[#allocation29_spill] sm:$0xff] %v6128_v30 }
 0x187   : > { %1479 = vmatpush.msra.mxu2 %v9593_v27  ;;  %9603 = vst [vmem:[#allocation32_spill] sm:$0xff] %v6141_v10 }
 0x188   : > { %1440 = vmatpush.msra.mxu0 %v9594_v16 }
 0x189   : > { %1480 = vmatpush.msra.mxu2 %v9595_v33 }
 0x18a   : > { %1441 = vmatpush.msra.mxu0 %v5755_v7  ;;  %v1017_v7 = vpop.f32.mrf.mxu1 }
 0x18b   : > { %1481 = vmatpush.msra.mxu2 %v9596_v14 }
 0x18c   : > { %1442 = vmatpush.msra.mxu0 %v5769_v37 }
 0x18d   : > { %1482 = vmatpush.msra.mxu2 %v5771_v38 }
 0x18e   : > { %1443 = vmatpush.msra.mxu0 %v5779_v28 }
 0x18f   : > { %1483 = vmatpush.msra.mxu2 %v5781_v29  ;;  %v6131_v29 = vperm.slane %v815_v11, 1 }
 0x190   : > { %1444 = vmatpush.msra.mxu0 %v5793_v47 }
 0x191   : > { %1484 = vmatpush.msra.mxu2 %v5795_v25  ;;  %9598 = vst [vmem:[#allocation30_spill] sm:$0xff] %v6131_v29 }
 0x192   : > { %1445 = vmatpush.msra.mxu0 %v5804_v50  ;;  %v1097_v15 = vpop.f32.mrf.mxu1 }
 0x193   : > { %1485 = vmatpush.msra.mxu2 %v5806_v51  ;;  %v9599_v51 = vld [vmem:[#allocation127_spill] sm:$0xff] }
 0x194   : > { %1446 = vmatpush.msra.mxu0 %v5812_v26  ;;  %v9600_v26 = vld [vmem:[#allocation28_spill] sm:$0xff] }
 0x195   : > { %1486 = vmatpush.msra.mxu2 %v5814_v41  ;;  %v489_v41 = vadd.f32 %v9600_v26, %v9599_v51  ;;  %v9604_v26 = vld [vmem:[#allocation126_spill] sm:$0xff] }
 0x196   : > { %1447 = vmatpush.msra.mxu0 %v5826_v60 }
 0x197   : > { %1487 = vmatpush.msra.mxu2 %v5828_v21 }
 0x198   : > { %1448 = vmatpush.msra.mxu0 %v5834_v63  ;;  %v1137_v60 = vpop.f32.mrf.mxu3 }
 0x199   : > { %1488 = vmatpush.msra.mxu2 %v5836_v0 }
 0x19a   : > { %1449 = vmatpush.msra.mxu0 %v5842_v3 }
 0x19b   : > { %1489 = vmatpush.msra.mxu2 %v5844_v4  ;;  %v6136_v4 = vperm.slane %v815_v11, 3 }
 0x19c   : > { %1450 = vmatpush.msra.mxu0 %v5854_v8 }
 0x19d   : > { %1490 = vmatpush.msra.mxu2 %v5856_v9  ;;  %9601 = vst [vmem:[#allocation31_spill] sm:$0xff] %v6136_v4 }
 0x1ba   : > { %v997_v20 = vpop.f32.mrf.mxu0 }
 0x1bb   : > { %v998_v25 = vadd.f32 %v997_v20, %v6128_v30  ;;  %v1245_v47 = vpop.f32.mrf.mxu1 }
 0x1bc   : > { %v1289_v63 = vadd.f32 %v1245_v47, %v489_v41  ;;  %v9605_v41 = vld [vmem:[#allocation27_spill] sm:$0xff] }
 0x1bd   : > { %v1018_v28 = vadd.f32 %v1017_v7, %v998_v25 }
 0x1be   : > { %v4001_v9 = vmul.f32 -1.442695, %v1289_v63 }
 0x1bf   : > { %v3997_v37 = vmul.f32 -1.442695, %v1018_v28 }
 0x1c0   : > { %v1037_v38 = vpop.f32.mrf.mxu2 }
 0x1c1   : > { %4113 = vpow2.f32 %v3997_v37  ;;  %v1038_v50 = vadd.f32 %v1037_v38, %v6131_v29 }
 0x1c2   : > { %v1285_v43 = vpop.f32.mrf.mxu3  ;;  %v1077_v55 = vpop.f32.mrf.mxu0 }
 0x1c3   : > { %v1058_v21 = vadd.f32 %v1057_v32, %v1038_v50  ;;  %v1291_v33 = vadd.f32 %v1285_v43, %v571_v17  ;;  %v1078_v32 = vadd.f32 %v1077_v55, %v6141_v10 }
 0x1c5   : > { %v3998_v0 = vmul.f32 -1.442695, %v1058_v21  ;;  %v4002_v25 = vmul.f32 -1.442695, %v1291_v33  ;;  %v1098_v47 = vadd.f32 %v1097_v15, %v1078_v32 }
 0x1c7   : > { %v4114_v3 = vpop.eup %4113  ;;  %4115 = vpow2.f32 %v3998_v0 }
 0x1c8   : > { %v1143_v8 = vadd.f32 1.0, %v4114_v3 }
 0x1c9   : > { %v1117_v39 = vpop.f32.mrf.mxu2 }
 0x1ca   : > { %4117 = vrcp.f32 %v1143_v8  ;;  %v1118_v62 = vadd.f32 %v1117_v39, %v6136_v4  ;;  %v1155_v21 = vand.u32 2147483648, %v1143_v8  ;;  %vm1149_vm14 = vweird.f32 %v1143_v8 }
 0x1cb   : > { %4119 = vpow2.f32 %v4001_v9  ;;  %v1153_v3 = vand.u32 2147483647, %v1143_v8 }
 0x1cc   : > { %v1138_v31 = vadd.f32 %v1137_v60, %v1118_v62  ;;  %v448_v60 = vadd.f32 %v9605_v41, %v9604_v26  ;;  %v1156_v17 = vor.u32 1.1754944e-38, %v1155_v21 }
 0x1cd   : > { %v4116_v45 = vpop.eup %4115  ;;  %vm1154_vm2 = vcmp.eq.f32.partialorder %v1153_v3, 8.507059e+37 }
 0x1ce   : > { %v1162_v54 = vadd.f32 1.0, %v4116_v45  ;;  %v3999_v27 = vmul.f32 -1.442695, %v1138_v31 }
 0x1d0   : > { %v4118_v16 = vpop.eup %4117  ;;  %4121 = vrcp.f32 %v1162_v54  ;;  %v1174_v9 = vand.u32 2147483648, %v1162_v54  ;;  %v1172_v15 = vand.u32 2147483647, %v1162_v54  ;;  %vm1168_vm1 = vweird.f32 %v1162_v54 }
 0x1d1   : > { %v1145_v14 = vmul.f32 %v4118_v16, %v1143_v8  ;;  %v4120_v7 = vpop.eup %4119  ;;  %4123 = vpow2.f32 %v3999_v27  ;;  %vm1150_vm13 = vweird.f32 %v4118_v16 }
 0x1d2   : > { %v6144_v28 = vadd.f32 1.0, %v4120_v7  ;;  %4125 = vpow2.f32 %v4002_v25  ;;  %vm6149_vm15 = vmor %vm1149_vm14, %vm1150_vm13  ;;  %v1175_v33 = vor.u32 1.1754944e-38, %v1174_v9  ;;  %vm1173_vm4 = vcmp.eq.f32.partialorder %v1172_v15, 8.507059e+37 }
 0x1d3   : > { %v1146_v20 = vsub.f32 1.0, %v1145_v14  ;;  %v819_v14 = vld [vmem:[#allocation6] sm:$0xff] }
 0x1d4   : > { %4127 = vrcp.f32 %v6144_v28  ;;  %vm1320_vm10 = vweird.f32 %v6144_v28 }
 0x1d5   : > { %v1147_v37 = vmul.f32 %v4118_v16, %v1146_v20  ;;  %4129 = vtanh.f32 %v1098_v47 }
 0x1d6   : > { %v4122_v38 = vpop.eup %4121 }
 0x1d7   : > { %v1164_v50 = vmul.f32 %v4122_v38, %v1162_v54  ;;  %v1148_v11 = vadd.f32 %v4118_v16, %v1147_v37  ;;  %v4124_v63 = vpop.eup %4123  ;;  %vm1169_vm0 = vweird.f32 %v4122_v38 }
 0x1d8   : > { %v1182_v62 = vadd.f32 1.0, %v4124_v63  ;;  %v4126_v27 = vpop.eup %4125  ;;  %vm1170_vm3 = vmor %vm1168_vm1, %vm1169_vm0 }
 0x1d9   : > { %v1165_v0 = vsub.f32 1.0, %v1164_v50  ;;  %v1152_v31 = vsel %vm6149_vm15, %v4118_v16, %v1148_v11  ;;  %v6157_v11 = vadd.f32 1.0, %v4126_v27 }
 0x1da   : > { %v1225_v45 = vpop.f32.mrf.mxu0  ;;  %4131 = vrcp.f32 %v1182_v62  ;;  %v1157_v7 = vsel %vm1154_vm2, %v1156_v17, %v1152_v31  ;;  %v6155_v32 = vpop.eup %4127  ;;  %v1192_v39 = vand.u32 2147483647, %v1182_v62  ;;  %vm1188_vm6 = vweird.f32 %v1182_v62 }
 0x1db   : > { %v1166_v43 = vmul.f32 %v4122_v38, %v1165_v0  ;;  %v1288_v49 = vadd.f32 %v1225_v45, %v448_v60  ;;  %v4130_v25 = vpop.eup %4129  ;;  %v1316_v54 = vmul.f32 %v6155_v32, %v6144_v28  ;;  %v1194_v0 = vand.u32 2147483648, %v1182_v62 }
 0x1dc   : > { %v1199_v47 = vmul.f32 %v4130_v25, %v1157_v7  ;;  %vm1193_vm8 = vcmp.eq.f32.partialorder %v1192_v39, 8.507059e+37  ;;  %vm1321_vm9 = vweird.f32 %v6155_v32  ;;  %vm1340_vm2 = vweird.f32 %v6157_v11 }
 0x1dd   : > { %v1167_v8 = vadd.f32 %v4122_v38, %v1166_v43  ;;  %v4000_v55 = vmul.f32 -1.442695, %v1288_v49  ;;  %v1317_v3 = vsub.f32 1.0, %v1316_v54  ;;  %v1195_v45 = vor.u32 1.1754944e-38, %v1194_v0  ;;  %vm6187_vm11 = vmor %vm1320_vm10, %vm1321_vm9  ;;  %v6192_v0 = vld [vmem:[#allocation10 + $0x1c8] sm:$0xff] }
 0x1df   : > { %v1171_v20 = vsel %vm1170_vm3, %v4122_v38, %v1167_v8  ;;  %4133 = vpow2.f32 %v4000_v55  ;;  %v1318_v31 = vmul.f32 %v6155_v32, %v1317_v3  ;;  %v9608_v55 = vld [vmem:[#allocation38_spill] sm:$0xff]  ;;  %v6195_v3 = vld [vmem:[#allocation10 + $0x1d8] sm:$0xff] }
 0x1e0   : > { %v1176_v37 = vsel %vm1173_vm4, %v1175_v33, %v1171_v20  ;;  %v4132_v50 = vpop.eup %4131  ;;  %v530_v27 = vadd.f32 %v9608_v55, %v5859_v5 }
 0x1e1   : > { %v1198_v16 = vmul.f32 %v1176_v37, %v819_v14  ;;  %v1184_v60 = vmul.f32 %v4132_v50, %v1182_v62  ;;  %vm1189_vm5 = vweird.f32 %v4132_v50  ;;  %v1265_v49 = vpop.f32.mrf.mxu2  ;;  %v1319_v25 = vadd.f32 %v6155_v32, %v1318_v31  ;;  %v6205_v31 = vld [vmem:[#allocation10 + $0x1b8] sm:$0xff] }
 0x1e2   : > { %vm1190_vm7 = vmor %vm1188_vm6, %vm1189_vm5  ;;  %v1290_v20 = vadd.f32 %v1265_v49, %v530_v27  ;;  %v1326_v37 = vand.u32 2147483648, %v6144_v28  ;;  %v6209_v27 = vld [vmem:[#allocation10 + $0x188] sm:$0xff] }
 0x1e3   : > { %v6161_v41 = vadd.f32 %v1199_v47, %v1198_v16  ;;  %v1185_v63 = vsub.f32 1.0, %v1184_v60  ;;  %v6179_v47 = vld [vmem:[#allocation10 + $0x1e8] sm:$0xff]  ;;  %v1324_v60 = vand.u32 2147483647, %v6144_v28  ;;  %v1323_v28 = vsel %vm6187_vm11, %v6155_v32, %v1319_v25  ;;  %v6212_v32 = vld [vmem:[#allocation10 + $0x198] sm:$0xff] }
 0x1e4   : > { %v6216_v25 = vld [vmem:[#allocation10 + $0x168] sm:$0xff] }
 0x1e5   : > { %v4134_v21 = vpop.eup %4133  ;;  %4135 = vtanh.f32 %v6161_v41  ;;  %v1186_v9 = vmul.f32 %v4132_v50, %v1185_v63  ;;  %vm1325_vm14 = vcmp.eq.f32.partialorder %v1324_v60, 8.507059e+37  ;;  %v6223_v60 = vld [vmem:[#allocation10 + $0x148] sm:$0xff] }
 0x1e6   : > { %4137 = vrcp.f32 %v6157_v11  ;;  %v6165_v38 = vadd.f32 1.0, %v4134_v21 }
 0x1e7   : > { %v1187_v15 = vadd.f32 %v4132_v50, %v1186_v9 }
 0x1e8   : > { %4139 = vrcp.f32 %v6165_v38  ;;  %v1307_v63 = vand.u32 2147483648, %v6165_v38  ;;  %v1305_v39 = vand.u32 2147483647, %v6165_v38  ;;  %vm1301_vm13 = vweird.f32 %v6165_v38 }
 0x1e9   : > { %v1191_v17 = vsel %vm1190_vm7, %v4132_v50, %v1187_v15  ;;  %v6182_v50 = vld [vmem:[#allocation10 + $0x1f8] sm:$0xff]  ;;  %4141 = vtanh.f32 %v1290_v20  ;;  %v1327_v15 = vor.u32 1.1754944e-38, %v1326_v37 }
 0x1ea   : > { %v1196_v33 = vsel %vm1193_vm8, %v1195_v45, %v1191_v17  ;;  %v1308_v17 = vor.u32 1.1754944e-38, %v1307_v63  ;;  %vm1306_vm0 = vcmp.eq.f32.partialorder %v1305_v39, 8.507059e+37  ;;  %v6219_v37 = vld [vmem:[#allocation10 + $0x178] sm:$0xff]  ;;  %v6233_v63 = vld [vmem:[#allocation10 + $0x128] sm:$0xff]  ;;  %v1344_v39 = vand.u32 2147483647, %v6157_v11 }
 0x1eb   : > { %v4136_v43 = vpop.eup %4135  ;;  %v1328_v55 = vsel %vm1325_vm14, %v1327_v15, %v1323_v28  ;;  %v6243_v28 = vld [vmem:[#allocation10 + $0x108] sm:$0xff]  ;;  %v6246_v15 = vld [vmem:[#allocation10 + $0x118] sm:$0xff] }
 0x1ec   : > { %v6169_v8 = vpop.eup %4137  ;;  %v1202_v14 = vmul.f32 %v4136_v43, %v1196_v33  ;;  %v6202_v43 = vld [vmem:[#allocation10 + $0x1a8] sm:$0xff]  ;;  %vm1345_vm4 = vcmp.eq.f32.partialorder %v1344_v39, 8.507059e+37  ;;  %v6283_v39 = vld [vmem:[#allocation10 + $0x78] sm:$0xff] }
 0x1ed   : > { %v1336_v16 = vmul.f32 %v6169_v8, %v6157_v11  ;;  %vm1341_vm1 = vweird.f32 %v6169_v8 }
 0x1ee   : > { %v4140_v7 = vpop.eup %4139  ;;  %1391 = vmatmul.f32.vlgmr.msrb.gmra.mxu1 %v1202_v14  ;;  %1431 = vmatmul.f32.vlgmr.msrb.gmra.mxu3 %v1202_v14  ;;  %vm1342_vm3 = vmor %vm1340_vm2, %vm1341_vm1 }
 0x1ef   : > { %v1297_v62 = vmul.f32 %v4140_v7, %v6165_v38  ;;  %1603 = vmatpush.msrb.mxu1 %v6179_v47  ;;  %1643 = vmatpush.msrb.mxu3 %v6182_v50  ;;  %vm1302_vm12 = vweird.f32 %v4140_v7  ;;  %v1337_v45 = vsub.f32 1.0, %v1336_v16  ;;  %v4142_v20 = vpop.eup %4141  ;;  %v1350_v16 = vmul.f32 %v1328_v55, %v5901_v56  ;;  %v6236_v56 = vld [vmem:[#allocation10 + $0x138] sm:$0xff]  ;;  %v6256_v55 = vld [vmem:[#allocation10 + $0xc8] sm:$0xff] }
 0x1f0   : > { %vm1303_vm15 = vmor %vm1301_vm13, %vm1302_vm12 }
 0x1f1   : > { %v1298_v54 = vsub.f32 1.0, %v1297_v62  ;;  %1604 = vmatpush.msrb.mxu1 %v6192_v0  ;;  %1644 = vmatpush.msrb.mxu3 %v6195_v3  ;;  %v1338_v62 = vmul.f32 %v6169_v8, %v1337_v45 }
 0x1f3   : > { %v1299_v9 = vmul.f32 %v4140_v7, %v1298_v54  ;;  %1605 = vmatpush.msrb.mxu1 %v6202_v43  ;;  %1645 = vmatpush.msrb.mxu3 %v6205_v31  ;;  %v1339_v21 = vadd.f32 %v6169_v8, %v1338_v62 }
 0x1f5   : > { %v1300_v49 = vadd.f32 %v4140_v7, %v1299_v9  ;;  %1606 = vmatpush.msrb.mxu1 %v6209_v27  ;;  %1646 = vmatpush.msrb.mxu3 %v6212_v32  ;;  %v1346_v9 = vand.u32 2147483648, %v6157_v11  ;;  %v1343_v45 = vsel %vm1342_vm3, %v6169_v8, %v1339_v21  ;;  %v6273_v21 = vld [vmem:[#allocation10 + $0x98] sm:$0xff] }
 0x1f6   : > { %1471 = vmatmul.f32.vlgmr.msra.gmra.mxu1 %v1202_v14  ;;  %1511 = vmatmul.f32.vlgmr.msra.gmra.mxu3 %v1202_v14  ;;  %v6226_v14 = vld [vmem:[#allocation10 + $0x158] sm:$0xff] }
 0x1f7   : > { %v1304_v33 = vsel %vm1303_vm15, %v4140_v7, %v1300_v49  ;;  %1607 = vmatpush.msrb.mxu1 %v6216_v25  ;;  %1647 = vmatpush.msrb.mxu3 %v6219_v37  ;;  %v6250_v49 = vld [vmem:[#allocation10 + $0xe8] sm:$0xff]  ;;  %v1347_v11 = vor.u32 1.1754944e-38, %v1346_v9 }
 0x1f8   : > { %v1309_v38 = vsel %vm1306_vm0, %v1308_v17, %v1304_v33  ;;  %v6253_v17 = vld [vmem:[#allocation10 + $0xf8] sm:$0xff]  ;;  %v6280_v9 = vld [vmem:[#allocation10 + $0x68] sm:$0xff] }
 0x1f9   : > { %v1351_v54 = vmul.f32 %v4142_v20, %v1309_v38  ;;  %1608 = vmatpush.msrb.mxu1 %v6223_v60  ;;  %1648 = vmatpush.msrb.mxu3 %v6226_v14  ;;  %v6259_v33 = vld [vmem:[#allocation10 + $0xd8] sm:$0xff]  ;;  %v1348_v8 = vsel %vm1345_vm4, %v1347_v11, %v1343_v45  ;;  %v6264_v38 = vld [vmem:[#allocation10 + $0xa8] sm:$0xff] }
 0x1fa   : > { %v6288_v45 = vld [vmem:[#allocation10 + $0x48] sm:$0xff]  ;;  %v6291_v11 = vld [vmem:[#allocation10 + $0x58] sm:$0xff] }
 0x1fb   : > { %v6229_v7 = vadd.f32 %v1351_v54, %v1350_v16  ;;  %1609 = vmatpush.msrb.mxu1 %v6233_v63  ;;  %1649 = vmatpush.msrb.mxu3 %v6236_v56  ;;  %v6267_v16 = vld [vmem:[#allocation10 + $0xb8] sm:$0xff]  ;;  %v6270_v54 = vld [vmem:[#allocation10 + $0x88] sm:$0xff] }
 0x1fd   : > { %4143 = vtanh.f32 %v6229_v7  ;;  %1610 = vmatpush.msrb.mxu1 %v6243_v28  ;;  %1650 = vmatpush.msrb.mxu3 %v6246_v15 }
 0x1ff   : > { %1611 = vmatpush.msrb.mxu1 %v6250_v49  ;;  %1651 = vmatpush.msrb.mxu3 %v6253_v17 }
 0x201   : > { %1612 = vmatpush.msrb.mxu1 %v6256_v55  ;;  %1652 = vmatpush.msrb.mxu3 %v6259_v33 }
 0x203   : > { %v4144_v20 = vpop.eup %4143  ;;  %1613 = vmatpush.msrb.mxu1 %v6264_v38  ;;  %1653 = vmatpush.msrb.mxu3 %v6267_v16 }
 0x204   : > { %v6262_v62 = vmul.f32 %v4144_v20, %v1348_v8  ;;  %v6377_v20 = vld [vmem:[#allocation13 + $0x308] sm:$0xff]  ;;  %v6381_v8 = vld [vmem:[#allocation13 + $0x2e0] sm:$0xff] }
 0x205   : > { %1614 = vmatpush.msrb.mxu1 %v6270_v54  ;;  %1654 = vmatpush.msrb.mxu3 %v6273_v21  ;;  %9626 = vst [vmem:[#allocation65_spill] sm:$0xff] %v6377_v20 }
 0x206   : > { %1371 = vmatmul.f32.vlgmr.msrb.gmra.mxu0 %v6262_v62  ;;  %1411 = vmatmul.f32.vlgmr.msrb.gmra.mxu2 %v6262_v62  ;;  %9628 = vst [vmem:[#allocation66_spill] sm:$0xff] %v6381_v8 }
 0x207   : > { %1583 = vmatpush.msrb.mxu0 %v5923_v44  ;;  %1623 = vmatpush.msrb.mxu2 %v5927_v42  ;;  %v6296_v44 = vld [vmem:[#allocation10 + $0x28] sm:$0xff]  ;;  %v6299_v42 = vld [vmem:[#allocation10 + $0x38] sm:$0xff] }
 0x208   : > { %1615 = vmatpush.msrb.mxu1 %v6280_v9  ;;  %1655 = vmatpush.msrb.mxu3 %v6283_v39 }
 0x209   : > { %1584 = vmatpush.msrb.mxu0 %v5931_v12  ;;  %1624 = vmatpush.msrb.mxu2 %v5935_v13  ;;  %v6304_v12 = vld [vmem:[#allocation10 + $0x8] sm:$0xff]  ;;  %v6307_v13 = vld [vmem:[#allocation10 + $0x18] sm:$0xff] }
 0x20a   : > { %1616 = vmatpush.msrb.mxu1 %v6288_v45  ;;  %1656 = vmatpush.msrb.mxu3 %v6291_v11 }
 0x20b   : > { %1585 = vmatpush.msrb.mxu0 %v5939_v24  ;;  %1625 = vmatpush.msrb.mxu2 %v5943_v2  ;;  %v6317_v24 = vld [vmem:[#allocation13 + $0x3e0] sm:$0xff]  ;;  %v6321_v2 = vld [vmem:[#allocation13 + $0x3e8] sm:$0xff] }
 0x20c   : > { %1617 = vmatpush.msrb.mxu1 %v6296_v44  ;;  %1657 = vmatpush.msrb.mxu3 %v6299_v42 }
 0x20d   : > { %1586 = vmatpush.msrb.mxu0 %v5947_v23  ;;  %1626 = vmatpush.msrb.mxu2 %v5951_v53  ;;  %v6325_v23 = vld [vmem:[#allocation13 + $0x3c0] sm:$0xff]  ;;  %v6329_v53 = vld [vmem:[#allocation13 + $0x3c8] sm:$0xff] }
 0x20e   : > { %1618 = vmatpush.msrb.mxu1 %v6304_v12  ;;  %1658 = vmatpush.msrb.mxu3 %v6307_v13  ;;  %9611 = vst [vmem:[#allocation33_spill] sm:$0xff] %v6329_v53 }
 0x20f   : > { %1451 = vmatmul.f32.vlgmr.msra.gmra.mxu0 %v6262_v62  ;;  %1491 = vmatmul.f32.vlgmr.msra.gmra.mxu2 %v6262_v62 }
 0x210   : > { %1587 = vmatpush.msrb.mxu0 %v5956_v18  ;;  %1619 = vmatmul.f32.vlgmr.msrb.gmra.mxu1 %v6262_v62  ;;  %v6333_v18 = vld [vmem:[#allocation13 + $0x3a0] sm:$0xff] }
 0x211   : > { %1627 = vmatpush.msrb.mxu2 %v5959_v59  ;;  %1659 = vmatmul.f32.vlgmr.msrb.gmra.mxu3 %v6262_v62  ;;  %9612 = vst [vmem:[#allocation34_spill] sm:$0xff] %v6333_v18  ;;  %v6337_v59 = vld [vmem:[#allocation13 + $0x3a8] sm:$0xff] }
 0x212   : > { %1588 = vmatpush.msrb.mxu0 %v5963_v58  ;;  %1750 = vmatpush.msra.mxu1 %v6317_v24  ;;  %9613 = vst [vmem:[#allocation37_spill] sm:$0xff] %v6337_v59  ;;  %v6341_v58 = vld [vmem:[#allocation13 + $0x380] sm:$0xff] }
 0x213   : > { %1628 = vmatpush.msrb.mxu2 %v5967_v61  ;;  %1790 = vmatpush.msra.mxu3 %v6321_v2  ;;  %9614 = vst [vmem:[#allocation40_spill] sm:$0xff] %v6341_v58  ;;  %v6345_v61 = vld [vmem:[#allocation13 + $0x388] sm:$0xff] }
 0x214   : > { %1589 = vmatpush.msrb.mxu0 %v5971_v1  ;;  %1751 = vmatpush.msra.mxu1 %v6325_v23  ;;  %9615 = vst [vmem:[#allocation45_spill] sm:$0xff] %v6345_v61  ;;  %v6349_v1 = vld [vmem:[#allocation13 + $0x360] sm:$0xff] }
 0x215   : > { %1629 = vmatpush.msrb.mxu2 %v5975_v19  ;;  %1791 = vmatpush.msra.mxu3 %v6329_v53  ;;  %9616 = vst [vmem:[#allocation46_spill] sm:$0xff] %v6349_v1  ;;  %v6353_v19 = vld [vmem:[#allocation13 + $0x368] sm:$0xff] }
 0x216   : > { %1590 = vmatpush.msrb.mxu0 %v5979_v40  ;;  %1752 = vmatpush.msra.mxu1 %v6333_v18  ;;  %9617 = vst [vmem:[#allocation49_spill] sm:$0xff] %v6353_v19  ;;  %v6357_v40 = vld [vmem:[#allocation13 + $0x340] sm:$0xff] }
 0x217   : > { %1630 = vmatpush.msrb.mxu2 %v5983_v22  ;;  %1792 = vmatpush.msra.mxu3 %v6337_v59  ;;  %9618 = vst [vmem:[#allocation50_spill] sm:$0xff] %v6357_v40  ;;  %v6361_v22 = vld [vmem:[#allocation13 + $0x348] sm:$0xff] }
 0x218   : > { %1591 = vmatpush.msrb.mxu0 %v5987_v34  ;;  %1753 = vmatpush.msra.mxu1 %v6341_v58  ;;  %9619 = vst [vmem:[#allocation53_spill] sm:$0xff] %v6361_v22  ;;  %v6365_v34 = vld [vmem:[#allocation13 + $0x320] sm:$0xff] }
 0x219   : > { %1631 = vmatpush.msrb.mxu2 %v5991_v48  ;;  %1793 = vmatpush.msra.mxu3 %v6345_v61  ;;  %9620 = vst [vmem:[#allocation54_spill] sm:$0xff] %v6365_v34  ;;  %v9621_v48 = vld [vmem:[#allocation18_spill] sm:$0xff] }
 0x21a   : > { %1592 = vmatpush.msrb.mxu0 %v5995_v52  ;;  %1754 = vmatpush.msra.mxu1 %v6349_v1  ;;  %v6369_v52 = vld [vmem:[#allocation13 + $0x328] sm:$0xff] }
 0x21b   : > { %1632 = vmatpush.msrb.mxu2 %v5999_v46  ;;  %1794 = vmatpush.msra.mxu3 %v6353_v19  ;;  %9622 = vst [vmem:[#allocation57_spill] sm:$0xff] %v6369_v52  ;;  %v9623_v46 = vld [vmem:[#allocation19_spill] sm:$0xff]  ;;  %v9745_v19 = vld [vmem:[#allocation42_spill] sm:$0xff] }
 0x21c   : > { %1593 = vmatpush.msrb.mxu0 %v6003_v57  ;;  %1755 = vmatpush.msra.mxu1 %v6357_v40  ;;  %v6373_v57 = vld [vmem:[#allocation13 + $0x300] sm:$0xff] }
 0x21d   : > { %1633 = vmatpush.msrb.mxu2 %v6007_v35  ;;  %1795 = vmatpush.msra.mxu3 %v6361_v22  ;;  %9624 = vst [vmem:[#allocation60_spill] sm:$0xff] %v6373_v57  ;;  %v9625_v35 = vld [vmem:[#allocation20_spill] sm:$0xff] }
 0x21e   : > { %1594 = vmatpush.msrb.mxu0 %v6011_v36  ;;  %1756 = vmatpush.msra.mxu1 %v6365_v34  ;;  %v9627_v36 = vld [vmem:[#allocation21_spill] sm:$0xff] }
 0x21f   : > { %1634 = vmatpush.msrb.mxu2 %v9621_v48  ;;  %1796 = vmatpush.msra.mxu3 %v6369_v52  ;;  %v9629_v48 = vld [vmem:[#allocation22_spill] sm:$0xff]  ;;  %v6385_v52 = vld [vmem:[#allocation13 + $0x2e8] sm:$0xff] }
 0x220   : > { %1595 = vmatpush.msrb.mxu0 %v9623_v46  ;;  %1757 = vmatpush.msra.mxu1 %v6373_v57  ;;  %9630 = vst [vmem:[#allocation69_spill] sm:$0xff] %v6385_v52  ;;  %v9631_v46 = vld [vmem:[#allocation23_spill] sm:$0xff]  ;;  %v6389_v57 = vld [vmem:[#allocation13 + $0x2c0] sm:$0xff] }
 0x221   : > { %1635 = vmatpush.msrb.mxu2 %v9625_v35  ;;  %1797 = vmatpush.msra.mxu3 %v6377_v20  ;;  %9632 = vst [vmem:[#allocation72_spill] sm:$0xff] %v6389_v57  ;;  %v9633_v35 = vld [vmem:[#allocation24_spill] sm:$0xff]  ;;  %v6393_v20 = vld [vmem:[#allocation13 + $0x2c8] sm:$0xff] }
 0x222   : > { %1596 = vmatpush.msrb.mxu0 %v9627_v36  ;;  %1758 = vmatpush.msra.mxu1 %v6381_v8  ;;  %9634 = vst [vmem:[#allocation73_spill] sm:$0xff] %v6393_v20  ;;  %v9635_v36 = vld [vmem:[#allocation25_spill] sm:$0xff]  ;;  %v6397_v8 = vld [vmem:[#allocation13 + $0x2a0] sm:$0xff] }
 0x223   : > { %1636 = vmatpush.msrb.mxu2 %v9629_v48  ;;  %1798 = vmatpush.msra.mxu3 %v6385_v52  ;;  %9636 = vst [vmem:[#allocation76_spill] sm:$0xff] %v6397_v8  ;;  %v9637_v48 = vld [vmem:[#allocation26_spill] sm:$0xff] }
 0x224   : > { %1597 = vmatpush.msrb.mxu0 %v9631_v46  ;;  %1759 = vmatpush.msra.mxu1 %v6389_v57  ;;  %v6403_v46 = vld [vmem:[#allocation13 + $0x2a8] sm:$0xff] }
 0x225   : > { %1637 = vmatpush.msrb.mxu2 %v9633_v35  ;;  %1799 = vmatpush.msra.mxu3 %v6393_v20  ;;  %9638 = vst [vmem:[#allocation79_spill] sm:$0xff] %v6403_v46  ;;  %v6406_v35 = vld [vmem:[#allocation13 + $0x280] sm:$0xff] }
 0x226   : > { %1598 = vmatpush.msrb.mxu0 %v9635_v36  ;;  %1760 = vmatpush.msra.mxu1 %v6397_v8  ;;  %9639 = vst [vmem:[#allocation84_spill] sm:$0xff] %v6406_v35  ;;  %v6409_v20 = vld [vmem:[#allocation13 + $0x1e0] sm:$0xff]  ;;  %v6412_v36 = vld [vmem:[#allocation13 + $0x288] sm:$0xff] }
 0x227   : > { %1638 = vmatpush.msrb.mxu2 %v9637_v48  ;;  %1599 = vmatmul.f32.vlgmr.msrb.gmra.mxu0 %v6262_v62  ;;  %9640 = vst [vmem:[#allocation85_spill] sm:$0xff] %v6409_v20  ;;  %v6415_v48 = vld [vmem:[#allocation13 + $0x1e8] sm:$0xff] }
 0x228   : > { %1639 = vmatmul.f32.vlgmr.msrb.gmra.mxu2 %v6262_v62  ;;  %1800 = vmatpush.msra.mxu3 %v6403_v46  ;;  %9641 = vst [vmem:[#allocation88_spill] sm:$0xff] %v6412_v36  ;;  %v6418_v62 = vld [vmem:[#allocation13 + $0x260] sm:$0xff] }
 0x229   : > { %1761 = vmatpush.msra.mxu1 %v6406_v35  ;;  %1730 = vmatpush.msra.mxu0 %v6409_v20  ;;  %9642 = vst [vmem:[#allocation89_spill] sm:$0xff] %v6415_v48  ;;  %v6421_v46 = vld [vmem:[#allocation13 + $0x1c0] sm:$0xff]  ;;  %v6424_v35 = vld [vmem:[#allocation13 + $0x268] sm:$0xff] }
 0x22a   : > { %1801 = vmatpush.msra.mxu3 %v6412_v36  ;;  %1770 = vmatpush.msra.mxu2 %v6415_v48  ;;  %9643 = vst [vmem:[#allocation92_spill] sm:$0xff] %v6418_v62  ;;  %v6427_v20 = vld [vmem:[#allocation13 + $0x1c8] sm:$0xff]  ;;  %v6430_v36 = vld [vmem:[#allocation13 + $0x240] sm:$0xff] }
 0x22b   : > { %1762 = vmatpush.msra.mxu1 %v6418_v62  ;;  %9644 = vst [vmem:[#allocation35_spill] sm:$0xff] %v6421_v46  ;;  %1731 = vmatpush.msra.mxu0 %v6421_v46  ;;  %v6433_v48 = vld [vmem:[#allocation13 + $0x1a0] sm:$0xff]  ;;  %v6436_v62 = vld [vmem:[#allocation13 + $0x248] sm:$0xff] }
 0x22c   : > { %9645 = vst [vmem:[#allocation36_spill] sm:$0xff] %v6424_v35  ;;  %1802 = vmatpush.msra.mxu3 %v6424_v35  ;;  %1771 = vmatpush.msra.mxu2 %v6427_v20  ;;  %v6439_v46 = vld [vmem:[#allocation13 + $0x1a8] sm:$0xff]  ;;  %v6442_v35 = vld [vmem:[#allocation13 + $0x220] sm:$0xff] }
 0x22d   : > { %9646 = vst [vmem:[#allocation93_spill] sm:$0xff] %v6427_v20  ;;  %1763 = vmatpush.msra.mxu1 %v6430_v36  ;;  %1732 = vmatpush.msra.mxu0 %v6433_v48  ;;  %v6445_v20 = vld [vmem:[#allocation13 + $0x180] sm:$0xff] }
 0x22e   : > { %9647 = vst [vmem:[#allocation43_spill] sm:$0xff] %v6430_v36  ;;  %1803 = vmatpush.msra.mxu3 %v6436_v62  ;;  %1772 = vmatpush.msra.mxu2 %v6439_v46  ;;  %v6448_v36 = vld [vmem:[#allocation13 + $0x228] sm:$0xff] }
 0x22f   : > { %9648 = vst [vmem:[#allocation97_spill] sm:$0xff] %v6433_v48  ;;  %1764 = vmatpush.msra.mxu1 %v6442_v35  ;;  %1733 = vmatpush.msra.mxu0 %v6445_v20  ;;  %v6451_v48 = vld [vmem:[#allocation13 + $0x188] sm:$0xff] }
 0x230   : > { %9649 = vst [vmem:[#allocation44_spill] sm:$0xff] %v6436_v62  ;;  %1804 = vmatpush.msra.mxu3 %v6448_v36  ;;  %1773 = vmatpush.msra.mxu2 %v6451_v48  ;;  %v6454_v62 = vld [vmem:[#allocation13 + $0x200] sm:$0xff] }
 0x231   : > { %9650 = vst [vmem:[#allocation100_spill] sm:$0xff] %v6439_v46  ;;  %1765 = vmatpush.msra.mxu1 %v6454_v62  ;;  %v6457_v46 = vld [vmem:[#allocation13 + $0x160] sm:$0xff] }
 0x232   : > { %9651 = vst [vmem:[#allocation47_spill] sm:$0xff] %v6442_v35  ;;  %1734 = vmatpush.msra.mxu0 %v6457_v46  ;;  %v6460_v35 = vld [vmem:[#allocation13 + $0x208] sm:$0xff] }
 0x233   : > { %9652 = vst [vmem:[#allocation104_spill] sm:$0xff] %v6445_v20  ;;  %1805 = vmatpush.msra.mxu3 %v6460_v35  ;;  %v6463_v20 = vld [vmem:[#allocation13 + $0x168] sm:$0xff] }
 0x234   : > { %9653 = vst [vmem:[#allocation48_spill] sm:$0xff] %v6448_v36  ;;  %1774 = vmatpush.msra.mxu2 %v6463_v20  ;;  %v6466_v36 = vld [vmem:[#allocation13 + $0x3f0] sm:$0xff] }
 0x235   : > { %9654 = vst [vmem:[#allocation105_spill] sm:$0xff] %v6451_v48  ;;  %1830 = vmatpush.msrb.mxu1 %v6466_v36  ;;  %v6469_v48 = vld [vmem:[#allocation13 + $0x3f8] sm:$0xff] }
 0x236   : > { %9655 = vst [vmem:[#allocation51_spill] sm:$0xff] %v6454_v62  ;;  %1870 = vmatpush.msrb.mxu3 %v6469_v48  ;;  %v6472_v62 = vld [vmem:[#allocation13 + $0x140] sm:$0xff] }
 0x237   : > { %9656 = vst [vmem:[#allocation108_spill] sm:$0xff] %v6457_v46  ;;  %1735 = vmatpush.msra.mxu0 %v6472_v62  ;;  %v6475_v46 = vld [vmem:[#allocation13 + $0x148] sm:$0xff] }
 0x238   : > { %9657 = vst [vmem:[#allocation52_spill] sm:$0xff] %v6460_v35  ;;  %1775 = vmatpush.msra.mxu2 %v6475_v46  ;;  %v6478_v35 = vld [vmem:[#allocation13 + $0x3d0] sm:$0xff] }
 0x239   : > { %9658 = vst [vmem:[#allocation109_spill] sm:$0xff] %v6463_v20  ;;  %1831 = vmatpush.msrb.mxu1 %v6478_v35  ;;  %v6481_v20 = vld [vmem:[#allocation13 + $0x3d8] sm:$0xff] }
 0x23a   : > { %9659 = vst [vmem:[#allocation55_spill] sm:$0xff] %v6466_v36  ;;  %1871 = vmatpush.msrb.mxu3 %v6481_v20  ;;  %v6484_v36 = vld [vmem:[#allocation13 + $0x120] sm:$0xff] }
 0x23b   : > { %9660 = vst [vmem:[#allocation56_spill] sm:$0xff] %v6469_v48  ;;  %1736 = vmatpush.msra.mxu0 %v6484_v36  ;;  %v6487_v48 = vld [vmem:[#allocation13 + $0x128] sm:$0xff] }
 0x23c   : > { %9661 = vst [vmem:[#allocation63_spill] sm:$0xff] %v6472_v62  ;;  %1776 = vmatpush.msra.mxu2 %v6487_v48  ;;  %v6490_v62 = vld [vmem:[#allocation13 + $0x3b0] sm:$0xff] }
 0x23d   : > { %9662 = vst [vmem:[#allocation64_spill] sm:$0xff] %v6475_v46  ;;  %1832 = vmatpush.msrb.mxu1 %v6490_v62  ;;  %v6493_v46 = vld [vmem:[#allocation13 + $0x3b8] sm:$0xff] }
 0x23e   : > { %9663 = vst [vmem:[#allocation67_spill] sm:$0xff] %v6478_v35  ;;  %1872 = vmatpush.msrb.mxu3 %v6493_v46  ;;  %v6496_v35 = vld [vmem:[#allocation13 + $0x100] sm:$0xff] }
 0x23f   : > { %9664 = vst [vmem:[#allocation68_spill] sm:$0xff] %v6481_v20  ;;  %1737 = vmatpush.msra.mxu0 %v6496_v35  ;;  %v6499_v20 = vld [vmem:[#allocation13 + $0x108] sm:$0xff] }
 0x240   : > { %9665 = vst [vmem:[#allocation70_spill] sm:$0xff] %v6484_v36  ;;  %1777 = vmatpush.msra.mxu2 %v6499_v20  ;;  %v6502_v36 = vld [vmem:[#allocation13 + $0x390] sm:$0xff] }
 0x241   : > { %9666 = vst [vmem:[#allocation71_spill] sm:$0xff] %v6487_v48  ;;  %1833 = vmatpush.msrb.mxu1 %v6502_v36  ;;  %v6505_v48 = vld [vmem:[#allocation13 + $0x398] sm:$0xff] }
 0x242   : > { %9667 = vst [vmem:[#allocation74_spill] sm:$0xff] %v6490_v62  ;;  %1873 = vmatpush.msrb.mxu3 %v6505_v48  ;;  %v6508_v62 = vld [vmem:[#allocation13 + $0xe0] sm:$0xff] }
 0x243   : > { %9668 = vst [vmem:[#allocation75_spill] sm:$0xff] %v6493_v46  ;;  %1738 = vmatpush.msra.mxu0 %v6508_v62  ;;  %v6511_v46 = vld [vmem:[#allocation13 + $0xe8] sm:$0xff] }
 0x244   : > { %9669 = vst [vmem:[#allocation82_spill] sm:$0xff] %v6496_v35  ;;  %1778 = vmatpush.msra.mxu2 %v6511_v46  ;;  %v6514_v35 = vld [vmem:[#allocation13 + $0x370] sm:$0xff] }
 0x245   : > { %9670 = vst [vmem:[#allocation83_spill] sm:$0xff] %v6499_v20  ;;  %1834 = vmatpush.msrb.mxu1 %v6514_v35  ;;  %v6517_v20 = vld [vmem:[#allocation13 + $0x378] sm:$0xff] }
 0x246   : > { %9671 = vst [vmem:[#allocation86_spill] sm:$0xff] %v6502_v36  ;;  %1874 = vmatpush.msrb.mxu3 %v6517_v20  ;;  %v6520_v36 = vld [vmem:[#allocation13 + $0xc0] sm:$0xff] }
 0x247   : > { %9672 = vst [vmem:[#allocation87_spill] sm:$0xff] %v6505_v48  ;;  %1739 = vmatpush.msra.mxu0 %v6520_v36  ;;  %v6523_v48 = vld [vmem:[#allocation13 + $0xc8] sm:$0xff] }
 0x248   : > { %9673 = vst [vmem:[#allocation90_spill] sm:$0xff] %v6508_v62  ;;  %1779 = vmatpush.msra.mxu2 %v6523_v48  ;;  %v6526_v62 = vld [vmem:[#allocation13 + $0x350] sm:$0xff] }
 0x249   : > { %9674 = vst [vmem:[#allocation91_spill] sm:$0xff] %v6511_v46  ;;  %1835 = vmatpush.msrb.mxu1 %v6526_v62  ;;  %v6529_v46 = vld [vmem:[#allocation13 + $0x358] sm:$0xff] }
 0x24a   : > { %9675 = vst [vmem:[#allocation95_spill] sm:$0xff] %v6514_v35  ;;  %1875 = vmatpush.msrb.mxu3 %v6529_v46  ;;  %v6532_v35 = vld [vmem:[#allocation13 + $0xa0] sm:$0xff] }
 0x24b   : > { %9676 = vst [vmem:[#allocation96_spill] sm:$0xff] %v6517_v20  ;;  %1740 = vmatpush.msra.mxu0 %v6532_v35  ;;  %v6535_v20 = vld [vmem:[#allocation13 + $0xa8] sm:$0xff] }
 0x24c   : > { %9677 = vst [vmem:[#allocation102_spill] sm:$0xff] %v6520_v36  ;;  %1780 = vmatpush.msra.mxu2 %v6535_v20  ;;  %v6538_v36 = vld [vmem:[#allocation13 + $0x330] sm:$0xff] }
 0x24d   : > { %9678 = vst [vmem:[#allocation103_spill] sm:$0xff] %v6523_v48  ;;  %1836 = vmatpush.msrb.mxu1 %v6538_v36  ;;  %v6541_v48 = vld [vmem:[#allocation13 + $0x338] sm:$0xff] }
 0x24e   : > { %9679 = vst [vmem:[#allocation106_spill] sm:$0xff] %v6526_v62  ;;  %1876 = vmatpush.msrb.mxu3 %v6541_v48  ;;  %v6544_v62 = vld [vmem:[#allocation13 + $0x80] sm:$0xff] }
 0x24f   : > { %9680 = vst [vmem:[#allocation107_spill] sm:$0xff] %v6529_v46  ;;  %1741 = vmatpush.msra.mxu0 %v6544_v62  ;;  %v6547_v46 = vld [vmem:[#allocation13 + $0x88] sm:$0xff] }
 0x250   : > { %9681 = vst [vmem:[#allocation110_spill] sm:$0xff] %v6532_v35  ;;  %1781 = vmatpush.msra.mxu2 %v6547_v46  ;;  %v6550_v35 = vld [vmem:[#allocation13 + $0x310] sm:$0xff] }
 0x251   : > { %9682 = vst [vmem:[#allocation111_spill] sm:$0xff] %v6535_v20  ;;  %1837 = vmatpush.msrb.mxu1 %v6550_v35  ;;  %v6553_v20 = vld [vmem:[#allocation13 + $0x318] sm:$0xff] }
 0x252   : > { %9683 = vst [vmem:[#allocation112_spill] sm:$0xff] %v6538_v36  ;;  %1877 = vmatpush.msrb.mxu3 %v6553_v20  ;;  %v6556_v36 = vld [vmem:[#allocation13 + $0x60] sm:$0xff] }
 0x253   : > { %9684 = vst [vmem:[#allocation114_spill] sm:$0xff] %v6541_v48  ;;  %1742 = vmatpush.msra.mxu0 %v6556_v36  ;;  %v6559_v48 = vld [vmem:[#allocation13 + $0x68] sm:$0xff] }
 0x254   : > { %9685 = vst [vmem:[#allocation117_spill] sm:$0xff] %v6544_v62  ;;  %1782 = vmatpush.msra.mxu2 %v6559_v48  ;;  %v6562_v62 = vld [vmem:[#allocation13 + $0x2f0] sm:$0xff] }
 0x255   : > { %9686 = vst [vmem:[#allocation119_spill] sm:$0xff] %v6547_v46  ;;  %1838 = vmatpush.msrb.mxu1 %v6562_v62  ;;  %v6565_v46 = vld [vmem:[#allocation13 + $0x2f8] sm:$0xff] }
 0x256   : > { %9687 = vst [vmem:[#allocation123_spill] sm:$0xff] %v6550_v35  ;;  %1878 = vmatpush.msrb.mxu3 %v6565_v46  ;;  %v6568_v35 = vld [vmem:[#allocation13 + $0x40] sm:$0xff] }
 0x257   : > { %9688 = vst [vmem:[#allocation124_spill] sm:$0xff] %v6553_v20  ;;  %1743 = vmatpush.msra.mxu0 %v6568_v35  ;;  %v6571_v20 = vld [vmem:[#allocation13 + $0x48] sm:$0xff] }
 0x258   : > { %9689 = vst [vmem:[#allocation125_spill] sm:$0xff] %v6556_v36  ;;  %1783 = vmatpush.msra.mxu2 %v6571_v20  ;;  %v6574_v36 = vld [vmem:[#allocation13 + $0x2d0] sm:$0xff] }
 0x259   : > { %9690 = vst [vmem:[#allocation28_spill] sm:$0xff] %v6559_v48  ;;  %1839 = vmatpush.msrb.mxu1 %v6574_v36  ;;  %v6577_v48 = vld [vmem:[#allocation13 + $0x2d8] sm:$0xff] }
 0x25a   : > { %9691 = vst [vmem:[#allocation39_spill] sm:$0xff] %v6562_v62  ;;  %1879 = vmatpush.msrb.mxu3 %v6577_v48  ;;  %v6580_v62 = vld [vmem:[#allocation13 + $0x20] sm:$0xff] }
 0x25b   : > { %9692 = vst [vmem:[#allocation27_spill] sm:$0xff] %v6565_v46  ;;  %1744 = vmatpush.msra.mxu0 %v6580_v62  ;;  %v6583_v46 = vld [vmem:[#allocation13 + $0x28] sm:$0xff] }
 0x25c   : > { %9693 = vst [vmem:[#allocation38_spill] sm:$0xff] %v6568_v35  ;;  %1784 = vmatpush.msra.mxu2 %v6583_v46  ;;  %v6586_v35 = vld [vmem:[#allocation13 + $0x2b0] sm:$0xff] }
 0x25d   : > { %9694 = vst [vmem:[#allocation18_spill] sm:$0xff] %v6571_v20  ;;  %1840 = vmatpush.msrb.mxu1 %v6586_v35  ;;  %v6589_v20 = vld [vmem:[#allocation13 + $0x2b8] sm:$0xff] }
 0x25e   : > { %9695 = vst [vmem:[#allocation19_spill] sm:$0xff] %v6574_v36  ;;  %1880 = vmatpush.msrb.mxu3 %v6589_v20  ;;  %v6592_v36 = vld [vmem:[#allocation13] sm:$0xff] }
 0x25f   : > { %9696 = vst [vmem:[#allocation20_spill] sm:$0xff] %v6577_v48  ;;  %1745 = vmatpush.msra.mxu0 %v6592_v36  ;;  %v6595_v48 = vld [vmem:[#allocation13 + $0x8] sm:$0xff] }
 0x260   : > { %9697 = vst [vmem:[#allocation21_spill] sm:$0xff] %v6580_v62  ;;  %1785 = vmatpush.msra.mxu2 %v6595_v48  ;;  %v6598_v62 = vld [vmem:[#allocation13 + $0x290] sm:$0xff] }
 0x261   : > { %9698 = vst [vmem:[#allocation22_spill] sm:$0xff] %v6583_v46  ;;  %1841 = vmatpush.msrb.mxu1 %v6598_v62  ;;  %v6601_v46 = vld [vmem:[#allocation13 + $0x298] sm:$0xff] }
 0x262   : > { %9699 = vst [vmem:[#allocation23_spill] sm:$0xff] %v6586_v35  ;;  %1881 = vmatpush.msrb.mxu3 %v6601_v46  ;;  %v6604_v35 = vld [vmem:[#allocation13 + $0x1f0] sm:$0xff] }
 0x263   : > { %9700 = vst [vmem:[#allocation24_spill] sm:$0xff] %v6589_v20  ;;  %1810 = vmatpush.msrb.mxu0 %v6604_v35  ;;  %v6607_v20 = vld [vmem:[#allocation13 + $0x1f8] sm:$0xff] }
 0x264   : > { %9701 = vst [vmem:[#allocation25_spill] sm:$0xff] %v6592_v36  ;;  %1850 = vmatpush.msrb.mxu2 %v6607_v20  ;;  %v6610_v36 = vld [vmem:[#allocation13 + $0x270] sm:$0xff] }
 0x265   : > { %9702 = vst [vmem:[#allocation26_spill] sm:$0xff] %v6595_v48  ;;  %1842 = vmatpush.msrb.mxu1 %v6610_v36  ;;  %v6613_v48 = vld [vmem:[#allocation13 + $0x278] sm:$0xff] }
 0x266   : > { %9703 = vst [vmem:[#allocation132_spill] sm:$0xff] %v6598_v62  ;;  %1882 = vmatpush.msrb.mxu3 %v6613_v48  ;;  %v6616_v62 = vld [vmem:[#allocation13 + $0x1d0] sm:$0xff] }
 0x267   : > { %9704 = vst [vmem:[#allocation133_spill] sm:$0xff] %v6601_v46  ;;  %1811 = vmatpush.msrb.mxu0 %v6616_v62  ;;  %v6619_v46 = vld [vmem:[#allocation13 + $0x1d8] sm:$0xff] }
 0x268   : > { %9705 = vst [vmem:[#allocation134_spill] sm:$0xff] %v6604_v35  ;;  %1851 = vmatpush.msrb.mxu2 %v6619_v46  ;;  %v6622_v35 = vld [vmem:[#allocation13 + $0x250] sm:$0xff] }
 0x269   : > { %9706 = vst [vmem:[#allocation135_spill] sm:$0xff] %v6607_v20  ;;  %1843 = vmatpush.msrb.mxu1 %v6622_v35  ;;  %v6625_v20 = vld [vmem:[#allocation13 + $0x258] sm:$0xff] }
 0x26a   : > { %9707 = vst [vmem:[#allocation136_spill] sm:$0xff] %v6610_v36  ;;  %1883 = vmatpush.msrb.mxu3 %v6625_v20  ;;  %v6628_v36 = vld [vmem:[#allocation13 + $0x1b0] sm:$0xff] }
 0x26b   : > { %9708 = vst [vmem:[#allocation137_spill] sm:$0xff] %v6613_v48  ;;  %1812 = vmatpush.msrb.mxu0 %v6628_v36  ;;  %v6631_v48 = vld [vmem:[#allocation13 + $0x1b8] sm:$0xff] }
 0x26c   : > { %9709 = vst [vmem:[#allocation138_spill] sm:$0xff] %v6616_v62  ;;  %1852 = vmatpush.msrb.mxu2 %v6631_v48  ;;  %v6634_v62 = vld [vmem:[#allocation13 + $0x230] sm:$0xff] }
 0x26d   : > { %9710 = vst [vmem:[#allocation139_spill] sm:$0xff] %v6619_v46  ;;  %1844 = vmatpush.msrb.mxu1 %v6634_v62  ;;  %v6637_v46 = vld [vmem:[#allocation13 + $0x238] sm:$0xff] }
 0x26e   : > { %9711 = vst [vmem:[#allocation140_spill] sm:$0xff] %v6622_v35  ;;  %1884 = vmatpush.msrb.mxu3 %v6637_v46  ;;  %v6640_v35 = vld [vmem:[#allocation13 + $0x190] sm:$0xff] }
 0x26f   : > { %9712 = vst [vmem:[#allocation141_spill] sm:$0xff] %v6625_v20  ;;  %1813 = vmatpush.msrb.mxu0 %v6640_v35  ;;  %v6643_v20 = vld [vmem:[#allocation13 + $0x198] sm:$0xff] }
 0x270   : > { %9713 = vst [vmem:[#allocation142_spill] sm:$0xff] %v6628_v36  ;;  %1853 = vmatpush.msrb.mxu2 %v6643_v20  ;;  %v6646_v36 = vld [vmem:[#allocation13 + $0x210] sm:$0xff] }
 0x271   : > { %9714 = vst [vmem:[#allocation143_spill] sm:$0xff] %v6631_v48  ;;  %1845 = vmatpush.msrb.mxu1 %v6646_v36  ;;  %v6649_v48 = vld [vmem:[#allocation13 + $0x218] sm:$0xff]  ;;  %v1432_v57 = vpop.f32.mrf.mxu3 }
 0x272   : > { %9715 = vst [vmem:[#allocation144_spill] sm:$0xff] %v6634_v62  ;;  %1885 = vmatpush.msrb.mxu3 %v6649_v48  ;;  %v6652_v62 = vld [vmem:[#allocation13 + $0x170] sm:$0xff] }
 0x273   : > { %9716 = vst [vmem:[#allocation145_spill] sm:$0xff] %v6637_v46  ;;  %1814 = vmatpush.msrb.mxu0 %v6652_v62  ;;  %v6655_v46 = vld [vmem:[#allocation13 + $0x178] sm:$0xff] }
 0x274   : > { %9717 = vst [vmem:[#allocation146_spill] sm:$0xff] %v6640_v35  ;;  %1854 = vmatpush.msrb.mxu2 %v6655_v46  ;;  %v6658_v35 = vld [vmem:[#allocation13 + $0x150] sm:$0xff] }
 0x275   : > { %9718 = vst [vmem:[#allocation147_spill] sm:$0xff] %v6643_v20  ;;  %1815 = vmatpush.msrb.mxu0 %v6658_v35  ;;  %v6661_v20 = vld [vmem:[#allocation13 + $0x158] sm:$0xff] }
 0x276   : > { %9719 = vst [vmem:[#allocation148_spill] sm:$0xff] %v6646_v36  ;;  %1855 = vmatpush.msrb.mxu2 %v6661_v20  ;;  %v6664_v36 = vld [vmem:[#allocation13 + $0x130] sm:$0xff] }
 0x277   : > { %9720 = vst [vmem:[#allocation149_spill] sm:$0xff] %v6649_v48  ;;  %1816 = vmatpush.msrb.mxu0 %v6664_v36  ;;  %v6667_v48 = vld [vmem:[#allocation13 + $0x138] sm:$0xff] }
 0x278   : > { %9721 = vst [vmem:[#allocation150_spill] sm:$0xff] %v6652_v62  ;;  %1856 = vmatpush.msrb.mxu2 %v6667_v48  ;;  %v6670_v62 = vld [vmem:[#allocation13 + $0x110] sm:$0xff] }
 0x279   : > { %9722 = vst [vmem:[#allocation151_spill] sm:$0xff] %v6655_v46  ;;  %1817 = vmatpush.msrb.mxu0 %v6670_v62  ;;  %v6673_v46 = vld [vmem:[#allocation13 + $0x118] sm:$0xff]  ;;  %v1512_v58 = vpop.f32.mrf.mxu3 }
 0x27a   : > { %9723 = vst [vmem:[#allocation152_spill] sm:$0xff] %v6658_v35  ;;  %1857 = vmatpush.msrb.mxu2 %v6673_v46  ;;  %v6676_v35 = vld [vmem:[#allocation13 + $0xf0] sm:$0xff] }
 0x27b   : > { %9724 = vst [vmem:[#allocation153_spill] sm:$0xff] %v6661_v20  ;;  %1818 = vmatpush.msrb.mxu0 %v6676_v35  ;;  %v6679_v20 = vld [vmem:[#allocation13 + $0xf8] sm:$0xff] }
 0x27c   : > { %9725 = vst [vmem:[#allocation154_spill] sm:$0xff] %v6664_v36  ;;  %1858 = vmatpush.msrb.mxu2 %v6679_v20  ;;  %v6682_v36 = vld [vmem:[#allocation13 + $0xd0] sm:$0xff] }
 0x27d   : > { %9726 = vst [vmem:[#allocation155_spill] sm:$0xff] %v6667_v48  ;;  %1819 = vmatpush.msrb.mxu0 %v6682_v36  ;;  %v6685_v48 = vld [vmem:[#allocation13 + $0xd8] sm:$0xff] }
 0x27e   : > { %9727 = vst [vmem:[#allocation156_spill] sm:$0xff] %v6670_v62  ;;  %1859 = vmatpush.msrb.mxu2 %v6685_v48  ;;  %v6688_v62 = vld [vmem:[#allocation13 + $0xb0] sm:$0xff] }
 0x27f   : > { %9728 = vst [vmem:[#allocation157_spill] sm:$0xff] %v6673_v46  ;;  %1820 = vmatpush.msrb.mxu0 %v6688_v62  ;;  %v6691_v46 = vld [vmem:[#allocation13 + $0xb8] sm:$0xff] }
 0x280   : > { %9729 = vst [vmem:[#allocation158_spill] sm:$0xff] %v6676_v35  ;;  %1860 = vmatpush.msrb.mxu2 %v6691_v46  ;;  %v6694_v35 = vld [vmem:[#allocation13 + $0x90] sm:$0xff] }
 0x281   : > { %9730 = vst [vmem:[#allocation159_spill] sm:$0xff] %v6679_v20  ;;  %1821 = vmatpush.msrb.mxu0 %v6694_v35  ;;  %v6697_v20 = vld [vmem:[#allocation13 + $0x98] sm:$0xff] }
 0x282   : > { %9731 = vst [vmem:[#allocation160_spill] sm:$0xff] %v6682_v36  ;;  %1861 = vmatpush.msrb.mxu2 %v6697_v20  ;;  %v6700_v36 = vld [vmem:[#allocation13 + $0x70] sm:$0xff] }
 0x283   : > { %9732 = vst [vmem:[#allocation161_spill] sm:$0xff] %v6685_v48  ;;  %1822 = vmatpush.msrb.mxu0 %v6700_v36  ;;  %v6703_v48 = vld [vmem:[#allocation13 + $0x78] sm:$0xff]  ;;  %v1372_v8 = vpop.f32.mrf.mxu0 }
 0x284   : > { %9733 = vst [vmem:[#allocation162_spill] sm:$0xff] %v6688_v62  ;;  %1862 = vmatpush.msrb.mxu2 %v6703_v48  ;;  %v6706_v62 = vld [vmem:[#allocation13 + $0x50] sm:$0xff] }
 0x285   : > { %9734 = vst [vmem:[#allocation163_spill] sm:$0xff] %v6691_v46  ;;  %1823 = vmatpush.msrb.mxu0 %v6706_v62  ;;  %v6709_v46 = vld [vmem:[#allocation13 + $0x58] sm:$0xff] }
 0x286   : > { %9735 = vst [vmem:[#allocation164_spill] sm:$0xff] %v6694_v35  ;;  %1863 = vmatpush.msrb.mxu2 %v6709_v46  ;;  %v6712_v35 = vld [vmem:[#allocation13 + $0x30] sm:$0xff] }
 0x287   : > { %9736 = vst [vmem:[#allocation165_spill] sm:$0xff] %v6697_v20  ;;  %1824 = vmatpush.msrb.mxu0 %v6712_v35  ;;  %v6715_v20 = vld [vmem:[#allocation13 + $0x38] sm:$0xff] }
 0x288   : > { %9737 = vst [vmem:[#allocation166_spill] sm:$0xff] %v6700_v36  ;;  %1864 = vmatpush.msrb.mxu2 %v6715_v20  ;;  %v6718_v36 = vld [vmem:[#allocation13 + $0x10] sm:$0xff] }
 0x289   : > { %9738 = vst [vmem:[#allocation167_spill] sm:$0xff] %v6703_v48  ;;  %1825 = vmatpush.msrb.mxu0 %v6718_v36  ;;  %v6721_v48 = vld [vmem:[#allocation13 + $0x18] sm:$0xff]  ;;  %v1412_v22 = vpop.f32.mrf.mxu2 }
 0x28a   : > { %9739 = vst [vmem:[#allocation168_spill] sm:$0xff] %v6706_v62  ;;  %1865 = vmatpush.msrb.mxu2 %v6721_v48  ;;  %v1392_v62 = vpop.f32.mrf.mxu1 }
 0x28b   : > { %9740 = vst [vmem:[#allocation169_spill] sm:$0xff] %v6709_v46  ;;  %v1373_v46 = vadd.f32 %v1372_v8, %v6128_v30 }
 0x28c   : > { %9741 = vst [vmem:[#allocation170_spill] sm:$0xff] %v6712_v35 }
 0x28d   : > { %9742 = vst [vmem:[#allocation171_spill] sm:$0xff] %v6715_v20  ;;  %v1393_v34 = vadd.f32 %v1392_v62, %v1373_v46  ;;  %v1413_v20 = vadd.f32 %v1412_v22, %v6131_v29 }
 0x28e   : > { %9743 = vst [vmem:[#allocation172_spill] sm:$0xff] %v6718_v36  ;;  %v492_v36 = vadd.f32 %v9745_v19, %v9599_v51  ;;  %v9746_v19 = vld [vmem:[#allocation59_spill] sm:$0xff] }
 0x28f   : > { %9744 = vst [vmem:[#allocation173_spill] sm:$0xff] %v6721_v48  ;;  %v4003_v35 = vmul.f32 -1.442695, %v1393_v34  ;;  %v1433_v40 = vadd.f32 %v1432_v57, %v1413_v20  ;;  %v574_v20 = vadd.f32 %v9746_v19, %v5800_v6 }
 0x291   : > { %4145 = vpow2.f32 %v4003_v35  ;;  %v4004_v61 = vmul.f32 -1.442695, %v1433_v40  ;;  %v1452_v35 = vpop.f32.mrf.mxu0 }
 0x292   : > { %v1472_v52 = vpop.f32.mrf.mxu1  ;;  %v1492_v8 = vpop.f32.mrf.mxu2 }
 0x293   : > { %4147 = vpow2.f32 %v4004_v61  ;;  %v1493_v34 = vadd.f32 %v1492_v8, %v6136_v4  ;;  %v1453_v61 = vadd.f32 %v1452_v35, %v6141_v10 }
 0x294   : > { %v1660_v57 = vpop.f32.mrf.mxu3 }
 0x295   : > { %v1513_v62 = vadd.f32 %v1512_v58, %v1493_v34  ;;  %v1473_v8 = vadd.f32 %v1472_v52, %v1453_v61 }
 0x297   : > { %v4146_v59 = vpop.eup %4145  ;;  %v4005_v40 = vmul.f32 -1.442695, %v1513_v62 }
 0x298   : > { %v1518_v18 = vadd.f32 1.0, %v4146_v59 }
 0x299   : > { %v4148_v46 = vpop.eup %4147 }
 0x29a   : > { %v1620_v1 = vpop.f32.mrf.mxu1  ;;  %4149 = vrcp.f32 %v1518_v18  ;;  %v1537_v22 = vadd.f32 1.0, %v4148_v46  ;;  %v1530_v62 = vand.u32 2147483648, %v1518_v18  ;;  %vm1524_vm6 = vweird.f32 %v1518_v18 }
 0x29b   : > { %v1664_v48 = vadd.f32 %v1620_v1, %v492_v36  ;;  %v1666_v1 = vadd.f32 %v1660_v57, %v574_v20  ;;  %v1528_v35 = vand.u32 2147483647, %v1518_v18  ;;  %v9747_v57 = vld [vmem:[#allocation41_spill] sm:$0xff] }
 0x29c   : > { %v451_v20 = vadd.f32 %v9747_v57, %v9604_v26  ;;  %v1549_v52 = vand.u32 2147483648, %v1537_v22  ;;  %v1547_v61 = vand.u32 2147483647, %v1537_v22  ;;  %vm1543_vm9 = vweird.f32 %v1537_v22 }
 0x29d   : > { %v4007_v30 = vmul.f32 -1.442695, %v1664_v48  ;;  %v4008_v29 = vmul.f32 -1.442695, %v1666_v1  ;;  %vm1529_vm10 = vcmp.eq.f32.partialorder %v1528_v35, 8.507059e+37 }
 0x29e   : > { %vm1548_vm12 = vcmp.eq.f32.partialorder %v1547_v61, 8.507059e+37 }
 0x29f   : > { %4151 = vpow2.f32 %v4007_v30 }
 0x2a0   : > { %v4150_v51 = vpop.eup %4149  ;;  %4153 = vrcp.f32 %v1537_v22 }
 0x2a1   : > { %v1520_v59 = vmul.f32 %v4150_v51, %v1518_v18  ;;  %4155 = vpow2.f32 %v4005_v40  ;;  %vm1525_vm5 = vweird.f32 %v4150_v51  ;;  %v1531_v18 = vor.u32 1.1754944e-38, %v1530_v62 }
 0x2a2   : > { %4157 = vtanh.f32 %v1473_v8  ;;  %vm6736_vm7 = vmor %vm1524_vm6, %vm1525_vm5  ;;  %v1550_v8 = vor.u32 1.1754944e-38, %v1549_v52 }
 0x2a3   : > { %v1521_v36 = vsub.f32 1.0, %v1520_v59  ;;  %4159 = vpow2.f32 %v4008_v29 }
 0x2a4   : > { %v1600_v1 = vpop.f32.mrf.mxu0 }
 0x2a5   : > { %v4152_v48 = vpop.eup %4151  ;;  %v1522_v4 = vmul.f32 %v4150_v51, %v1521_v36  ;;  %v1663_v29 = vadd.f32 %v1600_v1, %v451_v20 }
 0x2a6   : > { %v4154_v58 = vpop.eup %4153  ;;  %v6732_v53 = vadd.f32 1.0, %v4152_v48 }
 0x2a7   : > { %v4156_v34 = vpop.eup %4155  ;;  %v1539_v30 = vmul.f32 %v4154_v58, %v1537_v22  ;;  %v1523_v46 = vadd.f32 %v4150_v51, %v1522_v4  ;;  %vm1544_vm8 = vweird.f32 %v4154_v58 }
 0x2a8   : > { %v1557_v19 = vadd.f32 1.0, %v4156_v34  ;;  %v4158_v48 = vpop.eup %4157  ;;  %vm1545_vm11 = vmor %vm1543_vm9, %vm1544_vm8  ;;  %vm1695_vm2 = vweird.f32 %v6732_v53 }
 0x2a9   : > { %v1540_v6 = vsub.f32 1.0, %v1539_v30  ;;  %v1527_v59 = vsel %vm6736_vm7, %v4150_v51, %v1523_v46  ;;  %v4006_v30 = vmul.f32 -1.442695, %v1663_v29  ;;  %v4160_v57 = vpop.eup %4159 }
 0x2aa   : > { %4161 = vrcp.f32 %v1557_v19  ;;  %v1532_v34 = vsel %vm1529_vm10, %v1531_v18, %v1527_v59  ;;  %v6750_v40 = vadd.f32 1.0, %v4160_v57  ;;  %v1569_v61 = vand.u32 2147483648, %v1557_v19 }
 0x2ab   : > { %v1541_v4 = vmul.f32 %v4154_v58, %v1540_v6  ;;  %4163 = vrcp.f32 %v6732_v53  ;;  %v1574_v62 = vmul.f32 %v4158_v48, %v1532_v34  ;;  %vm1563_vm14 = vweird.f32 %v1557_v19 }
 0x2ac   : > { %4165 = vpow2.f32 %v4006_v30  ;;  %v9750_v30 = vld [vmem:[#allocation58_spill] sm:$0xff]  ;;  %vm1715_vm10 = vweird.f32 %v6750_v40 }
 0x2ad   : > { %v1542_v36 = vadd.f32 %v4154_v58, %v1541_v4  ;;  %v1567_v4 = vand.u32 2147483647, %v1557_v19  ;;  %v533_v57 = vadd.f32 %v9750_v30, %v5859_v5  ;;  %v9759_v30 = vld [vmem:[#allocation49_spill] sm:$0xff] }
 0x2af   : > { %v1546_v26 = vsel %vm1545_vm11, %v4154_v58, %v1542_v36  ;;  %vm1568_vm0 = vcmp.eq.f32.partialorder %v1567_v4, 8.507059e+37 }
 0x2b0   : > { %v4162_v6 = vpop.eup %4161  ;;  %v1551_v10 = vsel %vm1548_vm12, %v1550_v8, %v1546_v26  ;;  %v1640_v8 = vpop.f32.mrf.mxu2 }
 0x2b1   : > { %v6743_v51 = vpop.eup %4163  ;;  %v1573_v46 = vmul.f32 %v1551_v10, %v6161_v41  ;;  %v1559_v20 = vmul.f32 %v4162_v6, %v1557_v19  ;;  %vm1564_vm13 = vweird.f32 %v4162_v6  ;;  %v1570_v41 = vor.u32 1.1754944e-38, %v1569_v61 }
 0x2b2   : > { %v1691_v52 = vmul.f32 %v6743_v51, %v6732_v53  ;;  %v4166_v26 = vpop.eup %4165  ;;  %vm1565_vm15 = vmor %vm1563_vm14, %vm1564_vm13  ;;  %v1665_v19 = vadd.f32 %v1640_v8, %v533_v57  ;;  %vm1696_vm1 = vweird.f32 %v6743_v51  ;;  %v9758_v8 = vld [vmem:[#allocation46_spill] sm:$0xff] }
 0x2b3   : > { %v6746_v22 = vadd.f32 %v1574_v62, %v1573_v46  ;;  %v1560_v35 = vsub.f32 1.0, %v1559_v20  ;;  %v1670_v59 = vadd.f32 1.0, %v4166_v26  ;;  %vm6770_vm3 = vmor %vm1695_vm2, %vm1696_vm1  ;;  %v6894_v57 = vld [vmem:[#allocation10 + $0xa0] sm:$0xff] }
 0x2b4   : > { %v1692_v10 = vsub.f32 1.0, %v1691_v52 }
 0x2b5   : > { %4167 = vtanh.f32 %v6746_v22  ;;  %v1561_v58 = vmul.f32 %v4162_v6, %v1560_v35  ;;  %v1701_v35 = vand.u32 2147483648, %v6732_v53  ;;  %v1682_v61 = vand.u32 2147483648, %v1670_v59 }
 0x2b6   : > { %4169 = vrcp.f32 %v6750_v40  ;;  %v1693_v48 = vmul.f32 %v6743_v51, %v1692_v10  ;;  %vm1676_vm5 = vweird.f32 %v1670_v59 }
 0x2b7   : > { %v1562_v1 = vadd.f32 %v4162_v6, %v1561_v58  ;;  %4171 = vrcp.f32 %v1670_v59  ;;  %v1702_v4 = vor.u32 1.1754944e-38, %v1701_v35  ;;  %v6906_v35 = vld [vmem:[#allocation10 + $0x90] sm:$0xff] }
 0x2b8   : > { %v1694_v20 = vadd.f32 %v6743_v51, %v1693_v48  ;;  %4173 = vtanh.f32 %v1665_v19  ;;  %v6886_v48 = vld [vmem:[#allocation10 + $0xc0] sm:$0xff] }
 0x2b9   : > { %v1566_v18 = vsel %vm1565_vm15, %v4162_v6, %v1562_v1  ;;  %v9761_v19 = vld [vmem:[#allocation53_spill] sm:$0xff] }
 0x2ba   : > { %v1571_v36 = vsel %vm1568_vm0, %v1570_v41, %v1566_v18  ;;  %v6878_v18 = vld [vmem:[#allocation10 + $0xe0] sm:$0xff] }
 0x2bb   : > { %v4168_v29 = vpop.eup %4167 }
 0x2bc   : > { %v1577_v34 = vmul.f32 %v4168_v29, %v1571_v36  ;;  %v6757_v46 = vpop.eup %4169  ;;  %v6882_v29 = vld [vmem:[#allocation10 + $0xf0] sm:$0xff]  ;;  %v9757_v36 = vld [vmem:[#allocation45_spill] sm:$0xff] }
 0x2bd   : > { %v4172_v62 = vpop.eup %4171  ;;  %v1711_v52 = vmul.f32 %v6757_v46, %v6750_v40  ;;  %vm1716_vm9 = vweird.f32 %v6757_v46 }
 0x2be   : > { %1766 = vmatmul.f32.vlgmr.msra.gmra.mxu1 %v1577_v34  ;;  %1806 = vmatmul.f32.vlgmr.msra.gmra.mxu3 %v1577_v34  ;;  %v1672_v6 = vmul.f32 %v4172_v62, %v1670_v59  ;;  %vm1677_vm4 = vweird.f32 %v4172_v62  ;;  %vm1717_vm11 = vmor %vm1715_vm10, %vm1716_vm9 }
 0x2bf   : > { %1978 = vmatpush.msra.mxu1 %v6179_v47  ;;  %2018 = vmatpush.msra.mxu3 %v6182_v50  ;;  %v1699_v47 = vand.u32 2147483647, %v6732_v53  ;;  %v1712_v1 = vsub.f32 1.0, %v1711_v52  ;;  %vm1678_vm7 = vmor %vm1676_vm5, %vm1677_vm4  ;;  %v9763_v52 = vld [vmem:[#allocation57_spill] sm:$0xff]  ;;  %v6914_v50 = vld [vmem:[#allocation10 + $0x70] sm:$0xff] }
 0x2c0   : > { %v1673_v58 = vsub.f32 1.0, %v1672_v6  ;;  %v6902_v6 = vld [vmem:[#allocation10 + $0x80] sm:$0xff] }
 0x2c1   : > { %1979 = vmatpush.msra.mxu1 %v6192_v0  ;;  %2019 = vmatpush.msra.mxu3 %v6195_v3  ;;  %v1680_v0 = vand.u32 2147483647, %v1670_v59  ;;  %v1698_v3 = vsel %vm6770_vm3, %v6743_v51, %v1694_v20  ;;  %vm1700_vm6 = vcmp.eq.f32.partialorder %v1699_v47, 8.507059e+37  ;;  %v4174_v51 = vpop.eup %4173  ;;  %v1713_v41 = vmul.f32 %v6757_v46, %v1712_v1  ;;  %v9762_v20 = vld [vmem:[#allocation54_spill] sm:$0xff]  ;;  %v9764_v47 = vld [vmem:[#allocation60_spill] sm:$0xff] }
 0x2c2   : > { %v1674_v26 = vmul.f32 %v4172_v62, %v1673_v58  ;;  %v6910_v58 = vld [vmem:[#allocation10 + $0x60] sm:$0xff] }
 0x2c3   : > { %1980 = vmatpush.msra.mxu1 %v6202_v43  ;;  %2020 = vmatpush.msra.mxu3 %v6205_v31  ;;  %v1683_v43 = vor.u32 1.1754944e-38, %v1682_v61  ;;  %v1703_v31 = vsel %vm1700_vm6, %v1702_v4, %v1698_v3  ;;  %vm1681_vm8 = vcmp.eq.f32.partialorder %v1680_v0, 8.507059e+37  ;;  %v9765_v61 = vld [vmem:[#allocation65_spill] sm:$0xff]  ;;  %v9766_v0 = vld [vmem:[#allocation66_spill] sm:$0xff]  ;;  %v6922_v3 = vld [vmem:[#allocation10 + $0x50] sm:$0xff] }
 0x2c4   : > { %v1675_v53 = vadd.f32 %v4172_v62, %v1674_v26  ;;  %v6918_v26 = vld [vmem:[#allocation10 + $0x40] sm:$0xff] }
 0x2c5   : > { %1981 = vmatpush.msra.mxu1 %v6209_v27  ;;  %2021 = vmatpush.msra.mxu3 %v6212_v32  ;;  %v1725_v32 = vmul.f32 %v1703_v31, %v6229_v7  ;;  %v9767_v4 = vld [vmem:[#allocation69_spill] sm:$0xff] }
 0x2c6   : > { %1846 = vmatmul.f32.vlgmr.msrb.gmra.mxu1 %v1577_v34  ;;  %1886 = vmatmul.f32.vlgmr.msrb.gmra.mxu3 %v1577_v34  ;;  %v1679_v10 = vsel %vm1678_vm7, %v4172_v62, %v1675_v53  ;;  %v6890_v34 = vld [vmem:[#allocation10 + $0xd0] sm:$0xff]  ;;  %v6926_v1 = vld [vmem:[#allocation10 + $0x20] sm:$0xff] }
 0x2c7   : > { %1982 = vmatpush.msra.mxu1 %v6216_v25  ;;  %2022 = vmatpush.msra.mxu3 %v6219_v37  ;;  %v1684_v27 = vsel %vm1681_vm8, %v1683_v43, %v1679_v10  ;;  %v1714_v37 = vadd.f32 %v6757_v46, %v1713_v41  ;;  %v6898_v62 = vld [vmem:[#allocation10 + $0xb0] sm:$0xff]  ;;  %v9769_v31 = vld [vmem:[#allocation73_spill] sm:$0xff] }
 0x2c8   : > { %v1726_v59 = vmul.f32 %v4174_v51, %v1684_v27  ;;  %v9768_v53 = vld [vmem:[#allocation72_spill] sm:$0xff]  ;;  %v6934_v10 = vld [vmem:[#allocation10] sm:$0xff]  ;;  %v9771_v27 = vld [vmem:[#allocation79_spill] sm:$0xff] }
 0x2c9   : > { %1983 = vmatpush.msra.mxu1 %v6223_v60  ;;  %2023 = vmatpush.msra.mxu3 %v6226_v14  ;;  %v1721_v60 = vand.u32 2147483648, %v6750_v40  ;;  %v1719_v14 = vand.u32 2147483647, %v6750_v40  ;;  %v1718_v7 = vsel %vm1717_vm11, %v6757_v46, %v1714_v37  ;;  %v6874_v40 = vld [vmem:[#allocation10 + $0x110] sm:$0xff]  ;;  %v9760_v46 = vld [vmem:[#allocation50_spill] sm:$0xff] }
 0x2ca   : > { %v6789_v25 = vadd.f32 %v1726_v59, %v1725_v32  ;;  %v6930_v43 = vld [vmem:[#allocation10 + $0x30] sm:$0xff]  ;;  %v9773_v59 = vld [vmem:[#allocation85_spill] sm:$0xff] }
 0x2cb   : > { %1984 = vmatpush.msra.mxu1 %v6233_v63  ;;  %2024 = vmatpush.msra.mxu3 %v6236_v56  ;;  %v1722_v63 = vor.u32 1.1754944e-38, %v1721_v60  ;;  %vm1720_vm12 = vcmp.eq.f32.partialorder %v1719_v14, 8.507059e+37  ;;  %v9770_v51 = vld [vmem:[#allocation76_spill] sm:$0xff]  ;;  %v9775_v60 = vld [vmem:[#allocation89_spill] sm:$0xff] }
 0x2cc   : > { %4175 = vtanh.f32 %v6789_v25  ;;  %v6938_v41 = vld [vmem:[#allocation10 + $0x10] sm:$0xff] }
 0x2cd   : > { %1985 = vmatpush.msra.mxu1 %v6243_v28  ;;  %2025 = vmatpush.msra.mxu3 %v6246_v15  ;;  %v1723_v28 = vsel %vm1720_vm12, %v1722_v63, %v1718_v7  ;;  %v9772_v32 = vld [vmem:[#allocation84_spill] sm:$0xff]  ;;  %v9777_v7 = vld [vmem:[#allocation35_spill] sm:$0xff] }
 0x2ce   : > { %v9774_v37 = vld [vmem:[#allocation88_spill] sm:$0xff] }
 0x2cf   : > { %1986 = vmatpush.msra.mxu1 %v6250_v49  ;;  %2026 = vmatpush.msra.mxu3 %v6253_v17  ;;  %v6812_v49 = vld [vmem:[#allocation10 + $0x1e0] sm:$0xff]  ;;  %v6815_v17 = vld [vmem:[#allocation10 + $0x1f0] sm:$0xff] }
 0x2d0   : > { %v9776_v14 = vld [vmem:[#allocation92_spill] sm:$0xff] }
 0x2d1   : > { %1987 = vmatpush.msra.mxu1 %v6256_v55  ;;  %2027 = vmatpush.msra.mxu3 %v6259_v33  ;;  %v6820_v55 = vld [vmem:[#allocation10 + $0x1c0] sm:$0xff]  ;;  %v6823_v33 = vld [vmem:[#allocation10 + $0x1d0] sm:$0xff] }
 0x2d2   : > { %v4176_v56 = vpop.eup %4175  ;;  %v9778_v63 = vld [vmem:[#allocation36_spill] sm:$0xff] }
 0x2d3   : > { %1988 = vmatpush.msra.mxu1 %v6264_v38  ;;  %2028 = vmatpush.msra.mxu3 %v6267_v16  ;;  %v6806_v15 = vmul.f32 %v4176_v56, %v1723_v28  ;;  %v6828_v38 = vld [vmem:[#allocation10 + $0x1a0] sm:$0xff]  ;;  %v6831_v16 = vld [vmem:[#allocation10 + $0x1b0] sm:$0xff] }
 0x2d4   : > { %v9779_v56 = vld [vmem:[#allocation93_spill] sm:$0xff]  ;;  %v9780_v28 = vld [vmem:[#allocation43_spill] sm:$0xff] }
 0x2d5   : > { %1989 = vmatpush.msra.mxu1 %v6270_v54  ;;  %2029 = vmatpush.msra.mxu3 %v6273_v21  ;;  %v6836_v54 = vld [vmem:[#allocation10 + $0x180] sm:$0xff]  ;;  %v6839_v21 = vld [vmem:[#allocation10 + $0x190] sm:$0xff] }
 0x2d6   : > { %1746 = vmatmul.f32.vlgmr.msra.gmra.mxu0 %v6806_v15  ;;  %1786 = vmatmul.f32.vlgmr.msra.gmra.mxu2 %v6806_v15 }
 0x2d7   : > { %1958 = vmatpush.msra.mxu0 %v6812_v49  ;;  %1998 = vmatpush.msra.mxu2 %v6815_v17 }
 0x2d8   : > { %1990 = vmatpush.msra.mxu1 %v6280_v9  ;;  %2030 = vmatpush.msra.mxu3 %v6283_v39  ;;  %v6846_v9 = vld [vmem:[#allocation10 + $0x160] sm:$0xff]  ;;  %v6850_v39 = vld [vmem:[#allocation10 + $0x170] sm:$0xff] }
 0x2d9   : > { %1959 = vmatpush.msra.mxu0 %v6820_v55  ;;  %1999 = vmatpush.msra.mxu2 %v6823_v33 }
 0x2da   : > { %1991 = vmatpush.msra.mxu1 %v6288_v45  ;;  %2031 = vmatpush.msra.mxu3 %v6291_v11  ;;  %v6854_v45 = vld [vmem:[#allocation10 + $0x140] sm:$0xff]  ;;  %v6858_v11 = vld [vmem:[#allocation10 + $0x150] sm:$0xff] }
 0x2db   : > { %1960 = vmatpush.msra.mxu0 %v6828_v38  ;;  %2000 = vmatpush.msra.mxu2 %v6831_v16 }
 0x2dc   : > { %1992 = vmatpush.msra.mxu1 %v6296_v44  ;;  %2032 = vmatpush.msra.mxu3 %v6299_v42  ;;  %v6862_v44 = vld [vmem:[#allocation10 + $0x120] sm:$0xff]  ;;  %v6866_v42 = vld [vmem:[#allocation10 + $0x130] sm:$0xff] }
 0x2dd   : > { %1961 = vmatpush.msra.mxu0 %v6836_v54  ;;  %2001 = vmatpush.msra.mxu2 %v6839_v21 }
 0x2de   : > { %1993 = vmatpush.msra.mxu1 %v6304_v12  ;;  %2033 = vmatpush.msra.mxu3 %v6307_v13  ;;  %v9753_v12 = vld [vmem:[#allocation33_spill] sm:$0xff] }
 0x2df   : > { %1826 = vmatmul.f32.vlgmr.msrb.gmra.mxu0 %v6806_v15  ;;  %1866 = vmatmul.f32.vlgmr.msrb.gmra.mxu2 %v6806_v15  ;;  %v6870_v13 = vld [vmem:[#allocation10 + $0x100] sm:$0xff] }
 0x2e0   : > { %1962 = vmatpush.msra.mxu0 %v6846_v9  ;;  %1994 = vmatmul.f32.vlgmr.msra.gmra.mxu1 %v6806_v15 }
 0x2e1   : > { %2002 = vmatpush.msra.mxu2 %v6850_v39  ;;  %2034 = vmatmul.f32.vlgmr.msra.gmra.mxu3 %v6806_v15 }
 0x2e2   : > { %1963 = vmatpush.msra.mxu0 %v6854_v45  ;;  %2125 = vmatpush.msrb.mxu1 %v6317_v24  ;;  %v9754_v24 = vld [vmem:[#allocation34_spill] sm:$0xff] }
 0x2e3   : > { %2003 = vmatpush.msra.mxu2 %v6858_v11  ;;  %2165 = vmatpush.msrb.mxu3 %v6321_v2  ;;  %v9755_v2 = vld [vmem:[#allocation37_spill] sm:$0xff] }
 0x2e4   : > { %1964 = vmatpush.msra.mxu0 %v6862_v44  ;;  %2126 = vmatpush.msrb.mxu1 %v6325_v23  ;;  %v9756_v23 = vld [vmem:[#allocation40_spill] sm:$0xff] }
 0x2e5   : > { %2004 = vmatpush.msra.mxu2 %v6866_v42  ;;  %2166 = vmatpush.msrb.mxu3 %v9753_v12  ;;  %v9782_v12 = vld [vmem:[#allocation44_spill] sm:$0xff] }
 0x2e6   : > { %1965 = vmatpush.msra.mxu0 %v6870_v13  ;;  %2127 = vmatpush.msrb.mxu1 %v9754_v24  ;;  %v9783_v24 = vld [vmem:[#allocation100_spill] sm:$0xff] }
 0x2e7   : > { %2005 = vmatpush.msra.mxu2 %v6874_v40  ;;  %2167 = vmatpush.msrb.mxu3 %v9755_v2  ;;  %v9784_v2 = vld [vmem:[#allocation47_spill] sm:$0xff] }
 0x2e8   : > { %1966 = vmatpush.msra.mxu0 %v6878_v18  ;;  %2128 = vmatpush.msrb.mxu1 %v9756_v23  ;;  %v9785_v23 = vld [vmem:[#allocation104_spill] sm:$0xff] }
 0x2e9   : > { %2006 = vmatpush.msra.mxu2 %v6882_v29  ;;  %2168 = vmatpush.msrb.mxu3 %v9757_v36  ;;  %v9786_v36 = vld [vmem:[#allocation48_spill] sm:$0xff] }
 0x2ea   : > { %1967 = vmatpush.msra.mxu0 %v6886_v48  ;;  %2129 = vmatpush.msrb.mxu1 %v9758_v8  ;;  %v9787_v8 = vld [vmem:[#allocation105_spill] sm:$0xff] }
 0x2eb   : > { %2007 = vmatpush.msra.mxu2 %v6890_v34  ;;  %2169 = vmatpush.msrb.mxu3 %v9759_v30  ;;  %v9788_v30 = vld [vmem:[#allocation51_spill] sm:$0xff] }
 0x2ec   : > { %1968 = vmatpush.msra.mxu0 %v6894_v57  ;;  %2130 = vmatpush.msrb.mxu1 %v9760_v46  ;;  %v9789_v46 = vld [vmem:[#allocation108_spill] sm:$0xff] }
 0x2ed   : > { %2008 = vmatpush.msra.mxu2 %v6898_v62  ;;  %2170 = vmatpush.msrb.mxu3 %v9761_v19  ;;  %v9790_v19 = vld [vmem:[#allocation52_spill] sm:$0xff] }
 0x2ee   : > { %1969 = vmatpush.msra.mxu0 %v6902_v6  ;;  %2131 = vmatpush.msrb.mxu1 %v9762_v20  ;;  %v9791_v20 = vld [vmem:[#allocation109_spill] sm:$0xff] }
 0x2ef   : > { %2009 = vmatpush.msra.mxu2 %v6906_v35  ;;  %2171 = vmatpush.msrb.mxu3 %v9763_v52  ;;  %v9792_v52 = vld [vmem:[#allocation55_spill] sm:$0xff] }
 0x2f0   : > { %1970 = vmatpush.msra.mxu0 %v6910_v58  ;;  %2132 = vmatpush.msrb.mxu1 %v9764_v47  ;;  %v9793_v47 = vld [vmem:[#allocation56_spill] sm:$0xff] }
 0x2f1   : > { %2010 = vmatpush.msra.mxu2 %v6914_v50  ;;  %2172 = vmatpush.msrb.mxu3 %v9765_v61  ;;  %v9794_v61 = vld [vmem:[#allocation63_spill] sm:$0xff] }
 0x2f2   : > { %1971 = vmatpush.msra.mxu0 %v6918_v26  ;;  %2133 = vmatpush.msrb.mxu1 %v9766_v0  ;;  %v9795_v0 = vld [vmem:[#allocation64_spill] sm:$0xff] }
 0x2f3   : > { %2011 = vmatpush.msra.mxu2 %v6922_v3  ;;  %2173 = vmatpush.msrb.mxu3 %v9767_v4  ;;  %v9796_v4 = vld [vmem:[#allocation67_spill] sm:$0xff] }
 0x2f4   : > { %1972 = vmatpush.msra.mxu0 %v6926_v1  ;;  %2134 = vmatpush.msrb.mxu1 %v9768_v53  ;;  %v9797_v53 = vld [vmem:[#allocation68_spill] sm:$0xff] }
 0x2f5   : > { %2012 = vmatpush.msra.mxu2 %v6930_v43  ;;  %2174 = vmatpush.msrb.mxu3 %v9769_v31  ;;  %v9798_v31 = vld [vmem:[#allocation70_spill] sm:$0xff] }
 0x2f6   : > { %1973 = vmatpush.msra.mxu0 %v6934_v10  ;;  %2135 = vmatpush.msrb.mxu1 %v9770_v51  ;;  %v9799_v51 = vld [vmem:[#allocation71_spill] sm:$0xff] }
 0x2f7   : > { %2013 = vmatpush.msra.mxu2 %v6938_v41  ;;  %1974 = vmatmul.f32.vlgmr.msra.gmra.mxu0 %v6806_v15 }
 0x2f8   : > { %2014 = vmatmul.f32.vlgmr.msra.gmra.mxu2 %v6806_v15  ;;  %2175 = vmatpush.msrb.mxu3 %v9771_v27  ;;  %v9781_v15 = vld [vmem:[#allocation97_spill] sm:$0xff]  ;;  %v9800_v27 = vld [vmem:[#allocation74_spill] sm:$0xff] }
 0x2f9   : > { %2136 = vmatpush.msrb.mxu1 %v9772_v32  ;;  %2105 = vmatpush.msrb.mxu0 %v9773_v59  ;;  %v9801_v32 = vld [vmem:[#allocation75_spill] sm:$0xff]  ;;  %v9802_v59 = vld [vmem:[#allocation82_spill] sm:$0xff] }
 0x2fa   : > { %2176 = vmatpush.msrb.mxu3 %v9774_v37  ;;  %2145 = vmatpush.msrb.mxu2 %v9775_v60  ;;  %v9803_v37 = vld [vmem:[#allocation83_spill] sm:$0xff]  ;;  %v9804_v60 = vld [vmem:[#allocation86_spill] sm:$0xff] }
 0x2fb   : > { %2137 = vmatpush.msrb.mxu1 %v9776_v14  ;;  %2106 = vmatpush.msrb.mxu0 %v9777_v7  ;;  %v9805_v14 = vld [vmem:[#allocation87_spill] sm:$0xff]  ;;  %v9806_v7 = vld [vmem:[#allocation90_spill] sm:$0xff] }
 0x2fc   : > { %2177 = vmatpush.msrb.mxu3 %v9778_v63  ;;  %2146 = vmatpush.msrb.mxu2 %v9779_v56  ;;  %v9807_v63 = vld [vmem:[#allocation91_spill] sm:$0xff] }
 0x2fd   : > { %2138 = vmatpush.msrb.mxu1 %v9780_v28  ;;  %2107 = vmatpush.msrb.mxu0 %v9781_v15  ;;  %v9808_v56 = vld [vmem:[#allocation95_spill] sm:$0xff]  ;;  %v9809_v28 = vld [vmem:[#allocation96_spill] sm:$0xff]  ;;  %v9810_v15 = vld [vmem:[#allocation102_spill] sm:$0xff] }
 0x2fe   : > { %2178 = vmatpush.msrb.mxu3 %v9782_v12  ;;  %2147 = vmatpush.msrb.mxu2 %v9783_v24  ;;  %v9811_v12 = vld [vmem:[#allocation103_spill] sm:$0xff]  ;;  %v9812_v24 = vld [vmem:[#allocation106_spill] sm:$0xff] }
 0x2ff   : > { %2139 = vmatpush.msrb.mxu1 %v9784_v2  ;;  %2108 = vmatpush.msrb.mxu0 %v9785_v23  ;;  %v9813_v2 = vld [vmem:[#allocation107_spill] sm:$0xff]  ;;  %v9814_v23 = vld [vmem:[#allocation110_spill] sm:$0xff] }
 0x300   : > { %2179 = vmatpush.msrb.mxu3 %v9786_v36  ;;  %2148 = vmatpush.msrb.mxu2 %v9787_v8  ;;  %v9815_v36 = vld [vmem:[#allocation111_spill] sm:$0xff]  ;;  %v9816_v8 = vld [vmem:[#allocation112_spill] sm:$0xff] }
 0x301   : > { %2140 = vmatpush.msrb.mxu1 %v9788_v30  ;;  %2109 = vmatpush.msrb.mxu0 %v9789_v46  ;;  %v9817_v30 = vld [vmem:[#allocation114_spill] sm:$0xff]  ;;  %v9818_v46 = vld [vmem:[#allocation117_spill] sm:$0xff] }
 0x302   : > { %2180 = vmatpush.msrb.mxu3 %v9790_v19  ;;  %2149 = vmatpush.msrb.mxu2 %v9791_v20  ;;  %v9819_v19 = vld [vmem:[#allocation119_spill] sm:$0xff] }
 0x303   : > { %2205 = vmatpush.msra.mxu1 %v9792_v52  ;;  %2110 = vmatpush.msrb.mxu0 %v9794_v61  ;;  %v9820_v20 = vld [vmem:[#allocation123_spill] sm:$0xff]  ;;  %v9821_v52 = vld [vmem:[#allocation124_spill] sm:$0xff] }
 0x304   : > { %2245 = vmatpush.msra.mxu3 %v9793_v47  ;;  %2150 = vmatpush.msrb.mxu2 %v9795_v0  ;;  %v9822_v47 = vld [vmem:[#allocation125_spill] sm:$0xff]  ;;  %v9823_v61 = vld [vmem:[#allocation28_spill] sm:$0xff]  ;;  %v9824_v0 = vld [vmem:[#allocation39_spill] sm:$0xff] }
 0x305   : > { %2206 = vmatpush.msra.mxu1 %v9796_v4  ;;  %2111 = vmatpush.msrb.mxu0 %v9798_v31  ;;  %v9825_v4 = vld [vmem:[#allocation27_spill] sm:$0xff]  ;;  %v9827_v31 = vld [vmem:[#allocation18_spill] sm:$0xff] }
 0x306   : > { %2246 = vmatpush.msra.mxu3 %v9797_v53  ;;  %2151 = vmatpush.msrb.mxu2 %v9799_v51  ;;  %v9826_v53 = vld [vmem:[#allocation38_spill] sm:$0xff]  ;;  %v9828_v51 = vld [vmem:[#allocation19_spill] sm:$0xff] }
 0x307   : > { %2207 = vmatpush.msra.mxu1 %v9800_v27  ;;  %2112 = vmatpush.msrb.mxu0 %v9802_v59  ;;  %v9829_v27 = vld [vmem:[#allocation20_spill] sm:$0xff]  ;;  %v9831_v59 = vld [vmem:[#allocation22_spill] sm:$0xff] }
 0x308   : > { %2247 = vmatpush.msra.mxu3 %v9801_v32  ;;  %2152 = vmatpush.msrb.mxu2 %v9803_v37  ;;  %v9830_v32 = vld [vmem:[#allocation21_spill] sm:$0xff]  ;;  %v9832_v37 = vld [vmem:[#allocation23_spill] sm:$0xff] }
 0x309   : > { %2208 = vmatpush.msra.mxu1 %v9804_v60  ;;  %2113 = vmatpush.msrb.mxu0 %v9806_v7  ;;  %v9833_v60 = vld [vmem:[#allocation24_spill] sm:$0xff]  ;;  %v9835_v7 = vld [vmem:[#allocation26_spill] sm:$0xff] }
 0x30a   : > { %2248 = vmatpush.msra.mxu3 %v9805_v14  ;;  %2153 = vmatpush.msrb.mxu2 %v9807_v63  ;;  %v9834_v14 = vld [vmem:[#allocation25_spill] sm:$0xff]  ;;  %v9836_v63 = vld [vmem:[#allocation132_spill] sm:$0xff] }
 0x30b   : > { %2209 = vmatpush.msra.mxu1 %v9808_v56  ;;  %2114 = vmatpush.msrb.mxu0 %v9810_v15  ;;  %v9837_v56 = vld [vmem:[#allocation133_spill] sm:$0xff]  ;;  %v9839_v15 = vld [vmem:[#allocation135_spill] sm:$0xff] }
 0x30c   : > { %2249 = vmatpush.msra.mxu3 %v9809_v28  ;;  %2154 = vmatpush.msrb.mxu2 %v9811_v12  ;;  %v9838_v28 = vld [vmem:[#allocation134_spill] sm:$0xff]  ;;  %v9840_v12 = vld [vmem:[#allocation136_spill] sm:$0xff] }
 0x30d   : > { %2210 = vmatpush.msra.mxu1 %v9812_v24  ;;  %2115 = vmatpush.msrb.mxu0 %v9814_v23  ;;  %v9841_v24 = vld [vmem:[#allocation137_spill] sm:$0xff]  ;;  %v9843_v23 = vld [vmem:[#allocation139_spill] sm:$0xff] }
 0x30e   : > { %2250 = vmatpush.msra.mxu3 %v9813_v2  ;;  %2155 = vmatpush.msrb.mxu2 %v9815_v36  ;;  %v9842_v2 = vld [vmem:[#allocation138_spill] sm:$0xff]  ;;  %v9844_v36 = vld [vmem:[#allocation140_spill] sm:$0xff] }
 0x30f   : > { %2211 = vmatpush.msra.mxu1 %v9816_v8  ;;  %2116 = vmatpush.msrb.mxu0 %v9818_v46  ;;  %v9845_v8 = vld [vmem:[#allocation141_spill] sm:$0xff]  ;;  %v9847_v46 = vld [vmem:[#allocation143_spill] sm:$0xff] }
 0x310   : > { %2251 = vmatpush.msra.mxu3 %v9817_v30  ;;  %2156 = vmatpush.msrb.mxu2 %v9819_v19  ;;  %v9846_v30 = vld [vmem:[#allocation142_spill] sm:$0xff]  ;;  %v9848_v19 = vld [vmem:[#allocation144_spill] sm:$0xff] }
 0x311   : > { %2212 = vmatpush.msra.mxu1 %v9820_v20  ;;  %2117 = vmatpush.msrb.mxu0 %v9822_v47  ;;  %v9849_v20 = vld [vmem:[#allocation145_spill] sm:$0xff]  ;;  %v9851_v47 = vld [vmem:[#allocation147_spill] sm:$0xff] }
 0x312   : > { %2252 = vmatpush.msra.mxu3 %v9821_v52  ;;  %2157 = vmatpush.msrb.mxu2 %v9823_v61  ;;  %v9850_v52 = vld [vmem:[#allocation146_spill] sm:$0xff]  ;;  %v9852_v61 = vld [vmem:[#allocation148_spill] sm:$0xff] }
 0x313   : > { %2213 = vmatpush.msra.mxu1 %v9824_v0  ;;  %2118 = vmatpush.msrb.mxu0 %v9826_v53  ;;  %v9853_v0 = vld [vmem:[#allocation149_spill] sm:$0xff]  ;;  %v9855_v53 = vld [vmem:[#allocation151_spill] sm:$0xff] }
 0x314   : > { %2253 = vmatpush.msra.mxu3 %v9825_v4  ;;  %2158 = vmatpush.msrb.mxu2 %v9827_v31  ;;  %v9854_v4 = vld [vmem:[#allocation150_spill] sm:$0xff]  ;;  %v9856_v31 = vld [vmem:[#allocation152_spill] sm:$0xff] }
 0x315   : > { %2214 = vmatpush.msra.mxu1 %v9828_v51  ;;  %2119 = vmatpush.msrb.mxu0 %v9830_v32  ;;  %v9857_v51 = vld [vmem:[#allocation153_spill] sm:$0xff]  ;;  %v9859_v32 = vld [vmem:[#allocation155_spill] sm:$0xff] }
 0x316   : > { %2254 = vmatpush.msra.mxu3 %v9829_v27  ;;  %2159 = vmatpush.msrb.mxu2 %v9831_v59  ;;  %v9858_v27 = vld [vmem:[#allocation154_spill] sm:$0xff]  ;;  %v9860_v59 = vld [vmem:[#allocation156_spill] sm:$0xff] }
 0x317   : > { %2215 = vmatpush.msra.mxu1 %v9832_v37  ;;  %2120 = vmatpush.msrb.mxu0 %v9834_v14  ;;  %v9861_v37 = vld [vmem:[#allocation157_spill] sm:$0xff]  ;;  %v9863_v14 = vld [vmem:[#allocation159_spill] sm:$0xff] }
 0x318   : > { %2255 = vmatpush.msra.mxu3 %v9833_v60  ;;  %2160 = vmatpush.msrb.mxu2 %v9835_v7  ;;  %v9862_v60 = vld [vmem:[#allocation158_spill] sm:$0xff]  ;;  %v9864_v7 = vld [vmem:[#allocation160_spill] sm:$0xff] }
 0x319   : > { %2216 = vmatpush.msra.mxu1 %v9836_v63  ;;  %2185 = vmatpush.msra.mxu0 %v9838_v28  ;;  %v9865_v63 = vld [vmem:[#allocation161_spill] sm:$0xff]  ;;  %v9867_v28 = vld [vmem:[#allocation163_spill] sm:$0xff] }
 0x31a   : > { %2256 = vmatpush.msra.mxu3 %v9837_v56  ;;  %2225 = vmatpush.msra.mxu2 %v9839_v15  ;;  %v9866_v56 = vld [vmem:[#allocation162_spill] sm:$0xff]  ;;  %v9868_v15 = vld [vmem:[#allocation164_spill] sm:$0xff] }
 0x31b   : > { %2217 = vmatpush.msra.mxu1 %v9840_v12  ;;  %2186 = vmatpush.msra.mxu0 %v9842_v2  ;;  %v9869_v12 = vld [vmem:[#allocation165_spill] sm:$0xff]  ;;  %v9871_v2 = vld [vmem:[#allocation167_spill] sm:$0xff] }
 0x31c   : > { %2257 = vmatpush.msra.mxu3 %v9841_v24  ;;  %2226 = vmatpush.msra.mxu2 %v9843_v23  ;;  %v9870_v24 = vld [vmem:[#allocation166_spill] sm:$0xff]  ;;  %v9872_v23 = vld [vmem:[#allocation168_spill] sm:$0xff] }
 0x31d   : > { %2218 = vmatpush.msra.mxu1 %v9844_v36  ;;  %2187 = vmatpush.msra.mxu0 %v9846_v30  ;;  %v9873_v36 = vld [vmem:[#allocation169_spill] sm:$0xff]  ;;  %v9875_v30 = vld [vmem:[#allocation171_spill] sm:$0xff] }
 0x31e   : > { %2258 = vmatpush.msra.mxu3 %v9845_v8  ;;  %2227 = vmatpush.msra.mxu2 %v9847_v46  ;;  %v9874_v8 = vld [vmem:[#allocation170_spill] sm:$0xff]  ;;  %v9876_v46 = vld [vmem:[#allocation172_spill] sm:$0xff] }
 0x31f   : > { %2219 = vmatpush.msra.mxu1 %v9848_v19  ;;  %2188 = vmatpush.msra.mxu0 %v9850_v52  ;;  %v9877_v19 = vld [vmem:[#allocation173_spill] sm:$0xff] }
 0x320   : > { %2259 = vmatpush.msra.mxu3 %v9849_v20  ;;  %2228 = vmatpush.msra.mxu2 %v9851_v47  ;;  %v9878_v47 = vld [vmem:[#allocation29_spill] sm:$0xff] }
 0x321   : > { %2220 = vmatpush.msra.mxu1 %v9852_v61  ;;  %2189 = vmatpush.msra.mxu0 %v9854_v4 }
 0x322   : > { %2260 = vmatpush.msra.mxu3 %v9853_v0  ;;  %2229 = vmatpush.msra.mxu2 %v9855_v53 }
 0x323   : > { %2190 = vmatpush.msra.mxu0 %v9856_v31 }
 0x324   : > { %2230 = vmatpush.msra.mxu2 %v9857_v51 }
 0x325   : > { %2191 = vmatpush.msra.mxu0 %v9858_v27  ;;  %v9879_v27 = vld [vmem:[#allocation30_spill] sm:$0xff] }
 0x326   : > { %2231 = vmatpush.msra.mxu2 %v9859_v32 }
 0x327   : > { %2192 = vmatpush.msra.mxu0 %v9860_v59 }
 0x328   : > { %2232 = vmatpush.msra.mxu2 %v9861_v37  ;;  %v9880_v37 = vld [vmem:[#allocation127_spill] sm:$0xff] }
 0x329   : > { %2193 = vmatpush.msra.mxu0 %v9862_v60  ;;  %v9881_v60 = vld [vmem:[#allocation62_spill] sm:$0xff] }
 0x32a   : > { %2233 = vmatpush.msra.mxu2 %v9863_v14  ;;  %v495_v14 = vadd.f32 %v9881_v60, %v9880_v37 }
 0x32b   : > { %2194 = vmatpush.msra.mxu0 %v9864_v7 }
 0x32c   : > { %2234 = vmatpush.msra.mxu2 %v9865_v63 }
 0x32d   : > { %2195 = vmatpush.msra.mxu0 %v9866_v56 }
 0x32e   : > { %2235 = vmatpush.msra.mxu2 %v9867_v28 }
 0x32f   : > { %2196 = vmatpush.msra.mxu0 %v9868_v15 }
 0x330   : > { %2236 = vmatpush.msra.mxu2 %v9869_v12 }
 0x331   : > { %2197 = vmatpush.msra.mxu0 %v9870_v24 }
 0x332   : > { %2237 = vmatpush.msra.mxu2 %v9871_v2 }
 0x333   : > { %2198 = vmatpush.msra.mxu0 %v9872_v23  ;;  %v9882_v23 = vld [vmem:[#allocation31_spill] sm:$0xff] }
 0x334   : > { %2238 = vmatpush.msra.mxu2 %v9873_v36 }
 0x335   : > { %2199 = vmatpush.msra.mxu0 %v9874_v8 }
 0x336   : > { %2239 = vmatpush.msra.mxu2 %v9875_v30 }
 0x337   : > { %2200 = vmatpush.msra.mxu0 %v9876_v46 }
 0x338   : > { %2240 = vmatpush.msra.mxu2 %v9877_v19 }
 0x33b   : > { %v1767_v20 = vpop.f32.mrf.mxu1 }
 0x341   : > { %v1807_v0 = vpop.f32.mrf.mxu3 }
 0x343   : > { %v1847_v4 = vpop.f32.mrf.mxu1 }
 0x349   : > { %v1887_v56 = vpop.f32.mrf.mxu3 }
 0x353   : > { %v1747_v52 = vpop.f32.mrf.mxu0 }
 0x354   : > { %v1748_v61 = vadd.f32 %v1747_v52, %v9878_v47  ;;  %v9883_v52 = vld [vmem:[#allocation130_spill] sm:$0xff] }
 0x356   : > { %v1768_v53 = vadd.f32 %v1767_v20, %v1748_v61  ;;  %v9884_v61 = vld [vmem:[#allocation78_spill] sm:$0xff] }
 0x358   : > { %v4009_v31 = vmul.f32 -1.442695, %v1768_v53 }
 0x359   : > { %v1787_v51 = vpop.f32.mrf.mxu2 }
 0x35a   : > { %4177 = vpow2.f32 %v4009_v31  ;;  %v1788_v32 = vadd.f32 %v1787_v51, %v9879_v27  ;;  %v9885_v51 = vld [vmem:[#allocation32_spill] sm:$0xff] }
 0x35c   : > { %v1808_v59 = vadd.f32 %v1807_v0, %v1788_v32  ;;  %v1827_v30 = vpop.f32.mrf.mxu0  ;;  %v577_v0 = vadd.f32 %v9884_v61, %v9883_v52 }
 0x35d   : > { %v1995_v7 = vpop.f32.mrf.mxu1  ;;  %v1828_v32 = vadd.f32 %v1827_v30, %v9885_v51 }
 0x35e   : > { %v4010_v63 = vmul.f32 -1.442695, %v1808_v59  ;;  %v2039_v28 = vadd.f32 %v1995_v7, %v495_v14 }
 0x360   : > { %v4178_v15 = vpop.eup %4177  ;;  %4179 = vpow2.f32 %v4010_v63  ;;  %v4013_v2 = vmul.f32 -1.442695, %v2039_v28  ;;  %v1848_v63 = vadd.f32 %v1847_v4, %v1828_v32 }
 0x361   : > { %v1893_v12 = vadd.f32 1.0, %v4178_v15 }
 0x362   : > { %v1867_v24 = vpop.f32.mrf.mxu2 }
 0x363   : > { %4181 = vrcp.f32 %v1893_v12  ;;  %v1868_v36 = vadd.f32 %v1867_v24, %v9882_v23  ;;  %vm1899_vm14 = vweird.f32 %v1893_v12  ;;  %v1903_v30 = vand.u32 2147483647, %v1893_v12 }
 0x364   : > { %4183 = vpow2.f32 %v4013_v2  ;;  %v2035_v20 = vpop.f32.mrf.mxu3 }
 0x365   : > { %v1888_v46 = vadd.f32 %v1887_v56, %v1868_v36  ;;  %v2041_v60 = vadd.f32 %v2035_v20, %v577_v0  ;;  %v9886_v20 = vld [vmem:[#allocation126_spill] sm:$0xff]  ;;  %v9887_v0 = vld [vmem:[#allocation61_spill] sm:$0xff]  ;;  %vm1904_vm2 = vcmp.eq.f32.partialorder %v1903_v30, 8.507059e+37 }
 0x366   : > { %v4180_v8 = vpop.eup %4179 }
 0x367   : > { %v1912_v19 = vadd.f32 1.0, %v4180_v8  ;;  %v4011_v53 = vmul.f32 -1.442695, %v1888_v46  ;;  %v4014_v15 = vmul.f32 -1.442695, %v2041_v60  ;;  %v1905_v46 = vand.u32 2147483648, %v1893_v12 }
 0x369   : > { %v4182_v31 = vpop.eup %4181  ;;  %4185 = vrcp.f32 %v1912_v19  ;;  %v1924_v4 = vand.u32 2147483648, %v1912_v19  ;;  %vm1918_vm1 = vweird.f32 %v1912_v19 }
 0x36a   : > { %v1895_v59 = vmul.f32 %v4182_v31, %v1893_v12  ;;  %4187 = vpow2.f32 %v4011_v53  ;;  %v4184_v7 = vpop.eup %4183  ;;  %vm1900_vm13 = vweird.f32 %v4182_v31  ;;  %v454_v53 = vadd.f32 %v9887_v0, %v9886_v20 }
 0x36b   : > { %v7058_v8 = vadd.f32 1.0, %v4184_v7  ;;  %4189 = vtanh.f32 %v1848_v63  ;;  %vm7062_vm15 = vmor %vm1899_vm14, %vm1900_vm13  ;;  %v1906_v12 = vor.u32 1.1754944e-38, %v1905_v46 }
 0x36c   : > { %v1896_v14 = vsub.f32 1.0, %v1895_v59  ;;  %4191 = vpow2.f32 %v4014_v15  ;;  %v1922_v59 = vand.u32 2147483647, %v1912_v19 }
 0x36d   : > { %vm2070_vm10 = vweird.f32 %v7058_v8 }
 0x36e   : > { %v1897_v28 = vmul.f32 %v4182_v31, %v1896_v14  ;;  %vm1923_vm4 = vcmp.eq.f32.partialorder %v1922_v59, 8.507059e+37 }
 0x36f   : > { %v4186_v56 = vpop.eup %4185 }
 0x370   : > { %v4188_v24 = vpop.eup %4187  ;;  %v1914_v2 = vmul.f32 %v4186_v56, %v1912_v19  ;;  %v1898_v36 = vadd.f32 %v4182_v31, %v1897_v28  ;;  %vm1919_vm0 = vweird.f32 %v4186_v56 }
 0x371   : > { %v1932_v61 = vadd.f32 1.0, %v4188_v24  ;;  %v4190_v15 = vpop.eup %4189  ;;  %vm1920_vm3 = vmor %vm1918_vm1, %vm1919_vm0  ;;  %v1925_v24 = vor.u32 1.1754944e-38, %v1924_v4 }
 0x372   : > { %v1915_v52 = vsub.f32 1.0, %v1914_v2  ;;  %v1902_v14 = vsel %vm7062_vm15, %v4182_v31, %v1898_v36  ;;  %v4192_v20 = vpop.eup %4191 }
 0x373   : > { %4193 = vrcp.f32 %v1932_v61  ;;  %v1907_v2 = vsel %vm1904_vm2, %v1906_v12, %v1902_v14  ;;  %v7076_v32 = vadd.f32 1.0, %v4192_v20  ;;  %v1944_v59 = vand.u32 2147483648, %v1932_v61 }
 0x374   : > { %v1916_v60 = vmul.f32 %v4186_v56, %v1915_v52  ;;  %4195 = vrcp.f32 %v7058_v8  ;;  %v1975_v7 = vpop.f32.mrf.mxu0  ;;  %v1949_v46 = vmul.f32 %v4190_v15, %v1907_v2  ;;  %vm1938_vm6 = vweird.f32 %v1932_v61  ;;  %v9890_v2 = vld [vmem:[#allocation77_spill] sm:$0xff] }
 0x375   : > { %v2038_v63 = vadd.f32 %v1975_v7, %v454_v53  ;;  %v1945_v7 = vor.u32 1.1754944e-38, %v1944_v59  ;;  %vm2090_vm2 = vweird.f32 %v7076_v32 }
 0x376   : > { %v1917_v28 = vadd.f32 %v4186_v56, %v1916_v60  ;;  %v1942_v60 = vand.u32 2147483647, %v1932_v61 }
 0x377   : > { %v4012_v0 = vmul.f32 -1.442695, %v2038_v63 }
 0x378   : > { %v1921_v51 = vsel %vm1920_vm3, %v4186_v56, %v1917_v28  ;;  %vm1943_vm8 = vcmp.eq.f32.partialorder %v1942_v60, 8.507059e+37  ;;  %v7103_v60 = vld [vmem:[#allocation10 + $0x1d8] sm:$0xff] }
 0x379   : > { %v4194_v52 = vpop.eup %4193  ;;  %v1926_v23 = vsel %vm1923_vm4, %v1925_v24, %v1921_v51  ;;  %4197 = vpow2.f32 %v4012_v0  ;;  %v536_v0 = vadd.f32 %v9890_v2, %v5859_v5 }
 0x37a   : > { %v7069_v31 = vpop.eup %4195  ;;  %v1948_v36 = vmul.f32 %v1926_v23, %v6746_v22  ;;  %v1934_v53 = vmul.f32 %v4194_v52, %v1932_v61  ;;  %vm1939_vm5 = vweird.f32 %v4194_v52 }
 0x37b   : > { %v2066_v4 = vmul.f32 %v7069_v31, %v7058_v8  ;;  %vm1940_vm7 = vmor %vm1938_vm6, %vm1939_vm5  ;;  %v2015_v15 = vpop.f32.mrf.mxu2  ;;  %vm2071_vm9 = vweird.f32 %v7069_v31 }
 0x37c   : > { %v7072_v19 = vadd.f32 %v1949_v46, %v1948_v36  ;;  %v1935_v30 = vsub.f32 1.0, %v1934_v53  ;;  %v2040_v46 = vadd.f32 %v2015_v15, %v536_v0  ;;  %v7088_v53 = vld [vmem:[#allocation10 + $0x1e8] sm:$0xff]  ;;  %vm7108_vm11 = vmor %vm2070_vm10, %vm2071_vm9 }
 0x37d   : > { %v2067_v23 = vsub.f32 1.0, %v2066_v4 }
 0x37e   : > { %4199 = vtanh.f32 %v7072_v19  ;;  %v1936_v56 = vmul.f32 %v4194_v52, %v1935_v30 }
 0x37f   : > { %v4198_v51 = vpop.eup %4197  ;;  %4201 = vrcp.f32 %v7076_v32  ;;  %v2068_v28 = vmul.f32 %v7069_v31, %v2067_v23  ;;  %v2074_v23 = vand.u32 2147483647, %v7058_v8 }
 0x380   : > { %v7079_v14 = vadd.f32 1.0, %v4198_v51  ;;  %v1937_v22 = vadd.f32 %v4194_v52, %v1936_v56  ;;  %v2076_v56 = vand.u32 2147483648, %v7058_v8  ;;  %v7100_v51 = vld [vmem:[#allocation10 + $0x1c8] sm:$0xff] }
 0x381   : > { %v2069_v4 = vadd.f32 %v7069_v31, %v2068_v28  ;;  %vm2075_vm14 = vcmp.eq.f32.partialorder %v2074_v23, 8.507059e+37  ;;  %v7137_v23 = vld [vmem:[#allocation10 + $0x148] sm:$0xff] }
 0x382   : > { %4203 = vrcp.f32 %v7079_v14  ;;  %v1941_v20 = vsel %vm1940_vm7, %v4194_v52, %v1937_v22  ;;  %v7091_v52 = vld [vmem:[#allocation10 + $0x1f8] sm:$0xff]  ;;  %v2055_v15 = vand.u32 2147483647, %v7079_v14  ;;  %v2077_v2 = vor.u32 1.1754944e-38, %v2076_v56 }
 0x383   : > { %v1946_v63 = vsel %vm1943_vm8, %v1945_v7, %v1941_v20  ;;  %v2057_v20 = vand.u32 2147483648, %v7079_v14  ;;  %4205 = vtanh.f32 %v2040_v46  ;;  %v2073_v8 = vsel %vm7108_vm11, %v7069_v31, %v2069_v4  ;;  %v7126_v46 = vld [vmem:[#allocation10 + $0x198] sm:$0xff]  ;;  %v7130_v31 = vld [vmem:[#allocation10 + $0x168] sm:$0xff] }
 0x384   : > { %v4200_v12 = vpop.eup %4199  ;;  %vm2051_vm13 = vweird.f32 %v7079_v14  ;;  %v2078_v7 = vsel %vm2075_vm14, %v2077_v2, %v2073_v8  ;;  %v7133_v4 = vld [vmem:[#allocation10 + $0x178] sm:$0xff]  ;;  %vm2056_vm0 = vcmp.eq.f32.partialorder %v2055_v15, 8.507059e+37  ;;  %v7144_v2 = vld [vmem:[#allocation10 + $0x128] sm:$0xff] }
 0x385   : > { %v1952_v24 = vmul.f32 %v4200_v12, %v1946_v63  ;;  %v7086_v36 = vpop.eup %4201  ;;  %v7113_v12 = vld [vmem:[#allocation10 + $0x1a8] sm:$0xff]  ;;  %v7116_v63 = vld [vmem:[#allocation10 + $0x1b8] sm:$0xff] }
 0x386   : > { %v2086_v59 = vmul.f32 %v7086_v36, %v7076_v32  ;;  %9893 = vst [vmem:[#allocation42_spill] sm:$0xff] %v7113_v12  ;;  %vm2091_vm1 = vweird.f32 %v7086_v36 }
 0x387   : > { %2141 = vmatmul.f32.vlgmr.msrb.gmra.mxu1 %v1952_v24  ;;  %2181 = vmatmul.f32.vlgmr.msrb.gmra.mxu3 %v1952_v24  ;;  %vm2092_vm3 = vmor %vm2090_vm2, %vm2091_vm1 }
 0x388   : > { %v4204_v61 = vpop.eup %4203  ;;  %2353 = vmatpush.msrb.mxu1 %v7088_v53  ;;  %2393 = vmatpush.msrb.mxu3 %v7091_v52  ;;  %v2087_v0 = vsub.f32 1.0, %v2086_v59 }
 0x389   : > { %v2047_v30 = vmul.f32 %v4204_v61, %v7079_v14  ;;  %vm2052_vm12 = vweird.f32 %v4204_v61  ;;  %v4206_v59 = vpop.eup %4205 }
 0x38a   : > { %2354 = vmatpush.msrb.mxu1 %v7100_v51  ;;  %2394 = vmatpush.msrb.mxu3 %v7103_v60  ;;  %vm2053_vm15 = vmor %vm2051_vm13, %vm2052_vm12 }
 0x38b   : > { %v2048_v22 = vsub.f32 1.0, %v2047_v30  ;;  %v7123_v30 = vld [vmem:[#allocation10 + $0x188] sm:$0xff] }
 0x38c   : > { %2355 = vmatpush.msrb.mxu1 %v7113_v12  ;;  %2395 = vmatpush.msrb.mxu3 %v7116_v63 }
 0x38d   : > { %v2049_v28 = vmul.f32 %v4204_v61, %v2048_v22  ;;  %v2058_v22 = vor.u32 1.1754944e-38, %v2057_v20  ;;  %v2100_v20 = vmul.f32 %v2078_v7, %v6789_v25  ;;  %v7157_v25 = vld [vmem:[#allocation10 + $0x118] sm:$0xff]  ;;  %v2094_v7 = vand.u32 2147483647, %v7076_v32 }
 0x38e   : > { %2356 = vmatpush.msrb.mxu1 %v7123_v30  ;;  %2396 = vmatpush.msrb.mxu3 %v7126_v46  ;;  %9894 = vst [vmem:[#allocation59_spill] sm:$0xff] %v7157_v25 }
 0x38f   : > { %v2050_v12 = vadd.f32 %v4204_v61, %v2049_v28  ;;  %2221 = vmatmul.f32.vlgmr.msra.gmra.mxu1 %v1952_v24  ;;  %2261 = vmatmul.f32.vlgmr.msra.gmra.mxu3 %v1952_v24  ;;  %v2088_v28 = vmul.f32 %v7086_v36, %v2087_v0  ;;  %v7140_v24 = vld [vmem:[#allocation10 + $0x158] sm:$0xff]  ;;  %v7154_v0 = vld [vmem:[#allocation10 + $0x108] sm:$0xff]  ;;  %vm2095_vm4 = vcmp.eq.f32.partialorder %v2094_v7, 8.507059e+37 }
 0x390   : > { %2357 = vmatpush.msrb.mxu1 %v7130_v31  ;;  %2397 = vmatpush.msrb.mxu3 %v7133_v4  ;;  %v7198_v7 = vld [vmem:[#allocation10 + $0x78] sm:$0xff] }
 0x391   : > { %v2054_v56 = vsel %vm2053_vm15, %v4204_v61, %v2050_v12  ;;  %v7147_v61 = vld [vmem:[#allocation10 + $0x138] sm:$0xff]  ;;  %v2089_v15 = vadd.f32 %v7086_v36, %v2088_v28 }
 0x392   : > { %v2059_v14 = vsel %vm2056_vm0, %v2058_v22, %v2054_v56  ;;  %2358 = vmatpush.msrb.mxu1 %v7137_v23  ;;  %2398 = vmatpush.msrb.mxu3 %v7140_v24  ;;  %v2096_v22 = vand.u32 2147483648, %v7076_v32  ;;  %v7164_v56 = vld [vmem:[#allocation10 + $0xe8] sm:$0xff] }
 0x393   : > { %v2101_v8 = vmul.f32 %v4206_v59, %v2059_v14  ;;  %9895 = vst [vmem:[#allocation41_spill] sm:$0xff] %v7164_v56  ;;  %v7167_v59 = vld [vmem:[#allocation10 + $0xf8] sm:$0xff]  ;;  %v2093_v28 = vsel %vm2092_vm3, %v7086_v36, %v2089_v15  ;;  %v7171_v14 = vld [vmem:[#allocation10 + $0xc8] sm:$0xff] }
 0x394   : > { %2359 = vmatpush.msrb.mxu1 %v7144_v2  ;;  %2399 = vmatpush.msrb.mxu3 %v7147_v61  ;;  %9896 = vst [vmem:[#allocation58_spill] sm:$0xff] %v7167_v59  ;;  %v2097_v32 = vor.u32 1.1754944e-38, %v2096_v22  ;;  %v7195_v22 = vld [vmem:[#allocation10 + $0x68] sm:$0xff] }
 0x395   : > { %v7150_v12 = vadd.f32 %v2101_v8, %v2100_v20  ;;  %9897 = vst [vmem:[#allocation33_spill] sm:$0xff] %v7171_v14  ;;  %v7174_v20 = vld [vmem:[#allocation10 + $0xd8] sm:$0xff]  ;;  %v7177_v8 = vld [vmem:[#allocation10 + $0xa8] sm:$0xff] }
 0x396   : > { %2360 = vmatpush.msrb.mxu1 %v7154_v0  ;;  %2400 = vmatpush.msrb.mxu3 %v7157_v25  ;;  %v2098_v36 = vsel %vm2095_vm4, %v2097_v32, %v2093_v28  ;;  %v7185_v25 = vld [vmem:[#allocation10 + $0x88] sm:$0xff]  ;;  %v7206_v28 = vld [vmem:[#allocation10 + $0x58] sm:$0xff] }
 0x397   : > { %4207 = vtanh.f32 %v7150_v12  ;;  %v7339_v32 = vld [vmem:[#allocation13 + $0x268] sm:$0xff] }
 0x398   : > { %2361 = vmatpush.msrb.mxu1 %v7164_v56  ;;  %2401 = vmatpush.msrb.mxu3 %v7167_v59  ;;  %v7180_v56 = vld [vmem:[#allocation10 + $0xb8] sm:$0xff]  ;;  %9918 = vst [vmem:[#allocation88_spill] sm:$0xff] %v7339_v32 }
 0x39a   : > { %2362 = vmatpush.msrb.mxu1 %v7171_v14  ;;  %2402 = vmatpush.msrb.mxu3 %v7174_v20  ;;  %v7188_v14 = vld [vmem:[#allocation10 + $0x98] sm:$0xff] }
 0x39c   : > { %2363 = vmatpush.msrb.mxu1 %v7177_v8  ;;  %2403 = vmatpush.msrb.mxu3 %v7180_v56 }
 0x39d   : > { %v4208_v59 = vpop.eup %4207 }
 0x39e   : > { %v7183_v15 = vmul.f32 %v4208_v59, %v2098_v36  ;;  %2364 = vmatpush.msrb.mxu1 %v7185_v25  ;;  %2404 = vmatpush.msrb.mxu3 %v7188_v14  ;;  %v7203_v59 = vld [vmem:[#allocation10 + $0x48] sm:$0xff] }
 0x39f   : > { %v7342_v36 = vld [vmem:[#allocation13 + $0x1c8] sm:$0xff] }
 0x3a0   : > { %2121 = vmatmul.f32.vlgmr.msrb.gmra.mxu0 %v7183_v15  ;;  %2161 = vmatmul.f32.vlgmr.msrb.gmra.mxu2 %v7183_v15  ;;  %9919 = vst [vmem:[#allocation89_spill] sm:$0xff] %v7342_v36 }
 0x3a1   : > { %2333 = vmatpush.msrb.mxu0 %v6812_v49  ;;  %2373 = vmatpush.msrb.mxu2 %v6815_v17  ;;  %v7211_v49 = vld [vmem:[#allocation10 + $0x28] sm:$0xff]  ;;  %v7214_v17 = vld [vmem:[#allocation10 + $0x38] sm:$0xff] }
 0x3a2   : > { %2365 = vmatpush.msrb.mxu1 %v7195_v22  ;;  %2405 = vmatpush.msrb.mxu3 %v7198_v7 }
 0x3a3   : > { %2334 = vmatpush.msrb.mxu0 %v6820_v55  ;;  %2374 = vmatpush.msrb.mxu2 %v6823_v33  ;;  %v7219_v55 = vld [vmem:[#allocation10 + $0x8] sm:$0xff]  ;;  %v7222_v33 = vld [vmem:[#allocation10 + $0x18] sm:$0xff] }
 0x3a4   : > { %2366 = vmatpush.msrb.mxu1 %v7203_v59  ;;  %2406 = vmatpush.msrb.mxu3 %v7206_v28 }
 0x3a5   : > { %2335 = vmatpush.msrb.mxu0 %v6828_v38  ;;  %2375 = vmatpush.msrb.mxu2 %v6831_v16  ;;  %v7232_v38 = vld [vmem:[#allocation13 + $0x3e0] sm:$0xff]  ;;  %v7236_v16 = vld [vmem:[#allocation13 + $0x3e8] sm:$0xff] }
 0x3a6   : > { %2367 = vmatpush.msrb.mxu1 %v7211_v49  ;;  %2407 = vmatpush.msrb.mxu3 %v7214_v17 }
 0x3a7   : > { %2336 = vmatpush.msrb.mxu0 %v6836_v54  ;;  %2376 = vmatpush.msrb.mxu2 %v6839_v21  ;;  %v7240_v54 = vld [vmem:[#allocation13 + $0x3c0] sm:$0xff]  ;;  %v7244_v21 = vld [vmem:[#allocation13 + $0x3c8] sm:$0xff] }
 0x3a8   : > { %2368 = vmatpush.msrb.mxu1 %v7219_v55  ;;  %2408 = vmatpush.msrb.mxu3 %v7222_v33 }
 0x3a9   : > { %2201 = vmatmul.f32.vlgmr.msra.gmra.mxu0 %v7183_v15  ;;  %2241 = vmatmul.f32.vlgmr.msra.gmra.mxu2 %v7183_v15 }
 0x3aa   : > { %2337 = vmatpush.msrb.mxu0 %v6846_v9  ;;  %2369 = vmatmul.f32.vlgmr.msrb.gmra.mxu1 %v7183_v15  ;;  %v7248_v9 = vld [vmem:[#allocation13 + $0x3a0] sm:$0xff] }
 0x3ab   : > { %2377 = vmatpush.msrb.mxu2 %v6850_v39  ;;  %2409 = vmatmul.f32.vlgmr.msrb.gmra.mxu3 %v7183_v15  ;;  %v7252_v39 = vld [vmem:[#allocation13 + $0x3a8] sm:$0xff] }
 0x3ac   : > { %2338 = vmatpush.msrb.mxu0 %v6854_v45  ;;  %2500 = vmatpush.msra.mxu1 %v7232_v38  ;;  %v7256_v45 = vld [vmem:[#allocation13 + $0x380] sm:$0xff] }
 0x3ad   : > { %2378 = vmatpush.msrb.mxu2 %v6858_v11  ;;  %2540 = vmatpush.msra.mxu3 %v7236_v16  ;;  %v7260_v11 = vld [vmem:[#allocation13 + $0x388] sm:$0xff] }
 0x3ae   : > { %2339 = vmatpush.msrb.mxu0 %v6862_v44  ;;  %2501 = vmatpush.msra.mxu1 %v7240_v54  ;;  %v7264_v44 = vld [vmem:[#allocation13 + $0x360] sm:$0xff] }
 0x3af   : > { %2379 = vmatpush.msrb.mxu2 %v6866_v42  ;;  %2541 = vmatpush.msra.mxu3 %v7244_v21  ;;  %9898 = vst [vmem:[#allocation34_spill] sm:$0xff] %v7264_v44  ;;  %v7268_v42 = vld [vmem:[#allocation13 + $0x368] sm:$0xff] }
 0x3b0   : > { %2340 = vmatpush.msrb.mxu0 %v6870_v13  ;;  %2502 = vmatpush.msra.mxu1 %v7248_v9  ;;  %9899 = vst [vmem:[#allocation37_spill] sm:$0xff] %v7268_v42  ;;  %v7272_v13 = vld [vmem:[#allocation13 + $0x340] sm:$0xff] }
 0x3b1   : > { %2380 = vmatpush.msrb.mxu2 %v6874_v40  ;;  %2542 = vmatpush.msra.mxu3 %v7252_v39  ;;  %9900 = vst [vmem:[#allocation40_spill] sm:$0xff] %v7272_v13  ;;  %v7276_v40 = vld [vmem:[#allocation13 + $0x348] sm:$0xff] }
 0x3b2   : > { %2341 = vmatpush.msrb.mxu0 %v6878_v18  ;;  %2503 = vmatpush.msra.mxu1 %v7256_v45  ;;  %9901 = vst [vmem:[#allocation45_spill] sm:$0xff] %v7276_v40  ;;  %v7280_v18 = vld [vmem:[#allocation13 + $0x320] sm:$0xff] }
 0x3b3   : > { %2381 = vmatpush.msrb.mxu2 %v6882_v29  ;;  %2543 = vmatpush.msra.mxu3 %v7260_v11  ;;  %9902 = vst [vmem:[#allocation46_spill] sm:$0xff] %v7280_v18  ;;  %v7284_v29 = vld [vmem:[#allocation13 + $0x328] sm:$0xff] }
 0x3b4   : > { %2342 = vmatpush.msrb.mxu0 %v6886_v48  ;;  %2504 = vmatpush.msra.mxu1 %v7264_v44  ;;  %9903 = vst [vmem:[#allocation49_spill] sm:$0xff] %v7284_v29  ;;  %v7288_v48 = vld [vmem:[#allocation13 + $0x300] sm:$0xff] }
 0x3b5   : > { %2382 = vmatpush.msrb.mxu2 %v6890_v34  ;;  %2544 = vmatpush.msra.mxu3 %v7268_v42  ;;  %9904 = vst [vmem:[#allocation50_spill] sm:$0xff] %v7288_v48  ;;  %v7292_v34 = vld [vmem:[#allocation13 + $0x308] sm:$0xff] }
 0x3b6   : > { %2343 = vmatpush.msrb.mxu0 %v6894_v57  ;;  %2505 = vmatpush.msra.mxu1 %v7272_v13  ;;  %9905 = vst [vmem:[#allocation53_spill] sm:$0xff] %v7292_v34  ;;  %v7296_v57 = vld [vmem:[#allocation13 + $0x2e0] sm:$0xff] }
 0x3b7   : > { %2383 = vmatpush.msrb.mxu2 %v6898_v62  ;;  %2545 = vmatpush.msra.mxu3 %v7276_v40  ;;  %9906 = vst [vmem:[#allocation54_spill] sm:$0xff] %v7296_v57  ;;  %v7300_v62 = vld [vmem:[#allocation13 + $0x2e8] sm:$0xff] }
 0x3b8   : > { %2344 = vmatpush.msrb.mxu0 %v6902_v6  ;;  %2506 = vmatpush.msra.mxu1 %v7280_v18  ;;  %9907 = vst [vmem:[#allocation57_spill] sm:$0xff] %v7300_v62  ;;  %v7304_v6 = vld [vmem:[#allocation13 + $0x2c0] sm:$0xff] }
 0x3b9   : > { %2384 = vmatpush.msrb.mxu2 %v6906_v35  ;;  %2546 = vmatpush.msra.mxu3 %v7284_v29  ;;  %9908 = vst [vmem:[#allocation60_spill] sm:$0xff] %v7304_v6  ;;  %v7308_v35 = vld [vmem:[#allocation13 + $0x2c8] sm:$0xff] }
 0x3ba   : > { %2345 = vmatpush.msrb.mxu0 %v6910_v58  ;;  %2507 = vmatpush.msra.mxu1 %v7288_v48  ;;  %9909 = vst [vmem:[#allocation65_spill] sm:$0xff] %v7308_v35  ;;  %v7312_v58 = vld [vmem:[#allocation13 + $0x2a0] sm:$0xff] }
 0x3bb   : > { %2385 = vmatpush.msrb.mxu2 %v6914_v50  ;;  %2547 = vmatpush.msra.mxu3 %v7292_v34  ;;  %9910 = vst [vmem:[#allocation66_spill] sm:$0xff] %v7312_v58  ;;  %v7318_v50 = vld [vmem:[#allocation13 + $0x2a8] sm:$0xff] }
 0x3bc   : > { %2346 = vmatpush.msrb.mxu0 %v6918_v26  ;;  %2508 = vmatpush.msra.mxu1 %v7296_v57  ;;  %9911 = vst [vmem:[#allocation69_spill] sm:$0xff] %v7318_v50  ;;  %v7321_v26 = vld [vmem:[#allocation13 + $0x280] sm:$0xff] }
 0x3bd   : > { %2386 = vmatpush.msrb.mxu2 %v6922_v3  ;;  %2548 = vmatpush.msra.mxu3 %v7300_v62  ;;  %9912 = vst [vmem:[#allocation72_spill] sm:$0xff] %v7321_v26  ;;  %v7324_v3 = vld [vmem:[#allocation13 + $0x1e0] sm:$0xff] }
 0x3be   : > { %2347 = vmatpush.msrb.mxu0 %v6926_v1  ;;  %2509 = vmatpush.msra.mxu1 %v7304_v6  ;;  %9913 = vst [vmem:[#allocation73_spill] sm:$0xff] %v7324_v3  ;;  %v7327_v1 = vld [vmem:[#allocation13 + $0x288] sm:$0xff]  ;;  %v10018_v6 = vld [vmem:[#allocation81_spill] sm:$0xff] }
 0x3bf   : > { %2387 = vmatpush.msrb.mxu2 %v6930_v43  ;;  %2549 = vmatpush.msra.mxu3 %v7308_v35  ;;  %9914 = vst [vmem:[#allocation76_spill] sm:$0xff] %v7327_v1  ;;  %v7330_v43 = vld [vmem:[#allocation13 + $0x1e8] sm:$0xff] }
 0x3c0   : > { %2348 = vmatpush.msrb.mxu0 %v6934_v10  ;;  %2510 = vmatpush.msra.mxu1 %v7312_v58  ;;  %9915 = vst [vmem:[#allocation79_spill] sm:$0xff] %v7330_v43  ;;  %v7333_v10 = vld [vmem:[#allocation13 + $0x260] sm:$0xff] }
 0x3c1   : > { %2388 = vmatpush.msrb.mxu2 %v6938_v41  ;;  %2349 = vmatmul.f32.vlgmr.msrb.gmra.mxu0 %v7183_v15  ;;  %9916 = vst [vmem:[#allocation84_spill] sm:$0xff] %v7333_v10  ;;  %v7336_v41 = vld [vmem:[#allocation13 + $0x1c0] sm:$0xff] }
 0x3c2   : > { %2389 = vmatmul.f32.vlgmr.msrb.gmra.mxu2 %v7183_v15  ;;  %2550 = vmatpush.msra.mxu3 %v7318_v50  ;;  %9917 = vst [vmem:[#allocation85_spill] sm:$0xff] %v7336_v41  ;;  %v7345_v15 = vld [vmem:[#allocation13 + $0x240] sm:$0xff] }
 0x3c3   : > { %2511 = vmatpush.msra.mxu1 %v7321_v26  ;;  %2480 = vmatpush.msra.mxu0 %v7324_v3  ;;  %9920 = vst [vmem:[#allocation92_spill] sm:$0xff] %v7345_v15 }
 0x3c4   : > { %2551 = vmatpush.msra.mxu3 %v7327_v1  ;;  %2520 = vmatpush.msra.mxu2 %v7330_v43  ;;  %v7348_v43 = vld [vmem:[#allocation13 + $0x1a0] sm:$0xff] }
 0x3c5   : > { %2512 = vmatpush.msra.mxu1 %v7333_v10  ;;  %2481 = vmatpush.msra.mxu0 %v7336_v41  ;;  %9921 = vst [vmem:[#allocation35_spill] sm:$0xff] %v7348_v43  ;;  %v7351_v10 = vld [vmem:[#allocation13 + $0x248] sm:$0xff] }
 0x3c6   : > { %2552 = vmatpush.msra.mxu3 %v7339_v32  ;;  %2521 = vmatpush.msra.mxu2 %v7342_v36  ;;  %9922 = vst [vmem:[#allocation36_spill] sm:$0xff] %v7351_v10  ;;  %v7354_v41 = vld [vmem:[#allocation13 + $0x1a8] sm:$0xff]  ;;  %v7357_v32 = vld [vmem:[#allocation13 + $0x220] sm:$0xff] }
 0x3c7   : > { %2513 = vmatpush.msra.mxu1 %v7345_v15  ;;  %2482 = vmatpush.msra.mxu0 %v7348_v43  ;;  %9923 = vst [vmem:[#allocation93_spill] sm:$0xff] %v7354_v41  ;;  %v7360_v36 = vld [vmem:[#allocation13 + $0x180] sm:$0xff]  ;;  %v7363_v15 = vld [vmem:[#allocation13 + $0x228] sm:$0xff] }
 0x3c8   : > { %2553 = vmatpush.msra.mxu3 %v7351_v10  ;;  %2522 = vmatpush.msra.mxu2 %v7354_v41  ;;  %9924 = vst [vmem:[#allocation43_spill] sm:$0xff] %v7357_v32  ;;  %v7366_v43 = vld [vmem:[#allocation13 + $0x188] sm:$0xff]  ;;  %v7369_v10 = vld [vmem:[#allocation13 + $0x200] sm:$0xff] }
 0x3c9   : > { %2514 = vmatpush.msra.mxu1 %v7357_v32  ;;  %9925 = vst [vmem:[#allocation97_spill] sm:$0xff] %v7360_v36  ;;  %2483 = vmatpush.msra.mxu0 %v7360_v36  ;;  %v7372_v41 = vld [vmem:[#allocation13 + $0x160] sm:$0xff]  ;;  %v7375_v32 = vld [vmem:[#allocation13 + $0x208] sm:$0xff] }
 0x3ca   : > { %9926 = vst [vmem:[#allocation44_spill] sm:$0xff] %v7363_v15  ;;  %2554 = vmatpush.msra.mxu3 %v7363_v15  ;;  %2523 = vmatpush.msra.mxu2 %v7366_v43  ;;  %v7378_v36 = vld [vmem:[#allocation13 + $0x168] sm:$0xff]  ;;  %v7381_v15 = vld [vmem:[#allocation13 + $0x3f0] sm:$0xff] }
 0x3cb   : > { %9927 = vst [vmem:[#allocation100_spill] sm:$0xff] %v7366_v43  ;;  %2515 = vmatpush.msra.mxu1 %v7369_v10  ;;  %2484 = vmatpush.msra.mxu0 %v7372_v41  ;;  %v7384_v43 = vld [vmem:[#allocation13 + $0x3f8] sm:$0xff] }
 0x3cc   : > { %9928 = vst [vmem:[#allocation47_spill] sm:$0xff] %v7369_v10  ;;  %2555 = vmatpush.msra.mxu3 %v7375_v32  ;;  %2524 = vmatpush.msra.mxu2 %v7378_v36  ;;  %v7387_v10 = vld [vmem:[#allocation13 + $0x140] sm:$0xff] }
 0x3cd   : > { %9929 = vst [vmem:[#allocation104_spill] sm:$0xff] %v7372_v41  ;;  %2580 = vmatpush.msrb.mxu1 %v7381_v15  ;;  %2485 = vmatpush.msra.mxu0 %v7387_v10  ;;  %v7390_v41 = vld [vmem:[#allocation13 + $0x148] sm:$0xff] }
 0x3ce   : > { %9930 = vst [vmem:[#allocation48_spill] sm:$0xff] %v7375_v32  ;;  %2620 = vmatpush.msrb.mxu3 %v7384_v43  ;;  %2525 = vmatpush.msra.mxu2 %v7390_v41  ;;  %v7393_v32 = vld [vmem:[#allocation13 + $0x3d0] sm:$0xff] }
 0x3cf   : > { %9931 = vst [vmem:[#allocation105_spill] sm:$0xff] %v7378_v36  ;;  %2581 = vmatpush.msrb.mxu1 %v7393_v32  ;;  %v7396_v36 = vld [vmem:[#allocation13 + $0x3d8] sm:$0xff] }
 0x3d0   : > { %9932 = vst [vmem:[#allocation51_spill] sm:$0xff] %v7381_v15  ;;  %2621 = vmatpush.msrb.mxu3 %v7396_v36  ;;  %v7399_v15 = vld [vmem:[#allocation13 + $0x120] sm:$0xff] }
 0x3d1   : > { %9933 = vst [vmem:[#allocation108_spill] sm:$0xff] %v7384_v43  ;;  %2486 = vmatpush.msra.mxu0 %v7399_v15  ;;  %v7402_v43 = vld [vmem:[#allocation13 + $0x128] sm:$0xff] }
 0x3d2   : > { %9934 = vst [vmem:[#allocation52_spill] sm:$0xff] %v7387_v10  ;;  %2526 = vmatpush.msra.mxu2 %v7402_v43  ;;  %v7405_v10 = vld [vmem:[#allocation13 + $0x3b0] sm:$0xff] }
 0x3d3   : > { %9935 = vst [vmem:[#allocation109_spill] sm:$0xff] %v7390_v41  ;;  %2582 = vmatpush.msrb.mxu1 %v7405_v10  ;;  %v7408_v41 = vld [vmem:[#allocation13 + $0x3b8] sm:$0xff] }
 0x3d4   : > { %9936 = vst [vmem:[#allocation55_spill] sm:$0xff] %v7393_v32  ;;  %2622 = vmatpush.msrb.mxu3 %v7408_v41  ;;  %v7411_v32 = vld [vmem:[#allocation13 + $0x100] sm:$0xff] }
 0x3d5   : > { %9937 = vst [vmem:[#allocation56_spill] sm:$0xff] %v7396_v36  ;;  %2487 = vmatpush.msra.mxu0 %v7411_v32  ;;  %v7414_v36 = vld [vmem:[#allocation13 + $0x108] sm:$0xff] }
 0x3d6   : > { %9938 = vst [vmem:[#allocation63_spill] sm:$0xff] %v7399_v15  ;;  %2527 = vmatpush.msra.mxu2 %v7414_v36  ;;  %v7417_v15 = vld [vmem:[#allocation13 + $0x390] sm:$0xff] }
 0x3d7   : > { %9939 = vst [vmem:[#allocation64_spill] sm:$0xff] %v7402_v43  ;;  %2583 = vmatpush.msrb.mxu1 %v7417_v15  ;;  %v7420_v43 = vld [vmem:[#allocation13 + $0x398] sm:$0xff] }
 0x3d8   : > { %9940 = vst [vmem:[#allocation67_spill] sm:$0xff] %v7405_v10  ;;  %2623 = vmatpush.msrb.mxu3 %v7420_v43  ;;  %v7423_v10 = vld [vmem:[#allocation13 + $0xe0] sm:$0xff] }
 0x3d9   : > { %9941 = vst [vmem:[#allocation68_spill] sm:$0xff] %v7408_v41  ;;  %2488 = vmatpush.msra.mxu0 %v7423_v10  ;;  %v7426_v41 = vld [vmem:[#allocation13 + $0xe8] sm:$0xff] }
 0x3da   : > { %9942 = vst [vmem:[#allocation70_spill] sm:$0xff] %v7411_v32  ;;  %2528 = vmatpush.msra.mxu2 %v7426_v41  ;;  %v7429_v32 = vld [vmem:[#allocation13 + $0x370] sm:$0xff] }
 0x3db   : > { %9943 = vst [vmem:[#allocation71_spill] sm:$0xff] %v7414_v36  ;;  %2584 = vmatpush.msrb.mxu1 %v7429_v32  ;;  %v7432_v36 = vld [vmem:[#allocation13 + $0x378] sm:$0xff] }
 0x3dc   : > { %9944 = vst [vmem:[#allocation74_spill] sm:$0xff] %v7417_v15  ;;  %2624 = vmatpush.msrb.mxu3 %v7432_v36  ;;  %v7435_v15 = vld [vmem:[#allocation13 + $0xc0] sm:$0xff] }
 0x3dd   : > { %9945 = vst [vmem:[#allocation75_spill] sm:$0xff] %v7420_v43  ;;  %2489 = vmatpush.msra.mxu0 %v7435_v15  ;;  %v7438_v43 = vld [vmem:[#allocation13 + $0xc8] sm:$0xff] }
 0x3de   : > { %9946 = vst [vmem:[#allocation82_spill] sm:$0xff] %v7423_v10  ;;  %2529 = vmatpush.msra.mxu2 %v7438_v43  ;;  %v7441_v10 = vld [vmem:[#allocation13 + $0x350] sm:$0xff] }
 0x3df   : > { %9947 = vst [vmem:[#allocation83_spill] sm:$0xff] %v7426_v41  ;;  %2585 = vmatpush.msrb.mxu1 %v7441_v10  ;;  %v7444_v41 = vld [vmem:[#allocation13 + $0x358] sm:$0xff] }
 0x3e0   : > { %9948 = vst [vmem:[#allocation86_spill] sm:$0xff] %v7429_v32  ;;  %2625 = vmatpush.msrb.mxu3 %v7444_v41  ;;  %v7447_v32 = vld [vmem:[#allocation13 + $0xa0] sm:$0xff] }
 0x3e1   : > { %9949 = vst [vmem:[#allocation87_spill] sm:$0xff] %v7432_v36  ;;  %2490 = vmatpush.msra.mxu0 %v7447_v32  ;;  %v7450_v36 = vld [vmem:[#allocation13 + $0xa8] sm:$0xff] }
 0x3e2   : > { %9950 = vst [vmem:[#allocation90_spill] sm:$0xff] %v7435_v15  ;;  %2530 = vmatpush.msra.mxu2 %v7450_v36  ;;  %v7453_v15 = vld [vmem:[#allocation13 + $0x330] sm:$0xff] }
 0x3e3   : > { %9951 = vst [vmem:[#allocation91_spill] sm:$0xff] %v7438_v43  ;;  %2586 = vmatpush.msrb.mxu1 %v7453_v15  ;;  %v7456_v43 = vld [vmem:[#allocation13 + $0x338] sm:$0xff] }
 0x3e4   : > { %9952 = vst [vmem:[#allocation95_spill] sm:$0xff] %v7441_v10  ;;  %2626 = vmatpush.msrb.mxu3 %v7456_v43  ;;  %v7459_v10 = vld [vmem:[#allocation13 + $0x80] sm:$0xff] }
 0x3e5   : > { %9953 = vst [vmem:[#allocation96_spill] sm:$0xff] %v7444_v41  ;;  %2491 = vmatpush.msra.mxu0 %v7459_v10  ;;  %v7462_v41 = vld [vmem:[#allocation13 + $0x88] sm:$0xff] }
 0x3e6   : > { %9954 = vst [vmem:[#allocation102_spill] sm:$0xff] %v7447_v32  ;;  %2531 = vmatpush.msra.mxu2 %v7462_v41  ;;  %v7465_v32 = vld [vmem:[#allocation13 + $0x310] sm:$0xff] }
 0x3e7   : > { %9955 = vst [vmem:[#allocation103_spill] sm:$0xff] %v7450_v36  ;;  %2587 = vmatpush.msrb.mxu1 %v7465_v32  ;;  %v7468_v36 = vld [vmem:[#allocation13 + $0x318] sm:$0xff] }
 0x3e8   : > { %9956 = vst [vmem:[#allocation106_spill] sm:$0xff] %v7453_v15  ;;  %2627 = vmatpush.msrb.mxu3 %v7468_v36  ;;  %v7471_v15 = vld [vmem:[#allocation13 + $0x60] sm:$0xff] }
 0x3e9   : > { %9957 = vst [vmem:[#allocation107_spill] sm:$0xff] %v7456_v43  ;;  %2492 = vmatpush.msra.mxu0 %v7471_v15  ;;  %v7474_v43 = vld [vmem:[#allocation13 + $0x68] sm:$0xff] }
 0x3ea   : > { %9958 = vst [vmem:[#allocation110_spill] sm:$0xff] %v7459_v10  ;;  %2532 = vmatpush.msra.mxu2 %v7474_v43  ;;  %v7477_v10 = vld [vmem:[#allocation13 + $0x2f0] sm:$0xff] }
 0x3eb   : > { %9959 = vst [vmem:[#allocation111_spill] sm:$0xff] %v7462_v41  ;;  %2588 = vmatpush.msrb.mxu1 %v7477_v10  ;;  %v7480_v41 = vld [vmem:[#allocation13 + $0x2f8] sm:$0xff] }
 0x3ec   : > { %9960 = vst [vmem:[#allocation112_spill] sm:$0xff] %v7465_v32  ;;  %2628 = vmatpush.msrb.mxu3 %v7480_v41  ;;  %v7483_v32 = vld [vmem:[#allocation13 + $0x40] sm:$0xff] }
 0x3ed   : > { %9961 = vst [vmem:[#allocation114_spill] sm:$0xff] %v7468_v36  ;;  %2493 = vmatpush.msra.mxu0 %v7483_v32  ;;  %v7486_v36 = vld [vmem:[#allocation13 + $0x48] sm:$0xff] }
 0x3ee   : > { %9962 = vst [vmem:[#allocation117_spill] sm:$0xff] %v7471_v15  ;;  %2533 = vmatpush.msra.mxu2 %v7486_v36  ;;  %v7489_v15 = vld [vmem:[#allocation13 + $0x2d0] sm:$0xff] }
 0x3ef   : > { %9963 = vst [vmem:[#allocation119_spill] sm:$0xff] %v7474_v43  ;;  %2589 = vmatpush.msrb.mxu1 %v7489_v15  ;;  %v7492_v43 = vld [vmem:[#allocation13 + $0x2d8] sm:$0xff] }
 0x3f0   : > { %9964 = vst [vmem:[#allocation123_spill] sm:$0xff] %v7477_v10  ;;  %2629 = vmatpush.msrb.mxu3 %v7492_v43  ;;  %v7495_v10 = vld [vmem:[#allocation13 + $0x20] sm:$0xff] }
 0x3f1   : > { %9965 = vst [vmem:[#allocation124_spill] sm:$0xff] %v7480_v41  ;;  %2494 = vmatpush.msra.mxu0 %v7495_v10  ;;  %v7498_v41 = vld [vmem:[#allocation13 + $0x28] sm:$0xff] }
 0x3f2   : > { %9966 = vst [vmem:[#allocation125_spill] sm:$0xff] %v7483_v32  ;;  %2534 = vmatpush.msra.mxu2 %v7498_v41  ;;  %v7501_v32 = vld [vmem:[#allocation13 + $0x2b0] sm:$0xff] }
 0x3f3   : > { %9967 = vst [vmem:[#allocation28_spill] sm:$0xff] %v7486_v36  ;;  %2590 = vmatpush.msrb.mxu1 %v7501_v32  ;;  %v7504_v36 = vld [vmem:[#allocation13 + $0x2b8] sm:$0xff] }
 0x3f4   : > { %9968 = vst [vmem:[#allocation39_spill] sm:$0xff] %v7489_v15  ;;  %2630 = vmatpush.msrb.mxu3 %v7504_v36  ;;  %v7507_v15 = vld [vmem:[#allocation13] sm:$0xff] }
 0x3f5   : > { %9969 = vst [vmem:[#allocation27_spill] sm:$0xff] %v7492_v43  ;;  %2495 = vmatpush.msra.mxu0 %v7507_v15  ;;  %v7510_v43 = vld [vmem:[#allocation13 + $0x8] sm:$0xff] }
 0x3f6   : > { %9970 = vst [vmem:[#allocation38_spill] sm:$0xff] %v7495_v10  ;;  %2535 = vmatpush.msra.mxu2 %v7510_v43  ;;  %v7513_v10 = vld [vmem:[#allocation13 + $0x290] sm:$0xff] }
 0x3f7   : > { %9971 = vst [vmem:[#allocation18_spill] sm:$0xff] %v7498_v41  ;;  %2591 = vmatpush.msrb.mxu1 %v7513_v10  ;;  %v7516_v41 = vld [vmem:[#allocation13 + $0x298] sm:$0xff] }
 0x3f8   : > { %9972 = vst [vmem:[#allocation19_spill] sm:$0xff] %v7501_v32  ;;  %2631 = vmatpush.msrb.mxu3 %v7516_v41  ;;  %v7519_v32 = vld [vmem:[#allocation13 + $0x1f0] sm:$0xff] }
 0x3f9   : > { %9973 = vst [vmem:[#allocation20_spill] sm:$0xff] %v7504_v36  ;;  %2560 = vmatpush.msrb.mxu0 %v7519_v32  ;;  %v7522_v36 = vld [vmem:[#allocation13 + $0x1f8] sm:$0xff] }
 0x3fa   : > { %9974 = vst [vmem:[#allocation21_spill] sm:$0xff] %v7507_v15  ;;  %2600 = vmatpush.msrb.mxu2 %v7522_v36  ;;  %v7525_v15 = vld [vmem:[#allocation13 + $0x270] sm:$0xff] }
 0x3fb   : > { %9975 = vst [vmem:[#allocation22_spill] sm:$0xff] %v7510_v43  ;;  %2592 = vmatpush.msrb.mxu1 %v7525_v15  ;;  %v7528_v43 = vld [vmem:[#allocation13 + $0x278] sm:$0xff] }
 0x3fc   : > { %9976 = vst [vmem:[#allocation23_spill] sm:$0xff] %v7513_v10  ;;  %2632 = vmatpush.msrb.mxu3 %v7528_v43  ;;  %v7531_v10 = vld [vmem:[#allocation13 + $0x1d0] sm:$0xff] }
 0x3fd   : > { %9977 = vst [vmem:[#allocation24_spill] sm:$0xff] %v7516_v41  ;;  %2561 = vmatpush.msrb.mxu0 %v7531_v10  ;;  %v7534_v41 = vld [vmem:[#allocation13 + $0x1d8] sm:$0xff] }
 0x3fe   : > { %9978 = vst [vmem:[#allocation25_spill] sm:$0xff] %v7519_v32  ;;  %2601 = vmatpush.msrb.mxu2 %v7534_v41  ;;  %v7537_v32 = vld [vmem:[#allocation13 + $0x250] sm:$0xff] }
 0x3ff   : > { %9979 = vst [vmem:[#allocation26_spill] sm:$0xff] %v7522_v36  ;;  %2593 = vmatpush.msrb.mxu1 %v7537_v32  ;;  %v7540_v36 = vld [vmem:[#allocation13 + $0x258] sm:$0xff] }
 0x400   : > { %9980 = vst [vmem:[#allocation132_spill] sm:$0xff] %v7525_v15  ;;  %2633 = vmatpush.msrb.mxu3 %v7540_v36  ;;  %v7543_v15 = vld [vmem:[#allocation13 + $0x1b0] sm:$0xff] }
 0x401   : > { %9981 = vst [vmem:[#allocation133_spill] sm:$0xff] %v7528_v43  ;;  %2562 = vmatpush.msrb.mxu0 %v7543_v15  ;;  %v7546_v43 = vld [vmem:[#allocation13 + $0x1b8] sm:$0xff] }
 0x402   : > { %9982 = vst [vmem:[#allocation134_spill] sm:$0xff] %v7531_v10  ;;  %2602 = vmatpush.msrb.mxu2 %v7546_v43  ;;  %v7549_v10 = vld [vmem:[#allocation13 + $0x230] sm:$0xff] }
 0x403   : > { %9983 = vst [vmem:[#allocation135_spill] sm:$0xff] %v7534_v41  ;;  %2594 = vmatpush.msrb.mxu1 %v7549_v10  ;;  %v7552_v41 = vld [vmem:[#allocation13 + $0x238] sm:$0xff] }
 0x404   : > { %9984 = vst [vmem:[#allocation136_spill] sm:$0xff] %v7537_v32  ;;  %2634 = vmatpush.msrb.mxu3 %v7552_v41  ;;  %v7555_v32 = vld [vmem:[#allocation13 + $0x190] sm:$0xff] }
 0x405   : > { %9985 = vst [vmem:[#allocation137_spill] sm:$0xff] %v7540_v36  ;;  %2563 = vmatpush.msrb.mxu0 %v7555_v32  ;;  %v7558_v36 = vld [vmem:[#allocation13 + $0x198] sm:$0xff] }
 0x406   : > { %9986 = vst [vmem:[#allocation138_spill] sm:$0xff] %v7543_v15  ;;  %2603 = vmatpush.msrb.mxu2 %v7558_v36  ;;  %v7561_v15 = vld [vmem:[#allocation13 + $0x210] sm:$0xff] }
 0x407   : > { %9987 = vst [vmem:[#allocation139_spill] sm:$0xff] %v7546_v43  ;;  %2595 = vmatpush.msrb.mxu1 %v7561_v15  ;;  %v7564_v43 = vld [vmem:[#allocation13 + $0x218] sm:$0xff] }
 0x408   : > { %9988 = vst [vmem:[#allocation140_spill] sm:$0xff] %v7549_v10  ;;  %2635 = vmatpush.msrb.mxu3 %v7564_v43  ;;  %v7567_v10 = vld [vmem:[#allocation13 + $0x170] sm:$0xff] }
 0x409   : > { %9989 = vst [vmem:[#allocation141_spill] sm:$0xff] %v7552_v41  ;;  %2564 = vmatpush.msrb.mxu0 %v7567_v10  ;;  %v7570_v41 = vld [vmem:[#allocation13 + $0x178] sm:$0xff] }
 0x40a   : > { %9990 = vst [vmem:[#allocation142_spill] sm:$0xff] %v7555_v32  ;;  %2604 = vmatpush.msrb.mxu2 %v7570_v41  ;;  %v7573_v32 = vld [vmem:[#allocation13 + $0x150] sm:$0xff]  ;;  %v2182_v3 = vpop.f32.mrf.mxu3 }
 0x40b   : > { %9991 = vst [vmem:[#allocation143_spill] sm:$0xff] %v7558_v36  ;;  %2565 = vmatpush.msrb.mxu0 %v7573_v32  ;;  %v7576_v36 = vld [vmem:[#allocation13 + $0x158] sm:$0xff] }
 0x40c   : > { %9992 = vst [vmem:[#allocation144_spill] sm:$0xff] %v7561_v15  ;;  %2605 = vmatpush.msrb.mxu2 %v7576_v36  ;;  %v7579_v15 = vld [vmem:[#allocation13 + $0x130] sm:$0xff] }
 0x40d   : > { %9993 = vst [vmem:[#allocation145_spill] sm:$0xff] %v7564_v43  ;;  %2566 = vmatpush.msrb.mxu0 %v7579_v15  ;;  %v7582_v43 = vld [vmem:[#allocation13 + $0x138] sm:$0xff] }
 0x40e   : > { %9994 = vst [vmem:[#allocation146_spill] sm:$0xff] %v7567_v10  ;;  %2606 = vmatpush.msrb.mxu2 %v7582_v43  ;;  %v7585_v10 = vld [vmem:[#allocation13 + $0x110] sm:$0xff] }
 0x40f   : > { %9995 = vst [vmem:[#allocation147_spill] sm:$0xff] %v7570_v41  ;;  %2567 = vmatpush.msrb.mxu0 %v7585_v10  ;;  %v7588_v41 = vld [vmem:[#allocation13 + $0x118] sm:$0xff] }
 0x410   : > { %9996 = vst [vmem:[#allocation148_spill] sm:$0xff] %v7573_v32  ;;  %2607 = vmatpush.msrb.mxu2 %v7588_v41  ;;  %v7591_v32 = vld [vmem:[#allocation13 + $0xf0] sm:$0xff] }
 0x411   : > { %9997 = vst [vmem:[#allocation149_spill] sm:$0xff] %v7576_v36  ;;  %2568 = vmatpush.msrb.mxu0 %v7591_v32  ;;  %v7594_v36 = vld [vmem:[#allocation13 + $0xf8] sm:$0xff] }
 0x412   : > { %9998 = vst [vmem:[#allocation150_spill] sm:$0xff] %v7579_v15  ;;  %2608 = vmatpush.msrb.mxu2 %v7594_v36  ;;  %v7597_v15 = vld [vmem:[#allocation13 + $0xd0] sm:$0xff]  ;;  %v2262_v34 = vpop.f32.mrf.mxu3 }
 0x413   : > { %9999 = vst [vmem:[#allocation151_spill] sm:$0xff] %v7582_v43  ;;  %2569 = vmatpush.msrb.mxu0 %v7597_v15  ;;  %v7600_v43 = vld [vmem:[#allocation13 + $0xd8] sm:$0xff] }
 0x414   : > { %10000 = vst [vmem:[#allocation152_spill] sm:$0xff] %v7585_v10  ;;  %2609 = vmatpush.msrb.mxu2 %v7600_v43  ;;  %v7603_v10 = vld [vmem:[#allocation13 + $0xb0] sm:$0xff] }
 0x415   : > { %10001 = vst [vmem:[#allocation153_spill] sm:$0xff] %v7588_v41  ;;  %2570 = vmatpush.msrb.mxu0 %v7603_v10  ;;  %v7606_v41 = vld [vmem:[#allocation13 + $0xb8] sm:$0xff] }
 0x416   : > { %10002 = vst [vmem:[#allocation154_spill] sm:$0xff] %v7591_v32  ;;  %2610 = vmatpush.msrb.mxu2 %v7606_v41  ;;  %v7609_v32 = vld [vmem:[#allocation13 + $0x90] sm:$0xff] }
 0x417   : > { %10003 = vst [vmem:[#allocation155_spill] sm:$0xff] %v7594_v36  ;;  %2571 = vmatpush.msrb.mxu0 %v7609_v32  ;;  %v7612_v36 = vld [vmem:[#allocation13 + $0x98] sm:$0xff] }
 0x418   : > { %10004 = vst [vmem:[#allocation156_spill] sm:$0xff] %v7597_v15  ;;  %2611 = vmatpush.msrb.mxu2 %v7612_v36  ;;  %v7615_v15 = vld [vmem:[#allocation13 + $0x70] sm:$0xff] }
 0x419   : > { %10005 = vst [vmem:[#allocation157_spill] sm:$0xff] %v7600_v43  ;;  %2572 = vmatpush.msrb.mxu0 %v7615_v15  ;;  %v7618_v43 = vld [vmem:[#allocation13 + $0x78] sm:$0xff] }
 0x41a   : > { %10006 = vst [vmem:[#allocation158_spill] sm:$0xff] %v7603_v10  ;;  %2612 = vmatpush.msrb.mxu2 %v7618_v43  ;;  %v7621_v10 = vld [vmem:[#allocation13 + $0x50] sm:$0xff] }
 0x41b   : > { %10007 = vst [vmem:[#allocation159_spill] sm:$0xff] %v7606_v41  ;;  %2573 = vmatpush.msrb.mxu0 %v7621_v10  ;;  %v7624_v41 = vld [vmem:[#allocation13 + $0x58] sm:$0xff] }
 0x41c   : > { %10008 = vst [vmem:[#allocation160_spill] sm:$0xff] %v7609_v32  ;;  %2613 = vmatpush.msrb.mxu2 %v7624_v41  ;;  %v7627_v32 = vld [vmem:[#allocation13 + $0x30] sm:$0xff] }
 0x41d   : > { %10009 = vst [vmem:[#allocation161_spill] sm:$0xff] %v7612_v36  ;;  %2574 = vmatpush.msrb.mxu0 %v7627_v32  ;;  %v7630_v36 = vld [vmem:[#allocation13 + $0x38] sm:$0xff]  ;;  %v2122_v1 = vpop.f32.mrf.mxu0 }
 0x41e   : > { %10010 = vst [vmem:[#allocation162_spill] sm:$0xff] %v7615_v15  ;;  %2614 = vmatpush.msrb.mxu2 %v7630_v36  ;;  %v7633_v15 = vld [vmem:[#allocation13 + $0x10] sm:$0xff] }
 0x41f   : > { %10011 = vst [vmem:[#allocation163_spill] sm:$0xff] %v7618_v43  ;;  %2575 = vmatpush.msrb.mxu0 %v7633_v15  ;;  %v7636_v43 = vld [vmem:[#allocation13 + $0x18] sm:$0xff] }
 0x420   : > { %10012 = vst [vmem:[#allocation164_spill] sm:$0xff] %v7621_v10  ;;  %2615 = vmatpush.msrb.mxu2 %v7636_v43  ;;  %v2142_v10 = vpop.f32.mrf.mxu1 }
 0x421   : > { %10013 = vst [vmem:[#allocation165_spill] sm:$0xff] %v7624_v41  ;;  %v2123_v41 = vadd.f32 %v2122_v1, %v9878_v47 }
 0x422   : > { %10014 = vst [vmem:[#allocation166_spill] sm:$0xff] %v7627_v32 }
 0x423   : > { %10015 = vst [vmem:[#allocation167_spill] sm:$0xff] %v7630_v36  ;;  %v2143_v50 = vadd.f32 %v2142_v10, %v2123_v41  ;;  %v2162_v58 = vpop.f32.mrf.mxu2  ;;  %v10019_v10 = vld [vmem:[#allocation31_spill] sm:$0xff] }
 0x424   : > { %10016 = vst [vmem:[#allocation168_spill] sm:$0xff] %v7633_v15  ;;  %v2163_v36 = vadd.f32 %v2162_v58, %v9879_v27  ;;  %v498_v15 = vadd.f32 %v10018_v6, %v9880_v37  ;;  %v10021_v6 = vld [vmem:[#allocation94_spill] sm:$0xff] }
 0x425   : > { %10017 = vst [vmem:[#allocation169_spill] sm:$0xff] %v7636_v43  ;;  %v4015_v32 = vmul.f32 -1.442695, %v2143_v50 }
 0x426   : > { %v2183_v35 = vadd.f32 %v2182_v3, %v2163_v36  ;;  %v10020_v36 = vld [vmem:[#allocation130_spill] sm:$0xff] }
 0x427   : > { %4209 = vpow2.f32 %v4015_v32  ;;  %v2202_v32 = vpop.f32.mrf.mxu0  ;;  %v580_v37 = vadd.f32 %v10021_v6, %v10020_v36 }
 0x428   : > { %v2222_v26 = vpop.f32.mrf.mxu1  ;;  %v4016_v57 = vmul.f32 -1.442695, %v2183_v35 }
 0x42a   : > { %4211 = vpow2.f32 %v4016_v57 }
 0x42c   : > { %v2242_v1 = vpop.f32.mrf.mxu2 }
 0x42d   : > { %v4210_v48 = vpop.eup %4209  ;;  %v2243_v50 = vadd.f32 %v2242_v1, %v10019_v10 }
 0x42e   : > { %v2268_v29 = vadd.f32 1.0, %v4210_v48  ;;  %v2410_v3 = vpop.f32.mrf.mxu3 }
 0x42f   : > { %v2263_v18 = vadd.f32 %v2262_v34, %v2243_v50 }
 0x430   : > { %v2370_v62 = vpop.f32.mrf.mxu1  ;;  %4213 = vrcp.f32 %v2268_v29  ;;  %v4212_v41 = vpop.eup %4211  ;;  %vm2274_vm6 = vweird.f32 %v2268_v29 }
 0x431   : > { %v2414_v43 = vadd.f32 %v2370_v62, %v498_v15  ;;  %v2287_v58 = vadd.f32 1.0, %v4212_v41  ;;  %v4017_v35 = vmul.f32 -1.442695, %v2263_v18  ;;  %v10022_v62 = vld [vmem:[#allocation32_spill] sm:$0xff]  ;;  %v2416_v15 = vadd.f32 %v2410_v3, %v580_v37  ;;  %v10023_v37 = vld [vmem:[#allocation126_spill] sm:$0xff] }
 0x432   : > { %v2203_v57 = vadd.f32 %v2202_v32, %v10022_v62  ;;  %v2280_v18 = vand.u32 2147483648, %v2268_v29  ;;  %v2278_v32 = vand.u32 2147483647, %v2268_v29  ;;  %v10024_v3 = vld [vmem:[#allocation80_spill] sm:$0xff] }
 0x433   : > { %v4019_v47 = vmul.f32 -1.442695, %v2414_v43  ;;  %v4020_v13 = vmul.f32 -1.442695, %v2416_v15  ;;  %vm2293_vm9 = vweird.f32 %v2287_v58 }
 0x434   : > { %v2223_v1 = vadd.f32 %v2222_v26, %v2203_v57  ;;  %v2299_v26 = vand.u32 2147483648, %v2287_v58  ;;  %vm2279_vm10 = vcmp.eq.f32.partialorder %v2278_v32, 8.507059e+37 }
 0x435   : > { %4215 = vpow2.f32 %v4019_v47 }
 0x436   : > { %v4214_v27 = vpop.eup %4213  ;;  %4217 = vrcp.f32 %v2287_v58 }
 0x437   : > { %v2270_v48 = vmul.f32 %v4214_v27, %v2268_v29  ;;  %4219 = vpow2.f32 %v4017_v35  ;;  %vm2275_vm5 = vweird.f32 %v4214_v27  ;;  %v457_v35 = vadd.f32 %v10024_v3, %v10023_v37 }
 0x438   : > { %4221 = vtanh.f32 %v2223_v1  ;;  %vm7651_vm7 = vmor %vm2274_vm6, %vm2275_vm5  ;;  %v2281_v29 = vor.u32 1.1754944e-38, %v2280_v18 }
 0x439   : > { %v2271_v43 = vsub.f32 1.0, %v2270_v48  ;;  %4223 = vpow2.f32 %v4020_v13  ;;  %v2297_v48 = vand.u32 2147483647, %v2287_v58 }
 0x43b   : > { %v4216_v40 = vpop.eup %4215  ;;  %v2272_v10 = vmul.f32 %v4214_v27, %v2271_v43  ;;  %vm2298_vm12 = vcmp.eq.f32.partialorder %v2297_v48, 8.507059e+37 }
 0x43c   : > { %v4218_v34 = vpop.eup %4217  ;;  %v7647_v42 = vadd.f32 1.0, %v4216_v40 }
 0x43d   : > { %v4220_v50 = vpop.eup %4219  ;;  %v2289_v47 = vmul.f32 %v4218_v34, %v2287_v58  ;;  %v2273_v41 = vadd.f32 %v4214_v27, %v2272_v10  ;;  %vm2294_vm8 = vweird.f32 %v4218_v34 }
 0x43e   : > { %v2307_v6 = vadd.f32 1.0, %v4220_v50  ;;  %v2350_v15 = vpop.f32.mrf.mxu0  ;;  %v4222_v1 = vpop.eup %4221  ;;  %vm2295_vm11 = vmor %vm2293_vm9, %vm2294_vm8  ;;  %v2300_v50 = vor.u32 1.1754944e-38, %v2299_v26  ;;  %vm2445_vm2 = vweird.f32 %v7647_v42 }
 0x43f   : > { %v2290_v36 = vsub.f32 1.0, %v2289_v47  ;;  %v2277_v40 = vsel %vm7651_vm7, %v4214_v27, %v2273_v41  ;;  %v2413_v13 = vadd.f32 %v2350_v15, %v457_v35  ;;  %v4224_v37 = vpop.eup %4223 }
 0x440   : > { %4225 = vrcp.f32 %v2307_v6  ;;  %v2282_v47 = vsel %vm2279_vm10, %v2281_v29, %v2277_v40  ;;  %v7665_v57 = vadd.f32 1.0, %v4224_v37  ;;  %v2319_v48 = vand.u32 2147483648, %v2307_v6 }
 0x441   : > { %v2291_v10 = vmul.f32 %v4218_v34, %v2290_v36  ;;  %4227 = vrcp.f32 %v7647_v42  ;;  %v4018_v3 = vmul.f32 -1.442695, %v2413_v13  ;;  %v2324_v18 = vmul.f32 %v4222_v1, %v2282_v47  ;;  %v10027_v47 = vld [vmem:[#allocation101_spill] sm:$0xff] }
 0x442   : > { %vm2313_vm14 = vweird.f32 %v2307_v6  ;;  %vm2465_vm10 = vweird.f32 %v7665_v57 }
 0x443   : > { %v2292_v43 = vadd.f32 %v4218_v34, %v2291_v10  ;;  %4229 = vpow2.f32 %v4018_v3  ;;  %v2317_v10 = vand.u32 2147483647, %v2307_v6  ;;  %v539_v3 = vadd.f32 %v10027_v47, %v5859_v5  ;;  %v7727_v47 = vld [vmem:[#allocation10 + $0x1e0] sm:$0xff] }
 0x445   : > { %v2296_v62 = vsel %vm2295_vm11, %v4218_v34, %v2292_v43  ;;  %vm2318_vm0 = vcmp.eq.f32.partialorder %v2317_v10, 8.507059e+37  ;;  %v2390_v1 = vpop.f32.mrf.mxu2 }
 0x446   : > { %v4226_v36 = vpop.eup %4225  ;;  %v2301_v44 = vsel %vm2298_vm12, %v2300_v50, %v2296_v62 }
 0x447   : > { %v7658_v27 = vpop.eup %4227  ;;  %v2323_v41 = vmul.f32 %v2301_v44, %v7072_v19  ;;  %v2309_v35 = vmul.f32 %v4226_v36, %v2307_v6  ;;  %vm2314_vm13 = vweird.f32 %v4226_v36  ;;  %v2320_v44 = vor.u32 1.1754944e-38, %v2319_v48 }
 0x448   : > { %v2441_v26 = vmul.f32 %v7658_v27, %v7647_v42  ;;  %vm2315_vm15 = vmor %vm2313_vm14, %vm2314_vm13  ;;  %v2415_v6 = vadd.f32 %v2390_v1, %v539_v3  ;;  %vm2446_vm1 = vweird.f32 %v7658_v27  ;;  %v7785_v3 = vld [vmem:[#allocation10 + $0x100] sm:$0xff] }
 0x449   : > { %v7661_v58 = vadd.f32 %v2324_v18, %v2323_v41  ;;  %v2310_v32 = vsub.f32 1.0, %v2309_v35  ;;  %v4230_v62 = vpop.eup %4229  ;;  %vm7685_vm3 = vmor %vm2445_vm2, %vm2446_vm1 }
 0x44a   : > { %v2420_v40 = vadd.f32 1.0, %v4230_v62  ;;  %v2442_v19 = vsub.f32 1.0, %v2441_v26  ;;  %v10030_v62 = vld [vmem:[#allocation42_spill] sm:$0xff] }
 0x44b   : > { %4231 = vtanh.f32 %v7661_v58  ;;  %v2311_v34 = vmul.f32 %v4226_v36, %v2310_v32  ;;  %v2451_v32 = vand.u32 2147483648, %v7647_v42 }
 0x44c   : > { %4233 = vrcp.f32 %v7665_v57  ;;  %v2443_v43 = vmul.f32 %v7658_v27, %v2442_v19  ;;  %v2432_v48 = vand.u32 2147483648, %v2420_v40  ;;  %vm2426_vm5 = vweird.f32 %v2420_v40 }
 0x44d   : > { %v2312_v15 = vadd.f32 %v4226_v36, %v2311_v34  ;;  %4235 = vrcp.f32 %v2420_v40 }
 0x44e   : > { %v2444_v35 = vadd.f32 %v7658_v27, %v2443_v43  ;;  %4237 = vtanh.f32 %v2415_v6  ;;  %v10034_v43 = vld [vmem:[#allocation33_spill] sm:$0xff]  ;;  %v7813_v6 = vld [vmem:[#allocation10 + $0xb0] sm:$0xff] }
 0x44f   : > { %v2316_v29 = vsel %vm2315_vm15, %v4226_v36, %v2312_v15  ;;  %v2452_v15 = vor.u32 1.1754944e-38, %v2451_v32  ;;  %v7821_v32 = vld [vmem:[#allocation10 + $0x90] sm:$0xff] }
 0x450   : > { %v2321_v13 = vsel %vm2318_vm0, %v2320_v44, %v2316_v29 }
 0x451   : > { %v4232_v37 = vpop.eup %4231 }
 0x452   : > { %v2327_v50 = vmul.f32 %v4232_v37, %v2321_v13  ;;  %v7672_v41 = vpop.eup %4233  ;;  %v10031_v13 = vld [vmem:[#allocation59_spill] sm:$0xff] }
 0x453   : > { %v4236_v18 = vpop.eup %4235  ;;  %v2461_v26 = vmul.f32 %v7672_v41, %v7665_v57  ;;  %vm2466_vm9 = vweird.f32 %v7672_v41 }
 0x454   : > { %2516 = vmatmul.f32.vlgmr.msra.gmra.mxu1 %v2327_v50  ;;  %2556 = vmatmul.f32.vlgmr.msra.gmra.mxu3 %v2327_v50  ;;  %v2422_v36 = vmul.f32 %v4236_v18, %v2420_v40  ;;  %vm2427_vm4 = vweird.f32 %v4236_v18  ;;  %vm2467_vm11 = vmor %vm2465_vm10, %vm2466_vm9 }
 0x455   : > { %2728 = vmatpush.msra.mxu1 %v7088_v53  ;;  %2768 = vmatpush.msra.mxu3 %v7091_v52  ;;  %v2449_v53 = vand.u32 2147483647, %v7647_v42  ;;  %v2462_v19 = vsub.f32 1.0, %v2461_v26  ;;  %vm2428_vm7 = vmor %vm2426_vm5, %vm2427_vm4  ;;  %v10040_v26 = vld [vmem:[#allocation49_spill] sm:$0xff]  ;;  %v7829_v52 = vld [vmem:[#allocation10 + $0x70] sm:$0xff] }
 0x456   : > { %v2423_v34 = vsub.f32 1.0, %v2422_v36  ;;  %v7817_v36 = vld [vmem:[#allocation10 + $0x80] sm:$0xff] }
 0x457   : > { %2729 = vmatpush.msra.mxu1 %v7100_v51  ;;  %2769 = vmatpush.msra.mxu3 %v7103_v60  ;;  %v2430_v51 = vand.u32 2147483647, %v2420_v40  ;;  %v2448_v60 = vsel %vm7685_vm3, %v7658_v27, %v2444_v35  ;;  %vm2450_vm6 = vcmp.eq.f32.partialorder %v2449_v53, 8.507059e+37  ;;  %v4238_v27 = vpop.eup %4237  ;;  %v2463_v37 = vmul.f32 %v7672_v41, %v2462_v19  ;;  %v10039_v35 = vld [vmem:[#allocation46_spill] sm:$0xff]  ;;  %v10045_v19 = vld [vmem:[#allocation60_spill] sm:$0xff] }
 0x458   : > { %v2424_v10 = vmul.f32 %v4236_v18, %v2423_v34  ;;  %v2453_v44 = vsel %vm2450_vm6, %v2452_v15, %v2448_v60  ;;  %v7825_v34 = vld [vmem:[#allocation10 + $0x60] sm:$0xff] }
 0x459   : > { %2730 = vmatpush.msra.mxu1 %v10030_v62  ;;  %2770 = vmatpush.msra.mxu3 %v7116_v63  ;;  %v2433_v63 = vor.u32 1.1754944e-38, %v2432_v48  ;;  %vm2431_vm8 = vcmp.eq.f32.partialorder %v2430_v51, 8.507059e+37  ;;  %v10041_v53 = vld [vmem:[#allocation50_spill] sm:$0xff]  ;;  %v10042_v48 = vld [vmem:[#allocation53_spill] sm:$0xff]  ;;  %v7837_v51 = vld [vmem:[#allocation10 + $0x50] sm:$0xff] }
 0x45a   : > { %v2425_v42 = vadd.f32 %v4236_v18, %v2424_v10  ;;  %v7833_v62 = vld [vmem:[#allocation10 + $0x40] sm:$0xff] }
 0x45b   : > { %2731 = vmatpush.msra.mxu1 %v7123_v30  ;;  %2771 = vmatpush.msra.mxu3 %v7126_v46  ;;  %v2475_v46 = vmul.f32 %v2453_v44, %v7150_v12  ;;  %v10043_v10 = vld [vmem:[#allocation54_spill] sm:$0xff]  ;;  %v10044_v60 = vld [vmem:[#allocation57_spill] sm:$0xff] }
 0x45c   : > { %2596 = vmatmul.f32.vlgmr.msrb.gmra.mxu1 %v2327_v50  ;;  %2636 = vmatmul.f32.vlgmr.msrb.gmra.mxu3 %v2327_v50  ;;  %v2429_v29 = vsel %vm2428_vm7, %v4236_v18, %v2425_v42  ;;  %v7809_v18 = vld [vmem:[#allocation10 + $0xa0] sm:$0xff]  ;;  %v7845_v42 = vld [vmem:[#allocation10 + $0x30] sm:$0xff] }
 0x45d   : > { %2732 = vmatpush.msra.mxu1 %v7130_v31  ;;  %2772 = vmatpush.msra.mxu3 %v7133_v4  ;;  %v2434_v30 = vsel %vm2431_vm8, %v2433_v63, %v2429_v29  ;;  %v2464_v4 = vadd.f32 %v7672_v41, %v2463_v37  ;;  %v7841_v15 = vld [vmem:[#allocation10 + $0x20] sm:$0xff] }
 0x45e   : > { %v2476_v40 = vmul.f32 %v4238_v27, %v2434_v30  ;;  %v10046_v63 = vld [vmem:[#allocation65_spill] sm:$0xff]  ;;  %v10047_v29 = vld [vmem:[#allocation66_spill] sm:$0xff]  ;;  %v7853_v27 = vld [vmem:[#allocation10 + $0x10] sm:$0xff] }
 0x45f   : > { %2733 = vmatpush.msra.mxu1 %v7137_v23  ;;  %2773 = vmatpush.msra.mxu3 %v7140_v24  ;;  %v2471_v23 = vand.u32 2147483648, %v7665_v57  ;;  %v2469_v24 = vand.u32 2147483647, %v7665_v57  ;;  %v2468_v12 = vsel %vm2467_vm11, %v7672_v41, %v2464_v4  ;;  %v7805_v41 = vld [vmem:[#allocation10 + $0xd0] sm:$0xff]  ;;  %v7849_v44 = vld [vmem:[#allocation10] sm:$0xff] }
 0x460   : > { %v7704_v31 = vadd.f32 %v2476_v40, %v2475_v46  ;;  %v10048_v37 = vld [vmem:[#allocation69_spill] sm:$0xff]  ;;  %v10049_v30 = vld [vmem:[#allocation72_spill] sm:$0xff]  ;;  %v10052_v4 = vld [vmem:[#allocation79_spill] sm:$0xff] }
 0x461   : > { %2734 = vmatpush.msra.mxu1 %v7144_v2  ;;  %2774 = vmatpush.msra.mxu3 %v7147_v61  ;;  %v10032_v2 = vld [vmem:[#allocation41_spill] sm:$0xff]  ;;  %v10033_v61 = vld [vmem:[#allocation58_spill] sm:$0xff]  ;;  %vm2470_vm12 = vcmp.eq.f32.partialorder %v2469_v24, 8.507059e+37  ;;  %v10051_v40 = vld [vmem:[#allocation76_spill] sm:$0xff] }
 0x462   : > { %4239 = vtanh.f32 %v7704_v31  ;;  %v10050_v46 = vld [vmem:[#allocation73_spill] sm:$0xff]  ;;  %v10055_v24 = vld [vmem:[#allocation88_spill] sm:$0xff] }
 0x463   : > { %2735 = vmatpush.msra.mxu1 %v7154_v0  ;;  %2775 = vmatpush.msra.mxu3 %v10031_v13  ;;  %v2472_v0 = vor.u32 1.1754944e-38, %v2471_v23  ;;  %v10053_v13 = vld [vmem:[#allocation84_spill] sm:$0xff]  ;;  %v10054_v23 = vld [vmem:[#allocation85_spill] sm:$0xff] }
 0x465   : > { %2736 = vmatpush.msra.mxu1 %v10032_v2  ;;  %2776 = vmatpush.msra.mxu3 %v10033_v61  ;;  %v2473_v50 = vsel %vm2470_vm12, %v2472_v0, %v2468_v12  ;;  %v10056_v2 = vld [vmem:[#allocation89_spill] sm:$0xff]  ;;  %v10057_v61 = vld [vmem:[#allocation92_spill] sm:$0xff]  ;;  %v10058_v12 = vld [vmem:[#allocation35_spill] sm:$0xff] }
 0x466   : > { %v10060_v0 = vld [vmem:[#allocation93_spill] sm:$0xff] }
 0x467   : > { %2737 = vmatpush.msra.mxu1 %v10034_v43  ;;  %2777 = vmatpush.msra.mxu3 %v7174_v20  ;;  %v7730_v20 = vld [vmem:[#allocation10 + $0x1f0] sm:$0xff] }
 0x468   : > { %v4240_v1 = vpop.eup %4239  ;;  %v10059_v43 = vld [vmem:[#allocation36_spill] sm:$0xff] }
 0x469   : > { %2738 = vmatpush.msra.mxu1 %v7177_v8  ;;  %2778 = vmatpush.msra.mxu3 %v7180_v56  ;;  %v7721_v57 = vmul.f32 %v4240_v1, %v2473_v50  ;;  %v7735_v56 = vld [vmem:[#allocation10 + $0x1c0] sm:$0xff]  ;;  %v7746_v8 = vld [vmem:[#allocation10 + $0x1b0] sm:$0xff] }
 0x46a   : > { %v10061_v1 = vld [vmem:[#allocation43_spill] sm:$0xff]  ;;  %v10062_v50 = vld [vmem:[#allocation97_spill] sm:$0xff] }
 0x46b   : > { %2739 = vmatpush.msra.mxu1 %v7185_v25  ;;  %2779 = vmatpush.msra.mxu3 %v7188_v14  ;;  %v7738_v25 = vld [vmem:[#allocation10 + $0x1d0] sm:$0xff]  ;;  %v7743_v14 = vld [vmem:[#allocation10 + $0x1a0] sm:$0xff] }
 0x46c   : > { %2496 = vmatmul.f32.vlgmr.msra.gmra.mxu0 %v7721_v57  ;;  %2536 = vmatmul.f32.vlgmr.msra.gmra.mxu2 %v7721_v57 }
 0x46d   : > { %2708 = vmatpush.msra.mxu0 %v7727_v47  ;;  %2748 = vmatpush.msra.mxu2 %v7730_v20 }
 0x46e   : > { %2740 = vmatpush.msra.mxu1 %v7195_v22  ;;  %2780 = vmatpush.msra.mxu3 %v7198_v7  ;;  %v7751_v22 = vld [vmem:[#allocation10 + $0x180] sm:$0xff]  ;;  %v7754_v7 = vld [vmem:[#allocation10 + $0x190] sm:$0xff] }
 0x46f   : > { %2709 = vmatpush.msra.mxu0 %v7735_v56  ;;  %2749 = vmatpush.msra.mxu2 %v7738_v25 }
 0x470   : > { %2741 = vmatpush.msra.mxu1 %v7203_v59  ;;  %2781 = vmatpush.msra.mxu3 %v7206_v28  ;;  %v7761_v59 = vld [vmem:[#allocation10 + $0x160] sm:$0xff]  ;;  %v7765_v28 = vld [vmem:[#allocation10 + $0x170] sm:$0xff] }
 0x471   : > { %2710 = vmatpush.msra.mxu0 %v7743_v14  ;;  %2750 = vmatpush.msra.mxu2 %v7746_v8 }
 0x472   : > { %2742 = vmatpush.msra.mxu1 %v7211_v49  ;;  %2782 = vmatpush.msra.mxu3 %v7214_v17  ;;  %v7769_v49 = vld [vmem:[#allocation10 + $0x140] sm:$0xff]  ;;  %v7773_v17 = vld [vmem:[#allocation10 + $0x150] sm:$0xff] }
 0x473   : > { %2711 = vmatpush.msra.mxu0 %v7751_v22  ;;  %2751 = vmatpush.msra.mxu2 %v7754_v7 }
 0x474   : > { %2743 = vmatpush.msra.mxu1 %v7219_v55  ;;  %2783 = vmatpush.msra.mxu3 %v7222_v33  ;;  %v7777_v55 = vld [vmem:[#allocation10 + $0x120] sm:$0xff]  ;;  %v7781_v33 = vld [vmem:[#allocation10 + $0x130] sm:$0xff] }
 0x475   : > { %2576 = vmatmul.f32.vlgmr.msrb.gmra.mxu0 %v7721_v57  ;;  %2616 = vmatmul.f32.vlgmr.msrb.gmra.mxu2 %v7721_v57 }
 0x476   : > { %2712 = vmatpush.msra.mxu0 %v7761_v59  ;;  %2744 = vmatmul.f32.vlgmr.msra.gmra.mxu1 %v7721_v57 }
 0x477   : > { %2752 = vmatpush.msra.mxu2 %v7765_v28  ;;  %2784 = vmatmul.f32.vlgmr.msra.gmra.mxu3 %v7721_v57 }
 0x478   : > { %2713 = vmatpush.msra.mxu0 %v7769_v49  ;;  %2875 = vmatpush.msrb.mxu1 %v7232_v38  ;;  %v7789_v38 = vld [vmem:[#allocation10 + $0x110] sm:$0xff] }
 0x479   : > { %2753 = vmatpush.msra.mxu2 %v7773_v17  ;;  %2915 = vmatpush.msrb.mxu3 %v7236_v16  ;;  %v7793_v16 = vld [vmem:[#allocation10 + $0xe0] sm:$0xff] }
 0x47a   : > { %2714 = vmatpush.msra.mxu0 %v7777_v55  ;;  %2876 = vmatpush.msrb.mxu1 %v7240_v54  ;;  %v7797_v54 = vld [vmem:[#allocation10 + $0xf0] sm:$0xff] }
 0x47b   : > { %2754 = vmatpush.msra.mxu2 %v7781_v33  ;;  %2916 = vmatpush.msrb.mxu3 %v7244_v21  ;;  %v7801_v21 = vld [vmem:[#allocation10 + $0xc0] sm:$0xff] }
 0x47c   : > { %2715 = vmatpush.msra.mxu0 %v7785_v3  ;;  %2877 = vmatpush.msrb.mxu1 %v7248_v9  ;;  %v10035_v9 = vld [vmem:[#allocation34_spill] sm:$0xff] }
 0x47d   : > { %2755 = vmatpush.msra.mxu2 %v7789_v38  ;;  %2917 = vmatpush.msrb.mxu3 %v7252_v39  ;;  %v10036_v39 = vld [vmem:[#allocation37_spill] sm:$0xff] }
 0x47e   : > { %2716 = vmatpush.msra.mxu0 %v7793_v16  ;;  %2878 = vmatpush.msrb.mxu1 %v7256_v45  ;;  %v10037_v45 = vld [vmem:[#allocation40_spill] sm:$0xff] }
 0x47f   : > { %2756 = vmatpush.msra.mxu2 %v7797_v54  ;;  %2918 = vmatpush.msrb.mxu3 %v7260_v11  ;;  %v10038_v11 = vld [vmem:[#allocation45_spill] sm:$0xff] }
 0x480   : > { %2717 = vmatpush.msra.mxu0 %v7801_v21  ;;  %2879 = vmatpush.msrb.mxu1 %v10035_v9  ;;  %v10064_v9 = vld [vmem:[#allocation100_spill] sm:$0xff] }
 0x481   : > { %2757 = vmatpush.msra.mxu2 %v7805_v41  ;;  %2919 = vmatpush.msrb.mxu3 %v10036_v39  ;;  %v10065_v39 = vld [vmem:[#allocation47_spill] sm:$0xff] }
 0x482   : > { %2718 = vmatpush.msra.mxu0 %v7809_v18  ;;  %2880 = vmatpush.msrb.mxu1 %v10037_v45  ;;  %v10066_v45 = vld [vmem:[#allocation104_spill] sm:$0xff] }
 0x483   : > { %2758 = vmatpush.msra.mxu2 %v7813_v6  ;;  %2920 = vmatpush.msrb.mxu3 %v10038_v11  ;;  %v10067_v11 = vld [vmem:[#allocation48_spill] sm:$0xff] }
 0x484   : > { %2719 = vmatpush.msra.mxu0 %v7817_v36  ;;  %2881 = vmatpush.msrb.mxu1 %v10039_v35  ;;  %v10068_v35 = vld [vmem:[#allocation105_spill] sm:$0xff] }
 0x485   : > { %2759 = vmatpush.msra.mxu2 %v7821_v32  ;;  %2921 = vmatpush.msrb.mxu3 %v10040_v26  ;;  %v10069_v26 = vld [vmem:[#allocation51_spill] sm:$0xff] }
 0x486   : > { %2720 = vmatpush.msra.mxu0 %v7825_v34  ;;  %2882 = vmatpush.msrb.mxu1 %v10041_v53  ;;  %v10070_v53 = vld [vmem:[#allocation108_spill] sm:$0xff] }
 0x487   : > { %2760 = vmatpush.msra.mxu2 %v7829_v52  ;;  %2922 = vmatpush.msrb.mxu3 %v10042_v48  ;;  %v10071_v48 = vld [vmem:[#allocation52_spill] sm:$0xff] }
 0x488   : > { %2721 = vmatpush.msra.mxu0 %v7833_v62  ;;  %2883 = vmatpush.msrb.mxu1 %v10043_v10  ;;  %v10072_v10 = vld [vmem:[#allocation109_spill] sm:$0xff] }
 0x489   : > { %2761 = vmatpush.msra.mxu2 %v7837_v51  ;;  %2923 = vmatpush.msrb.mxu3 %v10044_v60  ;;  %v10073_v60 = vld [vmem:[#allocation55_spill] sm:$0xff] }
 0x48a   : > { %2722 = vmatpush.msra.mxu0 %v7841_v15  ;;  %2884 = vmatpush.msrb.mxu1 %v10045_v19  ;;  %v10074_v19 = vld [vmem:[#allocation56_spill] sm:$0xff] }
 0x48b   : > { %2762 = vmatpush.msra.mxu2 %v7845_v42  ;;  %2924 = vmatpush.msrb.mxu3 %v10046_v63  ;;  %v10075_v63 = vld [vmem:[#allocation63_spill] sm:$0xff] }
 0x48c   : > { %2723 = vmatpush.msra.mxu0 %v7849_v44  ;;  %2885 = vmatpush.msrb.mxu1 %v10047_v29  ;;  %v10076_v29 = vld [vmem:[#allocation64_spill] sm:$0xff] }
 0x48d   : > { %2763 = vmatpush.msra.mxu2 %v7853_v27  ;;  %2724 = vmatmul.f32.vlgmr.msra.gmra.mxu0 %v7721_v57 }
 0x48e   : > { %2764 = vmatmul.f32.vlgmr.msra.gmra.mxu2 %v7721_v57  ;;  %2925 = vmatpush.msrb.mxu3 %v10048_v37  ;;  %v10063_v57 = vld [vmem:[#allocation44_spill] sm:$0xff]  ;;  %v10077_v37 = vld [vmem:[#allocation67_spill] sm:$0xff] }
 0x48f   : > { %2886 = vmatpush.msrb.mxu1 %v10049_v30  ;;  %2855 = vmatpush.msrb.mxu0 %v10050_v46  ;;  %v10078_v30 = vld [vmem:[#allocation68_spill] sm:$0xff]  ;;  %v10079_v46 = vld [vmem:[#allocation70_spill] sm:$0xff] }
 0x490   : > { %2926 = vmatpush.msrb.mxu3 %v10051_v40  ;;  %2895 = vmatpush.msrb.mxu2 %v10052_v4  ;;  %v10080_v40 = vld [vmem:[#allocation71_spill] sm:$0xff]  ;;  %v10081_v4 = vld [vmem:[#allocation74_spill] sm:$0xff] }
 0x491   : > { %2887 = vmatpush.msrb.mxu1 %v10053_v13  ;;  %2856 = vmatpush.msrb.mxu0 %v10054_v23  ;;  %v10082_v13 = vld [vmem:[#allocation75_spill] sm:$0xff]  ;;  %v10083_v23 = vld [vmem:[#allocation82_spill] sm:$0xff] }
 0x492   : > { %2927 = vmatpush.msrb.mxu3 %v10055_v24  ;;  %2896 = vmatpush.msrb.mxu2 %v10056_v2  ;;  %v10084_v24 = vld [vmem:[#allocation83_spill] sm:$0xff]  ;;  %v10085_v2 = vld [vmem:[#allocation86_spill] sm:$0xff] }
 0x493   : > { %2888 = vmatpush.msrb.mxu1 %v10057_v61  ;;  %2857 = vmatpush.msrb.mxu0 %v10058_v12  ;;  %v10086_v61 = vld [vmem:[#allocation87_spill] sm:$0xff]  ;;  %v10087_v12 = vld [vmem:[#allocation90_spill] sm:$0xff] }
 0x494   : > { %2928 = vmatpush.msrb.mxu3 %v10059_v43  ;;  %2897 = vmatpush.msrb.mxu2 %v10060_v0  ;;  %v10088_v43 = vld [vmem:[#allocation91_spill] sm:$0xff] }
 0x495   : > { %2889 = vmatpush.msrb.mxu1 %v10061_v1  ;;  %2858 = vmatpush.msrb.mxu0 %v10062_v50  ;;  %v10089_v0 = vld [vmem:[#allocation95_spill] sm:$0xff]  ;;  %v10090_v1 = vld [vmem:[#allocation96_spill] sm:$0xff]  ;;  %v10091_v50 = vld [vmem:[#allocation102_spill] sm:$0xff] }
 0x496   : > { %2929 = vmatpush.msrb.mxu3 %v10063_v57  ;;  %2898 = vmatpush.msrb.mxu2 %v10064_v9  ;;  %v10092_v57 = vld [vmem:[#allocation103_spill] sm:$0xff]  ;;  %v10093_v9 = vld [vmem:[#allocation106_spill] sm:$0xff] }
 0x497   : > { %2890 = vmatpush.msrb.mxu1 %v10065_v39  ;;  %2859 = vmatpush.msrb.mxu0 %v10066_v45  ;;  %v10094_v39 = vld [vmem:[#allocation107_spill] sm:$0xff]  ;;  %v10095_v45 = vld [vmem:[#allocation110_spill] sm:$0xff] }
 0x498   : > { %2930 = vmatpush.msrb.mxu3 %v10067_v11  ;;  %2899 = vmatpush.msrb.mxu2 %v10068_v35  ;;  %v10096_v11 = vld [vmem:[#allocation111_spill] sm:$0xff]  ;;  %v10097_v35 = vld [vmem:[#allocation112_spill] sm:$0xff] }
 0x499   : > { %2955 = vmatpush.msra.mxu1 %v10069_v26  ;;  %2860 = vmatpush.msrb.mxu0 %v10071_v48  ;;  %v10098_v26 = vld [vmem:[#allocation114_spill] sm:$0xff]  ;;  %v10100_v48 = vld [vmem:[#allocation119_spill] sm:$0xff] }
 0x49a   : > { %2995 = vmatpush.msra.mxu3 %v10070_v53  ;;  %2900 = vmatpush.msrb.mxu2 %v10072_v10  ;;  %v10099_v53 = vld [vmem:[#allocation117_spill] sm:$0xff]  ;;  %v10101_v10 = vld [vmem:[#allocation123_spill] sm:$0xff] }
 0x49b   : > { %2956 = vmatpush.msra.mxu1 %v10073_v60  ;;  %2861 = vmatpush.msrb.mxu0 %v10075_v63  ;;  %v10102_v60 = vld [vmem:[#allocation124_spill] sm:$0xff] }
 0x49c   : > { %2996 = vmatpush.msra.mxu3 %v10074_v19  ;;  %2901 = vmatpush.msrb.mxu2 %v10076_v29  ;;  %v10103_v19 = vld [vmem:[#allocation125_spill] sm:$0xff]  ;;  %v10104_v63 = vld [vmem:[#allocation28_spill] sm:$0xff]  ;;  %v10105_v29 = vld [vmem:[#allocation39_spill] sm:$0xff] }
 0x49d   : > { %2957 = vmatpush.msra.mxu1 %v10077_v37  ;;  %2862 = vmatpush.msrb.mxu0 %v10079_v46  ;;  %v10106_v37 = vld [vmem:[#allocation27_spill] sm:$0xff]  ;;  %v10108_v46 = vld [vmem:[#allocation18_spill] sm:$0xff] }
 0x49e   : > { %2997 = vmatpush.msra.mxu3 %v10078_v30  ;;  %2902 = vmatpush.msrb.mxu2 %v10080_v40  ;;  %v10107_v30 = vld [vmem:[#allocation38_spill] sm:$0xff]  ;;  %v10109_v40 = vld [vmem:[#allocation19_spill] sm:$0xff] }
 0x49f   : > { %2958 = vmatpush.msra.mxu1 %v10081_v4  ;;  %2863 = vmatpush.msrb.mxu0 %v10083_v23  ;;  %v10110_v4 = vld [vmem:[#allocation20_spill] sm:$0xff]  ;;  %v10112_v23 = vld [vmem:[#allocation22_spill] sm:$0xff] }
 0x4a0   : > { %2998 = vmatpush.msra.mxu3 %v10082_v13  ;;  %2903 = vmatpush.msrb.mxu2 %v10084_v24  ;;  %v10111_v13 = vld [vmem:[#allocation21_spill] sm:$0xff]  ;;  %v10113_v24 = vld [vmem:[#allocation23_spill] sm:$0xff] }
 0x4a1   : > { %2959 = vmatpush.msra.mxu1 %v10085_v2  ;;  %2864 = vmatpush.msrb.mxu0 %v10087_v12  ;;  %v10114_v2 = vld [vmem:[#allocation24_spill] sm:$0xff]  ;;  %v10116_v12 = vld [vmem:[#allocation26_spill] sm:$0xff] }
 0x4a2   : > { %2999 = vmatpush.msra.mxu3 %v10086_v61  ;;  %2904 = vmatpush.msrb.mxu2 %v10088_v43  ;;  %v10115_v61 = vld [vmem:[#allocation25_spill] sm:$0xff]  ;;  %v10117_v43 = vld [vmem:[#allocation132_spill] sm:$0xff] }
 0x4a3   : > { %2960 = vmatpush.msra.mxu1 %v10089_v0  ;;  %2865 = vmatpush.msrb.mxu0 %v10091_v50  ;;  %v10118_v0 = vld [vmem:[#allocation133_spill] sm:$0xff]  ;;  %v10120_v50 = vld [vmem:[#allocation135_spill] sm:$0xff] }
 0x4a4   : > { %3000 = vmatpush.msra.mxu3 %v10090_v1  ;;  %2905 = vmatpush.msrb.mxu2 %v10092_v57  ;;  %v10119_v1 = vld [vmem:[#allocation134_spill] sm:$0xff]  ;;  %v10121_v57 = vld [vmem:[#allocation136_spill] sm:$0xff] }
 0x4a5   : > { %2961 = vmatpush.msra.mxu1 %v10093_v9  ;;  %2866 = vmatpush.msrb.mxu0 %v10095_v45  ;;  %v10122_v9 = vld [vmem:[#allocation137_spill] sm:$0xff]  ;;  %v10124_v45 = vld [vmem:[#allocation139_spill] sm:$0xff] }
 0x4a6   : > { %3001 = vmatpush.msra.mxu3 %v10094_v39  ;;  %2906 = vmatpush.msrb.mxu2 %v10096_v11  ;;  %v10123_v39 = vld [vmem:[#allocation138_spill] sm:$0xff]  ;;  %v10125_v11 = vld [vmem:[#allocation140_spill] sm:$0xff] }
 0x4a7   : > { %2962 = vmatpush.msra.mxu1 %v10097_v35  ;;  %2867 = vmatpush.msrb.mxu0 %v10099_v53  ;;  %v10126_v35 = vld [vmem:[#allocation141_spill] sm:$0xff]  ;;  %v10128_v53 = vld [vmem:[#allocation143_spill] sm:$0xff] }
 0x4a8   : > { %3002 = vmatpush.msra.mxu3 %v10098_v26  ;;  %2907 = vmatpush.msrb.mxu2 %v10100_v48  ;;  %v10127_v26 = vld [vmem:[#allocation142_spill] sm:$0xff]  ;;  %v10129_v48 = vld [vmem:[#allocation144_spill] sm:$0xff] }
 0x4a9   : > { %2963 = vmatpush.msra.mxu1 %v10101_v10  ;;  %2868 = vmatpush.msrb.mxu0 %v10103_v19  ;;  %v10130_v10 = vld [vmem:[#allocation145_spill] sm:$0xff]  ;;  %v10132_v19 = vld [vmem:[#allocation147_spill] sm:$0xff] }
 0x4aa   : > { %3003 = vmatpush.msra.mxu3 %v10102_v60  ;;  %2908 = vmatpush.msrb.mxu2 %v10104_v63  ;;  %v10131_v60 = vld [vmem:[#allocation146_spill] sm:$0xff]  ;;  %v10133_v63 = vld [vmem:[#allocation148_spill] sm:$0xff] }
 0x4ab   : > { %2964 = vmatpush.msra.mxu1 %v10105_v29  ;;  %2869 = vmatpush.msrb.mxu0 %v10107_v30  ;;  %v10134_v29 = vld [vmem:[#allocation149_spill] sm:$0xff]  ;;  %v10136_v30 = vld [vmem:[#allocation151_spill] sm:$0xff] }
 0x4ac   : > { %3004 = vmatpush.msra.mxu3 %v10106_v37  ;;  %2909 = vmatpush.msrb.mxu2 %v10108_v46  ;;  %v10135_v37 = vld [vmem:[#allocation150_spill] sm:$0xff]  ;;  %v10137_v46 = vld [vmem:[#allocation152_spill] sm:$0xff] }
 0x4ad   : > { %2965 = vmatpush.msra.mxu1 %v10109_v40  ;;  %2870 = vmatpush.msrb.mxu0 %v10111_v13  ;;  %v10138_v40 = vld [vmem:[#allocation153_spill] sm:$0xff]  ;;  %v10140_v13 = vld [vmem:[#allocation155_spill] sm:$0xff] }
 0x4ae   : > { %3005 = vmatpush.msra.mxu3 %v10110_v4  ;;  %2910 = vmatpush.msrb.mxu2 %v10112_v23  ;;  %v10139_v4 = vld [vmem:[#allocation154_spill] sm:$0xff]  ;;  %v10141_v23 = vld [vmem:[#allocation156_spill] sm:$0xff] }
 0x4af   : > { %2966 = vmatpush.msra.mxu1 %v10113_v24  ;;  %2935 = vmatpush.msra.mxu0 %v10115_v61  ;;  %v10142_v24 = vld [vmem:[#allocation157_spill] sm:$0xff]  ;;  %v10144_v61 = vld [vmem:[#allocation159_spill] sm:$0xff] }
 0x4b0   : > { %3006 = vmatpush.msra.mxu3 %v10114_v2  ;;  %2975 = vmatpush.msra.mxu2 %v10116_v12  ;;  %v10143_v2 = vld [vmem:[#allocation158_spill] sm:$0xff]  ;;  %v10145_v12 = vld [vmem:[#allocation160_spill] sm:$0xff] }
 0x4b1   : > { %2967 = vmatpush.msra.mxu1 %v10117_v43  ;;  %2936 = vmatpush.msra.mxu0 %v10119_v1  ;;  %v10146_v43 = vld [vmem:[#allocation161_spill] sm:$0xff]  ;;  %v10148_v1 = vld [vmem:[#allocation163_spill] sm:$0xff] }
 0x4b2   : > { %3007 = vmatpush.msra.mxu3 %v10118_v0  ;;  %2976 = vmatpush.msra.mxu2 %v10120_v50  ;;  %v10147_v0 = vld [vmem:[#allocation162_spill] sm:$0xff]  ;;  %v10149_v50 = vld [vmem:[#allocation164_spill] sm:$0xff] }
 0x4b3   : > { %2968 = vmatpush.msra.mxu1 %v10121_v57  ;;  %2937 = vmatpush.msra.mxu0 %v10123_v39  ;;  %v10150_v57 = vld [vmem:[#allocation165_spill] sm:$0xff]  ;;  %v10152_v39 = vld [vmem:[#allocation167_spill] sm:$0xff] }
 0x4b4   : > { %3008 = vmatpush.msra.mxu3 %v10122_v9  ;;  %2977 = vmatpush.msra.mxu2 %v10124_v45  ;;  %v10151_v9 = vld [vmem:[#allocation166_spill] sm:$0xff]  ;;  %v10153_v45 = vld [vmem:[#allocation168_spill] sm:$0xff] }
 0x4b5   : > { %2969 = vmatpush.msra.mxu1 %v10125_v11  ;;  %2938 = vmatpush.msra.mxu0 %v10127_v26  ;;  %v10154_v11 = vld [vmem:[#allocation169_spill] sm:$0xff] }
 0x4b6   : > { %3009 = vmatpush.msra.mxu3 %v10126_v35  ;;  %2978 = vmatpush.msra.mxu2 %v10128_v53  ;;  %v10155_v53 = vld [vmem:[#allocation29_spill] sm:$0xff] }
 0x4b7   : > { %2970 = vmatpush.msra.mxu1 %v10129_v48  ;;  %2939 = vmatpush.msra.mxu0 %v10131_v60 }
 0x4b8   : > { %3010 = vmatpush.msra.mxu3 %v10130_v10  ;;  %2979 = vmatpush.msra.mxu2 %v10132_v19 }
 0x4b9   : > { %2940 = vmatpush.msra.mxu0 %v10133_v63 }
 0x4ba   : > { %2980 = vmatpush.msra.mxu2 %v10134_v29 }
 0x4bb   : > { %2941 = vmatpush.msra.mxu0 %v10135_v37  ;;  %v10156_v37 = vld [vmem:[#allocation30_spill] sm:$0xff] }
 0x4bc   : > { %2981 = vmatpush.msra.mxu2 %v10136_v30 }
 0x4bd   : > { %2942 = vmatpush.msra.mxu0 %v10137_v46 }
 0x4be   : > { %2982 = vmatpush.msra.mxu2 %v10138_v40  ;;  %v10157_v40 = vld [vmem:[#allocation127_spill] sm:$0xff] }
 0x4bf   : > { %2943 = vmatpush.msra.mxu0 %v10139_v4  ;;  %v10158_v4 = vld [vmem:[#allocation99_spill] sm:$0xff] }
 0x4c0   : > { %2983 = vmatpush.msra.mxu2 %v10140_v13  ;;  %v501_v13 = vadd.f32 %v10158_v4, %v10157_v40 }
 0x4c1   : > { %2944 = vmatpush.msra.mxu0 %v10141_v23 }
 0x4c2   : > { %2984 = vmatpush.msra.mxu2 %v10142_v24 }
 0x4c3   : > { %2945 = vmatpush.msra.mxu0 %v10143_v2 }
 0x4c4   : > { %2985 = vmatpush.msra.mxu2 %v10144_v61 }
 0x4c5   : > { %2946 = vmatpush.msra.mxu0 %v10145_v12 }
 0x4c6   : > { %2986 = vmatpush.msra.mxu2 %v10146_v43 }
 0x4c7   : > { %2947 = vmatpush.msra.mxu0 %v10147_v0 }
 0x4c8   : > { %2987 = vmatpush.msra.mxu2 %v10148_v1 }
 0x4c9   : > { %2948 = vmatpush.msra.mxu0 %v10149_v50  ;;  %v10159_v50 = vld [vmem:[#allocation31_spill] sm:$0xff] }
 0x4ca   : > { %2988 = vmatpush.msra.mxu2 %v10150_v57 }
 0x4cb   : > { %2949 = vmatpush.msra.mxu0 %v10151_v9 }
 0x4cc   : > { %2989 = vmatpush.msra.mxu2 %v10152_v39 }
 0x4cd   : > { %2950 = vmatpush.msra.mxu0 %v10153_v45 }
 0x4ce   : > { %2990 = vmatpush.msra.mxu2 %v10154_v11 }
 0x4d1   : > { %v2517_v35 = vpop.f32.mrf.mxu1 }
 0x4d7   : > { %v2557_v10 = vpop.f32.mrf.mxu3 }
 0x4d9   : > { %v2597_v60 = vpop.f32.mrf.mxu1 }
 0x4df   : > { %v2637_v2 = vpop.f32.mrf.mxu3 }
 0x4e9   : > { %v2497_v26 = vpop.f32.mrf.mxu0 }
 0x4ea   : > { %v2498_v48 = vadd.f32 %v2497_v26, %v10155_v53  ;;  %v10160_v26 = vld [vmem:[#allocation130_spill] sm:$0xff] }
 0x4ec   : > { %v2518_v19 = vadd.f32 %v2517_v35, %v2498_v48  ;;  %v10161_v48 = vld [vmem:[#allocation113_spill] sm:$0xff] }
 0x4ee   : > { %v4021_v63 = vmul.f32 -1.442695, %v2518_v19 }
 0x4ef   : > { %v2537_v29 = vpop.f32.mrf.mxu2 }
 0x4f0   : > { %4241 = vpow2.f32 %v4021_v63  ;;  %v2538_v30 = vadd.f32 %v2537_v29, %v10156_v37  ;;  %v10162_v29 = vld [vmem:[#allocation32_spill] sm:$0xff] }
 0x4f2   : > { %v2558_v46 = vadd.f32 %v2557_v10, %v2538_v30  ;;  %v2577_v39 = vpop.f32.mrf.mxu0  ;;  %v583_v10 = vadd.f32 %v10161_v48, %v10160_v26 }
 0x4f3   : > { %v2745_v23 = vpop.f32.mrf.mxu1  ;;  %v2578_v30 = vadd.f32 %v2577_v39, %v10162_v29 }
 0x4f4   : > { %v4022_v24 = vmul.f32 -1.442695, %v2558_v46  ;;  %v2789_v61 = vadd.f32 %v2745_v23, %v501_v13 }
 0x4f6   : > { %v4242_v12 = vpop.eup %4241  ;;  %4243 = vpow2.f32 %v4022_v24  ;;  %v4025_v1 = vmul.f32 -1.442695, %v2789_v61  ;;  %v2598_v24 = vadd.f32 %v2597_v60, %v2578_v30 }
 0x4f7   : > { %v2643_v43 = vadd.f32 1.0, %v4242_v12 }
 0x4f8   : > { %v2617_v0 = vpop.f32.mrf.mxu2 }
 0x4f9   : > { %4245 = vrcp.f32 %v2643_v43  ;;  %v2618_v57 = vadd.f32 %v2617_v0, %v10159_v50  ;;  %vm2649_vm14 = vweird.f32 %v2643_v43  ;;  %v2653_v39 = vand.u32 2147483647, %v2643_v43 }
 0x4fa   : > { %4247 = vpow2.f32 %v4025_v1  ;;  %v2785_v35 = vpop.f32.mrf.mxu3 }
 0x4fb   : > { %v2638_v45 = vadd.f32 %v2637_v2, %v2618_v57  ;;  %v2791_v4 = vadd.f32 %v2785_v35, %v583_v10  ;;  %v10163_v35 = vld [vmem:[#allocation126_spill] sm:$0xff]  ;;  %vm2654_vm2 = vcmp.eq.f32.partialorder %v2653_v39, 8.507059e+37 }
 0x4fc   : > { %v4244_v9 = vpop.eup %4243  ;;  %v10164_v10 = vld [vmem:[#allocation98_spill] sm:$0xff] }
 0x4fd   : > { %v2662_v11 = vadd.f32 1.0, %v4244_v9  ;;  %v4023_v19 = vmul.f32 -1.442695, %v2638_v45  ;;  %v4026_v12 = vmul.f32 -1.442695, %v2791_v4  ;;  %v2655_v45 = vand.u32 2147483648, %v2643_v43 }
 0x4ff   : > { %v4246_v63 = vpop.eup %4245  ;;  %4249 = vrcp.f32 %v2662_v11  ;;  %v2674_v60 = vand.u32 2147483648, %v2662_v11  ;;  %vm2668_vm1 = vweird.f32 %v2662_v11 }
 0x500   : > { %v2645_v46 = vmul.f32 %v4246_v63, %v2643_v43  ;;  %4251 = vpow2.f32 %v4023_v19  ;;  %v4248_v23 = vpop.eup %4247  ;;  %vm2650_vm13 = vweird.f32 %v4246_v63  ;;  %v460_v19 = vadd.f32 %v10164_v10, %v10163_v35 }
 0x501   : > { %v7973_v9 = vadd.f32 1.0, %v4248_v23  ;;  %4253 = vtanh.f32 %v2598_v24  ;;  %vm7977_vm15 = vmor %vm2649_vm14, %vm2650_vm13  ;;  %v2656_v43 = vor.u32 1.1754944e-38, %v2655_v45 }
 0x502   : > { %v2646_v13 = vsub.f32 1.0, %v2645_v46  ;;  %4255 = vpow2.f32 %v4026_v12  ;;  %v2672_v46 = vand.u32 2147483647, %v2662_v11 }
 0x503   : > { %vm2820_vm10 = vweird.f32 %v7973_v9 }
 0x504   : > { %v2647_v61 = vmul.f32 %v4246_v63, %v2646_v13  ;;  %vm2673_vm4 = vcmp.eq.f32.partialorder %v2672_v46, 8.507059e+37 }
 0x505   : > { %v4250_v2 = vpop.eup %4249 }
 0x506   : > { %v4252_v0 = vpop.eup %4251  ;;  %v2664_v1 = vmul.f32 %v4250_v2, %v2662_v11  ;;  %v2648_v57 = vadd.f32 %v4246_v63, %v2647_v61  ;;  %vm2669_vm0 = vweird.f32 %v4250_v2 }
 0x507   : > { %v2682_v48 = vadd.f32 1.0, %v4252_v0  ;;  %v4254_v12 = vpop.eup %4253  ;;  %vm2670_vm3 = vmor %vm2668_vm1, %vm2669_vm0  ;;  %v2675_v0 = vor.u32 1.1754944e-38, %v2674_v60 }
 0x508   : > { %v2665_v26 = vsub.f32 1.0, %v2664_v1  ;;  %v2652_v13 = vsel %vm7977_vm15, %v4246_v63, %v2648_v57  ;;  %v4256_v10 = vpop.eup %4255 }
 0x509   : > { %4257 = vrcp.f32 %v2682_v48  ;;  %v2657_v1 = vsel %vm2654_vm2, %v2656_v43, %v2652_v13  ;;  %v7991_v60 = vadd.f32 1.0, %v4256_v10  ;;  %v2694_v46 = vand.u32 2147483648, %v2682_v48 }
 0x50a   : > { %v2666_v4 = vmul.f32 %v4250_v2, %v2665_v26  ;;  %4259 = vrcp.f32 %v7973_v9  ;;  %v2725_v23 = vpop.f32.mrf.mxu0  ;;  %v2699_v57 = vmul.f32 %v4254_v12, %v2657_v1  ;;  %vm2688_vm6 = vweird.f32 %v2682_v48 }
 0x50b   : > { %v2788_v61 = vadd.f32 %v2725_v23, %v460_v19  ;;  %v2695_v43 = vor.u32 1.1754944e-38, %v2694_v46  ;;  %v8015_v46 = vld [vmem:[#allocation10 + $0x1d8] sm:$0xff]  ;;  %vm2840_vm2 = vweird.f32 %v7991_v60 }
 0x50c   : > { %v2667_v24 = vadd.f32 %v4250_v2, %v2666_v4 }
 0x50d   : > { %v4024_v26 = vmul.f32 -1.442695, %v2788_v61 }
 0x50e   : > { %v2671_v35 = vsel %vm2670_vm3, %v4250_v2, %v2667_v24 }
 0x50f   : > { %v4258_v29 = vpop.eup %4257  ;;  %v2676_v50 = vsel %vm2673_vm4, %v2675_v0, %v2671_v35  ;;  %4261 = vpow2.f32 %v4024_v26  ;;  %v2692_v35 = vand.u32 2147483647, %v2682_v48 }
 0x510   : > { %v7984_v30 = vpop.eup %4259  ;;  %v2698_v63 = vmul.f32 %v2676_v50, %v7661_v58  ;;  %v2684_v45 = vmul.f32 %v4258_v29, %v2682_v48  ;;  %vm2689_vm5 = vweird.f32 %v4258_v29  ;;  %v10167_v48 = vld [vmem:[#allocation118_spill] sm:$0xff] }
 0x511   : > { %v2816_v19 = vmul.f32 %v7984_v30, %v7973_v9  ;;  %vm2690_vm7 = vmor %vm2688_vm6, %vm2689_vm5  ;;  %vm2693_vm8 = vcmp.eq.f32.partialorder %v2692_v35, 8.507059e+37  ;;  %v2765_v1 = vpop.f32.mrf.mxu2  ;;  %v542_v10 = vadd.f32 %v10167_v48, %v5859_v5  ;;  %vm2821_vm9 = vweird.f32 %v7984_v30  ;;  %v8040_v48 = vld [vmem:[#allocation10 + $0x188] sm:$0xff] }
 0x512   : > { %v7987_v11 = vadd.f32 %v2699_v57, %v2698_v63  ;;  %v2685_v39 = vsub.f32 1.0, %v2684_v45  ;;  %v8003_v63 = vld [vmem:[#allocation10 + $0x1e8] sm:$0xff]  ;;  %v2826_v35 = vand.u32 2147483648, %v7973_v9  ;;  %vm8031_vm11 = vmor %vm2820_vm10, %vm2821_vm9 }
 0x513   : > { %v2817_v13 = vsub.f32 1.0, %v2816_v19  ;;  %v2790_v45 = vadd.f32 %v2765_v1, %v542_v10  ;;  %v8043_v10 = vld [vmem:[#allocation10 + $0x198] sm:$0xff] }
 0x514   : > { %4263 = vtanh.f32 %v7987_v11  ;;  %v2686_v2 = vmul.f32 %v4258_v29, %v2685_v39  ;;  %10171 = vst [vmem:[#allocation171_spill] sm:$0xff] %v8043_v10 }
 0x515   : > { %v4262_v4 = vpop.eup %4261  ;;  %4265 = vrcp.f32 %v7991_v60  ;;  %v2818_v0 = vmul.f32 %v7984_v30, %v2817_v13  ;;  %v2824_v13 = vand.u32 2147483647, %v7973_v9 }
 0x516   : > { %v2687_v58 = vadd.f32 %v4258_v29, %v2686_v2  ;;  %v7994_v50 = vadd.f32 1.0, %v4262_v4  ;;  %v8012_v2 = vld [vmem:[#allocation10 + $0x1c8] sm:$0xff] }
 0x517   : > { %v2819_v19 = vadd.f32 %v7984_v30, %v2818_v0  ;;  %vm2825_vm14 = vcmp.eq.f32.partialorder %v2824_v13, 8.507059e+37 }
 0x518   : > { %v2691_v23 = vsel %vm2690_vm7, %v4258_v29, %v2687_v58  ;;  %4267 = vrcp.f32 %v7994_v50  ;;  %v8006_v29 = vld [vmem:[#allocation10 + $0x1f8] sm:$0xff]  ;;  %v2805_v9 = vand.u32 2147483647, %v7994_v50  ;;  %vm2801_vm13 = vweird.f32 %v7994_v50 }
 0x519   : > { %v2696_v61 = vsel %vm2693_vm8, %v2695_v43, %v2691_v23  ;;  %v8023_v23 = vld [vmem:[#allocation10 + $0x1a8] sm:$0xff]  ;;  %v8026_v43 = vld [vmem:[#allocation10 + $0x1b8] sm:$0xff]  ;;  %4269 = vtanh.f32 %v2790_v45  ;;  %v2823_v1 = vsel %vm8031_vm11, %v7984_v30, %v2819_v19 }
 0x51a   : > { %v4264_v24 = vpop.eup %4263  ;;  %10168 = vst [vmem:[#allocation170_spill] sm:$0xff] %v8026_v43  ;;  %v8050_v30 = vld [vmem:[#allocation10 + $0x178] sm:$0xff]  ;;  %vm2806_vm0 = vcmp.eq.f32.partialorder %v2805_v9, 8.507059e+37  ;;  %v8070_v9 = vld [vmem:[#allocation10 + $0x108] sm:$0xff] }
 0x51b   : > { %v2702_v12 = vmul.f32 %v4264_v24, %v2696_v61  ;;  %v8001_v26 = vpop.eup %4265  ;;  %v2807_v61 = vand.u32 2147483648, %v7994_v50  ;;  %10173 = vst [vmem:[#allocation173_spill] sm:$0xff] %v8050_v30 }
 0x51c   : > { %v2836_v4 = vmul.f32 %v8001_v26, %v7991_v60  ;;  %vm2841_vm1 = vweird.f32 %v8001_v26 }
 0x51d   : > { %2891 = vmatmul.f32.vlgmr.msrb.gmra.mxu1 %v2702_v12  ;;  %2931 = vmatmul.f32.vlgmr.msrb.gmra.mxu3 %v2702_v12  ;;  %v2808_v19 = vor.u32 1.1754944e-38, %v2807_v61  ;;  %vm2842_vm3 = vmor %vm2840_vm2, %vm2841_vm1 }
 0x51e   : > { %3103 = vmatpush.msrb.mxu1 %v8003_v63  ;;  %3143 = vmatpush.msrb.mxu3 %v8006_v29  ;;  %v4268_v57 = vpop.eup %4267 }
 0x51f   : > { %v2797_v39 = vmul.f32 %v4268_v57, %v7994_v50  ;;  %vm2802_vm12 = vweird.f32 %v4268_v57  ;;  %v8057_v50 = vld [vmem:[#allocation10 + $0x158] sm:$0xff] }
 0x520   : > { %3104 = vmatpush.msrb.mxu1 %v8012_v2  ;;  %3144 = vmatpush.msrb.mxu3 %v8015_v46  ;;  %vm2803_vm15 = vmor %vm2801_vm13, %vm2802_vm12 }
 0x521   : > { %v2798_v58 = vsub.f32 1.0, %v2797_v39  ;;  %v2827_v39 = vor.u32 1.1754944e-38, %v2826_v35 }
 0x522   : > { %3105 = vmatpush.msrb.mxu1 %v8023_v23  ;;  %3145 = vmatpush.msrb.mxu3 %v8026_v43  ;;  %v2837_v43 = vsub.f32 1.0, %v2836_v4  ;;  %v8054_v4 = vld [vmem:[#allocation10 + $0x148] sm:$0xff] }
 0x523   : > { %v2799_v0 = vmul.f32 %v4268_v57, %v2798_v58  ;;  %v8047_v58 = vld [vmem:[#allocation10 + $0x168] sm:$0xff]  ;;  %v2828_v24 = vsel %vm2825_vm14, %v2827_v39, %v2823_v1  ;;  %v8073_v1 = vld [vmem:[#allocation10 + $0x118] sm:$0xff] }
 0x524   : > { %3106 = vmatpush.msrb.mxu1 %v8040_v48  ;;  %3146 = vmatpush.msrb.mxu3 %v8043_v10  ;;  %10172 = vst [vmem:[#allocation172_spill] sm:$0xff] %v8047_v58  ;;  %v2838_v13 = vmul.f32 %v8001_v26, %v2837_v43  ;;  %v8062_v10 = vld [vmem:[#allocation10 + $0x128] sm:$0xff]  ;;  %v2846_v43 = vand.u32 2147483648, %v7991_v60 }
 0x525   : > { %2971 = vmatmul.f32.vlgmr.msra.gmra.mxu1 %v2702_v12  ;;  %3011 = vmatmul.f32.vlgmr.msra.gmra.mxu3 %v2702_v12  ;;  %v2800_v45 = vadd.f32 %v4268_v57, %v2799_v0  ;;  %v4270_v12 = vpop.eup %4269  ;;  %v8080_v39 = vld [vmem:[#allocation10 + $0xe8] sm:$0xff] }
 0x526   : > { %3107 = vmatpush.msrb.mxu1 %v8047_v58  ;;  %3147 = vmatpush.msrb.mxu3 %v8050_v30  ;;  %v2850_v30 = vmul.f32 %v2828_v24, %v7704_v31  ;;  %v2839_v31 = vadd.f32 %v8001_v26, %v2838_v13  ;;  %v8098_v13 = vld [vmem:[#allocation10 + $0xb8] sm:$0xff] }
 0x527   : > { %v2804_v35 = vsel %vm2803_vm15, %v4268_v57, %v2800_v45  ;;  %v8065_v57 = vld [vmem:[#allocation10 + $0x138] sm:$0xff] }
 0x528   : > { %3108 = vmatpush.msrb.mxu1 %v8054_v4  ;;  %3148 = vmatpush.msrb.mxu3 %v8057_v50  ;;  %v2809_v0 = vsel %vm2806_vm0, %v2808_v19, %v2804_v35  ;;  %v8083_v45 = vld [vmem:[#allocation10 + $0xf8] sm:$0xff]  ;;  %v2843_v24 = vsel %vm2842_vm3, %v8001_v26, %v2839_v31  ;;  %v2847_v35 = vor.u32 1.1754944e-38, %v2846_v43  ;;  %v8109_v31 = vld [vmem:[#allocation10 + $0x68] sm:$0xff] }
 0x529   : > { %v2851_v58 = vmul.f32 %v4270_v12, %v2809_v0  ;;  %10174 = vst [vmem:[#allocation62_spill] sm:$0xff] %v8083_v45  ;;  %v8091_v19 = vld [vmem:[#allocation10 + $0xd8] sm:$0xff]  ;;  %v8095_v12 = vld [vmem:[#allocation10 + $0xa8] sm:$0xff] }
 0x52a   : > { %3109 = vmatpush.msrb.mxu1 %v8062_v10  ;;  %3149 = vmatpush.msrb.mxu3 %v8065_v57  ;;  %v8112_v43 = vld [vmem:[#allocation10 + $0x78] sm:$0xff] }
 0x52b   : > { %v8068_v61 = vadd.f32 %v2851_v58, %v2850_v30  ;;  %v2844_v58 = vand.u32 2147483647, %v7991_v60  ;;  %v8088_v30 = vld [vmem:[#allocation10 + $0xc8] sm:$0xff] }
 0x52c   : > { %3110 = vmatpush.msrb.mxu1 %v8070_v9  ;;  %3150 = vmatpush.msrb.mxu3 %v8073_v1  ;;  %10175 = vst [vmem:[#allocation78_spill] sm:$0xff] %v8088_v30 }
 0x52d   : > { %4271 = vtanh.f32 %v8068_v61  ;;  %vm2845_vm4 = vcmp.eq.f32.partialorder %v2844_v58, 8.507059e+37  ;;  %v8119_v58 = vld [vmem:[#allocation10 + $0x48] sm:$0xff] }
 0x52e   : > { %3111 = vmatpush.msrb.mxu1 %v8080_v39  ;;  %3151 = vmatpush.msrb.mxu3 %v8083_v45  ;;  %v2848_v0 = vsel %vm2845_vm4, %v2847_v35, %v2843_v24  ;;  %v8101_v45 = vld [vmem:[#allocation10 + $0x88] sm:$0xff]  ;;  %v8122_v24 = vld [vmem:[#allocation10 + $0x58] sm:$0xff] }
 0x52f   : > { %v8127_v35 = vld [vmem:[#allocation10 + $0x28] sm:$0xff] }
 0x530   : > { %3112 = vmatpush.msrb.mxu1 %v8088_v30  ;;  %3152 = vmatpush.msrb.mxu3 %v8091_v19  ;;  %v8104_v30 = vld [vmem:[#allocation10 + $0x98] sm:$0xff] }
 0x532   : > { %3113 = vmatpush.msrb.mxu1 %v8095_v12  ;;  %3153 = vmatpush.msrb.mxu3 %v8098_v13 }
 0x533   : > { %v4272_v60 = vpop.eup %4271 }
 0x534   : > { %3114 = vmatpush.msrb.mxu1 %v8101_v45  ;;  %3154 = vmatpush.msrb.mxu3 %v8104_v30  ;;  %v8107_v26 = vmul.f32 %v4272_v60, %v2848_v0  ;;  %v8130_v60 = vld [vmem:[#allocation10 + $0x38] sm:$0xff]  ;;  %v8263_v0 = vld [vmem:[#allocation13 + $0x240] sm:$0xff] }
 0x535   : > { %10198 = vst [vmem:[#allocation65_spill] sm:$0xff] %v8263_v0 }
 0x536   : > { %3115 = vmatpush.msrb.mxu1 %v8109_v31  ;;  %3155 = vmatpush.msrb.mxu3 %v8112_v43 }
 0x537   : > { %2871 = vmatmul.f32.vlgmr.msrb.gmra.mxu0 %v8107_v26  ;;  %2911 = vmatmul.f32.vlgmr.msrb.gmra.mxu2 %v8107_v26 }
 0x538   : > { %3083 = vmatpush.msrb.mxu0 %v7727_v47  ;;  %3123 = vmatpush.msrb.mxu2 %v7730_v20  ;;  %v8135_v47 = vld [vmem:[#allocation10 + $0x8] sm:$0xff]  ;;  %v8138_v20 = vld [vmem:[#allocation10 + $0x18] sm:$0xff] }
 0x539   : > { %3116 = vmatpush.msrb.mxu1 %v8119_v58  ;;  %3156 = vmatpush.msrb.mxu3 %v8122_v24 }
 0x53a   : > { %3084 = vmatpush.msrb.mxu0 %v7735_v56  ;;  %3124 = vmatpush.msrb.mxu2 %v7738_v25  ;;  %v8150_v56 = vld [vmem:[#allocation13 + $0x3e0] sm:$0xff]  ;;  %v8154_v25 = vld [vmem:[#allocation13 + $0x3e8] sm:$0xff] }
 0x53b   : > { %3117 = vmatpush.msrb.mxu1 %v8127_v35  ;;  %3157 = vmatpush.msrb.mxu3 %v8130_v60 }
 0x53c   : > { %3085 = vmatpush.msrb.mxu0 %v7743_v14  ;;  %3125 = vmatpush.msrb.mxu2 %v7746_v8  ;;  %v8158_v14 = vld [vmem:[#allocation13 + $0x3c0] sm:$0xff]  ;;  %v8162_v8 = vld [vmem:[#allocation13 + $0x3c8] sm:$0xff] }
 0x53d   : > { %3118 = vmatpush.msrb.mxu1 %v8135_v47  ;;  %3158 = vmatpush.msrb.mxu3 %v8138_v20 }
 0x53e   : > { %3086 = vmatpush.msrb.mxu0 %v7751_v22  ;;  %3126 = vmatpush.msrb.mxu2 %v7754_v7  ;;  %v8166_v22 = vld [vmem:[#allocation13 + $0x3a0] sm:$0xff]  ;;  %v8170_v7 = vld [vmem:[#allocation13 + $0x3a8] sm:$0xff] }
 0x53f   : > { %2951 = vmatmul.f32.vlgmr.msra.gmra.mxu0 %v8107_v26  ;;  %2991 = vmatmul.f32.vlgmr.msra.gmra.mxu2 %v8107_v26 }
 0x540   : > { %3087 = vmatpush.msrb.mxu0 %v7761_v59  ;;  %3119 = vmatmul.f32.vlgmr.msrb.gmra.mxu1 %v8107_v26  ;;  %v8174_v59 = vld [vmem:[#allocation13 + $0x380] sm:$0xff] }
 0x541   : > { %3127 = vmatpush.msrb.mxu2 %v7765_v28  ;;  %3159 = vmatmul.f32.vlgmr.msrb.gmra.mxu3 %v8107_v26  ;;  %v8178_v28 = vld [vmem:[#allocation13 + $0x388] sm:$0xff] }
 0x542   : > { %3088 = vmatpush.msrb.mxu0 %v7769_v49  ;;  %3250 = vmatpush.msra.mxu1 %v8150_v56  ;;  %v8182_v49 = vld [vmem:[#allocation13 + $0x360] sm:$0xff] }
 0x543   : > { %3128 = vmatpush.msrb.mxu2 %v7773_v17  ;;  %3290 = vmatpush.msra.mxu3 %v8154_v25  ;;  %10176 = vst [vmem:[#allocation61_spill] sm:$0xff] %v8182_v49  ;;  %v8186_v17 = vld [vmem:[#allocation13 + $0x368] sm:$0xff] }
 0x544   : > { %3089 = vmatpush.msrb.mxu0 %v7777_v55  ;;  %3251 = vmatpush.msra.mxu1 %v8158_v14  ;;  %10177 = vst [vmem:[#allocation77_spill] sm:$0xff] %v8186_v17  ;;  %v8190_v55 = vld [vmem:[#allocation13 + $0x340] sm:$0xff] }
 0x545   : > { %3129 = vmatpush.msrb.mxu2 %v7781_v33  ;;  %3291 = vmatpush.msra.mxu3 %v8162_v8  ;;  %10178 = vst [vmem:[#allocation81_spill] sm:$0xff] %v8190_v55  ;;  %v8194_v33 = vld [vmem:[#allocation13 + $0x348] sm:$0xff] }
 0x546   : > { %3090 = vmatpush.msrb.mxu0 %v7785_v3  ;;  %3252 = vmatpush.msra.mxu1 %v8166_v22  ;;  %10179 = vst [vmem:[#allocation94_spill] sm:$0xff] %v8194_v33  ;;  %v8198_v3 = vld [vmem:[#allocation13 + $0x320] sm:$0xff] }
 0x547   : > { %3130 = vmatpush.msrb.mxu2 %v7789_v38  ;;  %3292 = vmatpush.msra.mxu3 %v8170_v7  ;;  %10180 = vst [vmem:[#allocation80_spill] sm:$0xff] %v8198_v3  ;;  %v8202_v38 = vld [vmem:[#allocation13 + $0x328] sm:$0xff] }
 0x548   : > { %3091 = vmatpush.msrb.mxu0 %v7793_v16  ;;  %3253 = vmatpush.msra.mxu1 %v8174_v59  ;;  %10181 = vst [vmem:[#allocation101_spill] sm:$0xff] %v8202_v38  ;;  %v8206_v16 = vld [vmem:[#allocation13 + $0x300] sm:$0xff] }
 0x549   : > { %3131 = vmatpush.msrb.mxu2 %v7797_v54  ;;  %3293 = vmatpush.msra.mxu3 %v8178_v28  ;;  %10182 = vst [vmem:[#allocation42_spill] sm:$0xff] %v8206_v16  ;;  %v8210_v54 = vld [vmem:[#allocation13 + $0x308] sm:$0xff] }
 0x54a   : > { %3092 = vmatpush.msrb.mxu0 %v7801_v21  ;;  %3254 = vmatpush.msra.mxu1 %v8182_v49  ;;  %10183 = vst [vmem:[#allocation59_spill] sm:$0xff] %v8210_v54  ;;  %v8214_v21 = vld [vmem:[#allocation13 + $0x2e0] sm:$0xff] }
 0x54b   : > { %3132 = vmatpush.msrb.mxu2 %v7805_v41  ;;  %3294 = vmatpush.msra.mxu3 %v8186_v17  ;;  %10184 = vst [vmem:[#allocation41_spill] sm:$0xff] %v8214_v21  ;;  %v8218_v41 = vld [vmem:[#allocation13 + $0x2e8] sm:$0xff] }
 0x54c   : > { %3093 = vmatpush.msrb.mxu0 %v7809_v18  ;;  %3255 = vmatpush.msra.mxu1 %v8190_v55  ;;  %10185 = vst [vmem:[#allocation58_spill] sm:$0xff] %v8218_v41  ;;  %v8222_v18 = vld [vmem:[#allocation13 + $0x2c0] sm:$0xff] }
 0x54d   : > { %3133 = vmatpush.msrb.mxu2 %v7813_v6  ;;  %3295 = vmatpush.msra.mxu3 %v8194_v33  ;;  %10186 = vst [vmem:[#allocation33_spill] sm:$0xff] %v8222_v18  ;;  %v8226_v6 = vld [vmem:[#allocation13 + $0x2c8] sm:$0xff] }
 0x54e   : > { %3094 = vmatpush.msrb.mxu0 %v7817_v36  ;;  %3256 = vmatpush.msra.mxu1 %v8198_v3  ;;  %10187 = vst [vmem:[#allocation34_spill] sm:$0xff] %v8226_v6  ;;  %v8230_v36 = vld [vmem:[#allocation13 + $0x2a0] sm:$0xff] }
 0x54f   : > { %3134 = vmatpush.msrb.mxu2 %v7821_v32  ;;  %3296 = vmatpush.msra.mxu3 %v8202_v38  ;;  %10188 = vst [vmem:[#allocation37_spill] sm:$0xff] %v8230_v36  ;;  %v8236_v32 = vld [vmem:[#allocation13 + $0x2a8] sm:$0xff] }
 0x550   : > { %3095 = vmatpush.msrb.mxu0 %v7825_v34  ;;  %3257 = vmatpush.msra.mxu1 %v8206_v16  ;;  %10189 = vst [vmem:[#allocation40_spill] sm:$0xff] %v8236_v32  ;;  %v8239_v34 = vld [vmem:[#allocation13 + $0x280] sm:$0xff] }
 0x551   : > { %3135 = vmatpush.msrb.mxu2 %v7829_v52  ;;  %3297 = vmatpush.msra.mxu3 %v8210_v54  ;;  %10190 = vst [vmem:[#allocation45_spill] sm:$0xff] %v8239_v34  ;;  %v8242_v52 = vld [vmem:[#allocation13 + $0x1e0] sm:$0xff] }
 0x552   : > { %3096 = vmatpush.msrb.mxu0 %v7833_v62  ;;  %3258 = vmatpush.msra.mxu1 %v8214_v21  ;;  %10191 = vst [vmem:[#allocation46_spill] sm:$0xff] %v8242_v52  ;;  %v8245_v62 = vld [vmem:[#allocation13 + $0x288] sm:$0xff] }
 0x553   : > { %3136 = vmatpush.msrb.mxu2 %v7837_v51  ;;  %3298 = vmatpush.msra.mxu3 %v8218_v41  ;;  %10192 = vst [vmem:[#allocation49_spill] sm:$0xff] %v8245_v62  ;;  %v8248_v51 = vld [vmem:[#allocation13 + $0x1e8] sm:$0xff] }
 0x554   : > { %3097 = vmatpush.msrb.mxu0 %v7841_v15  ;;  %3259 = vmatpush.msra.mxu1 %v8222_v18  ;;  %10193 = vst [vmem:[#allocation50_spill] sm:$0xff] %v8248_v51  ;;  %v8251_v15 = vld [vmem:[#allocation13 + $0x260] sm:$0xff] }
 0x555   : > { %3137 = vmatpush.msrb.mxu2 %v7845_v42  ;;  %3299 = vmatpush.msra.mxu3 %v8226_v6  ;;  %10194 = vst [vmem:[#allocation53_spill] sm:$0xff] %v8251_v15  ;;  %v8254_v42 = vld [vmem:[#allocation13 + $0x1c0] sm:$0xff] }
 0x556   : > { %3098 = vmatpush.msrb.mxu0 %v7849_v44  ;;  %3260 = vmatpush.msra.mxu1 %v8230_v36  ;;  %10195 = vst [vmem:[#allocation54_spill] sm:$0xff] %v8254_v42  ;;  %v8257_v44 = vld [vmem:[#allocation13 + $0x268] sm:$0xff] }
 0x557   : > { %3138 = vmatpush.msrb.mxu2 %v7853_v27  ;;  %3099 = vmatmul.f32.vlgmr.msrb.gmra.mxu0 %v8107_v26  ;;  %10196 = vst [vmem:[#allocation57_spill] sm:$0xff] %v8257_v44  ;;  %v8260_v27 = vld [vmem:[#allocation13 + $0x1c8] sm:$0xff] }
 0x558   : > { %3139 = vmatmul.f32.vlgmr.msrb.gmra.mxu2 %v8107_v26  ;;  %3300 = vmatpush.msra.mxu3 %v8236_v32  ;;  %10197 = vst [vmem:[#allocation60_spill] sm:$0xff] %v8260_v27  ;;  %v8266_v26 = vld [vmem:[#allocation13 + $0x1a0] sm:$0xff] }
 0x559   : > { %3261 = vmatpush.msra.mxu1 %v8239_v34  ;;  %3230 = vmatpush.msra.mxu0 %v8242_v52  ;;  %10199 = vst [vmem:[#allocation66_spill] sm:$0xff] %v8266_v26 }
 0x55a   : > { %3301 = vmatpush.msra.mxu3 %v8245_v62  ;;  %3270 = vmatpush.msra.mxu2 %v8248_v51 }
 0x55b   : > { %3262 = vmatpush.msra.mxu1 %v8251_v15  ;;  %3231 = vmatpush.msra.mxu0 %v8254_v42  ;;  %v8269_v15 = vld [vmem:[#allocation13 + $0x248] sm:$0xff] }
 0x55c   : > { %3302 = vmatpush.msra.mxu3 %v8257_v44  ;;  %3271 = vmatpush.msra.mxu2 %v8260_v27  ;;  %10200 = vst [vmem:[#allocation69_spill] sm:$0xff] %v8269_v15  ;;  %v8272_v42 = vld [vmem:[#allocation13 + $0x1a8] sm:$0xff]  ;;  %v8275_v44 = vld [vmem:[#allocation13 + $0x220] sm:$0xff] }
 0x55d   : > { %3263 = vmatpush.msra.mxu1 %v8263_v0  ;;  %3232 = vmatpush.msra.mxu0 %v8266_v26  ;;  %10201 = vst [vmem:[#allocation72_spill] sm:$0xff] %v8272_v42  ;;  %v8278_v27 = vld [vmem:[#allocation13 + $0x180] sm:$0xff]  ;;  %v8281_v0 = vld [vmem:[#allocation13 + $0x228] sm:$0xff] }
 0x55e   : > { %3303 = vmatpush.msra.mxu3 %v8269_v15  ;;  %3272 = vmatpush.msra.mxu2 %v8272_v42  ;;  %10202 = vst [vmem:[#allocation73_spill] sm:$0xff] %v8275_v44  ;;  %v8284_v26 = vld [vmem:[#allocation13 + $0x188] sm:$0xff]  ;;  %v8287_v15 = vld [vmem:[#allocation13 + $0x200] sm:$0xff] }
 0x55f   : > { %3264 = vmatpush.msra.mxu1 %v8275_v44  ;;  %10203 = vst [vmem:[#allocation76_spill] sm:$0xff] %v8278_v27  ;;  %3233 = vmatpush.msra.mxu0 %v8278_v27  ;;  %v8290_v42 = vld [vmem:[#allocation13 + $0x160] sm:$0xff]  ;;  %v8293_v44 = vld [vmem:[#allocation13 + $0x208] sm:$0xff] }
 0x560   : > { %10204 = vst [vmem:[#allocation79_spill] sm:$0xff] %v8281_v0  ;;  %3304 = vmatpush.msra.mxu3 %v8281_v0  ;;  %3273 = vmatpush.msra.mxu2 %v8284_v26  ;;  %v8296_v27 = vld [vmem:[#allocation13 + $0x168] sm:$0xff]  ;;  %v8299_v0 = vld [vmem:[#allocation13 + $0x3f0] sm:$0xff] }
 0x561   : > { %10205 = vst [vmem:[#allocation84_spill] sm:$0xff] %v8284_v26  ;;  %3265 = vmatpush.msra.mxu1 %v8287_v15  ;;  %3234 = vmatpush.msra.mxu0 %v8290_v42  ;;  %v8302_v26 = vld [vmem:[#allocation13 + $0x3f8] sm:$0xff] }
 0x562   : > { %10206 = vst [vmem:[#allocation85_spill] sm:$0xff] %v8287_v15  ;;  %3305 = vmatpush.msra.mxu3 %v8293_v44  ;;  %3274 = vmatpush.msra.mxu2 %v8296_v27  ;;  %v8305_v15 = vld [vmem:[#allocation13 + $0x140] sm:$0xff] }
 0x563   : > { %10207 = vst [vmem:[#allocation88_spill] sm:$0xff] %v8290_v42  ;;  %3330 = vmatpush.msrb.mxu1 %v8299_v0  ;;  %3235 = vmatpush.msra.mxu0 %v8305_v15  ;;  %v8308_v42 = vld [vmem:[#allocation13 + $0x148] sm:$0xff] }
 0x564   : > { %10208 = vst [vmem:[#allocation89_spill] sm:$0xff] %v8293_v44  ;;  %3370 = vmatpush.msrb.mxu3 %v8302_v26  ;;  %3275 = vmatpush.msra.mxu2 %v8308_v42  ;;  %v8311_v44 = vld [vmem:[#allocation13 + $0x3d0] sm:$0xff] }
 0x565   : > { %10209 = vst [vmem:[#allocation92_spill] sm:$0xff] %v8296_v27  ;;  %3331 = vmatpush.msrb.mxu1 %v8311_v44  ;;  %v8314_v27 = vld [vmem:[#allocation13 + $0x3d8] sm:$0xff] }
 0x566   : > { %10210 = vst [vmem:[#allocation35_spill] sm:$0xff] %v8299_v0  ;;  %3371 = vmatpush.msrb.mxu3 %v8314_v27  ;;  %v8317_v0 = vld [vmem:[#allocation13 + $0x120] sm:$0xff] }
 0x567   : > { %10211 = vst [vmem:[#allocation36_spill] sm:$0xff] %v8302_v26  ;;  %3236 = vmatpush.msra.mxu0 %v8317_v0  ;;  %v8320_v26 = vld [vmem:[#allocation13 + $0x128] sm:$0xff] }
 0x568   : > { %10212 = vst [vmem:[#allocation93_spill] sm:$0xff] %v8305_v15  ;;  %3276 = vmatpush.msra.mxu2 %v8320_v26  ;;  %v8323_v15 = vld [vmem:[#allocation13 + $0x3b0] sm:$0xff] }
 0x569   : > { %10213 = vst [vmem:[#allocation43_spill] sm:$0xff] %v8308_v42  ;;  %3332 = vmatpush.msrb.mxu1 %v8323_v15  ;;  %v8326_v42 = vld [vmem:[#allocation13 + $0x3b8] sm:$0xff] }
 0x56a   : > { %10214 = vst [vmem:[#allocation97_spill] sm:$0xff] %v8311_v44  ;;  %3372 = vmatpush.msrb.mxu3 %v8326_v42  ;;  %v8329_v44 = vld [vmem:[#allocation13 + $0x100] sm:$0xff] }
 0x56b   : > { %10215 = vst [vmem:[#allocation44_spill] sm:$0xff] %v8314_v27  ;;  %3237 = vmatpush.msra.mxu0 %v8329_v44  ;;  %v8332_v27 = vld [vmem:[#allocation13 + $0x108] sm:$0xff] }
 0x56c   : > { %10216 = vst [vmem:[#allocation100_spill] sm:$0xff] %v8317_v0  ;;  %3277 = vmatpush.msra.mxu2 %v8332_v27  ;;  %v8335_v0 = vld [vmem:[#allocation13 + $0x390] sm:$0xff] }
 0x56d   : > { %10217 = vst [vmem:[#allocation47_spill] sm:$0xff] %v8320_v26  ;;  %3333 = vmatpush.msrb.mxu1 %v8335_v0  ;;  %v8338_v26 = vld [vmem:[#allocation13 + $0x398] sm:$0xff] }
 0x56e   : > { %10218 = vst [vmem:[#allocation104_spill] sm:$0xff] %v8323_v15  ;;  %3373 = vmatpush.msrb.mxu3 %v8338_v26  ;;  %v8341_v15 = vld [vmem:[#allocation13 + $0xe0] sm:$0xff] }
 0x56f   : > { %10219 = vst [vmem:[#allocation48_spill] sm:$0xff] %v8326_v42  ;;  %3238 = vmatpush.msra.mxu0 %v8341_v15  ;;  %v8344_v42 = vld [vmem:[#allocation13 + $0xe8] sm:$0xff] }
 0x570   : > { %10220 = vst [vmem:[#allocation105_spill] sm:$0xff] %v8329_v44  ;;  %3278 = vmatpush.msra.mxu2 %v8344_v42  ;;  %v8347_v44 = vld [vmem:[#allocation13 + $0x370] sm:$0xff] }
 0x571   : > { %10221 = vst [vmem:[#allocation51_spill] sm:$0xff] %v8332_v27  ;;  %3334 = vmatpush.msrb.mxu1 %v8347_v44  ;;  %v8350_v27 = vld [vmem:[#allocation13 + $0x378] sm:$0xff] }
 0x572   : > { %10222 = vst [vmem:[#allocation108_spill] sm:$0xff] %v8335_v0  ;;  %3374 = vmatpush.msrb.mxu3 %v8350_v27  ;;  %v8353_v0 = vld [vmem:[#allocation13 + $0xc0] sm:$0xff] }
 0x573   : > { %10223 = vst [vmem:[#allocation52_spill] sm:$0xff] %v8338_v26  ;;  %3239 = vmatpush.msra.mxu0 %v8353_v0  ;;  %v8356_v26 = vld [vmem:[#allocation13 + $0xc8] sm:$0xff] }
 0x574   : > { %10224 = vst [vmem:[#allocation109_spill] sm:$0xff] %v8341_v15  ;;  %3279 = vmatpush.msra.mxu2 %v8356_v26  ;;  %v8359_v15 = vld [vmem:[#allocation13 + $0x350] sm:$0xff] }
 0x575   : > { %10225 = vst [vmem:[#allocation55_spill] sm:$0xff] %v8344_v42  ;;  %3335 = vmatpush.msrb.mxu1 %v8359_v15  ;;  %v8362_v42 = vld [vmem:[#allocation13 + $0x358] sm:$0xff] }
 0x576   : > { %10226 = vst [vmem:[#allocation56_spill] sm:$0xff] %v8347_v44  ;;  %3375 = vmatpush.msrb.mxu3 %v8362_v42  ;;  %v8365_v44 = vld [vmem:[#allocation13 + $0xa0] sm:$0xff] }
 0x577   : > { %10227 = vst [vmem:[#allocation63_spill] sm:$0xff] %v8350_v27  ;;  %3240 = vmatpush.msra.mxu0 %v8365_v44  ;;  %v8368_v27 = vld [vmem:[#allocation13 + $0xa8] sm:$0xff] }
 0x578   : > { %10228 = vst [vmem:[#allocation64_spill] sm:$0xff] %v8353_v0  ;;  %3280 = vmatpush.msra.mxu2 %v8368_v27  ;;  %v8371_v0 = vld [vmem:[#allocation13 + $0x330] sm:$0xff] }
 0x579   : > { %10229 = vst [vmem:[#allocation67_spill] sm:$0xff] %v8356_v26  ;;  %3336 = vmatpush.msrb.mxu1 %v8371_v0  ;;  %v8374_v26 = vld [vmem:[#allocation13 + $0x338] sm:$0xff] }
 0x57a   : > { %10230 = vst [vmem:[#allocation68_spill] sm:$0xff] %v8359_v15  ;;  %3376 = vmatpush.msrb.mxu3 %v8374_v26  ;;  %v8377_v15 = vld [vmem:[#allocation13 + $0x80] sm:$0xff] }
 0x57b   : > { %10231 = vst [vmem:[#allocation70_spill] sm:$0xff] %v8362_v42  ;;  %3241 = vmatpush.msra.mxu0 %v8377_v15  ;;  %v8380_v42 = vld [vmem:[#allocation13 + $0x88] sm:$0xff] }
 0x57c   : > { %10232 = vst [vmem:[#allocation71_spill] sm:$0xff] %v8365_v44  ;;  %3281 = vmatpush.msra.mxu2 %v8380_v42  ;;  %v8383_v44 = vld [vmem:[#allocation13 + $0x310] sm:$0xff] }
 0x57d   : > { %10233 = vst [vmem:[#allocation74_spill] sm:$0xff] %v8368_v27  ;;  %3337 = vmatpush.msrb.mxu1 %v8383_v44  ;;  %v8386_v27 = vld [vmem:[#allocation13 + $0x318] sm:$0xff] }
 0x57e   : > { %10234 = vst [vmem:[#allocation75_spill] sm:$0xff] %v8371_v0  ;;  %3377 = vmatpush.msrb.mxu3 %v8386_v27  ;;  %v8389_v0 = vld [vmem:[#allocation13 + $0x60] sm:$0xff] }
 0x57f   : > { %10235 = vst [vmem:[#allocation82_spill] sm:$0xff] %v8374_v26  ;;  %3242 = vmatpush.msra.mxu0 %v8389_v0  ;;  %v8392_v26 = vld [vmem:[#allocation13 + $0x68] sm:$0xff] }
 0x580   : > { %10236 = vst [vmem:[#allocation83_spill] sm:$0xff] %v8377_v15  ;;  %3282 = vmatpush.msra.mxu2 %v8392_v26  ;;  %v8395_v15 = vld [vmem:[#allocation13 + $0x2f0] sm:$0xff] }
 0x581   : > { %10237 = vst [vmem:[#allocation86_spill] sm:$0xff] %v8380_v42  ;;  %3338 = vmatpush.msrb.mxu1 %v8395_v15  ;;  %v8398_v42 = vld [vmem:[#allocation13 + $0x2f8] sm:$0xff] }
 0x582   : > { %10238 = vst [vmem:[#allocation87_spill] sm:$0xff] %v8383_v44  ;;  %3378 = vmatpush.msrb.mxu3 %v8398_v42  ;;  %v8401_v44 = vld [vmem:[#allocation13 + $0x40] sm:$0xff] }
 0x583   : > { %10239 = vst [vmem:[#allocation90_spill] sm:$0xff] %v8386_v27  ;;  %3243 = vmatpush.msra.mxu0 %v8401_v44  ;;  %v8404_v27 = vld [vmem:[#allocation13 + $0x48] sm:$0xff] }
 0x584   : > { %10240 = vst [vmem:[#allocation91_spill] sm:$0xff] %v8389_v0  ;;  %3283 = vmatpush.msra.mxu2 %v8404_v27  ;;  %v8407_v0 = vld [vmem:[#allocation13 + $0x2d0] sm:$0xff] }
 0x585   : > { %10241 = vst [vmem:[#allocation95_spill] sm:$0xff] %v8392_v26  ;;  %3339 = vmatpush.msrb.mxu1 %v8407_v0  ;;  %v8410_v26 = vld [vmem:[#allocation13 + $0x2d8] sm:$0xff] }
 0x586   : > { %10242 = vst [vmem:[#allocation96_spill] sm:$0xff] %v8395_v15  ;;  %3379 = vmatpush.msrb.mxu3 %v8410_v26  ;;  %v8413_v15 = vld [vmem:[#allocation13 + $0x20] sm:$0xff] }
 0x587   : > { %10243 = vst [vmem:[#allocation102_spill] sm:$0xff] %v8398_v42  ;;  %3244 = vmatpush.msra.mxu0 %v8413_v15  ;;  %v8416_v42 = vld [vmem:[#allocation13 + $0x28] sm:$0xff] }
 0x588   : > { %10244 = vst [vmem:[#allocation103_spill] sm:$0xff] %v8401_v44  ;;  %3284 = vmatpush.msra.mxu2 %v8416_v42  ;;  %v8419_v44 = vld [vmem:[#allocation13 + $0x2b0] sm:$0xff] }
 0x589   : > { %10245 = vst [vmem:[#allocation106_spill] sm:$0xff] %v8404_v27  ;;  %3340 = vmatpush.msrb.mxu1 %v8419_v44  ;;  %v8422_v27 = vld [vmem:[#allocation13 + $0x2b8] sm:$0xff] }
 0x58a   : > { %10246 = vst [vmem:[#allocation107_spill] sm:$0xff] %v8407_v0  ;;  %3380 = vmatpush.msrb.mxu3 %v8422_v27  ;;  %v8425_v0 = vld [vmem:[#allocation13] sm:$0xff] }
 0x58b   : > { %10247 = vst [vmem:[#allocation110_spill] sm:$0xff] %v8410_v26  ;;  %3245 = vmatpush.msra.mxu0 %v8425_v0  ;;  %v8428_v26 = vld [vmem:[#allocation13 + $0x8] sm:$0xff] }
 0x58c   : > { %10248 = vst [vmem:[#allocation111_spill] sm:$0xff] %v8413_v15  ;;  %3285 = vmatpush.msra.mxu2 %v8428_v26  ;;  %v8431_v15 = vld [vmem:[#allocation13 + $0x290] sm:$0xff] }
 0x58d   : > { %10249 = vst [vmem:[#allocation112_spill] sm:$0xff] %v8416_v42  ;;  %3341 = vmatpush.msrb.mxu1 %v8431_v15  ;;  %v8434_v42 = vld [vmem:[#allocation13 + $0x298] sm:$0xff] }
 0x58e   : > { %10250 = vst [vmem:[#allocation114_spill] sm:$0xff] %v8419_v44  ;;  %3381 = vmatpush.msrb.mxu3 %v8434_v42  ;;  %v8437_v44 = vld [vmem:[#allocation13 + $0x1f0] sm:$0xff] }
 0x58f   : > { %10251 = vst [vmem:[#allocation117_spill] sm:$0xff] %v8422_v27  ;;  %3310 = vmatpush.msrb.mxu0 %v8437_v44  ;;  %v8440_v27 = vld [vmem:[#allocation13 + $0x1f8] sm:$0xff] }
 0x590   : > { %10252 = vst [vmem:[#allocation119_spill] sm:$0xff] %v8425_v0  ;;  %3350 = vmatpush.msrb.mxu2 %v8440_v27  ;;  %v8443_v0 = vld [vmem:[#allocation13 + $0x270] sm:$0xff] }
 0x591   : > { %10253 = vst [vmem:[#allocation123_spill] sm:$0xff] %v8428_v26  ;;  %3342 = vmatpush.msrb.mxu1 %v8443_v0  ;;  %v8446_v26 = vld [vmem:[#allocation13 + $0x278] sm:$0xff] }
 0x592   : > { %10254 = vst [vmem:[#allocation124_spill] sm:$0xff] %v8431_v15  ;;  %3382 = vmatpush.msrb.mxu3 %v8446_v26  ;;  %v8449_v15 = vld [vmem:[#allocation13 + $0x1d0] sm:$0xff] }
 0x593   : > { %10255 = vst [vmem:[#allocation125_spill] sm:$0xff] %v8434_v42  ;;  %3311 = vmatpush.msrb.mxu0 %v8449_v15  ;;  %v8452_v42 = vld [vmem:[#allocation13 + $0x1d8] sm:$0xff] }
 0x594   : > { %10256 = vst [vmem:[#allocation28_spill] sm:$0xff] %v8437_v44  ;;  %3351 = vmatpush.msrb.mxu2 %v8452_v42  ;;  %v8455_v44 = vld [vmem:[#allocation13 + $0x250] sm:$0xff] }
 0x595   : > { %10257 = vst [vmem:[#allocation39_spill] sm:$0xff] %v8440_v27  ;;  %3343 = vmatpush.msrb.mxu1 %v8455_v44  ;;  %v8458_v27 = vld [vmem:[#allocation13 + $0x258] sm:$0xff] }
 0x596   : > { %10258 = vst [vmem:[#allocation27_spill] sm:$0xff] %v8443_v0  ;;  %3383 = vmatpush.msrb.mxu3 %v8458_v27  ;;  %v8461_v0 = vld [vmem:[#allocation13 + $0x1b0] sm:$0xff] }
 0x597   : > { %10259 = vst [vmem:[#allocation38_spill] sm:$0xff] %v8446_v26  ;;  %3312 = vmatpush.msrb.mxu0 %v8461_v0  ;;  %v8464_v26 = vld [vmem:[#allocation13 + $0x1b8] sm:$0xff] }
 0x598   : > { %10260 = vst [vmem:[#allocation18_spill] sm:$0xff] %v8449_v15  ;;  %3352 = vmatpush.msrb.mxu2 %v8464_v26  ;;  %v8467_v15 = vld [vmem:[#allocation13 + $0x230] sm:$0xff] }
 0x599   : > { %10261 = vst [vmem:[#allocation19_spill] sm:$0xff] %v8452_v42  ;;  %3344 = vmatpush.msrb.mxu1 %v8467_v15  ;;  %v8470_v42 = vld [vmem:[#allocation13 + $0x238] sm:$0xff] }
 0x59a   : > { %10262 = vst [vmem:[#allocation20_spill] sm:$0xff] %v8455_v44  ;;  %3384 = vmatpush.msrb.mxu3 %v8470_v42  ;;  %v8473_v44 = vld [vmem:[#allocation13 + $0x190] sm:$0xff] }
 0x59b   : > { %10263 = vst [vmem:[#allocation21_spill] sm:$0xff] %v8458_v27  ;;  %3313 = vmatpush.msrb.mxu0 %v8473_v44  ;;  %v8476_v27 = vld [vmem:[#allocation13 + $0x198] sm:$0xff] }
 0x59c   : > { %10264 = vst [vmem:[#allocation22_spill] sm:$0xff] %v8461_v0  ;;  %3353 = vmatpush.msrb.mxu2 %v8476_v27  ;;  %v8479_v0 = vld [vmem:[#allocation13 + $0x210] sm:$0xff] }
 0x59d   : > { %10265 = vst [vmem:[#allocation23_spill] sm:$0xff] %v8464_v26  ;;  %3345 = vmatpush.msrb.mxu1 %v8479_v0  ;;  %v8482_v26 = vld [vmem:[#allocation13 + $0x218] sm:$0xff] }
 0x59e   : > { %10266 = vst [vmem:[#allocation24_spill] sm:$0xff] %v8467_v15  ;;  %3385 = vmatpush.msrb.mxu3 %v8482_v26  ;;  %v8485_v15 = vld [vmem:[#allocation13 + $0x170] sm:$0xff] }
 0x59f   : > { %10267 = vst [vmem:[#allocation25_spill] sm:$0xff] %v8470_v42  ;;  %3314 = vmatpush.msrb.mxu0 %v8485_v15  ;;  %v8488_v42 = vld [vmem:[#allocation13 + $0x178] sm:$0xff] }
 0x5a0   : > { %10268 = vst [vmem:[#allocation26_spill] sm:$0xff] %v8473_v44  ;;  %3354 = vmatpush.msrb.mxu2 %v8488_v42  ;;  %v8491_v44 = vld [vmem:[#allocation13 + $0x150] sm:$0xff]  ;;  %v2932_v52 = vpop.f32.mrf.mxu3 }
 0x5a1   : > { %10269 = vst [vmem:[#allocation132_spill] sm:$0xff] %v8476_v27  ;;  %3315 = vmatpush.msrb.mxu0 %v8491_v44  ;;  %v8494_v27 = vld [vmem:[#allocation13 + $0x158] sm:$0xff] }
 0x5a2   : > { %10270 = vst [vmem:[#allocation133_spill] sm:$0xff] %v8479_v0  ;;  %3355 = vmatpush.msrb.mxu2 %v8494_v27  ;;  %v8497_v0 = vld [vmem:[#allocation13 + $0x130] sm:$0xff] }
 0x5a3   : > { %10271 = vst [vmem:[#allocation134_spill] sm:$0xff] %v8482_v26  ;;  %3316 = vmatpush.msrb.mxu0 %v8497_v0  ;;  %v8500_v26 = vld [vmem:[#allocation13 + $0x138] sm:$0xff] }
 0x5a4   : > { %10272 = vst [vmem:[#allocation135_spill] sm:$0xff] %v8485_v15  ;;  %3356 = vmatpush.msrb.mxu2 %v8500_v26  ;;  %v8503_v15 = vld [vmem:[#allocation13 + $0x110] sm:$0xff] }
 0x5a5   : > { %10273 = vst [vmem:[#allocation136_spill] sm:$0xff] %v8488_v42  ;;  %3317 = vmatpush.msrb.mxu0 %v8503_v15  ;;  %v8506_v42 = vld [vmem:[#allocation13 + $0x118] sm:$0xff] }
 0x5a6   : > { %10274 = vst [vmem:[#allocation137_spill] sm:$0xff] %v8491_v44  ;;  %3357 = vmatpush.msrb.mxu2 %v8506_v42  ;;  %v8509_v44 = vld [vmem:[#allocation13 + $0xf0] sm:$0xff] }
 0x5a7   : > { %10275 = vst [vmem:[#allocation138_spill] sm:$0xff] %v8494_v27  ;;  %3318 = vmatpush.msrb.mxu0 %v8509_v44  ;;  %v8512_v27 = vld [vmem:[#allocation13 + $0xf8] sm:$0xff] }
 0x5a8   : > { %10276 = vst [vmem:[#allocation139_spill] sm:$0xff] %v8497_v0  ;;  %3358 = vmatpush.msrb.mxu2 %v8512_v27  ;;  %v8515_v0 = vld [vmem:[#allocation13 + $0xd0] sm:$0xff]  ;;  %v3012_v54 = vpop.f32.mrf.mxu3 }
 0x5a9   : > { %10277 = vst [vmem:[#allocation140_spill] sm:$0xff] %v8500_v26  ;;  %3319 = vmatpush.msrb.mxu0 %v8515_v0  ;;  %v8518_v26 = vld [vmem:[#allocation13 + $0xd8] sm:$0xff] }
 0x5aa   : > { %10278 = vst [vmem:[#allocation141_spill] sm:$0xff] %v8503_v15  ;;  %3359 = vmatpush.msrb.mxu2 %v8518_v26  ;;  %v8521_v15 = vld [vmem:[#allocation13 + $0xb0] sm:$0xff] }
 0x5ab   : > { %10279 = vst [vmem:[#allocation142_spill] sm:$0xff] %v8506_v42  ;;  %3320 = vmatpush.msrb.mxu0 %v8521_v15  ;;  %v8524_v42 = vld [vmem:[#allocation13 + $0xb8] sm:$0xff] }
 0x5ac   : > { %10280 = vst [vmem:[#allocation143_spill] sm:$0xff] %v8509_v44  ;;  %3360 = vmatpush.msrb.mxu2 %v8524_v42  ;;  %v8527_v44 = vld [vmem:[#allocation13 + $0x90] sm:$0xff] }
 0x5ad   : > { %10281 = vst [vmem:[#allocation144_spill] sm:$0xff] %v8512_v27  ;;  %3321 = vmatpush.msrb.mxu0 %v8527_v44  ;;  %v8530_v27 = vld [vmem:[#allocation13 + $0x98] sm:$0xff] }
 0x5ae   : > { %10282 = vst [vmem:[#allocation145_spill] sm:$0xff] %v8515_v0  ;;  %3361 = vmatpush.msrb.mxu2 %v8530_v27  ;;  %v8533_v0 = vld [vmem:[#allocation13 + $0x70] sm:$0xff] }
 0x5af   : > { %10283 = vst [vmem:[#allocation146_spill] sm:$0xff] %v8518_v26  ;;  %3322 = vmatpush.msrb.mxu0 %v8533_v0  ;;  %v8536_v26 = vld [vmem:[#allocation13 + $0x78] sm:$0xff] }
 0x5b0   : > { %10284 = vst [vmem:[#allocation147_spill] sm:$0xff] %v8521_v15  ;;  %3362 = vmatpush.msrb.mxu2 %v8536_v26  ;;  %v8539_v15 = vld [vmem:[#allocation13 + $0x50] sm:$0xff] }
 0x5b1   : > { %10285 = vst [vmem:[#allocation148_spill] sm:$0xff] %v8524_v42  ;;  %3323 = vmatpush.msrb.mxu0 %v8539_v15  ;;  %v8542_v42 = vld [vmem:[#allocation13 + $0x58] sm:$0xff] }
 0x5b2   : > { %10286 = vst [vmem:[#allocation149_spill] sm:$0xff] %v8527_v44  ;;  %3363 = vmatpush.msrb.mxu2 %v8542_v42  ;;  %v8545_v44 = vld [vmem:[#allocation13 + $0x30] sm:$0xff] }
 0x5b3   : > { %10287 = vst [vmem:[#allocation150_spill] sm:$0xff] %v8530_v27  ;;  %3324 = vmatpush.msrb.mxu0 %v8545_v44  ;;  %v8548_v27 = vld [vmem:[#allocation13 + $0x38] sm:$0xff] }
 0x5b4   : > { %10288 = vst [vmem:[#allocation151_spill] sm:$0xff] %v8533_v0  ;;  %3364 = vmatpush.msrb.mxu2 %v8548_v27  ;;  %v8551_v0 = vld [vmem:[#allocation13 + $0x10] sm:$0xff]  ;;  %v2872_v51 = vpop.f32.mrf.mxu0 }
 0x5b5   : > { %10289 = vst [vmem:[#allocation152_spill] sm:$0xff] %v8536_v26  ;;  %3325 = vmatpush.msrb.mxu0 %v8551_v0  ;;  %v8554_v26 = vld [vmem:[#allocation13 + $0x18] sm:$0xff] }
 0x5b6   : > { %10290 = vst [vmem:[#allocation153_spill] sm:$0xff] %v8539_v15  ;;  %3365 = vmatpush.msrb.mxu2 %v8554_v26  ;;  %v2892_v15 = vpop.f32.mrf.mxu1 }
 0x5b7   : > { %10291 = vst [vmem:[#allocation154_spill] sm:$0xff] %v8542_v42  ;;  %v2873_v42 = vadd.f32 %v2872_v51, %v10155_v53  ;;  %v10297_v51 = vld [vmem:[#allocation31_spill] sm:$0xff] }
 0x5b8   : > { %10292 = vst [vmem:[#allocation155_spill] sm:$0xff] %v8545_v44 }
 0x5b9   : > { %10293 = vst [vmem:[#allocation156_spill] sm:$0xff] %v8548_v27  ;;  %v2893_v34 = vadd.f32 %v2892_v15, %v2873_v42 }
 0x5ba   : > { %10294 = vst [vmem:[#allocation157_spill] sm:$0xff] %v8551_v0  ;;  %v2912_v32 = vpop.f32.mrf.mxu2  ;;  %v10296_v0 = vld [vmem:[#allocation116_spill] sm:$0xff] }
 0x5bb   : > { %10295 = vst [vmem:[#allocation158_spill] sm:$0xff] %v8554_v26  ;;  %v4027_v44 = vmul.f32 -1.442695, %v2893_v34  ;;  %v2913_v27 = vadd.f32 %v2912_v32, %v10156_v37  ;;  %v504_v18 = vadd.f32 %v10296_v0, %v10157_v40 }
 0x5bd   : > { %4273 = vpow2.f32 %v4027_v44  ;;  %v2933_v36 = vadd.f32 %v2932_v52, %v2913_v27  ;;  %v2952_v52 = vpop.f32.mrf.mxu0 }
 0x5be   : > { %v2972_v62 = vpop.f32.mrf.mxu1 }
 0x5bf   : > { %v4028_v41 = vmul.f32 -1.442695, %v2933_v36  ;;  %v10298_v36 = vld [vmem:[#allocation130_spill] sm:$0xff] }
 0x5c1   : > { %4275 = vpow2.f32 %v4028_v41 }
 0x5c2   : > { %v2992_v38 = vpop.f32.mrf.mxu2 }
 0x5c3   : > { %v4274_v26 = vpop.eup %4273  ;;  %v2993_v53 = vadd.f32 %v2992_v38, %v10297_v51 }
 0x5c4   : > { %v3018_v16 = vadd.f32 1.0, %v4274_v26  ;;  %v3160_v27 = vpop.f32.mrf.mxu3  ;;  %v10300_v26 = vld [vmem:[#allocation32_spill] sm:$0xff] }
 0x5c5   : > { %v3013_v15 = vadd.f32 %v3012_v54, %v2993_v53  ;;  %v2953_v40 = vadd.f32 %v2952_v52, %v10300_v26  ;;  %v10301_v52 = vld [vmem:[#allocation126_spill] sm:$0xff] }
 0x5c6   : > { %v3120_v6 = vpop.f32.mrf.mxu1  ;;  %4277 = vrcp.f32 %v3018_v16  ;;  %v3030_v55 = vand.u32 2147483648, %v3018_v16  ;;  %vm3024_vm6 = vweird.f32 %v3018_v16 }
 0x5c7   : > { %v3164_v21 = vadd.f32 %v3120_v6, %v504_v18  ;;  %v4276_v42 = vpop.eup %4275  ;;  %v4029_v44 = vmul.f32 -1.442695, %v3013_v15  ;;  %v10299_v18 = vld [vmem:[#allocation120_spill] sm:$0xff]  ;;  %v2973_v53 = vadd.f32 %v2972_v62, %v2953_v40 }
 0x5c8   : > { %v3037_v32 = vadd.f32 1.0, %v4276_v42  ;;  %v586_v6 = vadd.f32 %v10299_v18, %v10298_v36  ;;  %v3028_v36 = vand.u32 2147483647, %v3018_v16 }
 0x5c9   : > { %v4031_v34 = vmul.f32 -1.442695, %v3164_v21 }
 0x5ca   : > { %v3166_v37 = vadd.f32 %v3160_v27, %v586_v6  ;;  %v10302_v27 = vld [vmem:[#allocation115_spill] sm:$0xff]  ;;  %vm3043_vm9 = vweird.f32 %v3037_v32  ;;  %vm3029_vm10 = vcmp.eq.f32.partialorder %v3028_v36, 8.507059e+37 }
 0x5cb   : > { %4279 = vpow2.f32 %v4031_v34  ;;  %v463_v6 = vadd.f32 %v10302_v27, %v10301_v52 }
 0x5cc   : > { %4281 = vpow2.f32 %v4029_v44  ;;  %v4278_v0 = vpop.eup %4277  ;;  %v4032_v3 = vmul.f32 -1.442695, %v3166_v37  ;;  %v3047_v37 = vand.u32 2147483647, %v3037_v32 }
 0x5cd   : > { %4283 = vrcp.f32 %v3037_v32  ;;  %v3020_v41 = vmul.f32 %v4278_v0, %v3018_v16  ;;  %vm3025_vm5 = vweird.f32 %v4278_v0  ;;  %v3031_v16 = vor.u32 1.1754944e-38, %v3030_v55 }
 0x5ce   : > { %vm8569_vm7 = vmor %vm3024_vm6, %vm3025_vm5  ;;  %vm3048_vm12 = vcmp.eq.f32.partialorder %v3047_v37, 8.507059e+37 }
 0x5cf   : > { %v3021_v38 = vsub.f32 1.0, %v3020_v41  ;;  %v3049_v41 = vand.u32 2147483648, %v3037_v32 }
 0x5d1   : > { %v4280_v51 = vpop.eup %4279  ;;  %v3022_v54 = vmul.f32 %v4278_v0, %v3021_v38 }
 0x5d2   : > { %v4282_v21 = vpop.eup %4281  ;;  %v8565_v33 = vadd.f32 1.0, %v4280_v51 }
 0x5d3   : > { %v4284_v15 = vpop.eup %4283  ;;  %v3057_v42 = vadd.f32 1.0, %v4282_v21  ;;  %v3023_v44 = vadd.f32 %v4278_v0, %v3022_v54 }
 0x5d4   : > { %v3039_v34 = vmul.f32 %v4284_v15, %v3037_v32  ;;  %v3100_v62 = vpop.f32.mrf.mxu0  ;;  %vm3044_vm8 = vweird.f32 %v4284_v15  ;;  %vm3195_vm2 = vweird.f32 %v8565_v33 }
 0x5d5   : > { %4285 = vrcp.f32 %v3057_v42  ;;  %v3027_v51 = vsel %vm8569_vm7, %v4278_v0, %v3023_v44  ;;  %v3163_v21 = vadd.f32 %v3100_v62, %v463_v6  ;;  %vm3045_vm11 = vmor %vm3043_vm9, %vm3044_vm8  ;;  %vm3063_vm14 = vweird.f32 %v3057_v42 }
 0x5d6   : > { %v3040_v18 = vsub.f32 1.0, %v3039_v34  ;;  %4287 = vtanh.f32 %v2973_v53  ;;  %v3050_v34 = vor.u32 1.1754944e-38, %v3049_v41  ;;  %v3032_v27 = vsel %vm3029_vm10, %v3031_v16, %v3027_v51 }
 0x5d7   : > { %4289 = vpow2.f32 %v4032_v3  ;;  %v4030_v52 = vmul.f32 -1.442695, %v3163_v21  ;;  %v3067_v62 = vand.u32 2147483647, %v3057_v42 }
 0x5d8   : > { %v3041_v38 = vmul.f32 %v4284_v15, %v3040_v18  ;;  %4291 = vrcp.f32 %v8565_v33 }
 0x5d9   : > { %4293 = vpow2.f32 %v4030_v52  ;;  %vm3068_vm0 = vcmp.eq.f32.partialorder %v3067_v62, 8.507059e+37 }
 0x5da   : > { %v3042_v53 = vadd.f32 %v4284_v15, %v3041_v38 }
 0x5db   : > { %v4286_v54 = vpop.eup %4285  ;;  %v3140_v21 = vpop.f32.mrf.mxu2 }
 0x5dc   : > { %v4288_v26 = vpop.eup %4287  ;;  %v3046_v3 = vsel %vm3045_vm11, %v4284_v15, %v3042_v53  ;;  %v3059_v18 = vmul.f32 %v4286_v54, %v3057_v42  ;;  %vm3064_vm13 = vweird.f32 %v4286_v54  ;;  %v3069_v15 = vand.u32 2147483648, %v3057_v42 }
 0x5dd   : > { %v4290_v17 = vpop.eup %4289  ;;  %v3051_v49 = vsel %vm3048_vm12, %v3050_v34, %v3046_v3  ;;  %v3074_v44 = vmul.f32 %v4288_v26, %v3032_v27  ;;  %vm3065_vm15 = vmor %vm3063_vm14, %vm3064_vm13  ;;  %v10305_v34 = vld [vmem:[#allocation128_spill] sm:$0xff] }
 0x5de   : > { %v8576_v0 = vpop.eup %4291  ;;  %v3073_v55 = vmul.f32 %v3051_v49, %v7987_v11  ;;  %v3060_v32 = vsub.f32 1.0, %v3059_v18  ;;  %v8583_v40 = vadd.f32 1.0, %v4290_v17  ;;  %v3070_v26 = vor.u32 1.1754944e-38, %v3069_v15  ;;  %v10308_v15 = vld [vmem:[#allocation170_spill] sm:$0xff] }
 0x5df   : > { %v3191_v41 = vmul.f32 %v8576_v0, %v8565_v33  ;;  %v4294_v52 = vpop.eup %4293  ;;  %v545_v27 = vadd.f32 %v10305_v34, %v5859_v5  ;;  %vm3196_vm1 = vweird.f32 %v8576_v0 }
 0x5e0   : > { %v8579_v36 = vadd.f32 %v3074_v44, %v3073_v55  ;;  %v3061_v6 = vmul.f32 %v4286_v54, %v3060_v32  ;;  %v3170_v38 = vadd.f32 1.0, %v4294_v52  ;;  %v3201_v44 = vand.u32 2147483648, %v8565_v33  ;;  %vm8603_vm3 = vmor %vm3195_vm2, %vm3196_vm1 }
 0x5e1   : > { %v3192_v11 = vsub.f32 1.0, %v3191_v41  ;;  %v3165_v18 = vadd.f32 %v3140_v21, %v545_v27  ;;  %vm3215_vm10 = vweird.f32 %v8583_v40 }
 0x5e2   : > { %4295 = vtanh.f32 %v8579_v36  ;;  %v3062_v37 = vadd.f32 %v4286_v54, %v3061_v6  ;;  %v3182_v41 = vand.u32 2147483648, %v3170_v38  ;;  %v3202_v52 = vor.u32 1.1754944e-38, %v3201_v44  ;;  %v10317_v44 = vld [vmem:[#allocation94_spill] sm:$0xff] }
 0x5e3   : > { %4297 = vrcp.f32 %v8583_v40  ;;  %v3193_v16 = vmul.f32 %v8576_v0, %v3192_v11  ;;  %vm3176_vm5 = vweird.f32 %v3170_v38 }
 0x5e4   : > { %v3066_v49 = vsel %vm3065_vm15, %v4286_v54, %v3062_v37  ;;  %4299 = vrcp.f32 %v3170_v38 }
 0x5e5   : > { %v3071_v17 = vsel %vm3068_vm0, %v3070_v26, %v3066_v49  ;;  %v3194_v55 = vadd.f32 %v8576_v0, %v3193_v16  ;;  %4301 = vtanh.f32 %v3165_v18  ;;  %v10310_v26 = vld [vmem:[#allocation172_spill] sm:$0xff]  ;;  %v10314_v18 = vld [vmem:[#allocation61_spill] sm:$0xff] }
 0x5e8   : > { %v4296_v51 = vpop.eup %4295 }
 0x5e9   : > { %v3077_v53 = vmul.f32 %v4296_v51, %v3071_v17  ;;  %v8590_v3 = vpop.eup %4297  ;;  %v10311_v51 = vld [vmem:[#allocation173_spill] sm:$0xff] }
 0x5ea   : > { %v4300_v42 = vpop.eup %4299  ;;  %v3211_v32 = vmul.f32 %v8590_v3, %v8583_v40  ;;  %vm3216_vm9 = vweird.f32 %v8590_v3 }
 0x5eb   : > { %3266 = vmatmul.f32.vlgmr.msra.gmra.mxu1 %v3077_v53  ;;  %3306 = vmatmul.f32.vlgmr.msra.gmra.mxu3 %v3077_v53  ;;  %v3172_v54 = vmul.f32 %v4300_v42, %v3170_v38  ;;  %vm3177_vm4 = vweird.f32 %v4300_v42  ;;  %vm3217_vm11 = vmor %vm3215_vm10, %vm3216_vm9 }
 0x5ec   : > { %3478 = vmatpush.msra.mxu1 %v8003_v63  ;;  %3518 = vmatpush.msra.mxu3 %v8006_v29  ;;  %v3199_v63 = vand.u32 2147483647, %v8565_v33  ;;  %v3212_v62 = vsub.f32 1.0, %v3211_v32  ;;  %v10309_v33 = vld [vmem:[#allocation171_spill] sm:$0xff]  ;;  %vm3178_vm7 = vmor %vm3176_vm5, %vm3177_vm4  ;;  %v10318_v32 = vld [vmem:[#allocation80_spill] sm:$0xff] }
 0x5ed   : > { %v3173_v6 = vsub.f32 1.0, %v3172_v54  ;;  %v10315_v54 = vld [vmem:[#allocation77_spill] sm:$0xff]  ;;  %v10320_v29 = vld [vmem:[#allocation42_spill] sm:$0xff] }
 0x5ee   : > { %3479 = vmatpush.msra.mxu1 %v8012_v2  ;;  %3519 = vmatpush.msra.mxu3 %v8015_v46  ;;  %v3180_v2 = vand.u32 2147483647, %v3170_v38  ;;  %v3198_v46 = vsel %vm8603_vm3, %v8576_v0, %v3194_v55  ;;  %vm3200_vm6 = vcmp.eq.f32.partialorder %v3199_v63, 8.507059e+37  ;;  %v4302_v0 = vpop.eup %4301  ;;  %v3213_v16 = vmul.f32 %v8590_v3, %v3212_v62  ;;  %v10316_v55 = vld [vmem:[#allocation81_spill] sm:$0xff] }
 0x5ef   : > { %v3174_v37 = vmul.f32 %v4300_v42, %v3173_v6  ;;  %v3203_v49 = vsel %vm3200_vm6, %v3202_v52, %v3198_v46  ;;  %v10319_v6 = vld [vmem:[#allocation101_spill] sm:$0xff]  ;;  %v4956_v46 = vld [vmem:[#allocation10 + $0x50] sm:$0xff]  ;;  %v10323_v52 = vld [vmem:[#allocation58_spill] sm:$0xff] }
 0x5f0   : > { %3480 = vmatpush.msra.mxu1 %v8023_v23  ;;  %3520 = vmatpush.msra.mxu3 %v10308_v15  ;;  %v3183_v23 = vor.u32 1.1754944e-38, %v3182_v41  ;;  %vm3181_vm8 = vcmp.eq.f32.partialorder %v3180_v2, 8.507059e+37  ;;  %v3225_v38 = vmul.f32 %v3203_v49, %v8068_v61  ;;  %v3214_v34 = vadd.f32 %v8590_v3, %v3213_v16  ;;  %v10313_v61 = vld [vmem:[#allocation78_spill] sm:$0xff]  ;;  %v4954_v41 = vld [vmem:[#allocation10 + $0x70] sm:$0xff]  ;;  %v10322_v2 = vld [vmem:[#allocation41_spill] sm:$0xff] }
 0x5f1   : > { %v3175_v11 = vadd.f32 %v4300_v42, %v3174_v37  ;;  %v4953_v63 = vld [vmem:[#allocation10 + $0x60] sm:$0xff]  ;;  %v10321_v15 = vld [vmem:[#allocation59_spill] sm:$0xff] }
 0x5f2   : > { %3481 = vmatpush.msra.mxu1 %v8040_v48  ;;  %3521 = vmatpush.msra.mxu3 %v10309_v33  ;;  %v4955_v37 = vld [vmem:[#allocation10 + $0x40] sm:$0xff] }
 0x5f3   : > { %3346 = vmatmul.f32.vlgmr.msrb.gmra.mxu1 %v3077_v53  ;;  %3386 = vmatmul.f32.vlgmr.msrb.gmra.mxu3 %v3077_v53  ;;  %v3179_v17 = vsel %vm3178_vm7, %v4300_v42, %v3175_v11  ;;  %v4944_v42 = vld [vmem:[#allocation10 + $0x110] sm:$0xff]  ;;  %v4957_v62 = vld [vmem:[#allocation10 + $0x20] sm:$0xff] }
 0x5f4   : > { %3482 = vmatpush.msra.mxu1 %v10310_v26  ;;  %3522 = vmatpush.msra.mxu3 %v10311_v51  ;;  %v3184_v48 = vsel %vm3181_vm8, %v3183_v23, %v3179_v17  ;;  %v10324_v33 = vld [vmem:[#allocation33_spill] sm:$0xff]  ;;  %v4958_v11 = vld [vmem:[#allocation10 + $0x30] sm:$0xff]  ;;  %v10325_v23 = vld [vmem:[#allocation34_spill] sm:$0xff] }
 0x5f5   : > { %v3226_v21 = vmul.f32 %v4302_v0, %v3184_v48  ;;  %v4959_v49 = vld [vmem:[#allocation10] sm:$0xff]  ;;  %v4960_v51 = vld [vmem:[#allocation10 + $0x10] sm:$0xff] }
 0x5f6   : > { %3483 = vmatpush.msra.mxu1 %v8054_v4  ;;  %3523 = vmatpush.msra.mxu3 %v8057_v50  ;;  %v3221_v4 = vand.u32 2147483648, %v8583_v40  ;;  %v10312_v50 = vld [vmem:[#allocation62_spill] sm:$0xff]  ;;  %v10326_v26 = vld [vmem:[#allocation37_spill] sm:$0xff]  ;;  %v10327_v17 = vld [vmem:[#allocation40_spill] sm:$0xff] }
 0x5f7   : > { %v8622_v53 = vadd.f32 %v3226_v21, %v3225_v38  ;;  %v10328_v0 = vld [vmem:[#allocation45_spill] sm:$0xff]  ;;  %v10329_v16 = vld [vmem:[#allocation46_spill] sm:$0xff] }
 0x5f8   : > { %3484 = vmatpush.msra.mxu1 %v8062_v10  ;;  %3524 = vmatpush.msra.mxu3 %v8065_v57  ;;  %v3219_v10 = vand.u32 2147483647, %v8583_v40  ;;  %v3218_v57 = vsel %vm3217_vm11, %v8590_v3, %v3214_v34  ;;  %v4935_v3 = vld [vmem:[#allocation10 + $0x180] sm:$0xff] }
 0x5f9   : > { %4303 = vtanh.f32 %v8622_v53  ;;  %v10330_v48 = vld [vmem:[#allocation49_spill] sm:$0xff]  ;;  %v10331_v38 = vld [vmem:[#allocation50_spill] sm:$0xff] }
 0x5fa   : > { %3485 = vmatpush.msra.mxu1 %v8070_v9  ;;  %3525 = vmatpush.msra.mxu3 %v8073_v1  ;;  %v3222_v9 = vor.u32 1.1754944e-38, %v3221_v4  ;;  %vm3220_vm12 = vcmp.eq.f32.partialorder %v3219_v10, 8.507059e+37  ;;  %v10332_v21 = vld [vmem:[#allocation53_spill] sm:$0xff]  ;;  %v10333_v34 = vld [vmem:[#allocation54_spill] sm:$0xff]  ;;  %v10335_v10 = vld [vmem:[#allocation60_spill] sm:$0xff] }
 0x5fb   : > { %v10334_v4 = vld [vmem:[#allocation57_spill] sm:$0xff] }
 0x5fc   : > { %3486 = vmatpush.msra.mxu1 %v8080_v39  ;;  %3526 = vmatpush.msra.mxu3 %v10312_v50  ;;  %v3223_v27 = vsel %vm3220_vm12, %v3222_v9, %v3218_v57  ;;  %v4929_v39 = vld [vmem:[#allocation10 + $0x1e0] sm:$0xff]  ;;  %v10339_v9 = vld [vmem:[#allocation72_spill] sm:$0xff] }
 0x5fd   : > { %v10336_v50 = vld [vmem:[#allocation65_spill] sm:$0xff]  ;;  %v10337_v57 = vld [vmem:[#allocation66_spill] sm:$0xff] }
 0x5fe   : > { %3487 = vmatpush.msra.mxu1 %v10313_v61  ;;  %3527 = vmatpush.msra.mxu3 %v8091_v19  ;;  %v4930_v19 = vld [vmem:[#allocation10 + $0x1f0] sm:$0xff]  ;;  %v10338_v61 = vld [vmem:[#allocation69_spill] sm:$0xff] }
 0x5ff   : > { %v4304_v1 = vpop.eup %4303 }
 0x600   : > { %3488 = vmatpush.msra.mxu1 %v8095_v12  ;;  %3528 = vmatpush.msra.mxu3 %v8098_v13  ;;  %v8639_v40 = vmul.f32 %v4304_v1, %v3223_v27  ;;  %v4931_v12 = vld [vmem:[#allocation10 + $0x1c0] sm:$0xff]  ;;  %v4932_v13 = vld [vmem:[#allocation10 + $0x1d0] sm:$0xff] }
 0x601   : > { %v10340_v1 = vld [vmem:[#allocation73_spill] sm:$0xff]  ;;  %v10341_v27 = vld [vmem:[#allocation76_spill] sm:$0xff] }
 0x602   : > { %3489 = vmatpush.msra.mxu1 %v8101_v45  ;;  %3529 = vmatpush.msra.mxu3 %v8104_v30  ;;  %v4933_v45 = vld [vmem:[#allocation10 + $0x1a0] sm:$0xff]  ;;  %v4934_v30 = vld [vmem:[#allocation10 + $0x1b0] sm:$0xff] }
 0x603   : > { %3246 = vmatmul.f32.vlgmr.msra.gmra.mxu0 %v8639_v40  ;;  %3286 = vmatmul.f32.vlgmr.msra.gmra.mxu2 %v8639_v40 }
 0x604   : > { %3458 = vmatpush.msra.mxu0 %v4929_v39  ;;  %3498 = vmatpush.msra.mxu2 %v4930_v19  ;;  %v10343_v39 = vld [vmem:[#allocation84_spill] sm:$0xff]  ;;  %v10344_v19 = vld [vmem:[#allocation85_spill] sm:$0xff] }
 0x605   : > { %3490 = vmatpush.msra.mxu1 %v8109_v31  ;;  %3530 = vmatpush.msra.mxu3 %v8112_v43  ;;  %v4936_v31 = vld [vmem:[#allocation10 + $0x190] sm:$0xff]  ;;  %v4937_v43 = vld [vmem:[#allocation10 + $0x160] sm:$0xff] }
 0x606   : > { %3459 = vmatpush.msra.mxu0 %v4931_v12  ;;  %3499 = vmatpush.msra.mxu2 %v4932_v13  ;;  %v10345_v12 = vld [vmem:[#allocation88_spill] sm:$0xff]  ;;  %v10346_v13 = vld [vmem:[#allocation89_spill] sm:$0xff] }
 0x607   : > { %3491 = vmatpush.msra.mxu1 %v8119_v58  ;;  %3531 = vmatpush.msra.mxu3 %v8122_v24  ;;  %v4938_v58 = vld [vmem:[#allocation10 + $0x170] sm:$0xff]  ;;  %v4939_v24 = vld [vmem:[#allocation10 + $0x140] sm:$0xff] }
 0x608   : > { %3460 = vmatpush.msra.mxu0 %v4933_v45  ;;  %3500 = vmatpush.msra.mxu2 %v4934_v30  ;;  %v10347_v45 = vld [vmem:[#allocation92_spill] sm:$0xff]  ;;  %v10348_v30 = vld [vmem:[#allocation35_spill] sm:$0xff] }
 0x609   : > { %3492 = vmatpush.msra.mxu1 %v8127_v35  ;;  %3532 = vmatpush.msra.mxu3 %v8130_v60  ;;  %v4940_v35 = vld [vmem:[#allocation10 + $0x150] sm:$0xff]  ;;  %v4941_v60 = vld [vmem:[#allocation10 + $0x120] sm:$0xff] }
 0x60a   : > { %3461 = vmatpush.msra.mxu0 %v4935_v3  ;;  %3501 = vmatpush.msra.mxu2 %v4936_v31  ;;  %v10349_v3 = vld [vmem:[#allocation36_spill] sm:$0xff]  ;;  %v10350_v31 = vld [vmem:[#allocation93_spill] sm:$0xff] }
 0x60b   : > { %3493 = vmatpush.msra.mxu1 %v8135_v47  ;;  %3533 = vmatpush.msra.mxu3 %v8138_v20  ;;  %v4942_v47 = vld [vmem:[#allocation10 + $0x130] sm:$0xff]  ;;  %v4943_v20 = vld [vmem:[#allocation10 + $0x100] sm:$0xff] }
 0x60c   : > { %3326 = vmatmul.f32.vlgmr.msrb.gmra.mxu0 %v8639_v40  ;;  %3366 = vmatmul.f32.vlgmr.msrb.gmra.mxu2 %v8639_v40 }
 0x60d   : > { %3462 = vmatpush.msra.mxu0 %v4937_v43  ;;  %3494 = vmatmul.f32.vlgmr.msra.gmra.mxu1 %v8639_v40  ;;  %v10351_v43 = vld [vmem:[#allocation43_spill] sm:$0xff] }
 0x60e   : > { %3502 = vmatpush.msra.mxu2 %v4938_v58  ;;  %3534 = vmatmul.f32.vlgmr.msra.gmra.mxu3 %v8639_v40  ;;  %v10352_v58 = vld [vmem:[#allocation97_spill] sm:$0xff] }
 0x60f   : > { %3463 = vmatpush.msra.mxu0 %v4939_v24  ;;  %3625 = vmatpush.msrb.mxu1 %v8150_v56  ;;  %v4945_v56 = vld [vmem:[#allocation10 + $0xe0] sm:$0xff]  ;;  %v10353_v24 = vld [vmem:[#allocation44_spill] sm:$0xff] }
 0x610   : > { %3503 = vmatpush.msra.mxu2 %v4940_v35  ;;  %3665 = vmatpush.msrb.mxu3 %v8154_v25  ;;  %v4946_v25 = vld [vmem:[#allocation10 + $0xf0] sm:$0xff] }
 0x611   : > { %3464 = vmatpush.msra.mxu0 %v4941_v60  ;;  %3626 = vmatpush.msrb.mxu1 %v8158_v14  ;;  %v4947_v14 = vld [vmem:[#allocation10 + $0xc0] sm:$0xff]  ;;  %v10354_v35 = vld [vmem:[#allocation100_spill] sm:$0xff]  ;;  %v10355_v60 = vld [vmem:[#allocation47_spill] sm:$0xff] }
 0x612   : > { %3504 = vmatpush.msra.mxu2 %v4942_v47  ;;  %3666 = vmatpush.msrb.mxu3 %v8162_v8  ;;  %v4948_v8 = vld [vmem:[#allocation10 + $0xd0] sm:$0xff] }
 0x613   : > { %3465 = vmatpush.msra.mxu0 %v4943_v20  ;;  %3627 = vmatpush.msrb.mxu1 %v8166_v22  ;;  %v4949_v22 = vld [vmem:[#allocation10 + $0xa0] sm:$0xff]  ;;  %v10356_v47 = vld [vmem:[#allocation104_spill] sm:$0xff] }
 0x614   : > { %3505 = vmatpush.msra.mxu2 %v4944_v42  ;;  %3667 = vmatpush.msrb.mxu3 %v8170_v7  ;;  %v4950_v7 = vld [vmem:[#allocation10 + $0xb0] sm:$0xff]  ;;  %v10358_v42 = vld [vmem:[#allocation105_spill] sm:$0xff] }
 0x615   : > { %3466 = vmatpush.msra.mxu0 %v4945_v56  ;;  %3628 = vmatpush.msrb.mxu1 %v8174_v59  ;;  %v4951_v59 = vld [vmem:[#allocation10 + $0x80] sm:$0xff]  ;;  %v10357_v20 = vld [vmem:[#allocation48_spill] sm:$0xff]  ;;  %v10359_v56 = vld [vmem:[#allocation51_spill] sm:$0xff] }
 0x616   : > { %3506 = vmatpush.msra.mxu2 %v4946_v25  ;;  %3668 = vmatpush.msrb.mxu3 %v8178_v28  ;;  %v4952_v28 = vld [vmem:[#allocation10 + $0x90] sm:$0xff] }
 0x617   : > { %3467 = vmatpush.msra.mxu0 %v4947_v14  ;;  %3629 = vmatpush.msrb.mxu1 %v10314_v18  ;;  %v10360_v25 = vld [vmem:[#allocation108_spill] sm:$0xff]  ;;  %v10362_v18 = vld [vmem:[#allocation109_spill] sm:$0xff] }
 0x618   : > { %3507 = vmatpush.msra.mxu2 %v4948_v8  ;;  %3669 = vmatpush.msrb.mxu3 %v10315_v54  ;;  %v10361_v14 = vld [vmem:[#allocation52_spill] sm:$0xff]  ;;  %v10363_v8 = vld [vmem:[#allocation55_spill] sm:$0xff] }
 0x619   : > { %3468 = vmatpush.msra.mxu0 %v4949_v22  ;;  %3630 = vmatpush.msrb.mxu1 %v10316_v55  ;;  %v10364_v54 = vld [vmem:[#allocation56_spill] sm:$0xff]  ;;  %v10365_v22 = vld [vmem:[#allocation63_spill] sm:$0xff] }
 0x61a   : > { %3508 = vmatpush.msra.mxu2 %v4950_v7  ;;  %3670 = vmatpush.msrb.mxu3 %v10317_v44  ;;  %v10366_v55 = vld [vmem:[#allocation64_spill] sm:$0xff]  ;;  %v10367_v7 = vld [vmem:[#allocation67_spill] sm:$0xff] }
 0x61b   : > { %3469 = vmatpush.msra.mxu0 %v4951_v59  ;;  %3631 = vmatpush.msrb.mxu1 %v10318_v32  ;;  %v10368_v44 = vld [vmem:[#allocation68_spill] sm:$0xff]  ;;  %v10369_v59 = vld [vmem:[#allocation70_spill] sm:$0xff]  ;;  %v10370_v32 = vld [vmem:[#allocation71_spill] sm:$0xff] }
 0x61c   : > { %3509 = vmatpush.msra.mxu2 %v4952_v28  ;;  %3671 = vmatpush.msrb.mxu3 %v10319_v6  ;;  %v10371_v28 = vld [vmem:[#allocation74_spill] sm:$0xff]  ;;  %v10372_v6 = vld [vmem:[#allocation75_spill] sm:$0xff] }
 0x61d   : > { %3470 = vmatpush.msra.mxu0 %v4953_v63  ;;  %3632 = vmatpush.msrb.mxu1 %v10320_v29  ;;  %v10373_v63 = vld [vmem:[#allocation82_spill] sm:$0xff]  ;;  %v10374_v29 = vld [vmem:[#allocation83_spill] sm:$0xff] }
 0x61e   : > { %3510 = vmatpush.msra.mxu2 %v4954_v41  ;;  %3672 = vmatpush.msrb.mxu3 %v10321_v15  ;;  %v10375_v41 = vld [vmem:[#allocation86_spill] sm:$0xff]  ;;  %v10376_v15 = vld [vmem:[#allocation87_spill] sm:$0xff] }
 0x61f   : > { %3471 = vmatpush.msra.mxu0 %v4955_v37  ;;  %3633 = vmatpush.msrb.mxu1 %v10322_v2  ;;  %v10377_v37 = vld [vmem:[#allocation90_spill] sm:$0xff]  ;;  %v10378_v2 = vld [vmem:[#allocation91_spill] sm:$0xff] }
 0x620   : > { %3511 = vmatpush.msra.mxu2 %v4956_v46  ;;  %3673 = vmatpush.msrb.mxu3 %v10323_v52  ;;  %v10379_v46 = vld [vmem:[#allocation95_spill] sm:$0xff]  ;;  %v10380_v52 = vld [vmem:[#allocation96_spill] sm:$0xff] }
 0x621   : > { %3472 = vmatpush.msra.mxu0 %v4957_v62  ;;  %3634 = vmatpush.msrb.mxu1 %v10324_v33  ;;  %v10381_v62 = vld [vmem:[#allocation102_spill] sm:$0xff]  ;;  %v10382_v33 = vld [vmem:[#allocation103_spill] sm:$0xff] }
 0x622   : > { %3512 = vmatpush.msra.mxu2 %v4958_v11  ;;  %3674 = vmatpush.msrb.mxu3 %v10325_v23  ;;  %v10383_v11 = vld [vmem:[#allocation106_spill] sm:$0xff]  ;;  %v10384_v23 = vld [vmem:[#allocation107_spill] sm:$0xff] }
 0x623   : > { %3473 = vmatpush.msra.mxu0 %v4959_v49  ;;  %3635 = vmatpush.msrb.mxu1 %v10326_v26  ;;  %v10385_v49 = vld [vmem:[#allocation110_spill] sm:$0xff]  ;;  %v10386_v26 = vld [vmem:[#allocation111_spill] sm:$0xff] }
 0x624   : > { %3513 = vmatpush.msra.mxu2 %v4960_v51  ;;  %3474 = vmatmul.f32.vlgmr.msra.gmra.mxu0 %v8639_v40  ;;  %v10387_v51 = vld [vmem:[#allocation112_spill] sm:$0xff] }
 0x625   : > { %3514 = vmatmul.f32.vlgmr.msra.gmra.mxu2 %v8639_v40  ;;  %3675 = vmatpush.msrb.mxu3 %v10327_v17  ;;  %v10342_v40 = vld [vmem:[#allocation79_spill] sm:$0xff]  ;;  %v10388_v17 = vld [vmem:[#allocation114_spill] sm:$0xff] }
 0x626   : > { %3636 = vmatpush.msrb.mxu1 %v10328_v0  ;;  %3605 = vmatpush.msrb.mxu0 %v10329_v16  ;;  %v10389_v0 = vld [vmem:[#allocation117_spill] sm:$0xff]  ;;  %v10390_v16 = vld [vmem:[#allocation119_spill] sm:$0xff] }
 0x627   : > { %3676 = vmatpush.msrb.mxu3 %v10330_v48  ;;  %3645 = vmatpush.msrb.mxu2 %v10331_v38  ;;  %v10391_v48 = vld [vmem:[#allocation123_spill] sm:$0xff]  ;;  %v10392_v38 = vld [vmem:[#allocation124_spill] sm:$0xff] }
 0x628   : > { %3637 = vmatpush.msrb.mxu1 %v10332_v21  ;;  %3606 = vmatpush.msrb.mxu0 %v10333_v34  ;;  %v10393_v21 = vld [vmem:[#allocation125_spill] sm:$0xff]  ;;  %v10394_v34 = vld [vmem:[#allocation28_spill] sm:$0xff] }
 0x629   : > { %3677 = vmatpush.msrb.mxu3 %v10334_v4  ;;  %3646 = vmatpush.msrb.mxu2 %v10335_v10  ;;  %v10395_v4 = vld [vmem:[#allocation39_spill] sm:$0xff] }
 0x62a   : > { %3638 = vmatpush.msrb.mxu1 %v10336_v50  ;;  %3607 = vmatpush.msrb.mxu0 %v10337_v57  ;;  %v10396_v10 = vld [vmem:[#allocation27_spill] sm:$0xff]  ;;  %v10397_v50 = vld [vmem:[#allocation38_spill] sm:$0xff] }
 0x62b   : > { %3678 = vmatpush.msrb.mxu3 %v10338_v61  ;;  %3647 = vmatpush.msrb.mxu2 %v10339_v9  ;;  %v10398_v57 = vld [vmem:[#allocation18_spill] sm:$0xff]  ;;  %v10399_v61 = vld [vmem:[#allocation19_spill] sm:$0xff]  ;;  %v10400_v9 = vld [vmem:[#allocation20_spill] sm:$0xff] }
 0x62c   : > { %3639 = vmatpush.msrb.mxu1 %v10340_v1  ;;  %3608 = vmatpush.msrb.mxu0 %v10341_v27  ;;  %v10401_v1 = vld [vmem:[#allocation21_spill] sm:$0xff]  ;;  %v10402_v27 = vld [vmem:[#allocation22_spill] sm:$0xff] }
 0x62d   : > { %3679 = vmatpush.msrb.mxu3 %v10342_v40  ;;  %3648 = vmatpush.msrb.mxu2 %v10343_v39  ;;  %v10403_v40 = vld [vmem:[#allocation23_spill] sm:$0xff]  ;;  %v10404_v39 = vld [vmem:[#allocation24_spill] sm:$0xff] }
 0x62e   : > { %3640 = vmatpush.msrb.mxu1 %v10344_v19  ;;  %3609 = vmatpush.msrb.mxu0 %v10345_v12  ;;  %v10405_v19 = vld [vmem:[#allocation25_spill] sm:$0xff]  ;;  %v10406_v12 = vld [vmem:[#allocation26_spill] sm:$0xff] }
 0x62f   : > { %3680 = vmatpush.msrb.mxu3 %v10346_v13  ;;  %3649 = vmatpush.msrb.mxu2 %v10347_v45  ;;  %v10407_v13 = vld [vmem:[#allocation132_spill] sm:$0xff]  ;;  %v10408_v45 = vld [vmem:[#allocation133_spill] sm:$0xff] }
 0x630   : > { %3705 = vmatpush.msra.mxu1 %v10348_v30  ;;  %3610 = vmatpush.msrb.mxu0 %v10350_v31  ;;  %v10409_v30 = vld [vmem:[#allocation134_spill] sm:$0xff]  ;;  %v10411_v31 = vld [vmem:[#allocation136_spill] sm:$0xff] }
 0x631   : > { %3745 = vmatpush.msra.mxu3 %v10349_v3  ;;  %3650 = vmatpush.msrb.mxu2 %v10351_v43  ;;  %v10410_v3 = vld [vmem:[#allocation135_spill] sm:$0xff]  ;;  %v10412_v43 = vld [vmem:[#allocation137_spill] sm:$0xff] }
 0x632   : > { %3706 = vmatpush.msra.mxu1 %v10352_v58  ;;  %3611 = vmatpush.msrb.mxu0 %v10354_v35  ;;  %v10413_v58 = vld [vmem:[#allocation138_spill] sm:$0xff]  ;;  %v10415_v35 = vld [vmem:[#allocation140_spill] sm:$0xff] }
 0x633   : > { %3746 = vmatpush.msra.mxu3 %v10353_v24  ;;  %3651 = vmatpush.msrb.mxu2 %v10355_v60  ;;  %v10414_v24 = vld [vmem:[#allocation139_spill] sm:$0xff]  ;;  %v10416_v60 = vld [vmem:[#allocation141_spill] sm:$0xff] }
 0x634   : > { %3707 = vmatpush.msra.mxu1 %v10356_v47  ;;  %3612 = vmatpush.msrb.mxu0 %v10358_v42  ;;  %v10417_v47 = vld [vmem:[#allocation142_spill] sm:$0xff]  ;;  %v10419_v42 = vld [vmem:[#allocation144_spill] sm:$0xff] }
 0x635   : > { %3747 = vmatpush.msra.mxu3 %v10357_v20  ;;  %3652 = vmatpush.msrb.mxu2 %v10359_v56  ;;  %v10418_v20 = vld [vmem:[#allocation143_spill] sm:$0xff]  ;;  %v10420_v56 = vld [vmem:[#allocation145_spill] sm:$0xff] }
 0x636   : > { %3708 = vmatpush.msra.mxu1 %v10360_v25  ;;  %3613 = vmatpush.msrb.mxu0 %v10362_v18  ;;  %v10421_v25 = vld [vmem:[#allocation146_spill] sm:$0xff]  ;;  %v10423_v18 = vld [vmem:[#allocation148_spill] sm:$0xff] }
 0x637   : > { %3748 = vmatpush.msra.mxu3 %v10361_v14  ;;  %3653 = vmatpush.msrb.mxu2 %v10363_v8  ;;  %v10422_v14 = vld [vmem:[#allocation147_spill] sm:$0xff]  ;;  %v10424_v8 = vld [vmem:[#allocation149_spill] sm:$0xff] }
 0x638   : > { %3709 = vmatpush.msra.mxu1 %v10364_v54  ;;  %3614 = vmatpush.msrb.mxu0 %v10366_v55  ;;  %v10425_v54 = vld [vmem:[#allocation150_spill] sm:$0xff]  ;;  %v10427_v55 = vld [vmem:[#allocation152_spill] sm:$0xff] }
 0x639   : > { %3749 = vmatpush.msra.mxu3 %v10365_v22  ;;  %3654 = vmatpush.msrb.mxu2 %v10367_v7  ;;  %v10426_v22 = vld [vmem:[#allocation151_spill] sm:$0xff]  ;;  %v10428_v7 = vld [vmem:[#allocation153_spill] sm:$0xff] }
 0x63a   : > { %3710 = vmatpush.msra.mxu1 %v10368_v44  ;;  %3615 = vmatpush.msrb.mxu0 %v10370_v32  ;;  %v10429_v44 = vld [vmem:[#allocation154_spill] sm:$0xff]  ;;  %v10431_v32 = vld [vmem:[#allocation156_spill] sm:$0xff] }
 0x63b   : > { %3750 = vmatpush.msra.mxu3 %v10369_v59  ;;  %3655 = vmatpush.msrb.mxu2 %v10371_v28  ;;  %v10430_v59 = vld [vmem:[#allocation155_spill] sm:$0xff]  ;;  %v10432_v28 = vld [vmem:[#allocation157_spill] sm:$0xff] }
 0x63c   : > { %3711 = vmatpush.msra.mxu1 %v10372_v6  ;;  %3616 = vmatpush.msrb.mxu0 %v10374_v29  ;;  %v10433_v6 = vld [vmem:[#allocation158_spill] sm:$0xff] }
 0x63d   : > { %3751 = vmatpush.msra.mxu3 %v10373_v63  ;;  %3656 = vmatpush.msrb.mxu2 %v10375_v41  ;;  %v10434_v41 = vld [vmem:[#allocation29_spill] sm:$0xff] }
 0x63e   : > { %3712 = vmatpush.msra.mxu1 %v10376_v15  ;;  %3617 = vmatpush.msrb.mxu0 %v10378_v2 }
 0x63f   : > { %3752 = vmatpush.msra.mxu3 %v10377_v37  ;;  %3657 = vmatpush.msrb.mxu2 %v10379_v46 }
 0x640   : > { %3713 = vmatpush.msra.mxu1 %v10380_v52  ;;  %3618 = vmatpush.msrb.mxu0 %v10382_v33  ;;  %v10435_v33 = vld [vmem:[#allocation30_spill] sm:$0xff] }
 0x641   : > { %3753 = vmatpush.msra.mxu3 %v10381_v62  ;;  %3658 = vmatpush.msrb.mxu2 %v10383_v11 }
 0x642   : > { %3714 = vmatpush.msra.mxu1 %v10384_v23  ;;  %3619 = vmatpush.msrb.mxu0 %v10386_v26  ;;  %v10437_v26 = vld [vmem:[#allocation122_spill] sm:$0xff] }
 0x643   : > { %3754 = vmatpush.msra.mxu3 %v10385_v49  ;;  %3659 = vmatpush.msrb.mxu2 %v10387_v51  ;;  %v10436_v49 = vld [vmem:[#allocation127_spill] sm:$0xff] }
 0x644   : > { %3715 = vmatpush.msra.mxu1 %v10388_v17  ;;  %3620 = vmatpush.msrb.mxu0 %v10390_v16  ;;  %v507_v51 = vadd.f32 %v10437_v26, %v10436_v49 }
 0x645   : > { %3755 = vmatpush.msra.mxu3 %v10389_v0  ;;  %3660 = vmatpush.msrb.mxu2 %v10391_v48 }
 0x646   : > { %3716 = vmatpush.msra.mxu1 %v10392_v38  ;;  %3685 = vmatpush.msra.mxu0 %v10394_v34 }
 0x647   : > { %3756 = vmatpush.msra.mxu3 %v10393_v21  ;;  %3725 = vmatpush.msra.mxu2 %v10395_v4 }
 0x648   : > { %3717 = vmatpush.msra.mxu1 %v10396_v10  ;;  %3686 = vmatpush.msra.mxu0 %v10398_v57  ;;  %v10438_v10 = vld [vmem:[#allocation31_spill] sm:$0xff] }
 0x649   : > { %3757 = vmatpush.msra.mxu3 %v10397_v50  ;;  %3726 = vmatpush.msra.mxu2 %v10399_v61 }
 0x64a   : > { %3718 = vmatpush.msra.mxu1 %v10400_v9  ;;  %3687 = vmatpush.msra.mxu0 %v10402_v27 }
 0x64b   : > { %3758 = vmatpush.msra.mxu3 %v10401_v1  ;;  %3727 = vmatpush.msra.mxu2 %v10403_v40  ;;  %v10439_v40 = vld [vmem:[#allocation130_spill] sm:$0xff] }
 0x64c   : > { %3719 = vmatpush.msra.mxu1 %v10404_v39  ;;  %3688 = vmatpush.msra.mxu0 %v10406_v12  ;;  %v10440_v39 = vld [vmem:[#allocation129_spill] sm:$0xff] }
 0x64d   : > { %3759 = vmatpush.msra.mxu3 %v10405_v19  ;;  %3728 = vmatpush.msra.mxu2 %v10407_v13  ;;  %v589_v19 = vadd.f32 %v10440_v39, %v10439_v40 }
 0x64e   : > { %3720 = vmatpush.msra.mxu1 %v10408_v45  ;;  %3689 = vmatpush.msra.mxu0 %v10410_v3  ;;  %v10441_v45 = vld [vmem:[#allocation32_spill] sm:$0xff] }
 0x64f   : > { %3760 = vmatpush.msra.mxu3 %v10409_v30  ;;  %3729 = vmatpush.msra.mxu2 %v10411_v31 }
 0x650   : > { %3690 = vmatpush.msra.mxu0 %v10412_v43 }
 0x651   : > { %3730 = vmatpush.msra.mxu2 %v10413_v58 }
 0x652   : > { %3691 = vmatpush.msra.mxu0 %v10414_v24 }
 0x653   : > { %3731 = vmatpush.msra.mxu2 %v10415_v35 }
 0x654   : > { %3692 = vmatpush.msra.mxu0 %v10416_v60 }
 0x655   : > { %3732 = vmatpush.msra.mxu2 %v10417_v47 }
 0x656   : > { %3693 = vmatpush.msra.mxu0 %v10418_v20 }
 0x657   : > { %3733 = vmatpush.msra.mxu2 %v10419_v42 }
 0x658   : > { %3694 = vmatpush.msra.mxu0 %v10420_v56 }
 0x659   : > { %3734 = vmatpush.msra.mxu2 %v10421_v25 }
 0x65a   : > { %3695 = vmatpush.msra.mxu0 %v10422_v14 }
 0x65b   : > { %3735 = vmatpush.msra.mxu2 %v10423_v18 }
 0x65c   : > { %3696 = vmatpush.msra.mxu0 %v10424_v8 }
 0x65d   : > { %3736 = vmatpush.msra.mxu2 %v10425_v54 }
 0x65e   : > { %3697 = vmatpush.msra.mxu0 %v10426_v22  ;;  %v10442_v22 = vld [vmem:[#allocation126_spill] sm:$0xff] }
 0x65f   : > { %3737 = vmatpush.msra.mxu2 %v10427_v55  ;;  %v10443_v55 = vld [vmem:[#allocation121_spill] sm:$0xff] }
 0x660   : > { %3698 = vmatpush.msra.mxu0 %v10428_v7  ;;  %v466_v7 = vadd.f32 %v10443_v55, %v10442_v22 }
 0x661   : > { %3738 = vmatpush.msra.mxu2 %v10429_v44 }
 0x662   : > { %3699 = vmatpush.msra.mxu0 %v10430_v59 }
 0x663   : > { %3739 = vmatpush.msra.mxu2 %v10431_v32 }
 0x664   : > { %3700 = vmatpush.msra.mxu0 %v10432_v28 }
 0x665   : > { %3740 = vmatpush.msra.mxu2 %v10433_v6 }
 0x668   : > { %v3267_v63 = vpop.f32.mrf.mxu1 }
 0x66e   : > { %v3307_v37 = vpop.f32.mrf.mxu3 }
 0x670   : > { %v3347_v2 = vpop.f32.mrf.mxu1 }
 0x676   : > { %v3387_v16 = vpop.f32.mrf.mxu3 }
 0x680   : > { %v3247_v29 = vpop.f32.mrf.mxu0 }
 0x681   : > { %v3248_v15 = vadd.f32 %v3247_v29, %v10434_v41 }
 0x683   : > { %v3268_v46 = vadd.f32 %v3267_v63, %v3248_v15 }
 0x685   : > { %v4033_v52 = vmul.f32 -1.442695, %v3268_v46 }
 0x686   : > { %v3287_v62 = vpop.f32.mrf.mxu2 }
 0x687   : > { %4305 = vpow2.f32 %v4033_v52  ;;  %v3288_v11 = vadd.f32 %v3287_v62, %v10435_v33 }
 0x689   : > { %v3308_v23 = vadd.f32 %v3307_v37, %v3288_v11  ;;  %v3327_v61 = vpop.f32.mrf.mxu0 }
 0x68a   : > { %v3495_v17 = vpop.f32.mrf.mxu1  ;;  %v3328_v30 = vadd.f32 %v3327_v61, %v10441_v45 }
 0x68b   : > { %v4034_v0 = vmul.f32 -1.442695, %v3308_v23  ;;  %v3539_v48 = vadd.f32 %v3495_v17, %v507_v51 }
 0x68c   : > { %v3348_v24 = vadd.f32 %v3347_v2, %v3328_v30 }
 0x68d   : > { %v4306_v38 = vpop.eup %4305  ;;  %4307 = vpow2.f32 %v4034_v0  ;;  %v4037_v4 = vmul.f32 -1.442695, %v3539_v48 }
 0x68e   : > { %v3393_v21 = vadd.f32 1.0, %v4306_v38 }
 0x68f   : > { %v3367_v34 = vpop.f32.mrf.mxu2 }
 0x690   : > { %4309 = vrcp.f32 %v3393_v21  ;;  %v3368_v50 = vadd.f32 %v3367_v34, %v10438_v10  ;;  %v3405_v14 = vand.u32 2147483648, %v3393_v21  ;;  %vm3399_vm14 = vweird.f32 %v3393_v21 }
 0x691   : > { %4311 = vpow2.f32 %v4037_v4  ;;  %v3535_v27 = vpop.f32.mrf.mxu3  ;;  %v3403_v54 = vand.u32 2147483647, %v3393_v21 }
 0x692   : > { %v3388_v9 = vadd.f32 %v3387_v16, %v3368_v50  ;;  %v3541_v31 = vadd.f32 %v3535_v27, %v589_v19  ;;  %v3406_v29 = vor.u32 1.1754944e-38, %v3405_v14 }
 0x693   : > { %v4308_v57 = vpop.eup %4307  ;;  %vm3404_vm2 = vcmp.eq.f32.partialorder %v3403_v54, 8.507059e+37 }
 0x694   : > { %v3412_v1 = vadd.f32 1.0, %v4308_v57  ;;  %v4035_v12 = vmul.f32 -1.442695, %v3388_v9  ;;  %v4038_v60 = vmul.f32 -1.442695, %v3541_v31 }
 0x696   : > { %v4310_v13 = vpop.eup %4309  ;;  %4313 = vrcp.f32 %v3412_v1  ;;  %v3424_v44 = vand.u32 2147483648, %v3412_v1  ;;  %v3422_v32 = vand.u32 2147483647, %v3412_v1  ;;  %vm3418_vm1 = vweird.f32 %v3412_v1 }
 0x697   : > { %v3395_v3 = vmul.f32 %v4310_v13, %v3393_v21  ;;  %4315 = vpow2.f32 %v4035_v12  ;;  %v4312_v58 = vpop.eup %4311  ;;  %vm3400_vm13 = vweird.f32 %v4310_v13 }
 0x698   : > { %v8795_v25 = vadd.f32 1.0, %v4312_v58  ;;  %4317 = vtanh.f32 %v3348_v24  ;;  %vm8799_vm15 = vmor %vm3399_vm14, %vm3400_vm13  ;;  %v3425_v46 = vor.u32 1.1754944e-38, %v3424_v44  ;;  %vm3423_vm4 = vcmp.eq.f32.partialorder %v3422_v32, 8.507059e+37 }
 0x699   : > { %v3396_v43 = vsub.f32 1.0, %v3395_v3  ;;  %4319 = vpow2.f32 %v4038_v60  ;;  %v10446_v3 = vld [vmem:[#allocation131_spill] sm:$0xff] }
 0x69a   : > { %v548_v31 = vadd.f32 %v10446_v3, %v5859_v5  ;;  %vm3570_vm10 = vweird.f32 %v8795_v25 }
 0x69b   : > { %v3397_v35 = vmul.f32 %v4310_v13, %v3396_v43 }
 0x69c   : > { %v4314_v47 = vpop.eup %4313 }
 0x69d   : > { %v4316_v20 = vpop.eup %4315  ;;  %v3414_v42 = vmul.f32 %v4314_v47, %v3412_v1  ;;  %v3398_v56 = vadd.f32 %v4310_v13, %v3397_v35  ;;  %vm3419_vm0 = vweird.f32 %v4314_v47 }
 0x69e   : > { %v3432_v18 = vadd.f32 1.0, %v4316_v20  ;;  %v4318_v2 = vpop.eup %4317  ;;  %vm3420_vm3 = vmor %vm3418_vm1, %vm3419_vm0 }
 0x69f   : > { %v3415_v8 = vsub.f32 1.0, %v3414_v42  ;;  %v3402_v6 = vsel %vm8799_vm15, %v4310_v13, %v3398_v56  ;;  %v4320_v62 = vpop.eup %4319  ;;  %v3574_v56 = vand.u32 2147483647, %v8795_v25 }
 0x6a0   : > { %4321 = vrcp.f32 %v3432_v18  ;;  %v3407_v52 = vsel %vm3404_vm2, %v3406_v29, %v3402_v6  ;;  %v8810_v34 = vadd.f32 1.0, %v4320_v62  ;;  %v3444_v50 = vand.u32 2147483648, %v3432_v18 }
 0x6a1   : > { %v3416_v28 = vmul.f32 %v4314_v47, %v3415_v8  ;;  %4323 = vrcp.f32 %v8795_v25  ;;  %v3475_v63 = vpop.f32.mrf.mxu0  ;;  %v3449_v0 = vmul.f32 %v4318_v2, %v3407_v52  ;;  %v3442_v57 = vand.u32 2147483647, %v3432_v18 }
 0x6a2   : > { %v3538_v37 = vadd.f32 %v3475_v63, %v466_v7  ;;  %vm3438_vm6 = vweird.f32 %v3432_v18  ;;  %v3445_v40 = vor.u32 1.1754944e-38, %v3444_v50  ;;  %vm3575_vm14 = vcmp.eq.f32.partialorder %v3574_v56, 8.507059e+37 }
 0x6a3   : > { %v3417_v15 = vadd.f32 %v4314_v47, %v3416_v28  ;;  %vm3443_vm8 = vcmp.eq.f32.partialorder %v3442_v57, 8.507059e+37  ;;  %v3596_v2 = vand.u32 2147483648, %v8810_v34  ;;  %vm3590_vm2 = vweird.f32 %v8810_v34 }
 0x6a4   : > { %v4036_v23 = vmul.f32 -1.442695, %v3538_v37 }
 0x6a5   : > { %v3421_v11 = vsel %vm3420_vm3, %v4314_v47, %v3417_v15  ;;  %v3576_v47 = vand.u32 2147483648, %v8795_v25  ;;  %v3597_v62 = vor.u32 1.1754944e-38, %v3596_v2 }
 0x6a6   : > { %v4322_v49 = vpop.eup %4321  ;;  %v3426_v26 = vsel %vm3423_vm4, %v3425_v46, %v3421_v11  ;;  %4325 = vpow2.f32 %v4036_v23  ;;  %v3594_v46 = vand.u32 2147483647, %v8810_v34 }
 0x6a7   : > { %v4324_v51 = vpop.eup %4323  ;;  %v3448_v17 = vmul.f32 %v3426_v26, %v8579_v36  ;;  %v3434_v16 = vmul.f32 %v4322_v49, %v3432_v18  ;;  %vm3439_vm5 = vweird.f32 %v4322_v49  ;;  %v3577_v22 = vor.u32 1.1754944e-38, %v3576_v47 }
 0x6a8   : > { %v3566_v21 = vmul.f32 %v4324_v51, %v8795_v25  ;;  %vm3440_vm7 = vmor %vm3438_vm6, %vm3439_vm5  ;;  %v3515_v30 = vpop.f32.mrf.mxu2  ;;  %vm3571_vm9 = vweird.f32 %v4324_v51  ;;  %vm3595_vm4 = vcmp.eq.f32.partialorder %v3594_v46, 8.507059e+37 }
 0x6a9   : > { %v8807_v48 = vadd.f32 %v3449_v0, %v3448_v17  ;;  %v3435_v38 = vsub.f32 1.0, %v3434_v16  ;;  %v3540_v24 = vadd.f32 %v3515_v30, %v548_v31  ;;  %vm8820_vm11 = vmor %vm3570_vm10, %vm3571_vm9 }
 0x6aa   : > { %v3567_v1 = vsub.f32 1.0, %v3566_v21 }
 0x6ab   : > { %4327 = vtanh.f32 %v8807_v48  ;;  %v3436_v4 = vmul.f32 %v4322_v49, %v3435_v38 }
 0x6ac   : > { %v4326_v61 = vpop.eup %4325  ;;  %4329 = vrcp.f32 %v8810_v34  ;;  %v3568_v13 = vmul.f32 %v4324_v51, %v3567_v1 }
 0x6ad   : > { %v3437_v9 = vadd.f32 %v4322_v49, %v3436_v4  ;;  %v3545_v36 = vadd.f32 1.0, %v4326_v61 }
 0x6ae   : > { %v3569_v60 = vadd.f32 %v4324_v51, %v3568_v13 }
 0x6af   : > { %v3441_v27 = vsel %vm3440_vm7, %v4322_v49, %v3437_v9  ;;  %4331 = vrcp.f32 %v3545_v36  ;;  %v3557_v5 = vand.u32 2147483648, %v3545_v36  ;;  %v3555_v8 = vand.u32 2147483647, %v3545_v36 }
 0x6b0   : > { %v3446_v19 = vsel %vm3443_vm8, %v3445_v40, %v3441_v27  ;;  %4333 = vtanh.f32 %v3540_v24  ;;  %v3573_v54 = vsel %vm8820_vm11, %v4324_v51, %v3569_v60  ;;  %vm3551_vm13 = vweird.f32 %v3545_v36 }
 0x6b1   : > { %v4328_v39 = vpop.eup %4327  ;;  %v3558_v25 = vor.u32 1.1754944e-38, %v3557_v5  ;;  %v3578_v44 = vsel %vm3575_vm14, %v3577_v22, %v3573_v54  ;;  %vm3556_vm0 = vcmp.eq.f32.partialorder %v3555_v8, 8.507059e+37 }
 0x6b2   : > { %v3452_v12 = vmul.f32 %v4328_v39, %v3446_v19  ;;  %v4330_v43 = vpop.eup %4329  ;;  %v3600_v63 = vmul.f32 %v3578_v44, %v8622_v53 }
 0x6b3   : > { %v3586_v20 = vmul.f32 %v4330_v43, %v8810_v34  ;;  %vm3591_vm1 = vweird.f32 %v4330_v43 }
 0x6b4   : > { %3641 = vmatmul.f32.vlgmr.msrb.gmra.mxu1 %v3452_v12  ;;  %3681 = vmatmul.f32.vlgmr.msrb.gmra.mxu3 %v3452_v12  ;;  %vm3592_vm3 = vmor %vm3590_vm2, %vm3591_vm1 }
 0x6b5   : > { %v4332_v58 = vpop.eup %4331  ;;  %v3587_v55 = vsub.f32 1.0, %v3586_v20 }
 0x6b6   : > { %v3547_v35 = vmul.f32 %v4332_v58, %v3545_v36  ;;  %vm3552_vm12 = vweird.f32 %v4332_v58  ;;  %v4334_v32 = vpop.eup %4333 }
 0x6b7   : > { %vm3553_vm15 = vmor %vm3551_vm13, %vm3552_vm12  ;;  %v3588_v28 = vmul.f32 %v4330_v43, %v3587_v55 }
 0x6b8   : > { %v3548_v42 = vsub.f32 1.0, %v3547_v35 }
 0x6b9   : > { %v3589_v37 = vadd.f32 %v4330_v43, %v3588_v28 }
 0x6ba   : > { %v3549_v18 = vmul.f32 %v4332_v58, %v3548_v42 }
 0x6bb   : > { %v3593_v52 = vsel %vm3592_vm3, %v4330_v43, %v3589_v37 }
 0x6bc   : > { %3721 = vmatmul.f32.vlgmr.msra.gmra.mxu1 %v3452_v12  ;;  %3761 = vmatmul.f32.vlgmr.msra.gmra.mxu3 %v3452_v12  ;;  %v3550_v7 = vadd.f32 %v4332_v58, %v3549_v18  ;;  %v3598_v23 = vsel %vm3595_vm4, %v3597_v62, %v3593_v52 }
 0x6be   : > { %v3554_v59 = vsel %vm3553_vm15, %v4332_v58, %v3550_v7 }
 0x6bf   : > { %v3559_v6 = vsel %vm3556_vm0, %v3558_v25, %v3554_v59 }
 0x6c0   : > { %v3601_v29 = vmul.f32 %v4334_v32, %v3559_v6 }
 0x6c2   : > { %v3602_v15 = vadd.f32 %v3601_v29, %v3600_v63 }
 0x6c4   : > { %4335 = vtanh.f32 %v3602_v15  ;;  %3829 = vst [vmem:[#allocation4] sm:$0xff] %v3602_v15 }
 0x6ca   : > { %v4336_v11 = vpop.eup %4335 }
 0x6cb   : > { %v3604_v49 = vmul.f32 %v4336_v11, %v3598_v23 }
 0x6cd   : > { %3621 = vmatmul.f32.vlgmr.msrb.gmra.mxu0 %v3604_v49  ;;  %3828 = vst [vmem:[#allocation3] sm:$0xff] %v3604_v49  ;;  %3661 = vmatmul.f32.vlgmr.msrb.gmra.mxu2 %v3604_v49 }
 0x6d5   : > { %3701 = vmatmul.f32.vlgmr.msra.gmra.mxu0 %v3604_v49  ;;  %3741 = vmatmul.f32.vlgmr.msra.gmra.mxu2 %v3604_v49 }
 0x731   : > { %v3642_v51 = vpop.f32.mrf.mxu1 }
 0x737   : > { %v3682_v16 = vpop.f32.mrf.mxu3 }
 0x739   : > { %v3722_v3 = vpop.f32.mrf.mxu1 }
 0x73f   : > { %v3762_v36 = vpop.f32.mrf.mxu3 }
 0x74a   : > { %v3622_v53 = vpop.f32.mrf.mxu0 }
 0x74b   : > { %v3623_v26 = vadd.f32 %v3622_v53, %v10434_v41 }
 0x74d   : > { %v3643_v17 = vadd.f32 %v3642_v51, %v3623_v26 }
 0x74f   : > { %v4039_v0 = vmul.f32 -1.442695, %v3643_v17 }
 0x750   : > { %v3662_v38 = vpop.f32.mrf.mxu2 }
 0x751   : > { %4337 = vpow2.f32 %v4039_v0  ;;  %v3663_v21 = vadd.f32 %v3662_v38, %v10435_v33 }
 0x752   : > { %v3702_v39 = vpop.f32.mrf.mxu0 }
 0x753   : > { %v3683_v34 = vadd.f32 %v3682_v16, %v3663_v21  ;;  %v3703_v33 = vadd.f32 %v3702_v39, %v10441_v45 }
 0x755   : > { %v4040_v4 = vmul.f32 -1.442695, %v3683_v34  ;;  %v3723_v58 = vadd.f32 %v3722_v3, %v3703_v33 }
 0x757   : > { %v4338_v50 = vpop.eup %4337  ;;  %4339 = vpow2.f32 %v4040_v4 }
 0x758   : > { %v3768_v57 = vadd.f32 1.0, %v4338_v50  ;;  %v3742_v61 = vpop.f32.mrf.mxu2 }
 0x759   : > { %v3743_v9 = vadd.f32 %v3742_v61, %v10438_v10 }
 0x75a   : > { %4341 = vrcp.f32 %v3768_v57  ;;  %v3780_v60 = vand.u32 2147483648, %v3768_v57  ;;  %vm3774_vm6 = vweird.f32 %v3768_v57  ;;  %v3778_v20 = vand.u32 2147483647, %v3768_v57 }
 0x75b   : > { %v3763_v1 = vadd.f32 %v3762_v36, %v3743_v9 }
 0x75c   : > { %v3781_v5 = vor.u32 1.1754944e-38, %v3780_v60  ;;  %vm3779_vm10 = vcmp.eq.f32.partialorder %v3778_v20, 8.507059e+37 }
 0x75d   : > { %v4340_v41 = vpop.eup %4339  ;;  %v4041_v27 = vmul.f32 -1.442695, %v3763_v1 }
 0x75e   : > { %v3787_v40 = vadd.f32 1.0, %v4340_v41 }
 0x75f   : > { %4343 = vpow2.f32 %v4041_v27 }
 0x760   : > { %v4342_v19 = vpop.eup %4341  ;;  %4345 = vrcp.f32 %v3787_v40  ;;  %v3799_v42 = vand.u32 2147483648, %v3787_v40  ;;  %v3797_v14 = vand.u32 2147483647, %v3787_v40  ;;  %vm3793_vm9 = vweird.f32 %v3787_v40 }
 0x761   : > { %v3770_v12 = vmul.f32 %v4342_v19, %v3768_v57  ;;  %vm3775_vm5 = vweird.f32 %v4342_v19 }
 0x762   : > { %vm3776_vm7 = vmor %vm3774_vm6, %vm3775_vm5  ;;  %v3800_v54 = vor.u32 1.1754944e-38, %v3799_v42  ;;  %vm3798_vm12 = vcmp.eq.f32.partialorder %v3797_v14, 8.507059e+37 }
 0x763   : > { %v3771_v13 = vsub.f32 1.0, %v3770_v12 }
 0x765   : > { %v4344_v30 = vpop.eup %4343  ;;  %v3772_v31 = vmul.f32 %v4342_v19, %v3771_v13 }
 0x766   : > { %v4346_v43 = vpop.eup %4345  ;;  %v3807_v10 = vadd.f32 1.0, %v4344_v30 }
 0x767   : > { %v3789_v24 = vmul.f32 %v4346_v43, %v3787_v40  ;;  %v3773_v35 = vadd.f32 %v4342_v19, %v3772_v31  ;;  %vm3794_vm8 = vweird.f32 %v4346_v43 }
 0x768   : > { %4347 = vrcp.f32 %v3807_v10  ;;  %vm3795_vm11 = vmor %vm3793_vm9, %vm3794_vm8  ;;  %v3819_v15 = vand.u32 2147483648, %v3807_v10  ;;  %vm3813_vm14 = vweird.f32 %v3807_v10  ;;  %v3817_v37 = vand.u32 2147483647, %v3807_v10 }
 0x769   : > { %v3790_v47 = vsub.f32 1.0, %v3789_v24  ;;  %4349 = vtanh.f32 %v3723_v58  ;;  %v3777_v45 = vsel %vm3776_vm7, %v4342_v19, %v3773_v35 }
 0x76a   : > { %v3782_v22 = vsel %vm3779_vm10, %v3781_v5, %v3777_v45  ;;  %v3820_v46 = vor.u32 1.1754944e-38, %v3819_v15  ;;  %vm3818_vm0 = vcmp.eq.f32.partialorder %v3817_v37, 8.507059e+37 }
 0x76b   : > { %v3791_v56 = vmul.f32 %v4346_v43, %v3790_v47 }
 0x76d   : > { %v3792_v18 = vadd.f32 %v4346_v43, %v3791_v56 }
 0x76e   : > { %v4348_v8 = vpop.eup %4347 }
 0x76f   : > { %v3796_v55 = vsel %vm3795_vm11, %v4346_v43, %v3792_v18  ;;  %v3809_v7 = vmul.f32 %v4348_v8, %v3807_v10  ;;  %v4350_v25 = vpop.eup %4349  ;;  %vm3814_vm13 = vweird.f32 %v4348_v8 }
 0x770   : > { %v3801_v44 = vsel %vm3798_vm12, %v3800_v54, %v3796_v55  ;;  %v3824_v32 = vmul.f32 %v4350_v25, %v3782_v22  ;;  %vm3815_vm15 = vmor %vm3813_vm14, %vm3814_vm13 }
 0x771   : > { %v3823_v59 = vmul.f32 %v3801_v44, %v8807_v48  ;;  %v3810_v28 = vsub.f32 1.0, %v3809_v7 }
 0x773   : > { %v3825_v6 = vadd.f32 %v3824_v32, %v3823_v59  ;;  %v3811_v63 = vmul.f32 %v4348_v8, %v3810_v28 }
 0x775   : > { %4351 = vtanh.f32 %v3825_v6  ;;  %3831 = vst [vmem:[#allocation6] sm:$0xff] %v3825_v6  ;;  %v3812_v29 = vadd.f32 %v4348_v8, %v3811_v63 }
 0x777   : > { %v3816_v2 = vsel %vm3815_vm15, %v4348_v8, %v3812_v29 }
 0x778   : > { %v3821_v62 = vsel %vm3818_vm0, %v3820_v46, %v3816_v2 }
 0x77a   : > { %3835 = sbr.rel (%p4042_p8) target bundleno = 2080 (0x820), region = 76 }
 0x77b   : > { %v4352_v52 = vpop.eup %4351 }
 0x77c   : > { %v3827_v11 = vmul.f32 %v4352_v52, %v3821_v62 }
 0x77e   : > { %3830 = vst [vmem:[#allocation5] sm:$0xff] %v3827_v11 }
 0x77f   : > { %v3851_v48 = vld [vmem:[%s8896_s6 + $0x78] sm:$0xff]  ;;  %v3850_v23 = vld [vmem:[%s8896_s6 + $0x70] sm:$0xff]  ;;  %v3849_v49 = vld [vmem:[%s8896_s6 + $0x68] sm:$0xff]  ;;  %vm3876_vm1 = vcmask 7168  }
 0x780   : > { %3856 = vmatpush.msra.mxu0 %v3851_v48  ;;  %v3848_v53 = vld [vmem:[%s8896_s6 + $0x60] sm:$0xff]  ;;  %v3847_v26 = vld [vmem:[%s8896_s6 + $0x58] sm:$0xff]  ;;  %v3846_v51 = vld [vmem:[%s8896_s6 + $0x50] sm:$0xff] }
 0x781   : > { %v3845_v17 = vld [vmem:[%s8896_s6 + $0x48] sm:$0xff]  ;;  %v3844_v0 = vld [vmem:[%s8896_s6 + $0x40] sm:$0xff]  ;;  %v3843_v16 = vld [vmem:[%s8896_s6 + $0x38] sm:$0xff] }
 0x782   : > { %3857 = vmatpush.msra.mxu0 %v3850_v23  ;;  %v3842_v38 = vld [vmem:[%s8896_s6 + $0x30] sm:$0xff]  ;;  %v3841_v21 = vld [vmem:[%s8896_s6 + $0x28] sm:$0xff]  ;;  %v3840_v34 = vld [vmem:[%s8896_s6 + $0x20] sm:$0xff] }
 0x783   : > { %v3839_v4 = vld [vmem:[%s8896_s6 + $0x18] sm:$0xff]  ;;  %v3838_v50 = vld [vmem:[%s8896_s6 + $0x10] sm:$0xff]  ;;  %v3837_v57 = vld [vmem:[%s8896_s6 + $0x8] sm:$0xff] }
 0x784   : > { %3858 = vmatpush.msra.mxu0 %v3849_v49  ;;  %v3836_v61 = vld [vmem:[%s8896_s6] sm:$0xff] }
 0x785   : > { %v4961_v9 = vld [vmem:[#allocation7] ss:$0 sm:$0xff] }
 0x786   : > { %3859 = vmatpush.msra.mxu0 %v3848_v53 }
 0x788   : > { %3860 = vmatpush.msra.mxu0 %v3847_v26 }
 0x78a   : > { %3861 = vmatpush.msra.mxu0 %v3846_v51 }
 0x78c   : > { %3862 = vmatpush.msra.mxu0 %v3845_v17 }
 0x78e   : > { %3863 = vmatpush.msra.mxu0 %v3844_v0 }
 0x790   : > { %3864 = vmatpush.msra.mxu0 %v3843_v16 }
 0x792   : > { %3865 = vmatpush.msra.mxu0 %v3842_v38 }
 0x794   : > { %3866 = vmatpush.msra.mxu0 %v3841_v21 }
 0x796   : > { %3867 = vmatpush.msra.mxu0 %v3840_v34 }
 0x798   : > { %3868 = vmatpush.msra.mxu0 %v3839_v4 }
 0x79a   : > { %3869 = vmatpush.msra.mxu0 %v3838_v50 }
 0x79c   : > { %3870 = vmatpush.msra.mxu0 %v3837_v57 }
 0x79e   : > { %3871 = vmatpush.msra.mxu0 %v3836_v61 }
 0x79f   : > { %3872 = vmatmul.f32.vlgmr.msra.gmra.mxu0 %v3827_v11 }
 0x81c   : > { %v3873_v36 = vpop.f32.mrf.mxu0 }
 0x81d   : > { %v3874_v1 = vadd.f32 %v4961_v9, %v3873_v36 }
 0x81f   : > { %3877 = vst.msk [vmem:[%s8898_s8] sm:$0xff] %vm3876_vm1, %v3874_v1 }
 0x820 PF: > { %s23_s29 = sadd.s32 1, %s5100_s29  }
 0x821   : > { %p20_p9 = scmp.ge.s32.totalorder %s23_s29, 4  }
 0x823   :  { %22 = sbr.rel (!%p20_p9) target bundleno = 6 (0x6), region = 110 }
 0x828   :  { %3889 = vsyncpa [#allocation9], 1 }
 0x829   :  { %3891 = vsyncpa [#allocation9 + $0x1], 1 }
 0x82a   :  { %3892 = vsyncpa [#allocation11], 1 }
 0x82b   :  { %3893 = vsyncpa [#allocation14], 1 }

</bundles_post_ra>
